<compile_context>
chip_gen: v7x
topology: tpu7x:2x2x1
jax: 0.10.0
libtpu: 0.0.40
codegen_flags: <defaults>
</compile_context>

<pallas_src>
from functools import partial

import jax
import jax.numpy as jnp
from jax.experimental import pallas as pl
from jax.experimental.pallas import tpu as pltpu

F32 = jnp.float32
BF16 = jnp.bfloat16
_VMEM_LIMIT = 32 * 1024 * 1024  # safe on v5e/v6e/v7x (v7x physical VMEM = 64 MiB)


def _round_up(x, m):
    return (x + m - 1) // m * m


def _divisor_tile(dim, cap, quantum):
    """Largest multiple of `quantum` <= cap that divides `dim` (dim % quantum == 0)."""
    t = min(cap, dim)
    t -= t % quantum
    while dim % t:
        t -= quantum
    return t


# -----------------------------------------------------------------------------
# Tiled GEMM (+bias, optional fused residual)
# -----------------------------------------------------------------------------
def _gemm_kernel(x_ref, w_ref, b_ref, o_ref, acc_ref):
    @pl.when(pl.program_id(2) == 0)
    def _():
        acc_ref[...] = jnp.zeros_like(acc_ref)

    acc_ref[...] += jnp.dot(x_ref[...], w_ref[...],
                            preferred_element_type=jnp.float32)

    @pl.when(pl.program_id(2) == pl.num_programs(2) - 1)
    def _():
        o_ref[...] = acc_ref[...] + b_ref[...]


def _gemm_res_kernel(x_ref, w_ref, b_ref, r_ref, o_ref, acc_ref):
    @pl.when(pl.program_id(2) == 0)
    def _():
        acc_ref[...] = jnp.zeros_like(acc_ref)

    acc_ref[...] += jnp.dot(x_ref[...], w_ref[...],
                            preferred_element_type=jnp.float32)

    @pl.when(pl.program_id(2) == pl.num_programs(2) - 1)
    def _():
        o_ref[...] = acc_ref[...] + b_ref[...] + r_ref[...]


def linear_rows(x, w, b, residual=None, keep_n_pad=False):
    """y = x @ w + b (+ residual).  x:(M,K), w:(K,N), b:(N,), residual:(M,<=Npad)."""
    M, K = x.shape
    N = w.shape[1]
    Kp = _round_up(K, 128)
    Np = _round_up(N, 128)
    tm = min(512, _round_up(M, 8))
    Mp = _round_up(M, tm)
    tn = _divisor_tile(Np, 256, 128)
    tk = _divisor_tile(Kp, 1024, 128)

    xb = jnp.pad(x.astype(F32), ((0, Mp - M), (0, Kp - K))).astype(BF16)
    wb = jnp.pad(w.astype(F32), ((0, Kp - K), (0, Np - N))).astype(BF16)
    bb = jnp.pad(b.astype(F32), (0, Np - N)).reshape(1, Np)

    in_specs = [
        pl.BlockSpec((tm, tk), lambda i, j, k: (i, k)),
        pl.BlockSpec((tk, tn), lambda i, j, k: (k, j)),
        pl.BlockSpec((1, tn), lambda i, j, k: (0, j)),
    ]
    args = [xb, wb, bb]
    kernel = _gemm_kernel
    if residual is not None:
        rN = residual.shape[1]
        rb = jnp.pad(residual.astype(F32), ((0, Mp - M), (0, Np - rN)))
        in_specs.append(pl.BlockSpec((tm, tn), lambda i, j, k: (i, j)))
        args.append(rb)
        kernel = _gemm_res_kernel

    out = pl.pallas_call(
        kernel,
        out_shape=jax.ShapeDtypeStruct((Mp, Np), F32),
        grid=(Mp // tm, Np // tn, Kp // tk),
        in_specs=in_specs,
        out_specs=pl.BlockSpec((tm, tn), lambda i, j, k: (i, j)),
        scratch_shapes=[pltpu.VMEM((tm, tn), F32)],
        compiler_params=pltpu.CompilerParams(
            dimension_semantics=("parallel", "parallel", "arbitrary"),
            vmem_limit_bytes=_VMEM_LIMIT),
    )(*args)
    if keep_n_pad:
        return out[:M, :]
    return out[:M, :N]


def _conv1x1_weight(w):
    """(Cout, Cin, 1, 1) torch weight -> (Cin, Cout) GEMM weight."""
    return jnp.transpose(w.reshape(w.shape[0], w.shape[1]))


# -----------------------------------------------------------------------------
# Direct 3x3 stride-1 conv (no HBM im2col): 9 in-VMEM taps -> bf16 MXU matmuls
# -----------------------------------------------------------------------------
def _conv3x3_kernel(*refs, ho, wo, cin, has_res):
    if has_res:
        x_ref, w_ref, b_ref, r_ref, o_ref = refs
    else:
        x_ref, w_ref, b_ref, o_ref = refs
        r_ref = None
    tn = o_ref.shape[-1]
    acc = jnp.zeros((ho * wo, tn), jnp.float32)
    for di in range(3):
        for dj in range(3):
            t = di * 3 + dj
            patch = x_ref[0, pl.ds(di, ho), pl.ds(dj, wo), :]       # (ho, wo, cin)
            patch = patch.reshape(ho * wo, cin).astype(BF16)
            acc = acc + jnp.dot(patch, w_ref[t * cin:(t + 1) * cin, :],
                                preferred_element_type=jnp.float32)
    y = acc + b_ref[...]
    if has_res:
        y = y + r_ref[0]
    o_ref[0] = y


def conv3x3(x_nhwc, w, b, residual_rows=None):
    """3x3 stride-1 pad-1 conv on NHWC.  w: (Cout, Cin, 3, 3) torch layout.
    Optional residual_rows (B*H*W, C<=Cout_pad) fused into the epilogue."""
    B, H, W_, Cin = x_nhwc.shape
    Cout = w.shape[0]
    Cin_p = _round_up(Cin, 8)
    Cout_p = _round_up(Cout, 128)
    Hp, Wp = H + 2, W_ + 2
    HWo = H * W_

    xp = jnp.pad(x_nhwc.astype(F32),
                 ((0, 0), (1, 1), (1, 1), (0, Cin_p - Cin)))
    wt = jnp.transpose(w.astype(F32), (2, 3, 1, 0))                  # (3,3,Cin,Cout)
    wt = jnp.pad(wt, ((0, 0), (0, 0), (0, Cin_p - Cin), (0, Cout_p - Cout)))
    wt = wt.reshape(9 * Cin_p, Cout_p).astype(BF16)
    bb = jnp.pad(b.astype(F32), (0, Cout_p - Cout)).reshape(1, Cout_p)

    tn = _divisor_tile(Cout_p, 256, 128)
    in_specs = [
        pl.BlockSpec((1, Hp, Wp, Cin_p), lambda bi, j: (bi, 0, 0, 0)),
        pl.BlockSpec((9 * Cin_p, tn), lambda bi, j: (0, j)),
        pl.BlockSpec((1, tn), lambda bi, j: (0, j)),
    ]
    args = [xp, wt, bb]
    has_res = residual_rows is not None
    if has_res:
        rN = residual_rows.shape[-1]
        rr = jnp.pad(residual_rows.astype(F32).reshape(B, HWo, rN),
                     ((0, 0), (0, 0), (0, Cout_p - rN)))
        in_specs.append(pl.BlockSpec((1, HWo, tn), lambda bi, j: (bi, 0, j)))
        args.append(rr)

    out = pl.pallas_call(
        partial(_conv3x3_kernel, ho=H, wo=W_, cin=Cin_p, has_res=has_res),
        out_shape=jax.ShapeDtypeStruct((B, HWo, Cout_p), F32),
        grid=(B, Cout_p // tn),
        in_specs=in_specs,
        out_specs=pl.BlockSpec((1, HWo, tn), lambda bi, j: (bi, 0, j)),
        compiler_params=pltpu.CompilerParams(
            dimension_semantics=("parallel", "parallel"),
            vmem_limit_bytes=_VMEM_LIMIT),
    )(*args)
    return out[:, :, :Cout].reshape(B, H, W_, Cout)


def downsample_conv(x_nhwc, w, b):
    """F.pad(0,1,0,1) + Conv2d(k=3, stride=2, padding=0).
    # TODO(synk): stride-2 window gather still uses host-side im2col (once per
    # level); only the GEMM runs in Pallas."""
    B, H, W_, Cin = x_nhwc.shape
    Cout = w.shape[0]
    xp = jnp.pad(x_nhwc.astype(F32), ((0, 0), (0, 1), (0, 1), (0, 0)))
    Ho = (H - 2) // 2 + 1
    Wo = (W_ - 2) // 2 + 1
    cols = []
    for di in range(3):
        for dj in range(3):
            cols.append(xp[:, di:di + 2 * (Ho - 1) + 1:2,
                           dj:dj + 2 * (Wo - 1) + 1:2, :])
    rows = jnp.concatenate(cols, axis=-1).reshape(B * Ho * Wo, 9 * Cin)
    w2 = jnp.transpose(w.astype(F32), (2, 3, 1, 0)).reshape(9 * Cin, Cout)
    y = linear_rows(rows, w2, b)
    return y.reshape(B, Ho, Wo, Cout)


# -----------------------------------------------------------------------------
# GroupNorm (+ optional fused swish), NHWC, group stats via tiny 0/1 matmuls
# -----------------------------------------------------------------------------
def _group_norm_kernel(x_ref, gmap_ref, gmapt_ref, g_ref, b_ref, o_ref,
                       *, eps, inv_n, swish):
    x = x_ref[0]                                       # (HW, C) f32
    gmap = gmap_ref[...]                               # (C, G) one-hot
    gmapt = gmapt_ref[...]                             # (G, C)
    s1 = jnp.sum(x, axis=0, keepdims=True)             # (1, C)
    mean_g = jnp.dot(s1, gmap, preferred_element_type=jnp.float32) * inv_n
    mean_c = jnp.dot(mean_g, gmapt, preferred_element_type=jnp.float32)
    d = x - mean_c
    s2 = jnp.sum(d * d, axis=0, keepdims=True)
    var_g = jnp.dot(s2, gmap, preferred_element_type=jnp.float32) * inv_n
    var_c = jnp.dot(var_g, gmapt, preferred_element_type=jnp.float32)
    y = d * jax.lax.rsqrt(var_c + eps)
    y = y * g_ref[...] + b_ref[...]
    if swish:
        y = y * jax.nn.sigmoid(y)
    o_ref[0] = y


def group_norm(x_nhwc, gamma, beta, *, num_groups=32, eps=1e-6, swish=False):
    """torch.nn.GroupNorm(32, C, eps=1e-6, affine=True); optional fused x*sigmoid(x).
    # TODO(synk): one batch image per grid step; very large H*W*C would need a
    # two-pass tiled-stats variant."""
    B, H, W_, C = x_nhwc.shape
    G = num_groups
    cpg = C // G
    HW = H * W_
    x3 = x_nhwc.astype(F32).reshape(B, HW, C)
    ch_group = jnp.arange(C, dtype=jnp.int32) // cpg
    gmap = (ch_group[:, None] == jnp.arange(G, dtype=jnp.int32)[None, :]).astype(F32)
    gmapt = jnp.transpose(gmap)
    g2 = gamma.astype(F32).reshape(1, C)
    b2 = beta.astype(F32).reshape(1, C)

    out = pl.pallas_call(
        partial(_group_norm_kernel, eps=eps, inv_n=1.0 / float(HW * cpg),
                swish=swish),
        out_shape=jax.ShapeDtypeStruct((B, HW, C), F32),
        grid=(B,),
        in_specs=[
            pl.BlockSpec((1, HW, C), lambda bi: (bi, 0, 0)),
            pl.BlockSpec((C, G), lambda bi: (0, 0)),
            pl.BlockSpec((G, C), lambda bi: (0, 0)),
            pl.BlockSpec((1, C), lambda bi: (0, 0)),
            pl.BlockSpec((1, C), lambda bi: (0, 0)),
        ],
        out_specs=pl.BlockSpec((1, HW, C), lambda bi: (bi, 0, 0)),
        compiler_params=pltpu.CompilerParams(
            dimension_semantics=("parallel",),
            vmem_limit_bytes=_VMEM_LIMIT),
    )(x3, gmap, gmapt, g2, b2)
    return out.reshape(B, H, W_, C)


# -----------------------------------------------------------------------------
# Spatial attention (per batch image), q/k/v read from one fused QKV array
# -----------------------------------------------------------------------------
def _attn_kernel(q_ref, k_ref, v_ref, o_ref, *, scale):
    q = q_ref[0].astype(BF16)                          # (HW, Cp)
    k = k_ref[0].astype(BF16)
    v = v_ref[0].astype(BF16)
    s = jax.lax.dot_general(q, k, (((1,), (1,)), ((), ())),
                            preferred_element_type=jnp.float32) * scale
    s = s - jnp.max(s, axis=-1, keepdims=True)
    p = jnp.exp(s)
    p = p * pl.reciprocal(jnp.sum(p, axis=-1, keepdims=True), approx=True)
    o_ref[0] = jnp.dot(p.astype(BF16), v, preferred_element_type=jnp.float32)


def spatial_attention(qkv, hw, c_pad, c_real):
    """qkv: (B, HW, 3*c_pad) fused projections -> (B, HW, c_pad)."""
    B = qkv.shape[0]
    return pl.pallas_call(
        partial(_attn_kernel, scale=float(c_real) ** (-0.5)),
        out_shape=jax.ShapeDtypeStruct((B, hw, c_pad), F32),
        grid=(B,),
        in_specs=[
            pl.BlockSpec((1, hw, c_pad), lambda bi: (bi, 0, 0)),
            pl.BlockSpec((1, hw, c_pad), lambda bi: (bi, 0, 1)),
            pl.BlockSpec((1, hw, c_pad), lambda bi: (bi, 0, 2)),
        ],
        out_specs=pl.BlockSpec((1, hw, c_pad), lambda bi: (bi, 0, 0)),
        compiler_params=pltpu.CompilerParams(
            dimension_semantics=("parallel",),
            vmem_limit_bytes=_VMEM_LIMIT),
    )(qkv, qkv, qkv)


# -----------------------------------------------------------------------------
# Blocks (NHWC activations)
# -----------------------------------------------------------------------------
def resnet_block(p, x):
    B, H, W_, Cin = x.shape
    h = group_norm(x, p["norm1_g"], p["norm1_b"], swish=True)
    h = conv3x3(h, p["conv1_w"], p["conv1_b"])
    h = group_norm(h, p["norm2_g"], p["norm2_b"], swish=True)
    # TODO(synk): dropout(config.dropout) is identity at inference / p=0.0.
    if "nin_w" in p:
        res_rows = linear_rows(x.reshape(B * H * W_, Cin),
                               _conv1x1_weight(p["nin_w"]), p["nin_b"],
                               keep_n_pad=True)        # padded cols are zero
    else:
        res_rows = x.reshape(B * H * W_, Cin)
    # residual add fused into conv2's epilogue
    return conv3x3(h, p["conv2_w"], p["conv2_b"], residual_rows=res_rows)


def attn_block(p, x):
    B, H, W_, C = x.shape
    HW = H * W_
    Cp = _round_up(C, 128)
    h = group_norm(x, p["norm_g"], p["norm_b"], swish=False)
    h_rows = h.reshape(B * HW, C)

    # fused q/k/v 1x1 convs: one GEMM with N = 3*Cp (each chunk zero-padded to Cp)
    wq = jnp.pad(_conv1x1_weight(p["q_w"]), ((0, 0), (0, Cp - C)))
    wk = jnp.pad(_conv1x1_weight(p["k_w"]), ((0, 0), (0, Cp - C)))
    wv = jnp.pad(_conv1x1_weight(p["v_w"]), ((0, 0), (0, Cp - C)))
    wqkv = jnp.concatenate([wq, wk, wv], axis=1)                  # (C, 3*Cp)
    bqkv = jnp.concatenate([jnp.pad(p["q_b"], (0, Cp - C)),
                            jnp.pad(p["k_b"], (0, Cp - C)),
                            jnp.pad(p["v_b"], (0, Cp - C))])      # (3*Cp,)
    qkv = linear_rows(h_rows, wqkv, bqkv, keep_n_pad=True).reshape(B, HW, 3 * Cp)

    attn = spatial_attention(qkv, HW, Cp, C)                      # (B, HW, Cp)

    # proj_out (1x1) with residual (x) fused into the GEMM epilogue
    wp = jnp.pad(_conv1x1_weight(p["proj_w"]), ((0, Cp - C), (0, 0)))  # (Cp, C)
    out_rows = linear_rows(attn.reshape(B * HW, Cp), wp, p["proj_b"],
                           residual=x.reshape(B * HW, C))
    return out_rows.reshape(B, H, W_, C)


# -----------------------------------------------------------------------------
# Parameter init (deterministic, synthetic; torch weight layouts)
# -----------------------------------------------------------------------------
def init_conv(key, cout, cin, k):
    k1, k2 = jax.random.split(key)
    w = 0.05 * jax.random.normal(k1, (cout, cin, k, k), F32)
    b = 0.05 * jax.random.normal(k2, (cout,), F32)
    return w, b


def init_gn(key, c):
    k1, k2 = jax.random.split(key)
    g = 1.0 + 0.05 * jax.random.normal(k1, (c,), F32)
    b = 0.05 * jax.random.normal(k2, (c,), F32)
    return g, b


def init_resnet(key, cin, cout):
    ks = jax.random.split(key, 5)
    p = {}
    p["norm1_g"], p["norm1_b"] = init_gn(ks[0], cin)
    p["conv1_w"], p["conv1_b"] = init_conv(ks[1], cout, cin, 3)
    p["norm2_g"], p["norm2_b"] = init_gn(ks[2], cout)
    p["conv2_w"], p["conv2_b"] = init_conv(ks[3], cout, cout, 3)
    if cin != cout:
        p["nin_w"], p["nin_b"] = init_conv(ks[4], cout, cin, 1)   # nin_shortcut
    return p


def init_attn(key, c):
    ks = jax.random.split(key, 5)
    p = {}
    p["norm_g"], p["norm_b"] = init_gn(ks[0], c)
    p["q_w"], p["q_b"] = init_conv(ks[1], c, c, 1)
    p["k_w"], p["k_b"] = init_conv(ks[2], c, c, 1)
    p["v_w"], p["v_b"] = init_conv(ks[3], c, c, 1)
    p["proj_w"], p["proj_b"] = init_conv(ks[4], c, c, 1)
    return p


def build_encoder_params(key, cfg):
    keys = iter(jax.random.split(key, 64))
    nk = lambda: next(keys)
    base = cfg["base_channels"]
    cm = tuple(cfg["channel_multiplier"])
    num_res = len(cm)
    in_cm = (1,) + cm

    params = {"conv_in": init_conv(nk(), base, cfg["in_channels"], 3)}
    curr_res = cfg["resolution"]
    down = []
    block_in = base
    for i_level in range(num_res):
        block_in = base * in_cm[i_level]
        block_out = base * cm[i_level]
        blocks, attns = [], []
        for _ in range(cfg["num_res_blocks"]):
            blocks.append(init_resnet(nk(), block_in, block_out))
            block_in = block_out
            if (cfg["attn_resolutions"] is not None
                    and curr_res in cfg["attn_resolutions"]
                    and cfg["attn_type"] == "vanilla"):
                attns.append(init_attn(nk(), block_in))
        level = {"block": blocks, "attn": attns}
        if i_level != num_res - 1:
            w, b = init_conv(nk(), block_in, block_in, 3)
            level["downsample"] = {"w": w, "b": b}
            curr_res //= 2
        down.append(level)
    params["down"] = down
    params["mid_block1"] = init_resnet(nk(), block_in, block_in)
    params["mid_attn"] = init_attn(nk(), block_in)
    params["mid_block2"] = init_resnet(nk(), block_in, block_in)
    params["norm_out"] = init_gn(nk(), block_in)
    out_ch = (2 * cfg["latent_channels"]
              if cfg["double_latent"] else cfg["latent_channels"])
    params["conv_out"] = init_conv(nk(), out_ch, block_in, 3)
    return params


# -----------------------------------------------------------------------------
# Encoder forward (mirrors ChameleonVQVAEEncoder.forward; NCHW in/out)
# -----------------------------------------------------------------------------
def chameleon_vqvae_encoder(params, cfg, pixel_values_nchw):
    x = jnp.transpose(pixel_values_nchw.astype(F32), (0, 2, 3, 1))   # -> NHWC
    w, b = params["conv_in"]
    hidden = conv3x3(x, w, b)
    num_res = len(cfg["channel_multiplier"])
    for i_level in range(num_res):
        level = params["down"][i_level]
        for i_block in range(cfg["num_res_blocks"]):
            hidden = resnet_block(level["block"][i_block], hidden)
            if len(level["attn"]) > 0:
                hidden = attn_block(level["attn"][i_block], hidden)
        if i_level != num_res - 1:
            ds = level["downsample"]
            hidden = downsample_conv(hidden, ds["w"], ds["b"])
    h = resnet_block(params["mid_block1"], hidden)
    h = attn_block(params["mid_attn"], h)
    h = resnet_block(params["mid_block2"], h)
    g, bb = params["norm_out"]
    h = group_norm(h, g, bb, swish=True)
    w, b = params["conv_out"]
    h = conv3x3(h, w, b)
    return jnp.transpose(h, (0, 3, 1, 2))                            # -> NCHW


# -----------------------------------------------------------------------------
# Main
# -----------------------------------------------------------------------------
if __name__ == "__main__":
    cfg = dict(
        base_channels=32,          # GroupNorm(32) requires multiples of 32
        channel_multiplier=(1, 2),
        num_res_blocks=1,
        resolution=16,
        in_channels=3,
        double_latent=False,
        latent_channels=8,
        attn_resolutions=(8,),     # attention fires at the 8x8 level
        attn_type="vanilla",
        dropout=0.0,
    )

    key = jax.random.PRNGKey(0)
    kp, kx = jax.random.split(key)
    params = build_encoder_params(kp, cfg)

    pixel_values = jax.random.normal(
        kx, (2, cfg["in_channels"], cfg["resolution"], cfg["resolution"]), F32)

    fwd = jax.jit(lambda p, px: chameleon_vqvae_encoder(p, cfg, px))
    out = jax.block_until_ready(fwd(params, pixel_values))

    assert out.shape == (2, cfg["latent_channels"], 8, 8), out.shape
    assert bool(jnp.all(jnp.isfinite(out)))
    print("KERNEL_OK")
</pallas_src>

<mosaic_0001>
module attributes {stable_mosaic.version = 11 : i64} {
  func.func @_conv3x3_kernel(%arg0: i32, %arg1: i32, %arg2: memref<1x18x18x8xf32, #tpu.memory_space<vmem>>, %arg3: memref<72x128xbf16, #tpu.memory_space<vmem>>, %arg4: memref<1x128xf32, #tpu.memory_space<vmem>>, %arg5: memref<1x256x128xf32, #tpu.memory_space<vmem>>) attributes {dimension_semantics = [#tpu.dimension_semantics<parallel>, #tpu.dimension_semantics<parallel>], iteration_bounds = array<i64: 2, 1>, scalar_prefetch = 0 : i64, scratch_operands = 0 : i64, tpu.core_type = #tpu.core_type<tc>, window_params = [{transform_indices = @transform_0, window_bounds = array<i64: 1, 18, 18, 8>}, {transform_indices = @transform_1, window_bounds = array<i64: 72, 128>}, {transform_indices = @transform_2, window_bounds = array<i64: 1, 128>}, {transform_indices = @transform_3, window_bounds = array<i64: 1, 256, 128>}]} {
    %cst = arith.constant 0.000000e+00 : f32
    %0 = vector.broadcast %cst : f32 to vector<256x128xf32>
    %c0 = arith.constant 0 : index
    %c0_0 = arith.constant 0 : index
    %c0_1 = arith.constant 0 : index
    %c0_2 = arith.constant 0 : index
    %1 = vector.load %arg2[%c0, %c0_0, %c0_1, %c0_2] : memref<1x18x18x8xf32, #tpu.memory_space<vmem>>, vector<1x16x16x8xf32>
    %2 = vector.shape_cast %1 : vector<1x16x16x8xf32> to vector<16x16x8xf32>
    %3 = vector.shape_cast %2 : vector<16x16x8xf32> to vector<256x8xf32>
    %4 = arith.truncf %3 : vector<256x8xf32> to vector<256x8xbf16>
    %c0_3 = arith.constant 0 : index
    %c0_4 = arith.constant 0 : index
    %5 = vector.load %arg3[%c0_3, %c0_4] : memref<72x128xbf16, #tpu.memory_space<vmem>>, vector<8x128xbf16>
    %cst_5 = arith.constant dense<0.000000e+00> : vector<256x128xf32>
    %6 = tpu.matmul %4, %5, %cst_5 {dimension_numbers = #tpu.dot_dimension_numbers<[1], [0], [0], [1], [0, 0, 1, 1], [], []>} : vector<256x8xbf16>, vector<8x128xbf16>, vector<256x128xf32> -> vector<256x128xf32>
    %7 = arith.addf %0, %6 : vector<256x128xf32>
    %c0_6 = arith.constant 0 : index
    %c0_7 = arith.constant 0 : index
    %c1 = arith.constant 1 : index
    %c0_8 = arith.constant 0 : index
    %8 = vector.load %arg2[%c0_6, %c0_7, %c1, %c0_8] : memref<1x18x18x8xf32, #tpu.memory_space<vmem>>, vector<1x16x16x8xf32>
    %9 = vector.shape_cast %8 : vector<1x16x16x8xf32> to vector<16x16x8xf32>
    %10 = vector.shape_cast %9 : vector<16x16x8xf32> to vector<256x8xf32>
    %11 = arith.truncf %10 : vector<256x8xf32> to vector<256x8xbf16>
    %c8 = arith.constant 8 : index
    %c0_9 = arith.constant 0 : index
    %12 = vector.load %arg3[%c8, %c0_9] : memref<72x128xbf16, #tpu.memory_space<vmem>>, vector<8x128xbf16>
    %cst_10 = arith.constant dense<0.000000e+00> : vector<256x128xf32>
    %13 = tpu.matmul %11, %12, %cst_10 {dimension_numbers = #tpu.dot_dimension_numbers<[1], [0], [0], [1], [0, 0, 1, 1], [], []>} : vector<256x8xbf16>, vector<8x128xbf16>, vector<256x128xf32> -> vector<256x128xf32>
    %14 = arith.addf %7, %13 : vector<256x128xf32>
    %c0_11 = arith.constant 0 : index
    %c0_12 = arith.constant 0 : index
    %c2 = arith.constant 2 : index
    %c0_13 = arith.constant 0 : index
    %15 = vector.load %arg2[%c0_11, %c0_12, %c2, %c0_13] : memref<1x18x18x8xf32, #tpu.memory_space<vmem>>, vector<1x16x16x8xf32>
    %16 = vector.shape_cast %15 : vector<1x16x16x8xf32> to vector<16x16x8xf32>
    %17 = vector.shape_cast %16 : vector<16x16x8xf32> to vector<256x8xf32>
    %18 = arith.truncf %17 : vector<256x8xf32> to vector<256x8xbf16>
    %c16 = arith.constant 16 : index
    %c0_14 = arith.constant 0 : index
    %19 = vector.load %arg3[%c16, %c0_14] : memref<72x128xbf16, #tpu.memory_space<vmem>>, vector<8x128xbf16>
    %cst_15 = arith.constant dense<0.000000e+00> : vector<256x128xf32>
    %20 = tpu.matmul %18, %19, %cst_15 {dimension_numbers = #tpu.dot_dimension_numbers<[1], [0], [0], [1], [0, 0, 1, 1], [], []>} : vector<256x8xbf16>, vector<8x128xbf16>, vector<256x128xf32> -> vector<256x128xf32>
    %21 = arith.addf %14, %20 : vector<256x128xf32>
    %c0_16 = arith.constant 0 : index
    %c1_17 = arith.constant 1 : index
    %c0_18 = arith.constant 0 : index
    %c0_19 = arith.constant 0 : index
    %22 = vector.load %arg2[%c0_16, %c1_17, %c0_18, %c0_19] : memref<1x18x18x8xf32, #tpu.memory_space<vmem>>, vector<1x16x16x8xf32>
    %23 = vector.shape_cast %22 : vector<1x16x16x8xf32> to vector<16x16x8xf32>
    %24 = vector.shape_cast %23 : vector<16x16x8xf32> to vector<256x8xf32>
    %25 = arith.truncf %24 : vector<256x8xf32> to vector<256x8xbf16>
    %c24 = arith.constant 24 : index
    %c0_20 = arith.constant 0 : index
    %26 = vector.load %arg3[%c24, %c0_20] : memref<72x128xbf16, #tpu.memory_space<vmem>>, vector<8x128xbf16>
    %cst_21 = arith.constant dense<0.000000e+00> : vector<256x128xf32>
    %27 = tpu.matmul %25, %26, %cst_21 {dimension_numbers = #tpu.dot_dimension_numbers<[1], [0], [0], [1], [0, 0, 1, 1], [], []>} : vector<256x8xbf16>, vector<8x128xbf16>, vector<256x128xf32> -> vector<256x128xf32>
    %28 = arith.addf %21, %27 : vector<256x128xf32>
    %c0_22 = arith.constant 0 : index
    %c1_23 = arith.constant 1 : index
    %c1_24 = arith.constant 1 : index
    %c0_25 = arith.constant 0 : index
    %29 = vector.load %arg2[%c0_22, %c1_23, %c1_24, %c0_25] : memref<1x18x18x8xf32, #tpu.memory_space<vmem>>, vector<1x16x16x8xf32>
    %30 = vector.shape_cast %29 : vector<1x16x16x8xf32> to vector<16x16x8xf32>
    %31 = vector.shape_cast %30 : vector<16x16x8xf32> to vector<256x8xf32>
    %32 = arith.truncf %31 : vector<256x8xf32> to vector<256x8xbf16>
    %c32 = arith.constant 32 : index
    %c0_26 = arith.constant 0 : index
    %33 = vector.load %arg3[%c32, %c0_26] : memref<72x128xbf16, #tpu.memory_space<vmem>>, vector<8x128xbf16>
    %cst_27 = arith.constant dense<0.000000e+00> : vector<256x128xf32>
    %34 = tpu.matmul %32, %33, %cst_27 {dimension_numbers = #tpu.dot_dimension_numbers<[1], [0], [0], [1], [0, 0, 1, 1], [], []>} : vector<256x8xbf16>, vector<8x128xbf16>, vector<256x128xf32> -> vector<256x128xf32>
    %35 = arith.addf %28, %34 : vector<256x128xf32>
    %c0_28 = arith.constant 0 : index
    %c1_29 = arith.constant 1 : index
    %c2_30 = arith.constant 2 : index
    %c0_31 = arith.constant 0 : index
    %36 = vector.load %arg2[%c0_28, %c1_29, %c2_30, %c0_31] : memref<1x18x18x8xf32, #tpu.memory_space<vmem>>, vector<1x16x16x8xf32>
    %37 = vector.shape_cast %36 : vector<1x16x16x8xf32> to vector<16x16x8xf32>
    %38 = vector.shape_cast %37 : vector<16x16x8xf32> to vector<256x8xf32>
    %39 = arith.truncf %38 : vector<256x8xf32> to vector<256x8xbf16>
    %c40 = arith.constant 40 : index
    %c0_32 = arith.constant 0 : index
    %40 = vector.load %arg3[%c40, %c0_32] : memref<72x128xbf16, #tpu.memory_space<vmem>>, vector<8x128xbf16>
    %cst_33 = arith.constant dense<0.000000e+00> : vector<256x128xf32>
    %41 = tpu.matmul %39, %40, %cst_33 {dimension_numbers = #tpu.dot_dimension_numbers<[1], [0], [0], [1], [0, 0, 1, 1], [], []>} : vector<256x8xbf16>, vector<8x128xbf16>, vector<256x128xf32> -> vector<256x128xf32>
    %42 = arith.addf %35, %41 : vector<256x128xf32>
    %c0_34 = arith.constant 0 : index
    %c2_35 = arith.constant 2 : index
    %c0_36 = arith.constant 0 : index
    %c0_37 = arith.constant 0 : index
    %43 = vector.load %arg2[%c0_34, %c2_35, %c0_36, %c0_37] : memref<1x18x18x8xf32, #tpu.memory_space<vmem>>, vector<1x16x16x8xf32>
    %44 = vector.shape_cast %43 : vector<1x16x16x8xf32> to vector<16x16x8xf32>
    %45 = vector.shape_cast %44 : vector<16x16x8xf32> to vector<256x8xf32>
    %46 = arith.truncf %45 : vector<256x8xf32> to vector<256x8xbf16>
    %c48 = arith.constant 48 : index
    %c0_38 = arith.constant 0 : index
    %47 = vector.load %arg3[%c48, %c0_38] : memref<72x128xbf16, #tpu.memory_space<vmem>>, vector<8x128xbf16>
    %cst_39 = arith.constant dense<0.000000e+00> : vector<256x128xf32>
    %48 = tpu.matmul %46, %47, %cst_39 {dimension_numbers = #tpu.dot_dimension_numbers<[1], [0], [0], [1], [0, 0, 1, 1], [], []>} : vector<256x8xbf16>, vector<8x128xbf16>, vector<256x128xf32> -> vector<256x128xf32>
    %49 = arith.addf %42, %48 : vector<256x128xf32>
    %c0_40 = arith.constant 0 : index
    %c2_41 = arith.constant 2 : index
    %c1_42 = arith.constant 1 : index
    %c0_43 = arith.constant 0 : index
    %50 = vector.load %arg2[%c0_40, %c2_41, %c1_42, %c0_43] : memref<1x18x18x8xf32, #tpu.memory_space<vmem>>, vector<1x16x16x8xf32>
    %51 = vector.shape_cast %50 : vector<1x16x16x8xf32> to vector<16x16x8xf32>
    %52 = vector.shape_cast %51 : vector<16x16x8xf32> to vector<256x8xf32>
    %53 = arith.truncf %52 : vector<256x8xf32> to vector<256x8xbf16>
    %c56 = arith.constant 56 : index
    %c0_44 = arith.constant 0 : index
    %54 = vector.load %arg3[%c56, %c0_44] : memref<72x128xbf16, #tpu.memory_space<vmem>>, vector<8x128xbf16>
    %cst_45 = arith.constant dense<0.000000e+00> : vector<256x128xf32>
    %55 = tpu.matmul %53, %54, %cst_45 {dimension_numbers = #tpu.dot_dimension_numbers<[1], [0], [0], [1], [0, 0, 1, 1], [], []>} : vector<256x8xbf16>, vector<8x128xbf16>, vector<256x128xf32> -> vector<256x128xf32>
    %56 = arith.addf %49, %55 : vector<256x128xf32>
    %c0_46 = arith.constant 0 : index
    %c2_47 = arith.constant 2 : index
    %c2_48 = arith.constant 2 : index
    %c0_49 = arith.constant 0 : index
    %57 = vector.load %arg2[%c0_46, %c2_47, %c2_48, %c0_49] : memref<1x18x18x8xf32, #tpu.memory_space<vmem>>, vector<1x16x16x8xf32>
    %58 = vector.shape_cast %57 : vector<1x16x16x8xf32> to vector<16x16x8xf32>
    %59 = vector.shape_cast %58 : vector<16x16x8xf32> to vector<256x8xf32>
    %60 = arith.truncf %59 : vector<256x8xf32> to vector<256x8xbf16>
    %c64 = arith.constant 64 : index
    %c0_50 = arith.constant 0 : index
    %61 = vector.load %arg3[%c64, %c0_50] : memref<72x128xbf16, #tpu.memory_space<vmem>>, vector<8x128xbf16>
    %cst_51 = arith.constant dense<0.000000e+00> : vector<256x128xf32>
    %62 = tpu.matmul %60, %61, %cst_51 {dimension_numbers = #tpu.dot_dimension_numbers<[1], [0], [0], [1], [0, 0, 1, 1], [], []>} : vector<256x8xbf16>, vector<8x128xbf16>, vector<256x128xf32> -> vector<256x128xf32>
    %63 = arith.addf %56, %62 : vector<256x128xf32>
    %c0_52 = arith.constant 0 : index
    %c0_53 = arith.constant 0 : index
    %64 = vector.load %arg4[%c0_52, %c0_53] : memref<1x128xf32, #tpu.memory_space<vmem>>, vector<1x128xf32>
    %65 = vector.broadcast %64 : vector<1x128xf32> to vector<256x128xf32>
    %66 = arith.addf %63, %65 : vector<256x128xf32>
    %c0_54 = arith.constant 0 : index
    %c0_55 = arith.constant 0 : index
    %c0_56 = arith.constant 0 : index
    %67 = vector.load %arg5[%c0_54, %c0_55, %c0_56] : memref<1x256x128xf32, #tpu.memory_space<vmem>>, vector<1x256x128xf32>
    %68 = vector.shape_cast %67 : vector<1x256x128xf32> to vector<256x128xf32>
    %69 = vector.shape_cast %66 : vector<256x128xf32> to vector<1x256x128xf32>
    tpu.vector_store %arg5[%c0_54, %c0_55, %c0_56], %69 {strides = array<i32>} : memref<1x256x128xf32, #tpu.memory_space<vmem>>, vector<1x256x128xf32>,
    return
  }
  func.func @transform_0(%arg0: i32, %arg1: i32) -> (i32, i32, i32, i32) {
    %c0_i32 = arith.constant 0 : i32
    %c0_i32_0 = arith.constant 0 : i32
    %c0_i32_1 = arith.constant 0 : i32
    %c0_i32_2 = arith.constant 0 : i32
    return %arg0, %c0_i32, %c0_i32_0, %c0_i32_1 : i32, i32, i32, i32
  }
  func.func @transform_1(%arg0: i32, %arg1: i32) -> (i32, i32) {
    %c0_i32 = arith.constant 0 : i32
    %c0_i32_0 = arith.constant 0 : i32
    return %c0_i32, %arg1 : i32, i32
  }
  func.func @transform_2(%arg0: i32, %arg1: i32) -> (i32, i32) {
    %c0_i32 = arith.constant 0 : i32
    %c0_i32_0 = arith.constant 0 : i32
    return %c0_i32, %arg1 : i32, i32
  }
  func.func @transform_3(%arg0: i32, %arg1: i32) -> (i32, i32, i32) {
    %c0_i32 = arith.constant 0 : i32
    %c0_i32_0 = arith.constant 0 : i32
    return %arg0, %c0_i32, %arg1 : i32, i32, i32
  }
}

module attributes {stable_mosaic.version = 11 : i64} {
  func.func @_group_norm_kernel(%arg0: i32, %arg1: memref<1x256x32xf32, #tpu.memory_space<vmem>>, %arg2: memref<32x32xf32, #tpu.memory_space<vmem>>, %arg3: memref<32x32xf32, #tpu.memory_space<vmem>>, %arg4: memref<1x32xf32, #tpu.memory_space<vmem>>, %arg5: memref<1x32xf32, #tpu.memory_space<vmem>>, %arg6: memref<1x256x32xf32, #tpu.memory_space<vmem>>) attributes {dimension_semantics = [#tpu.dimension_semantics<parallel>], iteration_bounds = array<i64: 2>, scalar_prefetch = 0 : i64, scratch_operands = 0 : i64, tpu.core_type = #tpu.core_type<tc>, window_params = [{transform_indices = @transform_0, window_bounds = array<i64: 1, 256, 32>}, {pipeline_mode = #tpu.pipeline_mode<synchronous>, transform_indices = @transform_1, window_bounds = array<i64: 32, 32>}, {pipeline_mode = #tpu.pipeline_mode<synchronous>, transform_indices = @transform_2, window_bounds = array<i64: 32, 32>}, {pipeline_mode = #tpu.pipeline_mode<synchronous>, transform_indices = @transform_3, window_bounds = array<i64: 1, 32>}, {pipeline_mode = #tpu.pipeline_mode<synchronous>, transform_indices = @transform_4, window_bounds = array<i64: 1, 32>}, {transform_indices = @transform_5, window_bounds = array<i64: 1, 256, 32>}]} {
    %c0 = arith.constant 0 : index
    %c0_0 = arith.constant 0 : index
    %c0_1 = arith.constant 0 : index
    %0 = vector.load %arg1[%c0, %c0_0, %c0_1] : memref<1x256x32xf32, #tpu.memory_space<vmem>>, vector<1x256x32xf32>
    %1 = vector.shape_cast %0 : vector<1x256x32xf32> to vector<256x32xf32>
    %c0_2 = arith.constant 0 : index
    %c0_3 = arith.constant 0 : index
    %2 = vector.load %arg2[%c0_2, %c0_3] : memref<32x32xf32, #tpu.memory_space<vmem>>, vector<32x32xf32>
    %c0_4 = arith.constant 0 : index
    %c0_5 = arith.constant 0 : index
    %3 = vector.load %arg3[%c0_4, %c0_5] : memref<32x32xf32, #tpu.memory_space<vmem>>, vector<32x32xf32>
    %cst = arith.constant dense<0.000000e+00> : vector<32xf32>
    %4 = vector.multi_reduction <add>, %1, %cst [0] : vector<256x32xf32> to vector<32xf32>
    %5 = vector.shape_cast %4 : vector<32xf32> to vector<1x32xf32>
    %cst_6 = arith.constant dense<0.000000e+00> : vector<1x32xf32>
    %6 = tpu.matmul %5, %2, %cst_6 {dimension_numbers = #tpu.dot_dimension_numbers<[1], [0], [0], [1], [0, 0, 1, 1], [], []>} : vector<1x32xf32>, vector<32x32xf32>, vector<1x32xf32> -> vector<1x32xf32>
    %cst_7 = arith.constant 3.906250e-03 : f32
    %7 = vector.broadcast %cst_7 : f32 to vector<1x32xf32>
    %8 = arith.mulf %6, %7 : vector<1x32xf32>
    %cst_8 = arith.constant dense<0.000000e+00> : vector<1x32xf32>
    %9 = tpu.matmul %8, %3, %cst_8 {dimension_numbers = #tpu.dot_dimension_numbers<[1], [0], [0], [1], [0, 0, 1, 1], [], []>} : vector<1x32xf32>, vector<32x32xf32>, vector<1x32xf32> -> vector<1x32xf32>
    %10 = vector.broadcast %9 : vector<1x32xf32> to vector<256x32xf32>
    %11 = arith.subf %1, %10 : vector<256x32xf32>
    %12 = arith.mulf %11, %11 : vector<256x32xf32>
    %cst_9 = arith.constant dense<0.000000e+00> : vector<32xf32>
    %13 = vector.multi_reduction <add>, %12, %cst_9 [0] : vector<256x32xf32> to vector<32xf32>
    %14 = vector.shape_cast %13 : vector<32xf32> to vector<1x32xf32>
    %cst_10 = arith.constant dense<0.000000e+00> : vector<1x32xf32>
    %15 = tpu.matmul %14, %2, %cst_10 {dimension_numbers = #tpu.dot_dimension_numbers<[1], [0], [0], [1], [0, 0, 1, 1], [], []>} : vector<1x32xf32>, vector<32x32xf32>, vector<1x32xf32> -> vector<1x32xf32>
    %cst_11 = arith.constant 3.906250e-03 : f32
    %16 = vector.broadcast %cst_11 : f32 to vector<1x32xf32>
    %17 = arith.mulf %15, %16 : vector<1x32xf32>
    %cst_12 = arith.constant dense<0.000000e+00> : vector<1x32xf32>
    %18 = tpu.matmul %17, %3, %cst_12 {dimension_numbers = #tpu.dot_dimension_numbers<[1], [0], [0], [1], [0, 0, 1, 1], [], []>} : vector<1x32xf32>, vector<32x32xf32>, vector<1x32xf32> -> vector<1x32xf32>
    %cst_13 = arith.constant 9.99999997E-7 : f32
    %19 = vector.broadcast %cst_13 : f32 to vector<1x32xf32>
    %20 = arith.addf %18, %19 : vector<1x32xf32>
    %21 = math.rsqrt %20 : vector<1x32xf32>
    %22 = vector.broadcast %21 : vector<1x32xf32> to vector<256x32xf32>
    %23 = arith.mulf %11, %22 : vector<256x32xf32>
    %c0_14 = arith.constant 0 : index
    %c0_15 = arith.constant 0 : index
    %24 = vector.load %arg4[%c0_14, %c0_15] : memref<1x32xf32, #tpu.memory_space<vmem>>, vector<1x32xf32>
    %25 = vector.broadcast %24 : vector<1x32xf32> to vector<256x32xf32>
    %26 = arith.mulf %23, %25 : vector<256x32xf32>
    %c0_16 = arith.constant 0 : index
    %c0_17 = arith.constant 0 : index
    %27 = vector.load %arg5[%c0_16, %c0_17] : memref<1x32xf32, #tpu.memory_space<vmem>>, vector<1x32xf32>
    %28 = vector.broadcast %27 : vector<1x32xf32> to vector<256x32xf32>
    %29 = arith.addf %26, %28 : vector<256x32xf32>
    %30 = arith.negf %29 : vector<256x32xf32>
    %31 = math.exp %30 : vector<256x32xf32>
    %cst_18 = arith.constant 1.000000e+00 : f32
    %32 = vector.broadcast %cst_18 : f32 to vector<256x32xf32>
    %33 = arith.addf %32, %31 : vector<256x32xf32>
    %34 = arith.divf %32, %33 : vector<256x32xf32>
    %35 = arith.mulf %29, %34 : vector<256x32xf32>
    %c0_19 = arith.constant 0 : index
    %c0_20 = arith.constant 0 : index
    %c0_21 = arith.constant 0 : index
    %36 = vector.load %arg6[%c0_19, %c0_20, %c0_21] : memref<1x256x32xf32, #tpu.memory_space<vmem>>, vector<1x256x32xf32>
    %37 = vector.shape_cast %36 : vector<1x256x32xf32> to vector<256x32xf32>
    %38 = vector.shape_cast %35 : vector<256x32xf32> to vector<1x256x32xf32>
    tpu.vector_store %arg6[%c0_19, %c0_20, %c0_21], %38 {strides = array<i32>} : memref<1x256x32xf32, #tpu.memory_space<vmem>>, vector<1x256x32xf32>,
    return
  }
  func.func @transform_0(%arg0: i32) -> (i32, i32, i32) {
    %c0_i32 = arith.constant 0 : i32
    %c0_i32_0 = arith.constant 0 : i32
    %c0_i32_1 = arith.constant 0 : i32
    return %arg0, %c0_i32, %c0_i32_0 : i32, i32, i32
  }
  func.func @transform_1(%arg0: i32) -> (i32, i32) {
    %c0_i32 = arith.constant 0 : i32
    %c0_i32_0 = arith.constant 0 : i32
    %c0_i32_1 = arith.constant 0 : i32
    return %c0_i32, %c0_i32_0 : i32, i32
  }
  func.func @transform_2(%arg0: i32) -> (i32, i32) {
    %c0_i32 = arith.constant 0 : i32
    %c0_i32_0 = arith.constant 0 : i32
    %c0_i32_1 = arith.constant 0 : i32
    return %c0_i32, %c0_i32_0 : i32, i32
  }
  func.func @transform_3(%arg0: i32) -> (i32, i32) {
    %c0_i32 = arith.constant 0 : i32
    %c0_i32_0 = arith.constant 0 : i32
    %c0_i32_1 = arith.constant 0 : i32
    return %c0_i32, %c0_i32_0 : i32, i32
  }
  func.func @transform_4(%arg0: i32) -> (i32, i32) {
    %c0_i32 = arith.constant 0 : i32
    %c0_i32_0 = arith.constant 0 : i32
    %c0_i32_1 = arith.constant 0 : i32
    return %c0_i32, %c0_i32_0 : i32, i32
  }
  func.func @transform_5(%arg0: i32) -> (i32, i32, i32) {
    %c0_i32 = arith.constant 0 : i32
    %c0_i32_0 = arith.constant 0 : i32
    %c0_i32_1 = arith.constant 0 : i32
    return %arg0, %c0_i32, %c0_i32_0 : i32, i32, i32
  }
}

module attributes {stable_mosaic.version = 11 : i64} {
  func.func @_conv3x3_kernel(%arg0: i32, %arg1: i32, %arg2: memref<1x18x18x32xf32, #tpu.memory_space<vmem>>, %arg3: memref<288x128xbf16, #tpu.memory_space<vmem>>, %arg4: memref<1x128xf32, #tpu.memory_space<vmem>>, %arg5: memref<1x256x128xf32, #tpu.memory_space<vmem>>) attributes {dimension_semantics = [#tpu.dimension_semantics<parallel>, #tpu.dimension_semantics<parallel>], iteration_bounds = array<i64: 2, 1>, scalar_prefetch = 0 : i64, scratch_operands = 0 : i64, tpu.core_type = #tpu.core_type<tc>, window_params = [{transform_indices = @transform_0, window_bounds = array<i64: 1, 18, 18, 32>}, {transform_indices = @transform_1, window_bounds = array<i64: 288, 128>}, {transform_indices = @transform_2, window_bounds = array<i64: 1, 128>}, {transform_indices = @transform_3, window_bounds = array<i64: 1, 256, 128>}]} {
    %cst = arith.constant 0.000000e+00 : f32
    %0 = vector.broadcast %cst : f32 to vector<256x128xf32>
    %c0 = arith.constant 0 : index
    %c0_0 = arith.constant 0 : index
    %c0_1 = arith.constant 0 : index
    %c0_2 = arith.constant 0 : index
    %1 = vector.load %arg2[%c0, %c0_0, %c0_1, %c0_2] : memref<1x18x18x32xf32, #tpu.memory_space<vmem>>, vector<1x16x16x32xf32>
    %2 = vector.shape_cast %1 : vector<1x16x16x32xf32> to vector<16x16x32xf32>
    %3 = vector.shape_cast %2 : vector<16x16x32xf32> to vector<256x32xf32>
    %4 = arith.truncf %3 : vector<256x32xf32> to vector<256x32xbf16>
    %c0_3 = arith.constant 0 : index
    %c0_4 = arith.constant 0 : index
    %5 = vector.load %arg3[%c0_3, %c0_4] : memref<288x128xbf16, #tpu.memory_space<vmem>>, vector<32x128xbf16>
    %cst_5 = arith.constant dense<0.000000e+00> : vector<256x128xf32>
    %6 = tpu.matmul %4, %5, %cst_5 {dimension_numbers = #tpu.dot_dimension_numbers<[1], [0], [0], [1], [0, 0, 1, 1], [], []>} : vector<256x32xbf16>, vector<32x128xbf16>, vector<256x128xf32> -> vector<256x128xf32>
    %7 = arith.addf %0, %6 : vector<256x128xf32>
    %c0_6 = arith.constant 0 : index
    %c0_7 = arith.constant 0 : index
    %c1 = arith.constant 1 : index
    %c0_8 = arith.constant 0 : index
    %8 = vector.load %arg2[%c0_6, %c0_7, %c1, %c0_8] : memref<1x18x18x32xf32, #tpu.memory_space<vmem>>, vector<1x16x16x32xf32>
    %9 = vector.shape_cast %8 : vector<1x16x16x32xf32> to vector<16x16x32xf32>
    %10 = vector.shape_cast %9 : vector<16x16x32xf32> to vector<256x32xf32>
    %11 = arith.truncf %10 : vector<256x32xf32> to vector<256x32xbf16>
    %c32 = arith.constant 32 : index
    %c0_9 = arith.constant 0 : index
    %12 = vector.load %arg3[%c32, %c0_9] : memref<288x128xbf16, #tpu.memory_space<vmem>>, vector<32x128xbf16>
    %cst_10 = arith.constant dense<0.000000e+00> : vector<256x128xf32>
    %13 = tpu.matmul %11, %12, %cst_10 {dimension_numbers = #tpu.dot_dimension_numbers<[1], [0], [0], [1], [0, 0, 1, 1], [], []>} : vector<256x32xbf16>, vector<32x128xbf16>, vector<256x128xf32> -> vector<256x128xf32>
    %14 = arith.addf %7, %13 : vector<256x128xf32>
    %c0_11 = arith.constant 0 : index
    %c0_12 = arith.constant 0 : index
    %c2 = arith.constant 2 : index
    %c0_13 = arith.constant 0 : index
    %15 = vector.load %arg2[%c0_11, %c0_12, %c2, %c0_13] : memref<1x18x18x32xf32, #tpu.memory_space<vmem>>, vector<1x16x16x32xf32>
    %16 = vector.shape_cast %15 : vector<1x16x16x32xf32> to vector<16x16x32xf32>
    %17 = vector.shape_cast %16 : vector<16x16x32xf32> to vector<256x32xf32>
    %18 = arith.truncf %17 : vector<256x32xf32> to vector<256x32xbf16>
    %c64 = arith.constant 64 : index
    %c0_14 = arith.constant 0 : index
    %19 = vector.load %arg3[%c64, %c0_14] : memref<288x128xbf16, #tpu.memory_space<vmem>>, vector<32x128xbf16>
    %cst_15 = arith.constant dense<0.000000e+00> : vector<256x128xf32>
    %20 = tpu.matmul %18, %19, %cst_15 {dimension_numbers = #tpu.dot_dimension_numbers<[1], [0], [0], [1], [0, 0, 1, 1], [], []>} : vector<256x32xbf16>, vector<32x128xbf16>, vector<256x128xf32> -> vector<256x128xf32>
    %21 = arith.addf %14, %20 : vector<256x128xf32>
    %c0_16 = arith.constant 0 : index
    %c1_17 = arith.constant 1 : index
    %c0_18 = arith.constant 0 : index
    %c0_19 = arith.constant 0 : index
    %22 = vector.load %arg2[%c0_16, %c1_17, %c0_18, %c0_19] : memref<1x18x18x32xf32, #tpu.memory_space<vmem>>, vector<1x16x16x32xf32>
    %23 = vector.shape_cast %22 : vector<1x16x16x32xf32> to vector<16x16x32xf32>
    %24 = vector.shape_cast %23 : vector<16x16x32xf32> to vector<256x32xf32>
    %25 = arith.truncf %24 : vector<256x32xf32> to vector<256x32xbf16>
    %c96 = arith.constant 96 : index
    %c0_20 = arith.constant 0 : index
    %26 = vector.load %arg3[%c96, %c0_20] : memref<288x128xbf16, #tpu.memory_space<vmem>>, vector<32x128xbf16>
    %cst_21 = arith.constant dense<0.000000e+00> : vector<256x128xf32>
    %27 = tpu.matmul %25, %26, %cst_21 {dimension_numbers = #tpu.dot_dimension_numbers<[1], [0], [0], [1], [0, 0, 1, 1], [], []>} : vector<256x32xbf16>, vector<32x128xbf16>, vector<256x128xf32> -> vector<256x128xf32>
    %28 = arith.addf %21, %27 : vector<256x128xf32>
    %c0_22 = arith.constant 0 : index
    %c1_23 = arith.constant 1 : index
    %c1_24 = arith.constant 1 : index
    %c0_25 = arith.constant 0 : index
    %29 = vector.load %arg2[%c0_22, %c1_23, %c1_24, %c0_25] : memref<1x18x18x32xf32, #tpu.memory_space<vmem>>, vector<1x16x16x32xf32>
    %30 = vector.shape_cast %29 : vector<1x16x16x32xf32> to vector<16x16x32xf32>
    %31 = vector.shape_cast %30 : vector<16x16x32xf32> to vector<256x32xf32>
    %32 = arith.truncf %31 : vector<256x32xf32> to vector<256x32xbf16>
    %c128 = arith.constant 128 : index
    %c0_26 = arith.constant 0 : index
    %33 = vector.load %arg3[%c128, %c0_26] : memref<288x128xbf16, #tpu.memory_space<vmem>>, vector<32x128xbf16>
    %cst_27 = arith.constant dense<0.000000e+00> : vector<256x128xf32>
    %34 = tpu.matmul %32, %33, %cst_27 {dimension_numbers = #tpu.dot_dimension_numbers<[1], [0], [0], [1], [0, 0, 1, 1], [], []>} : vector<256x32xbf16>, vector<32x128xbf16>, vector<256x128xf32> -> vector<256x128xf32>
    %35 = arith.addf %28, %34 : vector<256x128xf32>
    %c0_28 = arith.constant 0 : index
    %c1_29 = arith.constant 1 : index
    %c2_30 = arith.constant 2 : index
    %c0_31 = arith.constant 0 : index
    %36 = vector.load %arg2[%c0_28, %c1_29, %c2_30, %c0_31] : memref<1x18x18x32xf32, #tpu.memory_space<vmem>>, vector<1x16x16x32xf32>
    %37 = vector.shape_cast %36 : vector<1x16x16x32xf32> to vector<16x16x32xf32>
    %38 = vector.shape_cast %37 : vector<16x16x32xf32> to vector<256x32xf32>
    %39 = arith.truncf %38 : vector<256x32xf32> to vector<256x32xbf16>
    %c160 = arith.constant 160 : index
    %c0_32 = arith.constant 0 : index
    %40 = vector.load %arg3[%c160, %c0_32] : memref<288x128xbf16, #tpu.memory_space<vmem>>, vector<32x128xbf16>
    %cst_33 = arith.constant dense<0.000000e+00> : vector<256x128xf32>
    %41 = tpu.matmul %39, %40, %cst_33 {dimension_numbers = #tpu.dot_dimension_numbers<[1], [0], [0], [1], [0, 0, 1, 1], [], []>} : vector<256x32xbf16>, vector<32x128xbf16>, vector<256x128xf32> -> vector<256x128xf32>
    %42 = arith.addf %35, %41 : vector<256x128xf32>
    %c0_34 = arith.constant 0 : index
    %c2_35 = arith.constant 2 : index
    %c0_36 = arith.constant 0 : index
    %c0_37 = arith.constant 0 : index
    %43 = vector.load %arg2[%c0_34, %c2_35, %c0_36, %c0_37] : memref<1x18x18x32xf32, #tpu.memory_space<vmem>>, vector<1x16x16x32xf32>
    %44 = vector.shape_cast %43 : vector<1x16x16x32xf32> to vector<16x16x32xf32>
    %45 = vector.shape_cast %44 : vector<16x16x32xf32> to vector<256x32xf32>
    %46 = arith.truncf %45 : vector<256x32xf32> to vector<256x32xbf16>
    %c192 = arith.constant 192 : index
    %c0_38 = arith.constant 0 : index
    %47 = vector.load %arg3[%c192, %c0_38] : memref<288x128xbf16, #tpu.memory_space<vmem>>, vector<32x128xbf16>
    %cst_39 = arith.constant dense<0.000000e+00> : vector<256x128xf32>
    %48 = tpu.matmul %46, %47, %cst_39 {dimension_numbers = #tpu.dot_dimension_numbers<[1], [0], [0], [1], [0, 0, 1, 1], [], []>} : vector<256x32xbf16>, vector<32x128xbf16>, vector<256x128xf32> -> vector<256x128xf32>
    %49 = arith.addf %42, %48 : vector<256x128xf32>
    %c0_40 = arith.constant 0 : index
    %c2_41 = arith.constant 2 : index
    %c1_42 = arith.constant 1 : index
    %c0_43 = arith.constant 0 : index
    %50 = vector.load %arg2[%c0_40, %c2_41, %c1_42, %c0_43] : memref<1x18x18x32xf32, #tpu.memory_space<vmem>>, vector<1x16x16x32xf32>
    %51 = vector.shape_cast %50 : vector<1x16x16x32xf32> to vector<16x16x32xf32>
    %52 = vector.shape_cast %51 : vector<16x16x32xf32> to vector<256x32xf32>
    %53 = arith.truncf %52 : vector<256x32xf32> to vector<256x32xbf16>
    %c224 = arith.constant 224 : index
    %c0_44 = arith.constant 0 : index
    %54 = vector.load %arg3[%c224, %c0_44] : memref<288x128xbf16, #tpu.memory_space<vmem>>, vector<32x128xbf16>
    %cst_45 = arith.constant dense<0.000000e+00> : vector<256x128xf32>
    %55 = tpu.matmul %53, %54, %cst_45 {dimension_numbers = #tpu.dot_dimension_numbers<[1], [0], [0], [1], [0, 0, 1, 1], [], []>} : vector<256x32xbf16>, vector<32x128xbf16>, vector<256x128xf32> -> vector<256x128xf32>
    %56 = arith.addf %49, %55 : vector<256x128xf32>
    %c0_46 = arith.constant 0 : index
    %c2_47 = arith.constant 2 : index
    %c2_48 = arith.constant 2 : index
    %c0_49 = arith.constant 0 : index
    %57 = vector.load %arg2[%c0_46, %c2_47, %c2_48, %c0_49] : memref<1x18x18x32xf32, #tpu.memory_space<vmem>>, vector<1x16x16x32xf32>
    %58 = vector.shape_cast %57 : vector<1x16x16x32xf32> to vector<16x16x32xf32>
    %59 = vector.shape_cast %58 : vector<16x16x32xf32> to vector<256x32xf32>
    %60 = arith.truncf %59 : vector<256x32xf32> to vector<256x32xbf16>
    %c256 = arith.constant 256 : index
    %c0_50 = arith.constant 0 : index
    %61 = vector.load %arg3[%c256, %c0_50] : memref<288x128xbf16, #tpu.memory_space<vmem>>, vector<32x128xbf16>
    %cst_51 = arith.constant dense<0.000000e+00> : vector<256x128xf32>
    %62 = tpu.matmul %60, %61, %cst_51 {dimension_numbers = #tpu.dot_dimension_numbers<[1], [0], [0], [1], [0, 0, 1, 1], [], []>} : vector<256x32xbf16>, vector<32x128xbf16>, vector<256x128xf32> -> vector<256x128xf32>
    %63 = arith.addf %56, %62 : vector<256x128xf32>
    %c0_52 = arith.constant 0 : index
    %c0_53 = arith.constant 0 : index
    %64 = vector.load %arg4[%c0_52, %c0_53] : memref<1x128xf32, #tpu.memory_space<vmem>>, vector<1x128xf32>
    %65 = vector.broadcast %64 : vector<1x128xf32> to vector<256x128xf32>
    %66 = arith.addf %63, %65 : vector<256x128xf32>
    %c0_54 = arith.constant 0 : index
    %c0_55 = arith.constant 0 : index
    %c0_56 = arith.constant 0 : index
    %67 = vector.load %arg5[%c0_54, %c0_55, %c0_56] : memref<1x256x128xf32, #tpu.memory_space<vmem>>, vector<1x256x128xf32>
    %68 = vector.shape_cast %67 : vector<1x256x128xf32> to vector<256x128xf32>
    %69 = vector.shape_cast %66 : vector<256x128xf32> to vector<1x256x128xf32>
    tpu.vector_store %arg5[%c0_54, %c0_55, %c0_56], %69 {strides = array<i32>} : memref<1x256x128xf32, #tpu.memory_space<vmem>>, vector<1x256x128xf32>,
    return
  }
  func.func @transform_0(%arg0: i32, %arg1: i32) -> (i32, i32, i32, i32) {
    %c0_i32 = arith.constant 0 : i32
    %c0_i32_0 = arith.constant 0 : i32
    %c0_i32_1 = arith.constant 0 : i32
    %c0_i32_2 = arith.constant 0 : i32
    return %arg0, %c0_i32, %c0_i32_0, %c0_i32_1 : i32, i32, i32, i32
  }
  func.func @transform_1(%arg0: i32, %arg1: i32) -> (i32, i32) {
    %c0_i32 = arith.constant 0 : i32
    %c0_i32_0 = arith.constant 0 : i32
    return %c0_i32, %arg1 : i32, i32
  }
  func.func @transform_2(%arg0: i32, %arg1: i32) -> (i32, i32) {
    %c0_i32 = arith.constant 0 : i32
    %c0_i32_0 = arith.constant 0 : i32
    return %c0_i32, %arg1 : i32, i32
  }
  func.func @transform_3(%arg0: i32, %arg1: i32) -> (i32, i32, i32) {
    %c0_i32 = arith.constant 0 : i32
    %c0_i32_0 = arith.constant 0 : i32
    return %arg0, %c0_i32, %arg1 : i32, i32, i32
  }
}

module attributes {stable_mosaic.version = 11 : i64} {
  func.func @_conv3x3_kernel(%arg0: i32, %arg1: i32, %arg2: memref<1x18x18x32xf32, #tpu.memory_space<vmem>>, %arg3: memref<288x128xbf16, #tpu.memory_space<vmem>>, %arg4: memref<1x128xf32, #tpu.memory_space<vmem>>, %arg5: memref<1x256x128xf32, #tpu.memory_space<vmem>>, %arg6: memref<1x256x128xf32, #tpu.memory_space<vmem>>) attributes {dimension_semantics = [#tpu.dimension_semantics<parallel>, #tpu.dimension_semantics<parallel>], iteration_bounds = array<i64: 2, 1>, scalar_prefetch = 0 : i64, scratch_operands = 0 : i64, tpu.core_type = #tpu.core_type<tc>, window_params = [{transform_indices = @transform_0, window_bounds = array<i64: 1, 18, 18, 32>}, {transform_indices = @transform_1, window_bounds = array<i64: 288, 128>}, {transform_indices = @transform_2, window_bounds = array<i64: 1, 128>}, {transform_indices = @transform_3, window_bounds = array<i64: 1, 256, 128>}, {transform_indices = @transform_4, window_bounds = array<i64: 1, 256, 128>}]} {
    %cst = arith.constant 0.000000e+00 : f32
    %0 = vector.broadcast %cst : f32 to vector<256x128xf32>
    %c0 = arith.constant 0 : index
    %c0_0 = arith.constant 0 : index
    %c0_1 = arith.constant 0 : index
    %c0_2 = arith.constant 0 : index
    %1 = vector.load %arg2[%c0, %c0_0, %c0_1, %c0_2] : memref<1x18x18x32xf32, #tpu.memory_space<vmem>>, vector<1x16x16x32xf32>
    %2 = vector.shape_cast %1 : vector<1x16x16x32xf32> to vector<16x16x32xf32>
    %3 = vector.shape_cast %2 : vector<16x16x32xf32> to vector<256x32xf32>
    %4 = arith.truncf %3 : vector<256x32xf32> to vector<256x32xbf16>
    %c0_3 = arith.constant 0 : index
    %c0_4 = arith.constant 0 : index
    %5 = vector.load %arg3[%c0_3, %c0_4] : memref<288x128xbf16, #tpu.memory_space<vmem>>, vector<32x128xbf16>
    %cst_5 = arith.constant dense<0.000000e+00> : vector<256x128xf32>
    %6 = tpu.matmul %4, %5, %cst_5 {dimension_numbers = #tpu.dot_dimension_numbers<[1], [0], [0], [1], [0, 0, 1, 1], [], []>} : vector<256x32xbf16>, vector<32x128xbf16>, vector<256x128xf32> -> vector<256x128xf32>
    %7 = arith.addf %0, %6 : vector<256x128xf32>
    %c0_6 = arith.constant 0 : index
    %c0_7 = arith.constant 0 : index
    %c1 = arith.constant 1 : index
    %c0_8 = arith.constant 0 : index
    %8 = vector.load %arg2[%c0_6, %c0_7, %c1, %c0_8] : memref<1x18x18x32xf32, #tpu.memory_space<vmem>>, vector<1x16x16x32xf32>
    %9 = vector.shape_cast %8 : vector<1x16x16x32xf32> to vector<16x16x32xf32>
    %10 = vector.shape_cast %9 : vector<16x16x32xf32> to vector<256x32xf32>
    %11 = arith.truncf %10 : vector<256x32xf32> to vector<256x32xbf16>
    %c32 = arith.constant 32 : index
    %c0_9 = arith.constant 0 : index
    %12 = vector.load %arg3[%c32, %c0_9] : memref<288x128xbf16, #tpu.memory_space<vmem>>, vector<32x128xbf16>
    %cst_10 = arith.constant dense<0.000000e+00> : vector<256x128xf32>
    %13 = tpu.matmul %11, %12, %cst_10 {dimension_numbers = #tpu.dot_dimension_numbers<[1], [0], [0], [1], [0, 0, 1, 1], [], []>} : vector<256x32xbf16>, vector<32x128xbf16>, vector<256x128xf32> -> vector<256x128xf32>
    %14 = arith.addf %7, %13 : vector<256x128xf32>
    %c0_11 = arith.constant 0 : index
    %c0_12 = arith.constant 0 : index
    %c2 = arith.constant 2 : index
    %c0_13 = arith.constant 0 : index
    %15 = vector.load %arg2[%c0_11, %c0_12, %c2, %c0_13] : memref<1x18x18x32xf32, #tpu.memory_space<vmem>>, vector<1x16x16x32xf32>
    %16 = vector.shape_cast %15 : vector<1x16x16x32xf32> to vector<16x16x32xf32>
    %17 = vector.shape_cast %16 : vector<16x16x32xf32> to vector<256x32xf32>
    %18 = arith.truncf %17 : vector<256x32xf32> to vector<256x32xbf16>
    %c64 = arith.constant 64 : index
    %c0_14 = arith.constant 0 : index
    %19 = vector.load %arg3[%c64, %c0_14] : memref<288x128xbf16, #tpu.memory_space<vmem>>, vector<32x128xbf16>
    %cst_15 = arith.constant dense<0.000000e+00> : vector<256x128xf32>
    %20 = tpu.matmul %18, %19, %cst_15 {dimension_numbers = #tpu.dot_dimension_numbers<[1], [0], [0], [1], [0, 0, 1, 1], [], []>} : vector<256x32xbf16>, vector<32x128xbf16>, vector<256x128xf32> -> vector<256x128xf32>
    %21 = arith.addf %14, %20 : vector<256x128xf32>
    %c0_16 = arith.constant 0 : index
    %c1_17 = arith.constant 1 : index
    %c0_18 = arith.constant 0 : index
    %c0_19 = arith.constant 0 : index
    %22 = vector.load %arg2[%c0_16, %c1_17, %c0_18, %c0_19] : memref<1x18x18x32xf32, #tpu.memory_space<vmem>>, vector<1x16x16x32xf32>
    %23 = vector.shape_cast %22 : vector<1x16x16x32xf32> to vector<16x16x32xf32>
    %24 = vector.shape_cast %23 : vector<16x16x32xf32> to vector<256x32xf32>
    %25 = arith.truncf %24 : vector<256x32xf32> to vector<256x32xbf16>
    %c96 = arith.constant 96 : index
    %c0_20 = arith.constant 0 : index
    %26 = vector.load %arg3[%c96, %c0_20] : memref<288x128xbf16, #tpu.memory_space<vmem>>, vector<32x128xbf16>
    %cst_21 = arith.constant dense<0.000000e+00> : vector<256x128xf32>
    %27 = tpu.matmul %25, %26, %cst_21 {dimension_numbers = #tpu.dot_dimension_numbers<[1], [0], [0], [1], [0, 0, 1, 1], [], []>} : vector<256x32xbf16>, vector<32x128xbf16>, vector<256x128xf32> -> vector<256x128xf32>
    %28 = arith.addf %21, %27 : vector<256x128xf32>
    %c0_22 = arith.constant 0 : index
    %c1_23 = arith.constant 1 : index
    %c1_24 = arith.constant 1 : index
    %c0_25 = arith.constant 0 : index
    %29 = vector.load %arg2[%c0_22, %c1_23, %c1_24, %c0_25] : memref<1x18x18x32xf32, #tpu.memory_space<vmem>>, vector<1x16x16x32xf32>
    %30 = vector.shape_cast %29 : vector<1x16x16x32xf32> to vector<16x16x32xf32>
    %31 = vector.shape_cast %30 : vector<16x16x32xf32> to vector<256x32xf32>
    %32 = arith.truncf %31 : vector<256x32xf32> to vector<256x32xbf16>
    %c128 = arith.constant 128 : index
    %c0_26 = arith.constant 0 : index
    %33 = vector.load %arg3[%c128, %c0_26] : memref<288x128xbf16, #tpu.memory_space<vmem>>, vector<32x128xbf16>
    %cst_27 = arith.constant dense<0.000000e+00> : vector<256x128xf32>
    %34 = tpu.matmul %32, %33, %cst_27 {dimension_numbers = #tpu.dot_dimension_numbers<[1], [0], [0], [1], [0, 0, 1, 1], [], []>} : vector<256x32xbf16>, vector<32x128xbf16>, vector<256x128xf32> -> vector<256x128xf32>
    %35 = arith.addf %28, %34 : vector<256x128xf32>
    %c0_28 = arith.constant 0 : index
    %c1_29 = arith.constant 1 : index
    %c2_30 = arith.constant 2 : index
    %c0_31 = arith.constant 0 : index
    %36 = vector.load %arg2[%c0_28, %c1_29, %c2_30, %c0_31] : memref<1x18x18x32xf32, #tpu.memory_space<vmem>>, vector<1x16x16x32xf32>
    %37 = vector.shape_cast %36 : vector<1x16x16x32xf32> to vector<16x16x32xf32>
    %38 = vector.shape_cast %37 : vector<16x16x32xf32> to vector<256x32xf32>
    %39 = arith.truncf %38 : vector<256x32xf32> to vector<256x32xbf16>
    %c160 = arith.constant 160 : index
    %c0_32 = arith.constant 0 : index
    %40 = vector.load %arg3[%c160, %c0_32] : memref<288x128xbf16, #tpu.memory_space<vmem>>, vector<32x128xbf16>
    %cst_33 = arith.constant dense<0.000000e+00> : vector<256x128xf32>
    %41 = tpu.matmul %39, %40, %cst_33 {dimension_numbers = #tpu.dot_dimension_numbers<[1], [0], [0], [1], [0, 0, 1, 1], [], []>} : vector<256x32xbf16>, vector<32x128xbf16>, vector<256x128xf32> -> vector<256x128xf32>
    %42 = arith.addf %35, %41 : vector<256x128xf32>
    %c0_34 = arith.constant 0 : index
    %c2_35 = arith.constant 2 : index
    %c0_36 = arith.constant 0 : index
    %c0_37 = arith.constant 0 : index
    %43 = vector.load %arg2[%c0_34, %c2_35, %c0_36, %c0_37] : memref<1x18x18x32xf32, #tpu.memory_space<vmem>>, vector<1x16x16x32xf32>
    %44 = vector.shape_cast %43 : vector<1x16x16x32xf32> to vector<16x16x32xf32>
    %45 = vector.shape_cast %44 : vector<16x16x32xf32> to vector<256x32xf32>
    %46 = arith.truncf %45 : vector<256x32xf32> to vector<256x32xbf16>
    %c192 = arith.constant 192 : index
    %c0_38 = arith.constant 0 : index
    %47 = vector.load %arg3[%c192, %c0_38] : memref<288x128xbf16, #tpu.memory_space<vmem>>, vector<32x128xbf16>
    %cst_39 = arith.constant dense<0.000000e+00> : vector<256x128xf32>
    %48 = tpu.matmul %46, %47, %cst_39 {dimension_numbers = #tpu.dot_dimension_numbers<[1], [0], [0], [1], [0, 0, 1, 1], [], []>} : vector<256x32xbf16>, vector<32x128xbf16>, vector<256x128xf32> -> vector<256x128xf32>
    %49 = arith.addf %42, %48 : vector<256x128xf32>
    %c0_40 = arith.constant 0 : index
    %c2_41 = arith.constant 2 : index
    %c1_42 = arith.constant 1 : index
    %c0_43 = arith.constant 0 : index
    %50 = vector.load %arg2[%c0_40, %c2_41, %c1_42, %c0_43] : memref<1x18x18x32xf32, #tpu.memory_space<vmem>>, vector<1x16x16x32xf32>
    %51 = vector.shape_cast %50 : vector<1x16x16x32xf32> to vector<16x16x32xf32>
    %52 = vector.shape_cast %51 : vector<16x16x32xf32> to vector<256x32xf32>
    %53 = arith.truncf %52 : vector<256x32xf32> to vector<256x32xbf16>
    %c224 = arith.constant 224 : index
    %c0_44 = arith.constant 0 : index
    %54 = vector.load %arg3[%c224, %c0_44] : memref<288x128xbf16, #tpu.memory_space<vmem>>, vector<32x128xbf16>
    %cst_45 = arith.constant dense<0.000000e+00> : vector<256x128xf32>
    %55 = tpu.matmul %53, %54, %cst_45 {dimension_numbers = #tpu.dot_dimension_numbers<[1], [0], [0], [1], [0, 0, 1, 1], [], []>} : vector<256x32xbf16>, vector<32x128xbf16>, vector<256x128xf32> -> vector<256x128xf32>
    %56 = arith.addf %49, %55 : vector<256x128xf32>
    %c0_46 = arith.constant 0 : index
    %c2_47 = arith.constant 2 : index
    %c2_48 = arith.constant 2 : index
    %c0_49 = arith.constant 0 : index
    %57 = vector.load %arg2[%c0_46, %c2_47, %c2_48, %c0_49] : memref<1x18x18x32xf32, #tpu.memory_space<vmem>>, vector<1x16x16x32xf32>
    %58 = vector.shape_cast %57 : vector<1x16x16x32xf32> to vector<16x16x32xf32>
    %59 = vector.shape_cast %58 : vector<16x16x32xf32> to vector<256x32xf32>
    %60 = arith.truncf %59 : vector<256x32xf32> to vector<256x32xbf16>
    %c256 = arith.constant 256 : index
    %c0_50 = arith.constant 0 : index
    %61 = vector.load %arg3[%c256, %c0_50] : memref<288x128xbf16, #tpu.memory_space<vmem>>, vector<32x128xbf16>
    %cst_51 = arith.constant dense<0.000000e+00> : vector<256x128xf32>
    %62 = tpu.matmul %60, %61, %cst_51 {dimension_numbers = #tpu.dot_dimension_numbers<[1], [0], [0], [1], [0, 0, 1, 1], [], []>} : vector<256x32xbf16>, vector<32x128xbf16>, vector<256x128xf32> -> vector<256x128xf32>
    %63 = arith.addf %56, %62 : vector<256x128xf32>
    %c0_52 = arith.constant 0 : index
    %c0_53 = arith.constant 0 : index
    %64 = vector.load %arg4[%c0_52, %c0_53] : memref<1x128xf32, #tpu.memory_space<vmem>>, vector<1x128xf32>
    %65 = vector.broadcast %64 : vector<1x128xf32> to vector<256x128xf32>
    %66 = arith.addf %63, %65 : vector<256x128xf32>
    %c0_54 = arith.constant 0 : index
    %c0_55 = arith.constant 0 : index
    %c0_56 = arith.constant 0 : index
    %67 = vector.load %arg5[%c0_54, %c0_55, %c0_56] : memref<1x256x128xf32, #tpu.memory_space<vmem>>, vector<1x256x128xf32>
    %68 = vector.shape_cast %67 : vector<1x256x128xf32> to vector<256x128xf32>
    %69 = arith.addf %66, %68 : vector<256x128xf32>
    %c0_57 = arith.constant 0 : index
    %c0_58 = arith.constant 0 : index
    %c0_59 = arith.constant 0 : index
    %70 = vector.load %arg6[%c0_57, %c0_58, %c0_59] : memref<1x256x128xf32, #tpu.memory_space<vmem>>, vector<1x256x128xf32>
    %71 = vector.shape_cast %70 : vector<1x256x128xf32> to vector<256x128xf32>
    %72 = vector.shape_cast %69 : vector<256x128xf32> to vector<1x256x128xf32>
    tpu.vector_store %arg6[%c0_57, %c0_58, %c0_59], %72 {strides = array<i32>} : memref<1x256x128xf32, #tpu.memory_space<vmem>>, vector<1x256x128xf32>,
    return
  }
  func.func @transform_0(%arg0: i32, %arg1: i32) -> (i32, i32, i32, i32) {
    %c0_i32 = arith.constant 0 : i32
    %c0_i32_0 = arith.constant 0 : i32
    %c0_i32_1 = arith.constant 0 : i32
    %c0_i32_2 = arith.constant 0 : i32
    return %arg0, %c0_i32, %c0_i32_0, %c0_i32_1 : i32, i32, i32, i32
  }
  func.func @transform_1(%arg0: i32, %arg1: i32) -> (i32, i32) {
    %c0_i32 = arith.constant 0 : i32
    %c0_i32_0 = arith.constant 0 : i32
    return %c0_i32, %arg1 : i32, i32
  }
  func.func @transform_2(%arg0: i32, %arg1: i32) -> (i32, i32) {
    %c0_i32 = arith.constant 0 : i32
    %c0_i32_0 = arith.constant 0 : i32
    return %c0_i32, %arg1 : i32, i32
  }
  func.func @transform_3(%arg0: i32, %arg1: i32) -> (i32, i32, i32) {
    %c0_i32 = arith.constant 0 : i32
    %c0_i32_0 = arith.constant 0 : i32
    return %arg0, %c0_i32, %arg1 : i32, i32, i32
  }
  func.func @transform_4(%arg0: i32, %arg1: i32) -> (i32, i32, i32) {
    %c0_i32 = arith.constant 0 : i32
    %c0_i32_0 = arith.constant 0 : i32
    return %arg0, %c0_i32, %arg1 : i32, i32, i32
  }
}

module attributes {stable_mosaic.version = 11 : i64} {
  func.func @_gemm_kernel(%arg0: i32, %arg1: i32, %arg2: i32, %arg3: memref<128x384xbf16, #tpu.memory_space<vmem>>, %arg4: memref<384x128xbf16, #tpu.memory_space<vmem>>, %arg5: memref<1x128xf32, #tpu.memory_space<vmem>>, %arg6: memref<128x128xf32, #tpu.memory_space<vmem>>, %arg7: memref<128x128xf32, #tpu.memory_space<vmem>>) attributes {dimension_semantics = [#tpu.dimension_semantics<parallel>, #tpu.dimension_semantics<parallel>, #tpu.dimension_semantics<arbitrary>], iteration_bounds = array<i64: 1, 1, 1>, scalar_prefetch = 0 : i64, scratch_operands = 1 : i64, tpu.core_type = #tpu.core_type<tc>, window_params = [{transform_indices = @transform_0, window_bounds = array<i64: 128, 384>}, {transform_indices = @transform_1, window_bounds = array<i64: 384, 128>}, {transform_indices = @transform_2, window_bounds = array<i64: 1, 128>}, {transform_indices = @transform_3, window_bounds = array<i64: 128, 128>}]} {
    %c0_i32 = arith.constant 0 : i32
    %0 = arith.cmpi eq, %arg2, %c0_i32 : i32
    %1 = arith.extui %0 : i1 to i32
    %c0_i32_0 = arith.constant 0 : i32
    %2 = arith.cmpi ne, %1, %c0_i32_0 : i32
    scf.if %2 {
      %cst_10 = arith.constant 0.000000e+00 : f32
      %12 = vector.broadcast %cst_10 : f32 to vector<128x128xf32>
      %c0_11 = arith.constant 0 : index
      %c0_12 = arith.constant 0 : index
      %13 = vector.load %arg7[%c0_11, %c0_12] : memref<128x128xf32, #tpu.memory_space<vmem>>, vector<128x128xf32>
      tpu.vector_store %arg7[%c0_11, %c0_12], %12 {strides = array<i32>} : memref<128x128xf32, #tpu.memory_space<vmem>>, vector<128x128xf32>,
    } else {
    }
    %c0 = arith.constant 0 : index
    %c0_1 = arith.constant 0 : index
    %3 = vector.load %arg7[%c0, %c0_1] : memref<128x128xf32, #tpu.memory_space<vmem>>, vector<128x128xf32>
    %c0_2 = arith.constant 0 : index
    %c0_3 = arith.constant 0 : index
    %4 = vector.load %arg3[%c0_2, %c0_3] : memref<128x384xbf16, #tpu.memory_space<vmem>>, vector<128x384xbf16>
    %c0_4 = arith.constant 0 : index
    %c0_5 = arith.constant 0 : index
    %5 = vector.load %arg4[%c0_4, %c0_5] : memref<384x128xbf16, #tpu.memory_space<vmem>>, vector<384x128xbf16>
    %cst = arith.constant dense<0.000000e+00> : vector<128x128xf32>
    %6 = tpu.matmul %4, %5, %cst {dimension_numbers = #tpu.dot_dimension_numbers<[1], [0], [0], [1], [0, 0, 1, 1], [], []>} : vector<128x384xbf16>, vector<384x128xbf16>, vector<128x128xf32> -> vector<128x128xf32>
    %7 = arith.addf %3, %6 : vector<128x128xf32>
    %c0_6 = arith.constant 0 : index
    %c0_7 = arith.constant 0 : index
    %8 = vector.load %arg7[%c0_6, %c0_7] : memref<128x128xf32, #tpu.memory_space<vmem>>, vector<128x128xf32>
    tpu.vector_store %arg7[%c0_6, %c0_7], %7 {strides = array<i32>} : memref<128x128xf32, #tpu.memory_space<vmem>>, vector<128x128xf32>,
    %c0_i32_8 = arith.constant 0 : i32
    %9 = arith.cmpi eq, %arg2, %c0_i32_8 : i32
    %10 = arith.extui %9 : i1 to i32
    %c0_i32_9 = arith.constant 0 : i32
    %11 = arith.cmpi ne, %10, %c0_i32_9 : i32
    scf.if %11 {
      %c0_10 = arith.constant 0 : index
      %c0_11 = arith.constant 0 : index
      %12 = vector.load %arg7[%c0_10, %c0_11] : memref<128x128xf32, #tpu.memory_space<vmem>>, vector<128x128xf32>
      %c0_12 = arith.constant 0 : index
      %c0_13 = arith.constant 0 : index
      %13 = vector.load %arg5[%c0_12, %c0_13] : memref<1x128xf32, #tpu.memory_space<vmem>>, vector<1x128xf32>
      %14 = vector.broadcast %13 : vector<1x128xf32> to vector<128x128xf32>
      %15 = arith.addf %12, %14 : vector<128x128xf32>
      %c0_14 = arith.constant 0 : index
      %c0_15 = arith.constant 0 : index
      %16 = vector.load %arg6[%c0_14, %c0_15] : memref<128x128xf32, #tpu.memory_space<vmem>>, vector<128x128xf32>
      tpu.vector_store %arg6[%c0_14, %c0_15], %15 {strides = array<i32>} : memref<128x128xf32, #tpu.memory_space<vmem>>, vector<128x128xf32>,
    } else {
    }
    return
  }
  func.func @transform_0(%arg0: i32, %arg1: i32, %arg2: i32) -> (i32, i32) {
    %c0_i32 = arith.constant 0 : i32
    return %arg0, %arg2 : i32, i32
  }
  func.func @transform_1(%arg0: i32, %arg1: i32, %arg2: i32) -> (i32, i32) {
    %c0_i32 = arith.constant 0 : i32
    return %arg2, %arg1 : i32, i32
  }
  func.func @transform_2(%arg0: i32, %arg1: i32, %arg2: i32) -> (i32, i32) {
    %c0_i32 = arith.constant 0 : i32
    %c0_i32_0 = arith.constant 0 : i32
    return %c0_i32, %arg1 : i32, i32
  }
  func.func @transform_3(%arg0: i32, %arg1: i32, %arg2: i32) -> (i32, i32) {
    %c0_i32 = arith.constant 0 : i32
    return %arg0, %arg1 : i32, i32
  }
}

module attributes {stable_mosaic.version = 11 : i64} {
  func.func @_group_norm_kernel(%arg0: i32, %arg1: memref<1x64x32xf32, #tpu.memory_space<vmem>>, %arg2: memref<32x32xf32, #tpu.memory_space<vmem>>, %arg3: memref<32x32xf32, #tpu.memory_space<vmem>>, %arg4: memref<1x32xf32, #tpu.memory_space<vmem>>, %arg5: memref<1x32xf32, #tpu.memory_space<vmem>>, %arg6: memref<1x64x32xf32, #tpu.memory_space<vmem>>) attributes {dimension_semantics = [#tpu.dimension_semantics<parallel>], iteration_bounds = array<i64: 2>, scalar_prefetch = 0 : i64, scratch_operands = 0 : i64, tpu.core_type = #tpu.core_type<tc>, window_params = [{transform_indices = @transform_0, window_bounds = array<i64: 1, 64, 32>}, {pipeline_mode = #tpu.pipeline_mode<synchronous>, transform_indices = @transform_1, window_bounds = array<i64: 32, 32>}, {pipeline_mode = #tpu.pipeline_mode<synchronous>, transform_indices = @transform_2, window_bounds = array<i64: 32, 32>}, {pipeline_mode = #tpu.pipeline_mode<synchronous>, transform_indices = @transform_3, window_bounds = array<i64: 1, 32>}, {pipeline_mode = #tpu.pipeline_mode<synchronous>, transform_indices = @transform_4, window_bounds = array<i64: 1, 32>}, {transform_indices = @transform_5, window_bounds = array<i64: 1, 64, 32>}]} {
    %c0 = arith.constant 0 : index
    %c0_0 = arith.constant 0 : index
    %c0_1 = arith.constant 0 : index
    %0 = vector.load %arg1[%c0, %c0_0, %c0_1] : memref<1x64x32xf32, #tpu.memory_space<vmem>>, vector<1x64x32xf32>
    %1 = vector.shape_cast %0 : vector<1x64x32xf32> to vector<64x32xf32>
    %c0_2 = arith.constant 0 : index
    %c0_3 = arith.constant 0 : index
    %2 = vector.load %arg2[%c0_2, %c0_3] : memref<32x32xf32, #tpu.memory_space<vmem>>, vector<32x32xf32>
    %c0_4 = arith.constant 0 : index
    %c0_5 = arith.constant 0 : index
    %3 = vector.load %arg3[%c0_4, %c0_5] : memref<32x32xf32, #tpu.memory_space<vmem>>, vector<32x32xf32>
    %cst = arith.constant dense<0.000000e+00> : vector<32xf32>
    %4 = vector.multi_reduction <add>, %1, %cst [0] : vector<64x32xf32> to vector<32xf32>
    %5 = vector.shape_cast %4 : vector<32xf32> to vector<1x32xf32>
    %cst_6 = arith.constant dense<0.000000e+00> : vector<1x32xf32>
    %6 = tpu.matmul %5, %2, %cst_6 {dimension_numbers = #tpu.dot_dimension_numbers<[1], [0], [0], [1], [0, 0, 1, 1], [], []>} : vector<1x32xf32>, vector<32x32xf32>, vector<1x32xf32> -> vector<1x32xf32>
    %cst_7 = arith.constant 1.562500e-02 : f32
    %7 = vector.broadcast %cst_7 : f32 to vector<1x32xf32>
    %8 = arith.mulf %6, %7 : vector<1x32xf32>
    %cst_8 = arith.constant dense<0.000000e+00> : vector<1x32xf32>
    %9 = tpu.matmul %8, %3, %cst_8 {dimension_numbers = #tpu.dot_dimension_numbers<[1], [0], [0], [1], [0, 0, 1, 1], [], []>} : vector<1x32xf32>, vector<32x32xf32>, vector<1x32xf32> -> vector<1x32xf32>
    %10 = vector.broadcast %9 : vector<1x32xf32> to vector<64x32xf32>
    %11 = arith.subf %1, %10 : vector<64x32xf32>
    %12 = arith.mulf %11, %11 : vector<64x32xf32>
    %cst_9 = arith.constant dense<0.000000e+00> : vector<32xf32>
    %13 = vector.multi_reduction <add>, %12, %cst_9 [0] : vector<64x32xf32> to vector<32xf32>
    %14 = vector.shape_cast %13 : vector<32xf32> to vector<1x32xf32>
    %cst_10 = arith.constant dense<0.000000e+00> : vector<1x32xf32>
    %15 = tpu.matmul %14, %2, %cst_10 {dimension_numbers = #tpu.dot_dimension_numbers<[1], [0], [0], [1], [0, 0, 1, 1], [], []>} : vector<1x32xf32>, vector<32x32xf32>, vector<1x32xf32> -> vector<1x32xf32>
    %cst_11 = arith.constant 1.562500e-02 : f32
    %16 = vector.broadcast %cst_11 : f32 to vector<1x32xf32>
    %17 = arith.mulf %15, %16 : vector<1x32xf32>
    %cst_12 = arith.constant dense<0.000000e+00> : vector<1x32xf32>
    %18 = tpu.matmul %17, %3, %cst_12 {dimension_numbers = #tpu.dot_dimension_numbers<[1], [0], [0], [1], [0, 0, 1, 1], [], []>} : vector<1x32xf32>, vector<32x32xf32>, vector<1x32xf32> -> vector<1x32xf32>
    %cst_13 = arith.constant 9.99999997E-7 : f32
    %19 = vector.broadcast %cst_13 : f32 to vector<1x32xf32>
    %20 = arith.addf %18, %19 : vector<1x32xf32>
    %21 = math.rsqrt %20 : vector<1x32xf32>
    %22 = vector.broadcast %21 : vector<1x32xf32> to vector<64x32xf32>
    %23 = arith.mulf %11, %22 : vector<64x32xf32>
    %c0_14 = arith.constant 0 : index
    %c0_15 = arith.constant 0 : index
    %24 = vector.load %arg4[%c0_14, %c0_15] : memref<1x32xf32, #tpu.memory_space<vmem>>, vector<1x32xf32>
    %25 = vector.broadcast %24 : vector<1x32xf32> to vector<64x32xf32>
    %26 = arith.mulf %23, %25 : vector<64x32xf32>
    %c0_16 = arith.constant 0 : index
    %c0_17 = arith.constant 0 : index
    %27 = vector.load %arg5[%c0_16, %c0_17] : memref<1x32xf32, #tpu.memory_space<vmem>>, vector<1x32xf32>
    %28 = vector.broadcast %27 : vector<1x32xf32> to vector<64x32xf32>
    %29 = arith.addf %26, %28 : vector<64x32xf32>
    %30 = arith.negf %29 : vector<64x32xf32>
    %31 = math.exp %30 : vector<64x32xf32>
    %cst_18 = arith.constant 1.000000e+00 : f32
    %32 = vector.broadcast %cst_18 : f32 to vector<64x32xf32>
    %33 = arith.addf %32, %31 : vector<64x32xf32>
    %34 = arith.divf %32, %33 : vector<64x32xf32>
    %35 = arith.mulf %29, %34 : vector<64x32xf32>
    %c0_19 = arith.constant 0 : index
    %c0_20 = arith.constant 0 : index
    %c0_21 = arith.constant 0 : index
    %36 = vector.load %arg6[%c0_19, %c0_20, %c0_21] : memref<1x64x32xf32, #tpu.memory_space<vmem>>, vector<1x64x32xf32>
    %37 = vector.shape_cast %36 : vector<1x64x32xf32> to vector<64x32xf32>
    %38 = vector.shape_cast %35 : vector<64x32xf32> to vector<1x64x32xf32>
    tpu.vector_store %arg6[%c0_19, %c0_20, %c0_21], %38 {strides = array<i32>} : memref<1x64x32xf32, #tpu.memory_space<vmem>>, vector<1x64x32xf32>,
    return
  }
  func.func @transform_0(%arg0: i32) -> (i32, i32, i32) {
    %c0_i32 = arith.constant 0 : i32
    %c0_i32_0 = arith.constant 0 : i32
    %c0_i32_1 = arith.constant 0 : i32
    return %arg0, %c0_i32, %c0_i32_0 : i32, i32, i32
  }
  func.func @transform_1(%arg0: i32) -> (i32, i32) {
    %c0_i32 = arith.constant 0 : i32
    %c0_i32_0 = arith.constant 0 : i32
    %c0_i32_1 = arith.constant 0 : i32
    return %c0_i32, %c0_i32_0 : i32, i32
  }
  func.func @transform_2(%arg0: i32) -> (i32, i32) {
    %c0_i32 = arith.constant 0 : i32
    %c0_i32_0 = arith.constant 0 : i32
    %c0_i32_1 = arith.constant 0 : i32
    return %c0_i32, %c0_i32_0 : i32, i32
  }
  func.func @transform_3(%arg0: i32) -> (i32, i32) {
    %c0_i32 = arith.constant 0 : i32
    %c0_i32_0 = arith.constant 0 : i32
    %c0_i32_1 = arith.constant 0 : i32
    return %c0_i32, %c0_i32_0 : i32, i32
  }
  func.func @transform_4(%arg0: i32) -> (i32, i32) {
    %c0_i32 = arith.constant 0 : i32
    %c0_i32_0 = arith.constant 0 : i32
    %c0_i32_1 = arith.constant 0 : i32
    return %c0_i32, %c0_i32_0 : i32, i32
  }
  func.func @transform_5(%arg0: i32) -> (i32, i32, i32) {
    %c0_i32 = arith.constant 0 : i32
    %c0_i32_0 = arith.constant 0 : i32
    %c0_i32_1 = arith.constant 0 : i32
    return %arg0, %c0_i32, %c0_i32_0 : i32, i32, i32
  }
}

module attributes {stable_mosaic.version = 11 : i64} {
  func.func @_conv3x3_kernel(%arg0: i32, %arg1: i32, %arg2: memref<1x10x10x32xf32, #tpu.memory_space<vmem>>, %arg3: memref<288x128xbf16, #tpu.memory_space<vmem>>, %arg4: memref<1x128xf32, #tpu.memory_space<vmem>>, %arg5: memref<1x64x128xf32, #tpu.memory_space<vmem>>) attributes {dimension_semantics = [#tpu.dimension_semantics<parallel>, #tpu.dimension_semantics<parallel>], iteration_bounds = array<i64: 2, 1>, scalar_prefetch = 0 : i64, scratch_operands = 0 : i64, tpu.core_type = #tpu.core_type<tc>, window_params = [{transform_indices = @transform_0, window_bounds = array<i64: 1, 10, 10, 32>}, {transform_indices = @transform_1, window_bounds = array<i64: 288, 128>}, {transform_indices = @transform_2, window_bounds = array<i64: 1, 128>}, {transform_indices = @transform_3, window_bounds = array<i64: 1, 64, 128>}]} {
    %cst = arith.constant 0.000000e+00 : f32
    %0 = vector.broadcast %cst : f32 to vector<64x128xf32>
    %c0 = arith.constant 0 : index
    %c0_0 = arith.constant 0 : index
    %c0_1 = arith.constant 0 : index
    %c0_2 = arith.constant 0 : index
    %1 = vector.load %arg2[%c0, %c0_0, %c0_1, %c0_2] : memref<1x10x10x32xf32, #tpu.memory_space<vmem>>, vector<1x8x8x32xf32>
    %2 = vector.shape_cast %1 : vector<1x8x8x32xf32> to vector<8x8x32xf32>
    %3 = vector.shape_cast %2 : vector<8x8x32xf32> to vector<64x32xf32>
    %4 = arith.truncf %3 : vector<64x32xf32> to vector<64x32xbf16>
    %c0_3 = arith.constant 0 : index
    %c0_4 = arith.constant 0 : index
    %5 = vector.load %arg3[%c0_3, %c0_4] : memref<288x128xbf16, #tpu.memory_space<vmem>>, vector<32x128xbf16>
    %cst_5 = arith.constant dense<0.000000e+00> : vector<64x128xf32>
    %6 = tpu.matmul %4, %5, %cst_5 {dimension_numbers = #tpu.dot_dimension_numbers<[1], [0], [0], [1], [0, 0, 1, 1], [], []>} : vector<64x32xbf16>, vector<32x128xbf16>, vector<64x128xf32> -> vector<64x128xf32>
    %7 = arith.addf %0, %6 : vector<64x128xf32>
    %c0_6 = arith.constant 0 : index
    %c0_7 = arith.constant 0 : index
    %c1 = arith.constant 1 : index
    %c0_8 = arith.constant 0 : index
    %8 = vector.load %arg2[%c0_6, %c0_7, %c1, %c0_8] : memref<1x10x10x32xf32, #tpu.memory_space<vmem>>, vector<1x8x8x32xf32>
    %9 = vector.shape_cast %8 : vector<1x8x8x32xf32> to vector<8x8x32xf32>
    %10 = vector.shape_cast %9 : vector<8x8x32xf32> to vector<64x32xf32>
    %11 = arith.truncf %10 : vector<64x32xf32> to vector<64x32xbf16>
    %c32 = arith.constant 32 : index
    %c0_9 = arith.constant 0 : index
    %12 = vector.load %arg3[%c32, %c0_9] : memref<288x128xbf16, #tpu.memory_space<vmem>>, vector<32x128xbf16>
    %cst_10 = arith.constant dense<0.000000e+00> : vector<64x128xf32>
    %13 = tpu.matmul %11, %12, %cst_10 {dimension_numbers = #tpu.dot_dimension_numbers<[1], [0], [0], [1], [0, 0, 1, 1], [], []>} : vector<64x32xbf16>, vector<32x128xbf16>, vector<64x128xf32> -> vector<64x128xf32>
    %14 = arith.addf %7, %13 : vector<64x128xf32>
    %c0_11 = arith.constant 0 : index
    %c0_12 = arith.constant 0 : index
    %c2 = arith.constant 2 : index
    %c0_13 = arith.constant 0 : index
    %15 = vector.load %arg2[%c0_11, %c0_12, %c2, %c0_13] : memref<1x10x10x32xf32, #tpu.memory_space<vmem>>, vector<1x8x8x32xf32>
    %16 = vector.shape_cast %15 : vector<1x8x8x32xf32> to vector<8x8x32xf32>
    %17 = vector.shape_cast %16 : vector<8x8x32xf32> to vector<64x32xf32>
    %18 = arith.truncf %17 : vector<64x32xf32> to vector<64x32xbf16>
    %c64 = arith.constant 64 : index
    %c0_14 = arith.constant 0 : index
    %19 = vector.load %arg3[%c64, %c0_14] : memref<288x128xbf16, #tpu.memory_space<vmem>>, vector<32x128xbf16>
    %cst_15 = arith.constant dense<0.000000e+00> : vector<64x128xf32>
    %20 = tpu.matmul %18, %19, %cst_15 {dimension_numbers = #tpu.dot_dimension_numbers<[1], [0], [0], [1], [0, 0, 1, 1], [], []>} : vector<64x32xbf16>, vector<32x128xbf16>, vector<64x128xf32> -> vector<64x128xf32>
    %21 = arith.addf %14, %20 : vector<64x128xf32>
    %c0_16 = arith.constant 0 : index
    %c1_17 = arith.constant 1 : index
    %c0_18 = arith.constant 0 : index
    %c0_19 = arith.constant 0 : index
    %22 = vector.load %arg2[%c0_16, %c1_17, %c0_18, %c0_19] : memref<1x10x10x32xf32, #tpu.memory_space<vmem>>, vector<1x8x8x32xf32>
    %23 = vector.shape_cast %22 : vector<1x8x8x32xf32> to vector<8x8x32xf32>
    %24 = vector.shape_cast %23 : vector<8x8x32xf32> to vector<64x32xf32>
    %25 = arith.truncf %24 : vector<64x32xf32> to vector<64x32xbf16>
    %c96 = arith.constant 96 : index
    %c0_20 = arith.constant 0 : index
    %26 = vector.load %arg3[%c96, %c0_20] : memref<288x128xbf16, #tpu.memory_space<vmem>>, vector<32x128xbf16>
    %cst_21 = arith.constant dense<0.000000e+00> : vector<64x128xf32>
    %27 = tpu.matmul %25, %26, %cst_21 {dimension_numbers = #tpu.dot_dimension_numbers<[1], [0], [0], [1], [0, 0, 1, 1], [], []>} : vector<64x32xbf16>, vector<32x128xbf16>, vector<64x128xf32> -> vector<64x128xf32>
    %28 = arith.addf %21, %27 : vector<64x128xf32>
    %c0_22 = arith.constant 0 : index
    %c1_23 = arith.constant 1 : index
    %c1_24 = arith.constant 1 : index
    %c0_25 = arith.constant 0 : index
    %29 = vector.load %arg2[%c0_22, %c1_23, %c1_24, %c0_25] : memref<1x10x10x32xf32, #tpu.memory_space<vmem>>, vector<1x8x8x32xf32>
    %30 = vector.shape_cast %29 : vector<1x8x8x32xf32> to vector<8x8x32xf32>
    %31 = vector.shape_cast %30 : vector<8x8x32xf32> to vector<64x32xf32>
    %32 = arith.truncf %31 : vector<64x32xf32> to vector<64x32xbf16>
    %c128 = arith.constant 128 : index
    %c0_26 = arith.constant 0 : index
    %33 = vector.load %arg3[%c128, %c0_26] : memref<288x128xbf16, #tpu.memory_space<vmem>>, vector<32x128xbf16>
    %cst_27 = arith.constant dense<0.000000e+00> : vector<64x128xf32>
    %34 = tpu.matmul %32, %33, %cst_27 {dimension_numbers = #tpu.dot_dimension_numbers<[1], [0], [0], [1], [0, 0, 1, 1], [], []>} : vector<64x32xbf16>, vector<32x128xbf16>, vector<64x128xf32> -> vector<64x128xf32>
    %35 = arith.addf %28, %34 : vector<64x128xf32>
    %c0_28 = arith.constant 0 : index
    %c1_29 = arith.constant 1 : index
    %c2_30 = arith.constant 2 : index
    %c0_31 = arith.constant 0 : index
    %36 = vector.load %arg2[%c0_28, %c1_29, %c2_30, %c0_31] : memref<1x10x10x32xf32, #tpu.memory_space<vmem>>, vector<1x8x8x32xf32>
    %37 = vector.shape_cast %36 : vector<1x8x8x32xf32> to vector<8x8x32xf32>
    %38 = vector.shape_cast %37 : vector<8x8x32xf32> to vector<64x32xf32>
    %39 = arith.truncf %38 : vector<64x32xf32> to vector<64x32xbf16>
    %c160 = arith.constant 160 : index
    %c0_32 = arith.constant 0 : index
    %40 = vector.load %arg3[%c160, %c0_32] : memref<288x128xbf16, #tpu.memory_space<vmem>>, vector<32x128xbf16>
    %cst_33 = arith.constant dense<0.000000e+00> : vector<64x128xf32>
    %41 = tpu.matmul %39, %40, %cst_33 {dimension_numbers = #tpu.dot_dimension_numbers<[1], [0], [0], [1], [0, 0, 1, 1], [], []>} : vector<64x32xbf16>, vector<32x128xbf16>, vector<64x128xf32> -> vector<64x128xf32>
    %42 = arith.addf %35, %41 : vector<64x128xf32>
    %c0_34 = arith.constant 0 : index
    %c2_35 = arith.constant 2 : index
    %c0_36 = arith.constant 0 : index
    %c0_37 = arith.constant 0 : index
    %43 = vector.load %arg2[%c0_34, %c2_35, %c0_36, %c0_37] : memref<1x10x10x32xf32, #tpu.memory_space<vmem>>, vector<1x8x8x32xf32>
    %44 = vector.shape_cast %43 : vector<1x8x8x32xf32> to vector<8x8x32xf32>
    %45 = vector.shape_cast %44 : vector<8x8x32xf32> to vector<64x32xf32>
    %46 = arith.truncf %45 : vector<64x32xf32> to vector<64x32xbf16>
    %c192 = arith.constant 192 : index
    %c0_38 = arith.constant 0 : index
    %47 = vector.load %arg3[%c192, %c0_38] : memref<288x128xbf16, #tpu.memory_space<vmem>>, vector<32x128xbf16>
    %cst_39 = arith.constant dense<0.000000e+00> : vector<64x128xf32>
    %48 = tpu.matmul %46, %47, %cst_39 {dimension_numbers = #tpu.dot_dimension_numbers<[1], [0], [0], [1], [0, 0, 1, 1], [], []>} : vector<64x32xbf16>, vector<32x128xbf16>, vector<64x128xf32> -> vector<64x128xf32>
    %49 = arith.addf %42, %48 : vector<64x128xf32>
    %c0_40 = arith.constant 0 : index
    %c2_41 = arith.constant 2 : index
    %c1_42 = arith.constant 1 : index
    %c0_43 = arith.constant 0 : index
    %50 = vector.load %arg2[%c0_40, %c2_41, %c1_42, %c0_43] : memref<1x10x10x32xf32, #tpu.memory_space<vmem>>, vector<1x8x8x32xf32>
    %51 = vector.shape_cast %50 : vector<1x8x8x32xf32> to vector<8x8x32xf32>
    %52 = vector.shape_cast %51 : vector<8x8x32xf32> to vector<64x32xf32>
    %53 = arith.truncf %52 : vector<64x32xf32> to vector<64x32xbf16>
    %c224 = arith.constant 224 : index
    %c0_44 = arith.constant 0 : index
    %54 = vector.load %arg3[%c224, %c0_44] : memref<288x128xbf16, #tpu.memory_space<vmem>>, vector<32x128xbf16>
    %cst_45 = arith.constant dense<0.000000e+00> : vector<64x128xf32>
    %55 = tpu.matmul %53, %54, %cst_45 {dimension_numbers = #tpu.dot_dimension_numbers<[1], [0], [0], [1], [0, 0, 1, 1], [], []>} : vector<64x32xbf16>, vector<32x128xbf16>, vector<64x128xf32> -> vector<64x128xf32>
    %56 = arith.addf %49, %55 : vector<64x128xf32>
    %c0_46 = arith.constant 0 : index
    %c2_47 = arith.constant 2 : index
    %c2_48 = arith.constant 2 : index
    %c0_49 = arith.constant 0 : index
    %57 = vector.load %arg2[%c0_46, %c2_47, %c2_48, %c0_49] : memref<1x10x10x32xf32, #tpu.memory_space<vmem>>, vector<1x8x8x32xf32>
    %58 = vector.shape_cast %57 : vector<1x8x8x32xf32> to vector<8x8x32xf32>
    %59 = vector.shape_cast %58 : vector<8x8x32xf32> to vector<64x32xf32>
    %60 = arith.truncf %59 : vector<64x32xf32> to vector<64x32xbf16>
    %c256 = arith.constant 256 : index
    %c0_50 = arith.constant 0 : index
    %61 = vector.load %arg3[%c256, %c0_50] : memref<288x128xbf16, #tpu.memory_space<vmem>>, vector<32x128xbf16>
    %cst_51 = arith.constant dense<0.000000e+00> : vector<64x128xf32>
    %62 = tpu.matmul %60, %61, %cst_51 {dimension_numbers = #tpu.dot_dimension_numbers<[1], [0], [0], [1], [0, 0, 1, 1], [], []>} : vector<64x32xbf16>, vector<32x128xbf16>, vector<64x128xf32> -> vector<64x128xf32>
    %63 = arith.addf %56, %62 : vector<64x128xf32>
    %c0_52 = arith.constant 0 : index
    %c0_53 = arith.constant 0 : index
    %64 = vector.load %arg4[%c0_52, %c0_53] : memref<1x128xf32, #tpu.memory_space<vmem>>, vector<1x128xf32>
    %65 = vector.broadcast %64 : vector<1x128xf32> to vector<64x128xf32>
    %66 = arith.addf %63, %65 : vector<64x128xf32>
    %c0_54 = arith.constant 0 : index
    %c0_55 = arith.constant 0 : index
    %c0_56 = arith.constant 0 : index
    %67 = vector.load %arg5[%c0_54, %c0_55, %c0_56] : memref<1x64x128xf32, #tpu.memory_space<vmem>>, vector<1x64x128xf32>
    %68 = vector.shape_cast %67 : vector<1x64x128xf32> to vector<64x128xf32>
    %69 = vector.shape_cast %66 : vector<64x128xf32> to vector<1x64x128xf32>
    tpu.vector_store %arg5[%c0_54, %c0_55, %c0_56], %69 {strides = array<i32>} : memref<1x64x128xf32, #tpu.memory_space<vmem>>, vector<1x64x128xf32>,
    return
  }
  func.func @transform_0(%arg0: i32, %arg1: i32) -> (i32, i32, i32, i32) {
    %c0_i32 = arith.constant 0 : i32
    %c0_i32_0 = arith.constant 0 : i32
    %c0_i32_1 = arith.constant 0 : i32
    %c0_i32_2 = arith.constant 0 : i32
    return %arg0, %c0_i32, %c0_i32_0, %c0_i32_1 : i32, i32, i32, i32
  }
  func.func @transform_1(%arg0: i32, %arg1: i32) -> (i32, i32) {
    %c0_i32 = arith.constant 0 : i32
    %c0_i32_0 = arith.constant 0 : i32
    return %c0_i32, %arg1 : i32, i32
  }
  func.func @transform_2(%arg0: i32, %arg1: i32) -> (i32, i32) {
    %c0_i32 = arith.constant 0 : i32
    %c0_i32_0 = arith.constant 0 : i32
    return %c0_i32, %arg1 : i32, i32
  }
  func.func @transform_3(%arg0: i32, %arg1: i32) -> (i32, i32, i32) {
    %c0_i32 = arith.constant 0 : i32
    %c0_i32_0 = arith.constant 0 : i32
    return %arg0, %c0_i32, %arg1 : i32, i32, i32
  }
}

module attributes {stable_mosaic.version = 11 : i64} {
  func.func @_gemm_kernel(%arg0: i32, %arg1: i32, %arg2: i32, %arg3: memref<128x128xbf16, #tpu.memory_space<vmem>>, %arg4: memref<128x128xbf16, #tpu.memory_space<vmem>>, %arg5: memref<1x128xf32, #tpu.memory_space<vmem>>, %arg6: memref<128x128xf32, #tpu.memory_space<vmem>>, %arg7: memref<128x128xf32, #tpu.memory_space<vmem>>) attributes {dimension_semantics = [#tpu.dimension_semantics<parallel>, #tpu.dimension_semantics<parallel>, #tpu.dimension_semantics<arbitrary>], iteration_bounds = array<i64: 1, 1, 1>, scalar_prefetch = 0 : i64, scratch_operands = 1 : i64, tpu.core_type = #tpu.core_type<tc>, window_params = [{transform_indices = @transform_0, window_bounds = array<i64: 128, 128>}, {transform_indices = @transform_1, window_bounds = array<i64: 128, 128>}, {transform_indices = @transform_2, window_bounds = array<i64: 1, 128>}, {transform_indices = @transform_3, window_bounds = array<i64: 128, 128>}]} {
    %c0_i32 = arith.constant 0 : i32
    %0 = arith.cmpi eq, %arg2, %c0_i32 : i32
    %1 = arith.extui %0 : i1 to i32
    %c0_i32_0 = arith.constant 0 : i32
    %2 = arith.cmpi ne, %1, %c0_i32_0 : i32
    scf.if %2 {
      %cst_10 = arith.constant 0.000000e+00 : f32
      %12 = vector.broadcast %cst_10 : f32 to vector<128x128xf32>
      %c0_11 = arith.constant 0 : index
      %c0_12 = arith.constant 0 : index
      %13 = vector.load %arg7[%c0_11, %c0_12] : memref<128x128xf32, #tpu.memory_space<vmem>>, vector<128x128xf32>
      tpu.vector_store %arg7[%c0_11, %c0_12], %12 {strides = array<i32>} : memref<128x128xf32, #tpu.memory_space<vmem>>, vector<128x128xf32>,
    } else {
    }
    %c0 = arith.constant 0 : index
    %c0_1 = arith.constant 0 : index
    %3 = vector.load %arg7[%c0, %c0_1] : memref<128x128xf32, #tpu.memory_space<vmem>>, vector<128x128xf32>
    %c0_2 = arith.constant 0 : index
    %c0_3 = arith.constant 0 : index
    %4 = vector.load %arg3[%c0_2, %c0_3] : memref<128x128xbf16, #tpu.memory_space<vmem>>, vector<128x128xbf16>
    %c0_4 = arith.constant 0 : index
    %c0_5 = arith.constant 0 : index
    %5 = vector.load %arg4[%c0_4, %c0_5] : memref<128x128xbf16, #tpu.memory_space<vmem>>, vector<128x128xbf16>
    %cst = arith.constant dense<0.000000e+00> : vector<128x128xf32>
    %6 = tpu.matmul %4, %5, %cst {dimension_numbers = #tpu.dot_dimension_numbers<[1], [0], [0], [1], [0, 0, 1, 1], [], []>} : vector<128x128xbf16>, vector<128x128xbf16>, vector<128x128xf32> -> vector<128x128xf32>
    %7 = arith.addf %3, %6 : vector<128x128xf32>
    %c0_6 = arith.constant 0 : index
    %c0_7 = arith.constant 0 : index
    %8 = vector.load %arg7[%c0_6, %c0_7] : memref<128x128xf32, #tpu.memory_space<vmem>>, vector<128x128xf32>
    tpu.vector_store %arg7[%c0_6, %c0_7], %7 {strides = array<i32>} : memref<128x128xf32, #tpu.memory_space<vmem>>, vector<128x128xf32>,
    %c0_i32_8 = arith.constant 0 : i32
    %9 = arith.cmpi eq, %arg2, %c0_i32_8 : i32
    %10 = arith.extui %9 : i1 to i32
    %c0_i32_9 = arith.constant 0 : i32
    %11 = arith.cmpi ne, %10, %c0_i32_9 : i32
    scf.if %11 {
      %c0_10 = arith.constant 0 : index
      %c0_11 = arith.constant 0 : index
      %12 = vector.load %arg7[%c0_10, %c0_11] : memref<128x128xf32, #tpu.memory_space<vmem>>, vector<128x128xf32>
      %c0_12 = arith.constant 0 : index
      %c0_13 = arith.constant 0 : index
      %13 = vector.load %arg5[%c0_12, %c0_13] : memref<1x128xf32, #tpu.memory_space<vmem>>, vector<1x128xf32>
      %14 = vector.broadcast %13 : vector<1x128xf32> to vector<128x128xf32>
      %15 = arith.addf %12, %14 : vector<128x128xf32>
      %c0_14 = arith.constant 0 : index
      %c0_15 = arith.constant 0 : index
      %16 = vector.load %arg6[%c0_14, %c0_15] : memref<128x128xf32, #tpu.memory_space<vmem>>, vector<128x128xf32>
      tpu.vector_store %arg6[%c0_14, %c0_15], %15 {strides = array<i32>} : memref<128x128xf32, #tpu.memory_space<vmem>>, vector<128x128xf32>,
    } else {
    }
    return
  }
  func.func @transform_0(%arg0: i32, %arg1: i32, %arg2: i32) -> (i32, i32) {
    %c0_i32 = arith.constant 0 : i32
    return %arg0, %arg2 : i32, i32
  }
  func.func @transform_1(%arg0: i32, %arg1: i32, %arg2: i32) -> (i32, i32) {
    %c0_i32 = arith.constant 0 : i32
    return %arg2, %arg1 : i32, i32
  }
  func.func @transform_2(%arg0: i32, %arg1: i32, %arg2: i32) -> (i32, i32) {
    %c0_i32 = arith.constant 0 : i32
    %c0_i32_0 = arith.constant 0 : i32
    return %c0_i32, %arg1 : i32, i32
  }
  func.func @transform_3(%arg0: i32, %arg1: i32, %arg2: i32) -> (i32, i32) {
    %c0_i32 = arith.constant 0 : i32
    return %arg0, %arg1 : i32, i32
  }
}

module attributes {stable_mosaic.version = 11 : i64} {
  func.func @_group_norm_kernel(%arg0: i32, %arg1: memref<1x64x64xf32, #tpu.memory_space<vmem>>, %arg2: memref<64x32xf32, #tpu.memory_space<vmem>>, %arg3: memref<32x64xf32, #tpu.memory_space<vmem>>, %arg4: memref<1x64xf32, #tpu.memory_space<vmem>>, %arg5: memref<1x64xf32, #tpu.memory_space<vmem>>, %arg6: memref<1x64x64xf32, #tpu.memory_space<vmem>>) attributes {dimension_semantics = [#tpu.dimension_semantics<parallel>], iteration_bounds = array<i64: 2>, scalar_prefetch = 0 : i64, scratch_operands = 0 : i64, tpu.core_type = #tpu.core_type<tc>, window_params = [{transform_indices = @transform_0, window_bounds = array<i64: 1, 64, 64>}, {pipeline_mode = #tpu.pipeline_mode<synchronous>, transform_indices = @transform_1, window_bounds = array<i64: 64, 32>}, {pipeline_mode = #tpu.pipeline_mode<synchronous>, transform_indices = @transform_2, window_bounds = array<i64: 32, 64>}, {pipeline_mode = #tpu.pipeline_mode<synchronous>, transform_indices = @transform_3, window_bounds = array<i64: 1, 64>}, {pipeline_mode = #tpu.pipeline_mode<synchronous>, transform_indices = @transform_4, window_bounds = array<i64: 1, 64>}, {transform_indices = @transform_5, window_bounds = array<i64: 1, 64, 64>}]} {
    %c0 = arith.constant 0 : index
    %c0_0 = arith.constant 0 : index
    %c0_1 = arith.constant 0 : index
    %0 = vector.load %arg1[%c0, %c0_0, %c0_1] : memref<1x64x64xf32, #tpu.memory_space<vmem>>, vector<1x64x64xf32>
    %1 = vector.shape_cast %0 : vector<1x64x64xf32> to vector<64x64xf32>
    %c0_2 = arith.constant 0 : index
    %c0_3 = arith.constant 0 : index
    %2 = vector.load %arg2[%c0_2, %c0_3] : memref<64x32xf32, #tpu.memory_space<vmem>>, vector<64x32xf32>
    %c0_4 = arith.constant 0 : index
    %c0_5 = arith.constant 0 : index
    %3 = vector.load %arg3[%c0_4, %c0_5] : memref<32x64xf32, #tpu.memory_space<vmem>>, vector<32x64xf32>
    %cst = arith.constant dense<0.000000e+00> : vector<64xf32>
    %4 = vector.multi_reduction <add>, %1, %cst [0] : vector<64x64xf32> to vector<64xf32>
    %5 = vector.shape_cast %4 : vector<64xf32> to vector<1x64xf32>
    %cst_6 = arith.constant dense<0.000000e+00> : vector<1x32xf32>
    %6 = tpu.matmul %5, %2, %cst_6 {dimension_numbers = #tpu.dot_dimension_numbers<[1], [0], [0], [1], [0, 0, 1, 1], [], []>} : vector<1x64xf32>, vector<64x32xf32>, vector<1x32xf32> -> vector<1x32xf32>
    %cst_7 = arith.constant 7.812500e-03 : f32
    %7 = vector.broadcast %cst_7 : f32 to vector<1x32xf32>
    %8 = arith.mulf %6, %7 : vector<1x32xf32>
    %cst_8 = arith.constant dense<0.000000e+00> : vector<1x64xf32>
    %9 = tpu.matmul %8, %3, %cst_8 {dimension_numbers = #tpu.dot_dimension_numbers<[1], [0], [0], [1], [0, 0, 1, 1], [], []>} : vector<1x32xf32>, vector<32x64xf32>, vector<1x64xf32> -> vector<1x64xf32>
    %10 = vector.broadcast %9 : vector<1x64xf32> to vector<64x64xf32>
    %11 = arith.subf %1, %10 : vector<64x64xf32>
    %12 = arith.mulf %11, %11 : vector<64x64xf32>
    %cst_9 = arith.constant dense<0.000000e+00> : vector<64xf32>
    %13 = vector.multi_reduction <add>, %12, %cst_9 [0] : vector<64x64xf32> to vector<64xf32>
    %14 = vector.shape_cast %13 : vector<64xf32> to vector<1x64xf32>
    %cst_10 = arith.constant dense<0.000000e+00> : vector<1x32xf32>
    %15 = tpu.matmul %14, %2, %cst_10 {dimension_numbers = #tpu.dot_dimension_numbers<[1], [0], [0], [1], [0, 0, 1, 1], [], []>} : vector<1x64xf32>, vector<64x32xf32>, vector<1x32xf32> -> vector<1x32xf32>
    %cst_11 = arith.constant 7.812500e-03 : f32
    %16 = vector.broadcast %cst_11 : f32 to vector<1x32xf32>
    %17 = arith.mulf %15, %16 : vector<1x32xf32>
    %cst_12 = arith.constant dense<0.000000e+00> : vector<1x64xf32>
    %18 = tpu.matmul %17, %3, %cst_12 {dimension_numbers = #tpu.dot_dimension_numbers<[1], [0], [0], [1], [0, 0, 1, 1], [], []>} : vector<1x32xf32>, vector<32x64xf32>, vector<1x64xf32> -> vector<1x64xf32>
    %cst_13 = arith.constant 9.99999997E-7 : f32
    %19 = vector.broadcast %cst_13 : f32 to vector<1x64xf32>
    %20 = arith.addf %18, %19 : vector<1x64xf32>
    %21 = math.rsqrt %20 : vector<1x64xf32>
    %22 = vector.broadcast %21 : vector<1x64xf32> to vector<64x64xf32>
    %23 = arith.mulf %11, %22 : vector<64x64xf32>
    %c0_14 = arith.constant 0 : index
    %c0_15 = arith.constant 0 : index
    %24 = vector.load %arg4[%c0_14, %c0_15] : memref<1x64xf32, #tpu.memory_space<vmem>>, vector<1x64xf32>
    %25 = vector.broadcast %24 : vector<1x64xf32> to vector<64x64xf32>
    %26 = arith.mulf %23, %25 : vector<64x64xf32>
    %c0_16 = arith.constant 0 : index
    %c0_17 = arith.constant 0 : index
    %27 = vector.load %arg5[%c0_16, %c0_17] : memref<1x64xf32, #tpu.memory_space<vmem>>, vector<1x64xf32>
    %28 = vector.broadcast %27 : vector<1x64xf32> to vector<64x64xf32>
    %29 = arith.addf %26, %28 : vector<64x64xf32>
    %30 = arith.negf %29 : vector<64x64xf32>
    %31 = math.exp %30 : vector<64x64xf32>
    %cst_18 = arith.constant 1.000000e+00 : f32
    %32 = vector.broadcast %cst_18 : f32 to vector<64x64xf32>
    %33 = arith.addf %32, %31 : vector<64x64xf32>
    %34 = arith.divf %32, %33 : vector<64x64xf32>
    %35 = arith.mulf %29, %34 : vector<64x64xf32>
    %c0_19 = arith.constant 0 : index
    %c0_20 = arith.constant 0 : index
    %c0_21 = arith.constant 0 : index
    %36 = vector.load %arg6[%c0_19, %c0_20, %c0_21] : memref<1x64x64xf32, #tpu.memory_space<vmem>>, vector<1x64x64xf32>
    %37 = vector.shape_cast %36 : vector<1x64x64xf32> to vector<64x64xf32>
    %38 = vector.shape_cast %35 : vector<64x64xf32> to vector<1x64x64xf32>
    tpu.vector_store %arg6[%c0_19, %c0_20, %c0_21], %38 {strides = array<i32>} : memref<1x64x64xf32, #tpu.memory_space<vmem>>, vector<1x64x64xf32>,
    return
  }
  func.func @transform_0(%arg0: i32) -> (i32, i32, i32) {
    %c0_i32 = arith.constant 0 : i32
    %c0_i32_0 = arith.constant 0 : i32
    %c0_i32_1 = arith.constant 0 : i32
    return %arg0, %c0_i32, %c0_i32_0 : i32, i32, i32
  }
  func.func @transform_1(%arg0: i32) -> (i32, i32) {
    %c0_i32 = arith.constant 0 : i32
    %c0_i32_0 = arith.constant 0 : i32
    %c0_i32_1 = arith.constant 0 : i32
    return %c0_i32, %c0_i32_0 : i32, i32
  }
  func.func @transform_2(%arg0: i32) -> (i32, i32) {
    %c0_i32 = arith.constant 0 : i32
    %c0_i32_0 = arith.constant 0 : i32
    %c0_i32_1 = arith.constant 0 : i32
    return %c0_i32, %c0_i32_0 : i32, i32
  }
  func.func @transform_3(%arg0: i32) -> (i32, i32) {
    %c0_i32 = arith.constant 0 : i32
    %c0_i32_0 = arith.constant 0 : i32
    %c0_i32_1 = arith.constant 0 : i32
    return %c0_i32, %c0_i32_0 : i32, i32
  }
  func.func @transform_4(%arg0: i32) -> (i32, i32) {
    %c0_i32 = arith.constant 0 : i32
    %c0_i32_0 = arith.constant 0 : i32
    %c0_i32_1 = arith.constant 0 : i32
    return %c0_i32, %c0_i32_0 : i32, i32
  }
  func.func @transform_5(%arg0: i32) -> (i32, i32, i32) {
    %c0_i32 = arith.constant 0 : i32
    %c0_i32_0 = arith.constant 0 : i32
    %c0_i32_1 = arith.constant 0 : i32
    return %arg0, %c0_i32, %c0_i32_0 : i32, i32, i32
  }
}

module attributes {stable_mosaic.version = 11 : i64} {
  func.func @_conv3x3_kernel(%arg0: i32, %arg1: i32, %arg2: memref<1x10x10x64xf32, #tpu.memory_space<vmem>>, %arg3: memref<576x128xbf16, #tpu.memory_space<vmem>>, %arg4: memref<1x128xf32, #tpu.memory_space<vmem>>, %arg5: memref<1x64x128xf32, #tpu.memory_space<vmem>>, %arg6: memref<1x64x128xf32, #tpu.memory_space<vmem>>) attributes {dimension_semantics = [#tpu.dimension_semantics<parallel>, #tpu.dimension_semantics<parallel>], iteration_bounds = array<i64: 2, 1>, scalar_prefetch = 0 : i64, scratch_operands = 0 : i64, tpu.core_type = #tpu.core_type<tc>, window_params = [{transform_indices = @transform_0, window_bounds = array<i64: 1, 10, 10, 64>}, {transform_indices = @transform_1, window_bounds = array<i64: 576, 128>}, {transform_indices = @transform_2, window_bounds = array<i64: 1, 128>}, {transform_indices = @transform_3, window_bounds = array<i64: 1, 64, 128>}, {transform_indices = @transform_4, window_bounds = array<i64: 1, 64, 128>}]} {
    %cst = arith.constant 0.000000e+00 : f32
    %0 = vector.broadcast %cst : f32 to vector<64x128xf32>
    %c0 = arith.constant 0 : index
    %c0_0 = arith.constant 0 : index
    %c0_1 = arith.constant 0 : index
    %c0_2 = arith.constant 0 : index
    %1 = vector.load %arg2[%c0, %c0_0, %c0_1, %c0_2] : memref<1x10x10x64xf32, #tpu.memory_space<vmem>>, vector<1x8x8x64xf32>
    %2 = vector.shape_cast %1 : vector<1x8x8x64xf32> to vector<8x8x64xf32>
    %3 = vector.shape_cast %2 : vector<8x8x64xf32> to vector<64x64xf32>
    %4 = arith.truncf %3 : vector<64x64xf32> to vector<64x64xbf16>
    %c0_3 = arith.constant 0 : index
    %c0_4 = arith.constant 0 : index
    %5 = vector.load %arg3[%c0_3, %c0_4] : memref<576x128xbf16, #tpu.memory_space<vmem>>, vector<64x128xbf16>
    %cst_5 = arith.constant dense<0.000000e+00> : vector<64x128xf32>
    %6 = tpu.matmul %4, %5, %cst_5 {dimension_numbers = #tpu.dot_dimension_numbers<[1], [0], [0], [1], [0, 0, 1, 1], [], []>} : vector<64x64xbf16>, vector<64x128xbf16>, vector<64x128xf32> -> vector<64x128xf32>
    %7 = arith.addf %0, %6 : vector<64x128xf32>
    %c0_6 = arith.constant 0 : index
    %c0_7 = arith.constant 0 : index
    %c1 = arith.constant 1 : index
    %c0_8 = arith.constant 0 : index
    %8 = vector.load %arg2[%c0_6, %c0_7, %c1, %c0_8] : memref<1x10x10x64xf32, #tpu.memory_space<vmem>>, vector<1x8x8x64xf32>
    %9 = vector.shape_cast %8 : vector<1x8x8x64xf32> to vector<8x8x64xf32>
    %10 = vector.shape_cast %9 : vector<8x8x64xf32> to vector<64x64xf32>
    %11 = arith.truncf %10 : vector<64x64xf32> to vector<64x64xbf16>
    %c64 = arith.constant 64 : index
    %c0_9 = arith.constant 0 : index
    %12 = vector.load %arg3[%c64, %c0_9] : memref<576x128xbf16, #tpu.memory_space<vmem>>, vector<64x128xbf16>
    %cst_10 = arith.constant dense<0.000000e+00> : vector<64x128xf32>
    %13 = tpu.matmul %11, %12, %cst_10 {dimension_numbers = #tpu.dot_dimension_numbers<[1], [0], [0], [1], [0, 0, 1, 1], [], []>} : vector<64x64xbf16>, vector<64x128xbf16>, vector<64x128xf32> -> vector<64x128xf32>
    %14 = arith.addf %7, %13 : vector<64x128xf32>
    %c0_11 = arith.constant 0 : index
    %c0_12 = arith.constant 0 : index
    %c2 = arith.constant 2 : index
    %c0_13 = arith.constant 0 : index
    %15 = vector.load %arg2[%c0_11, %c0_12, %c2, %c0_13] : memref<1x10x10x64xf32, #tpu.memory_space<vmem>>, vector<1x8x8x64xf32>
    %16 = vector.shape_cast %15 : vector<1x8x8x64xf32> to vector<8x8x64xf32>
    %17 = vector.shape_cast %16 : vector<8x8x64xf32> to vector<64x64xf32>
    %18 = arith.truncf %17 : vector<64x64xf32> to vector<64x64xbf16>
    %c128 = arith.constant 128 : index
    %c0_14 = arith.constant 0 : index
    %19 = vector.load %arg3[%c128, %c0_14] : memref<576x128xbf16, #tpu.memory_space<vmem>>, vector<64x128xbf16>
    %cst_15 = arith.constant dense<0.000000e+00> : vector<64x128xf32>
    %20 = tpu.matmul %18, %19, %cst_15 {dimension_numbers = #tpu.dot_dimension_numbers<[1], [0], [0], [1], [0, 0, 1, 1], [], []>} : vector<64x64xbf16>, vector<64x128xbf16>, vector<64x128xf32> -> vector<64x128xf32>
    %21 = arith.addf %14, %20 : vector<64x128xf32>
    %c0_16 = arith.constant 0 : index
    %c1_17 = arith.constant 1 : index
    %c0_18 = arith.constant 0 : index
    %c0_19 = arith.constant 0 : index
    %22 = vector.load %arg2[%c0_16, %c1_17, %c0_18, %c0_19] : memref<1x10x10x64xf32, #tpu.memory_space<vmem>>, vector<1x8x8x64xf32>
    %23 = vector.shape_cast %22 : vector<1x8x8x64xf32> to vector<8x8x64xf32>
    %24 = vector.shape_cast %23 : vector<8x8x64xf32> to vector<64x64xf32>
    %25 = arith.truncf %24 : vector<64x64xf32> to vector<64x64xbf16>
    %c192 = arith.constant 192 : index
    %c0_20 = arith.constant 0 : index
    %26 = vector.load %arg3[%c192, %c0_20] : memref<576x128xbf16, #tpu.memory_space<vmem>>, vector<64x128xbf16>
    %cst_21 = arith.constant dense<0.000000e+00> : vector<64x128xf32>
    %27 = tpu.matmul %25, %26, %cst_21 {dimension_numbers = #tpu.dot_dimension_numbers<[1], [0], [0], [1], [0, 0, 1, 1], [], []>} : vector<64x64xbf16>, vector<64x128xbf16>, vector<64x128xf32> -> vector<64x128xf32>
    %28 = arith.addf %21, %27 : vector<64x128xf32>
    %c0_22 = arith.constant 0 : index
    %c1_23 = arith.constant 1 : index
    %c1_24 = arith.constant 1 : index
    %c0_25 = arith.constant 0 : index
    %29 = vector.load %arg2[%c0_22, %c1_23, %c1_24, %c0_25] : memref<1x10x10x64xf32, #tpu.memory_space<vmem>>, vector<1x8x8x64xf32>
    %30 = vector.shape_cast %29 : vector<1x8x8x64xf32> to vector<8x8x64xf32>
    %31 = vector.shape_cast %30 : vector<8x8x64xf32> to vector<64x64xf32>
    %32 = arith.truncf %31 : vector<64x64xf32> to vector<64x64xbf16>
    %c256 = arith.constant 256 : index
    %c0_26 = arith.constant 0 : index
    %33 = vector.load %arg3[%c256, %c0_26] : memref<576x128xbf16, #tpu.memory_space<vmem>>, vector<64x128xbf16>
    %cst_27 = arith.constant dense<0.000000e+00> : vector<64x128xf32>
    %34 = tpu.matmul %32, %33, %cst_27 {dimension_numbers = #tpu.dot_dimension_numbers<[1], [0], [0], [1], [0, 0, 1, 1], [], []>} : vector<64x64xbf16>, vector<64x128xbf16>, vector<64x128xf32> -> vector<64x128xf32>
    %35 = arith.addf %28, %34 : vector<64x128xf32>
    %c0_28 = arith.constant 0 : index
    %c1_29 = arith.constant 1 : index
    %c2_30 = arith.constant 2 : index
    %c0_31 = arith.constant 0 : index
    %36 = vector.load %arg2[%c0_28, %c1_29, %c2_30, %c0_31] : memref<1x10x10x64xf32, #tpu.memory_space<vmem>>, vector<1x8x8x64xf32>
    %37 = vector.shape_cast %36 : vector<1x8x8x64xf32> to vector<8x8x64xf32>
    %38 = vector.shape_cast %37 : vector<8x8x64xf32> to vector<64x64xf32>
    %39 = arith.truncf %38 : vector<64x64xf32> to vector<64x64xbf16>
    %c320 = arith.constant 320 : index
    %c0_32 = arith.constant 0 : index
    %40 = vector.load %arg3[%c320, %c0_32] : memref<576x128xbf16, #tpu.memory_space<vmem>>, vector<64x128xbf16>
    %cst_33 = arith.constant dense<0.000000e+00> : vector<64x128xf32>
    %41 = tpu.matmul %39, %40, %cst_33 {dimension_numbers = #tpu.dot_dimension_numbers<[1], [0], [0], [1], [0, 0, 1, 1], [], []>} : vector<64x64xbf16>, vector<64x128xbf16>, vector<64x128xf32> -> vector<64x128xf32>
    %42 = arith.addf %35, %41 : vector<64x128xf32>
    %c0_34 = arith.constant 0 : index
    %c2_35 = arith.constant 2 : index
    %c0_36 = arith.constant 0 : index
    %c0_37 = arith.constant 0 : index
    %43 = vector.load %arg2[%c0_34, %c2_35, %c0_36, %c0_37] : memref<1x10x10x64xf32, #tpu.memory_space<vmem>>, vector<1x8x8x64xf32>
    %44 = vector.shape_cast %43 : vector<1x8x8x64xf32> to vector<8x8x64xf32>
    %45 = vector.shape_cast %44 : vector<8x8x64xf32> to vector<64x64xf32>
    %46 = arith.truncf %45 : vector<64x64xf32> to vector<64x64xbf16>
    %c384 = arith.constant 384 : index
    %c0_38 = arith.constant 0 : index
    %47 = vector.load %arg3[%c384, %c0_38] : memref<576x128xbf16, #tpu.memory_space<vmem>>, vector<64x128xbf16>
    %cst_39 = arith.constant dense<0.000000e+00> : vector<64x128xf32>
    %48 = tpu.matmul %46, %47, %cst_39 {dimension_numbers = #tpu.dot_dimension_numbers<[1], [0], [0], [1], [0, 0, 1, 1], [], []>} : vector<64x64xbf16>, vector<64x128xbf16>, vector<64x128xf32> -> vector<64x128xf32>
    %49 = arith.addf %42, %48 : vector<64x128xf32>
    %c0_40 = arith.constant 0 : index
    %c2_41 = arith.constant 2 : index
    %c1_42 = arith.constant 1 : index
    %c0_43 = arith.constant 0 : index
    %50 = vector.load %arg2[%c0_40, %c2_41, %c1_42, %c0_43] : memref<1x10x10x64xf32, #tpu.memory_space<vmem>>, vector<1x8x8x64xf32>
    %51 = vector.shape_cast %50 : vector<1x8x8x64xf32> to vector<8x8x64xf32>
    %52 = vector.shape_cast %51 : vector<8x8x64xf32> to vector<64x64xf32>
    %53 = arith.truncf %52 : vector<64x64xf32> to vector<64x64xbf16>
    %c448 = arith.constant 448 : index
    %c0_44 = arith.constant 0 : index
    %54 = vector.load %arg3[%c448, %c0_44] : memref<576x128xbf16, #tpu.memory_space<vmem>>, vector<64x128xbf16>
    %cst_45 = arith.constant dense<0.000000e+00> : vector<64x128xf32>
    %55 = tpu.matmul %53, %54, %cst_45 {dimension_numbers = #tpu.dot_dimension_numbers<[1], [0], [0], [1], [0, 0, 1, 1], [], []>} : vector<64x64xbf16>, vector<64x128xbf16>, vector<64x128xf32> -> vector<64x128xf32>
    %56 = arith.addf %49, %55 : vector<64x128xf32>
    %c0_46 = arith.constant 0 : index
    %c2_47 = arith.constant 2 : index
    %c2_48 = arith.constant 2 : index
    %c0_49 = arith.constant 0 : index
    %57 = vector.load %arg2[%c0_46, %c2_47, %c2_48, %c0_49] : memref<1x10x10x64xf32, #tpu.memory_space<vmem>>, vector<1x8x8x64xf32>
    %58 = vector.shape_cast %57 : vector<1x8x8x64xf32> to vector<8x8x64xf32>
    %59 = vector.shape_cast %58 : vector<8x8x64xf32> to vector<64x64xf32>
    %60 = arith.truncf %59 : vector<64x64xf32> to vector<64x64xbf16>
    %c512 = arith.constant 512 : index
    %c0_50 = arith.constant 0 : index
    %61 = vector.load %arg3[%c512, %c0_50] : memref<576x128xbf16, #tpu.memory_space<vmem>>, vector<64x128xbf16>
    %cst_51 = arith.constant dense<0.000000e+00> : vector<64x128xf32>
    %62 = tpu.matmul %60, %61, %cst_51 {dimension_numbers = #tpu.dot_dimension_numbers<[1], [0], [0], [1], [0, 0, 1, 1], [], []>} : vector<64x64xbf16>, vector<64x128xbf16>, vector<64x128xf32> -> vector<64x128xf32>
    %63 = arith.addf %56, %62 : vector<64x128xf32>
    %c0_52 = arith.constant 0 : index
    %c0_53 = arith.constant 0 : index
    %64 = vector.load %arg4[%c0_52, %c0_53] : memref<1x128xf32, #tpu.memory_space<vmem>>, vector<1x128xf32>
    %65 = vector.broadcast %64 : vector<1x128xf32> to vector<64x128xf32>
    %66 = arith.addf %63, %65 : vector<64x128xf32>
    %c0_54 = arith.constant 0 : index
    %c0_55 = arith.constant 0 : index
    %c0_56 = arith.constant 0 : index
    %67 = vector.load %arg5[%c0_54, %c0_55, %c0_56] : memref<1x64x128xf32, #tpu.memory_space<vmem>>, vector<1x64x128xf32>
    %68 = vector.shape_cast %67 : vector<1x64x128xf32> to vector<64x128xf32>
    %69 = arith.addf %66, %68 : vector<64x128xf32>
    %c0_57 = arith.constant 0 : index
    %c0_58 = arith.constant 0 : index
    %c0_59 = arith.constant 0 : index
    %70 = vector.load %arg6[%c0_57, %c0_58, %c0_59] : memref<1x64x128xf32, #tpu.memory_space<vmem>>, vector<1x64x128xf32>
    %71 = vector.shape_cast %70 : vector<1x64x128xf32> to vector<64x128xf32>
    %72 = vector.shape_cast %69 : vector<64x128xf32> to vector<1x64x128xf32>
    tpu.vector_store %arg6[%c0_57, %c0_58, %c0_59], %72 {strides = array<i32>} : memref<1x64x128xf32, #tpu.memory_space<vmem>>, vector<1x64x128xf32>,
    return
  }
  func.func @transform_0(%arg0: i32, %arg1: i32) -> (i32, i32, i32, i32) {
    %c0_i32 = arith.constant 0 : i32
    %c0_i32_0 = arith.constant 0 : i32
    %c0_i32_1 = arith.constant 0 : i32
    %c0_i32_2 = arith.constant 0 : i32
    return %arg0, %c0_i32, %c0_i32_0, %c0_i32_1 : i32, i32, i32, i32
  }
  func.func @transform_1(%arg0: i32, %arg1: i32) -> (i32, i32) {
    %c0_i32 = arith.constant 0 : i32
    %c0_i32_0 = arith.constant 0 : i32
    return %c0_i32, %arg1 : i32, i32
  }
  func.func @transform_2(%arg0: i32, %arg1: i32) -> (i32, i32) {
    %c0_i32 = arith.constant 0 : i32
    %c0_i32_0 = arith.constant 0 : i32
    return %c0_i32, %arg1 : i32, i32
  }
  func.func @transform_3(%arg0: i32, %arg1: i32) -> (i32, i32, i32) {
    %c0_i32 = arith.constant 0 : i32
    %c0_i32_0 = arith.constant 0 : i32
    return %arg0, %c0_i32, %arg1 : i32, i32, i32
  }
  func.func @transform_4(%arg0: i32, %arg1: i32) -> (i32, i32, i32) {
    %c0_i32 = arith.constant 0 : i32
    %c0_i32_0 = arith.constant 0 : i32
    return %arg0, %c0_i32, %arg1 : i32, i32, i32
  }
}

module attributes {stable_mosaic.version = 11 : i64} {
  func.func @_group_norm_kernel(%arg0: i32, %arg1: memref<1x64x64xf32, #tpu.memory_space<vmem>>, %arg2: memref<64x32xf32, #tpu.memory_space<vmem>>, %arg3: memref<32x64xf32, #tpu.memory_space<vmem>>, %arg4: memref<1x64xf32, #tpu.memory_space<vmem>>, %arg5: memref<1x64xf32, #tpu.memory_space<vmem>>, %arg6: memref<1x64x64xf32, #tpu.memory_space<vmem>>) attributes {dimension_semantics = [#tpu.dimension_semantics<parallel>], iteration_bounds = array<i64: 2>, scalar_prefetch = 0 : i64, scratch_operands = 0 : i64, tpu.core_type = #tpu.core_type<tc>, window_params = [{transform_indices = @transform_0, window_bounds = array<i64: 1, 64, 64>}, {pipeline_mode = #tpu.pipeline_mode<synchronous>, transform_indices = @transform_1, window_bounds = array<i64: 64, 32>}, {pipeline_mode = #tpu.pipeline_mode<synchronous>, transform_indices = @transform_2, window_bounds = array<i64: 32, 64>}, {pipeline_mode = #tpu.pipeline_mode<synchronous>, transform_indices = @transform_3, window_bounds = array<i64: 1, 64>}, {pipeline_mode = #tpu.pipeline_mode<synchronous>, transform_indices = @transform_4, window_bounds = array<i64: 1, 64>}, {transform_indices = @transform_5, window_bounds = array<i64: 1, 64, 64>}]} {
    %c0 = arith.constant 0 : index
    %c0_0 = arith.constant 0 : index
    %c0_1 = arith.constant 0 : index
    %0 = vector.load %arg1[%c0, %c0_0, %c0_1] : memref<1x64x64xf32, #tpu.memory_space<vmem>>, vector<1x64x64xf32>
    %1 = vector.shape_cast %0 : vector<1x64x64xf32> to vector<64x64xf32>
    %c0_2 = arith.constant 0 : index
    %c0_3 = arith.constant 0 : index
    %2 = vector.load %arg2[%c0_2, %c0_3] : memref<64x32xf32, #tpu.memory_space<vmem>>, vector<64x32xf32>
    %c0_4 = arith.constant 0 : index
    %c0_5 = arith.constant 0 : index
    %3 = vector.load %arg3[%c0_4, %c0_5] : memref<32x64xf32, #tpu.memory_space<vmem>>, vector<32x64xf32>
    %cst = arith.constant dense<0.000000e+00> : vector<64xf32>
    %4 = vector.multi_reduction <add>, %1, %cst [0] : vector<64x64xf32> to vector<64xf32>
    %5 = vector.shape_cast %4 : vector<64xf32> to vector<1x64xf32>
    %cst_6 = arith.constant dense<0.000000e+00> : vector<1x32xf32>
    %6 = tpu.matmul %5, %2, %cst_6 {dimension_numbers = #tpu.dot_dimension_numbers<[1], [0], [0], [1], [0, 0, 1, 1], [], []>} : vector<1x64xf32>, vector<64x32xf32>, vector<1x32xf32> -> vector<1x32xf32>
    %cst_7 = arith.constant 7.812500e-03 : f32
    %7 = vector.broadcast %cst_7 : f32 to vector<1x32xf32>
    %8 = arith.mulf %6, %7 : vector<1x32xf32>
    %cst_8 = arith.constant dense<0.000000e+00> : vector<1x64xf32>
    %9 = tpu.matmul %8, %3, %cst_8 {dimension_numbers = #tpu.dot_dimension_numbers<[1], [0], [0], [1], [0, 0, 1, 1], [], []>} : vector<1x32xf32>, vector<32x64xf32>, vector<1x64xf32> -> vector<1x64xf32>
    %10 = vector.broadcast %9 : vector<1x64xf32> to vector<64x64xf32>
    %11 = arith.subf %1, %10 : vector<64x64xf32>
    %12 = arith.mulf %11, %11 : vector<64x64xf32>
    %cst_9 = arith.constant dense<0.000000e+00> : vector<64xf32>
    %13 = vector.multi_reduction <add>, %12, %cst_9 [0] : vector<64x64xf32> to vector<64xf32>
    %14 = vector.shape_cast %13 : vector<64xf32> to vector<1x64xf32>
    %cst_10 = arith.constant dense<0.000000e+00> : vector<1x32xf32>
    %15 = tpu.matmul %14, %2, %cst_10 {dimension_numbers = #tpu.dot_dimension_numbers<[1], [0], [0], [1], [0, 0, 1, 1], [], []>} : vector<1x64xf32>, vector<64x32xf32>, vector<1x32xf32> -> vector<1x32xf32>
    %cst_11 = arith.constant 7.812500e-03 : f32
    %16 = vector.broadcast %cst_11 : f32 to vector<1x32xf32>
    %17 = arith.mulf %15, %16 : vector<1x32xf32>
    %cst_12 = arith.constant dense<0.000000e+00> : vector<1x64xf32>
    %18 = tpu.matmul %17, %3, %cst_12 {dimension_numbers = #tpu.dot_dimension_numbers<[1], [0], [0], [1], [0, 0, 1, 1], [], []>} : vector<1x32xf32>, vector<32x64xf32>, vector<1x64xf32> -> vector<1x64xf32>
    %cst_13 = arith.constant 9.99999997E-7 : f32
    %19 = vector.broadcast %cst_13 : f32 to vector<1x64xf32>
    %20 = arith.addf %18, %19 : vector<1x64xf32>
    %21 = math.rsqrt %20 : vector<1x64xf32>
    %22 = vector.broadcast %21 : vector<1x64xf32> to vector<64x64xf32>
    %23 = arith.mulf %11, %22 : vector<64x64xf32>
    %c0_14 = arith.constant 0 : index
    %c0_15 = arith.constant 0 : index
    %24 = vector.load %arg4[%c0_14, %c0_15] : memref<1x64xf32, #tpu.memory_space<vmem>>, vector<1x64xf32>
    %25 = vector.broadcast %24 : vector<1x64xf32> to vector<64x64xf32>
    %26 = arith.mulf %23, %25 : vector<64x64xf32>
    %c0_16 = arith.constant 0 : index
    %c0_17 = arith.constant 0 : index
    %27 = vector.load %arg5[%c0_16, %c0_17] : memref<1x64xf32, #tpu.memory_space<vmem>>, vector<1x64xf32>
    %28 = vector.broadcast %27 : vector<1x64xf32> to vector<64x64xf32>
    %29 = arith.addf %26, %28 : vector<64x64xf32>
    %c0_18 = arith.constant 0 : index
    %c0_19 = arith.constant 0 : index
    %c0_20 = arith.constant 0 : index
    %30 = vector.load %arg6[%c0_18, %c0_19, %c0_20] : memref<1x64x64xf32, #tpu.memory_space<vmem>>, vector<1x64x64xf32>
    %31 = vector.shape_cast %30 : vector<1x64x64xf32> to vector<64x64xf32>
    %32 = vector.shape_cast %29 : vector<64x64xf32> to vector<1x64x64xf32>
    tpu.vector_store %arg6[%c0_18, %c0_19, %c0_20], %32 {strides = array<i32>} : memref<1x64x64xf32, #tpu.memory_space<vmem>>, vector<1x64x64xf32>,
    return
  }
  func.func @transform_0(%arg0: i32) -> (i32, i32, i32) {
    %c0_i32 = arith.constant 0 : i32
    %c0_i32_0 = arith.constant 0 : i32
    %c0_i32_1 = arith.constant 0 : i32
    return %arg0, %c0_i32, %c0_i32_0 : i32, i32, i32
  }
  func.func @transform_1(%arg0: i32) -> (i32, i32) {
    %c0_i32 = arith.constant 0 : i32
    %c0_i32_0 = arith.constant 0 : i32
    %c0_i32_1 = arith.constant 0 : i32
    return %c0_i32, %c0_i32_0 : i32, i32
  }
  func.func @transform_2(%arg0: i32) -> (i32, i32) {
    %c0_i32 = arith.constant 0 : i32
    %c0_i32_0 = arith.constant 0 : i32
    %c0_i32_1 = arith.constant 0 : i32
    return %c0_i32, %c0_i32_0 : i32, i32
  }
  func.func @transform_3(%arg0: i32) -> (i32, i32) {
    %c0_i32 = arith.constant 0 : i32
    %c0_i32_0 = arith.constant 0 : i32
    %c0_i32_1 = arith.constant 0 : i32
    return %c0_i32, %c0_i32_0 : i32, i32
  }
  func.func @transform_4(%arg0: i32) -> (i32, i32) {
    %c0_i32 = arith.constant 0 : i32
    %c0_i32_0 = arith.constant 0 : i32
    %c0_i32_1 = arith.constant 0 : i32
    return %c0_i32, %c0_i32_0 : i32, i32
  }
  func.func @transform_5(%arg0: i32) -> (i32, i32, i32) {
    %c0_i32 = arith.constant 0 : i32
    %c0_i32_0 = arith.constant 0 : i32
    %c0_i32_1 = arith.constant 0 : i32
    return %arg0, %c0_i32, %c0_i32_0 : i32, i32, i32
  }
}

module attributes {stable_mosaic.version = 11 : i64} {
  func.func @_attn_kernel(%arg0: i32, %arg1: memref<1x64x128xf32, #tpu.memory_space<vmem>>, %arg2: memref<1x64x128xf32, #tpu.memory_space<vmem>>, %arg3: memref<1x64x128xf32, #tpu.memory_space<vmem>>, %arg4: memref<1x64x128xf32, #tpu.memory_space<vmem>>) attributes {dimension_semantics = [#tpu.dimension_semantics<parallel>], iteration_bounds = array<i64: 2>, scalar_prefetch = 0 : i64, scratch_operands = 0 : i64, tpu.core_type = #tpu.core_type<tc>, window_params = [{transform_indices = @transform_0, window_bounds = array<i64: 1, 64, 128>}, {transform_indices = @transform_1, window_bounds = array<i64: 1, 64, 128>}, {transform_indices = @transform_2, window_bounds = array<i64: 1, 64, 128>}, {transform_indices = @transform_3, window_bounds = array<i64: 1, 64, 128>}]} {
    %c0 = arith.constant 0 : index
    %c0_0 = arith.constant 0 : index
    %c0_1 = arith.constant 0 : index
    %0 = vector.load %arg1[%c0, %c0_0, %c0_1] : memref<1x64x128xf32, #tpu.memory_space<vmem>>, vector<1x64x128xf32>
    %1 = vector.shape_cast %0 : vector<1x64x128xf32> to vector<64x128xf32>
    %2 = arith.truncf %1 : vector<64x128xf32> to vector<64x128xbf16>
    %c0_2 = arith.constant 0 : index
    %c0_3 = arith.constant 0 : index
    %c0_4 = arith.constant 0 : index
    %3 = vector.load %arg2[%c0_2, %c0_3, %c0_4] : memref<1x64x128xf32, #tpu.memory_space<vmem>>, vector<1x64x128xf32>
    %4 = vector.shape_cast %3 : vector<1x64x128xf32> to vector<64x128xf32>
    %5 = arith.truncf %4 : vector<64x128xf32> to vector<64x128xbf16>
    %c0_5 = arith.constant 0 : index
    %c0_6 = arith.constant 0 : index
    %c0_7 = arith.constant 0 : index
    %6 = vector.load %arg3[%c0_5, %c0_6, %c0_7] : memref<1x64x128xf32, #tpu.memory_space<vmem>>, vector<1x64x128xf32>
    %7 = vector.shape_cast %6 : vector<1x64x128xf32> to vector<64x128xf32>
    %8 = arith.truncf %7 : vector<64x128xf32> to vector<64x128xbf16>
    %cst = arith.constant dense<0.000000e+00> : vector<64x64xf32>
    %9 = tpu.matmul %2, %5, %cst {dimension_numbers = #tpu.dot_dimension_numbers<[1], [1], [0], [0], [0, 0, 1, 0], [], []>} : vector<64x128xbf16>, vector<64x128xbf16>, vector<64x64xf32> -> vector<64x64xf32>
    %cst_8 = arith.constant 1.250000e-01 : f32
    %10 = vector.broadcast %cst_8 : f32 to vector<64x64xf32>
    %11 = arith.mulf %9, %10 : vector<64x64xf32>
    %cst_9 = arith.constant dense<0xFF800000> : vector<64xf32>
    %12 = vector.multi_reduction <maximumf>, %11, %cst_9 [1] : vector<64x64xf32> to vector<64xf32>
    %13 = vector.shape_cast %12 : vector<64xf32> to vector<64x1xf32>
    %14 = vector.broadcast %13 : vector<64x1xf32> to vector<64x64xf32>
    %15 = arith.subf %11, %14 : vector<64x64xf32>
    %16 = math.exp %15 : vector<64x64xf32>
    %cst_10 = arith.constant dense<0.000000e+00> : vector<64xf32>
    %17 = vector.multi_reduction <add>, %16, %cst_10 [1] : vector<64x64xf32> to vector<64xf32>
    %18 = vector.shape_cast %17 : vector<64xf32> to vector<64x1xf32>
    %19 = tpu.reciprocal %18 {approx = true} : vector<64x1xf32> -> vector<64x1xf32>
    %20 = vector.broadcast %19 : vector<64x1xf32> to vector<64x64xf32>
    %21 = arith.mulf %16, %20 : vector<64x64xf32>
    %22 = arith.truncf %21 : vector<64x64xf32> to vector<64x64xbf16>
    %cst_11 = arith.constant dense<0.000000e+00> : vector<64x128xf32>
    %23 = tpu.matmul %22, %8, %cst_11 {dimension_numbers = #tpu.dot_dimension_numbers<[1], [0], [0], [1], [0, 0, 1, 1], [], []>} : vector<64x64xbf16>, vector<64x128xbf16>, vector<64x128xf32> -> vector<64x128xf32>
    %c0_12 = arith.constant 0 : index
    %c0_13 = arith.constant 0 : index
    %c0_14 = arith.constant 0 : index
    %24 = vector.load %arg4[%c0_12, %c0_13, %c0_14] : memref<1x64x128xf32, #tpu.memory_space<vmem>>, vector<1x64x128xf32>
    %25 = vector.shape_cast %24 : vector<1x64x128xf32> to vector<64x128xf32>
    %26 = vector.shape_cast %23 : vector<64x128xf32> to vector<1x64x128xf32>
    tpu.vector_store %arg4[%c0_12, %c0_13, %c0_14], %26 {strides = array<i32>} : memref<1x64x128xf32, #tpu.memory_space<vmem>>, vector<1x64x128xf32>,
    return
  }
  func.func @transform_0(%arg0: i32) -> (i32, i32, i32) {
    %c0_i32 = arith.constant 0 : i32
    %c0_i32_0 = arith.constant 0 : i32
    %c0_i32_1 = arith.constant 0 : i32
    return %arg0, %c0_i32, %c0_i32_0 : i32, i32, i32
  }
  func.func @transform_1(%arg0: i32) -> (i32, i32, i32) {
    %c0_i32 = arith.constant 0 : i32
    %c1_i32 = arith.constant 1 : i32
    %c0_i32_0 = arith.constant 0 : i32
    return %arg0, %c0_i32, %c1_i32 : i32, i32, i32
  }
  func.func @transform_2(%arg0: i32) -> (i32, i32, i32) {
    %c0_i32 = arith.constant 0 : i32
    %c2_i32 = arith.constant 2 : i32
    %c0_i32_0 = arith.constant 0 : i32
    return %arg0, %c0_i32, %c2_i32 : i32, i32, i32
  }
  func.func @transform_3(%arg0: i32) -> (i32, i32, i32) {
    %c0_i32 = arith.constant 0 : i32
    %c0_i32_0 = arith.constant 0 : i32
    %c0_i32_1 = arith.constant 0 : i32
    return %arg0, %c0_i32, %c0_i32_0 : i32, i32, i32
  }
}

module attributes {stable_mosaic.version = 11 : i64} {
  func.func @_gemm_kernel(%arg0: i32, %arg1: i32, %arg2: i32, %arg3: memref<128x128xbf16, #tpu.memory_space<vmem>>, %arg4: memref<128x128xbf16, #tpu.memory_space<vmem>>, %arg5: memref<1x128xf32, #tpu.memory_space<vmem>>, %arg6: memref<128x128xf32, #tpu.memory_space<vmem>>, %arg7: memref<128x128xf32, #tpu.memory_space<vmem>>) attributes {dimension_semantics = [#tpu.dimension_semantics<parallel>, #tpu.dimension_semantics<parallel>, #tpu.dimension_semantics<arbitrary>], iteration_bounds = array<i64: 1, 3, 1>, scalar_prefetch = 0 : i64, scratch_operands = 1 : i64, tpu.core_type = #tpu.core_type<tc>, window_params = [{transform_indices = @transform_0, window_bounds = array<i64: 128, 128>}, {transform_indices = @transform_1, window_bounds = array<i64: 128, 128>}, {transform_indices = @transform_2, window_bounds = array<i64: 1, 128>}, {transform_indices = @transform_3, window_bounds = array<i64: 128, 128>}]} {
    %c0_i32 = arith.constant 0 : i32
    %0 = arith.cmpi eq, %arg2, %c0_i32 : i32
    %1 = arith.extui %0 : i1 to i32
    %c0_i32_0 = arith.constant 0 : i32
    %2 = arith.cmpi ne, %1, %c0_i32_0 : i32
    scf.if %2 {
      %cst_10 = arith.constant 0.000000e+00 : f32
      %12 = vector.broadcast %cst_10 : f32 to vector<128x128xf32>
      %c0_11 = arith.constant 0 : index
      %c0_12 = arith.constant 0 : index
      %13 = vector.load %arg7[%c0_11, %c0_12] : memref<128x128xf32, #tpu.memory_space<vmem>>, vector<128x128xf32>
      tpu.vector_store %arg7[%c0_11, %c0_12], %12 {strides = array<i32>} : memref<128x128xf32, #tpu.memory_space<vmem>>, vector<128x128xf32>,
    } else {
    }
    %c0 = arith.constant 0 : index
    %c0_1 = arith.constant 0 : index
    %3 = vector.load %arg7[%c0, %c0_1] : memref<128x128xf32, #tpu.memory_space<vmem>>, vector<128x128xf32>
    %c0_2 = arith.constant 0 : index
    %c0_3 = arith.constant 0 : index
    %4 = vector.load %arg3[%c0_2, %c0_3] : memref<128x128xbf16, #tpu.memory_space<vmem>>, vector<128x128xbf16>
    %c0_4 = arith.constant 0 : index
    %c0_5 = arith.constant 0 : index
    %5 = vector.load %arg4[%c0_4, %c0_5] : memref<128x128xbf16, #tpu.memory_space<vmem>>, vector<128x128xbf16>
    %cst = arith.constant dense<0.000000e+00> : vector<128x128xf32>
    %6 = tpu.matmul %4, %5, %cst {dimension_numbers = #tpu.dot_dimension_numbers<[1], [0], [0], [1], [0, 0, 1, 1], [], []>} : vector<128x128xbf16>, vector<128x128xbf16>, vector<128x128xf32> -> vector<128x128xf32>
    %7 = arith.addf %3, %6 : vector<128x128xf32>
    %c0_6 = arith.constant 0 : index
    %c0_7 = arith.constant 0 : index
    %8 = vector.load %arg7[%c0_6, %c0_7] : memref<128x128xf32, #tpu.memory_space<vmem>>, vector<128x128xf32>
    tpu.vector_store %arg7[%c0_6, %c0_7], %7 {strides = array<i32>} : memref<128x128xf32, #tpu.memory_space<vmem>>, vector<128x128xf32>,
    %c0_i32_8 = arith.constant 0 : i32
    %9 = arith.cmpi eq, %arg2, %c0_i32_8 : i32
    %10 = arith.extui %9 : i1 to i32
    %c0_i32_9 = arith.constant 0 : i32
    %11 = arith.cmpi ne, %10, %c0_i32_9 : i32
    scf.if %11 {
      %c0_10 = arith.constant 0 : index
      %c0_11 = arith.constant 0 : index
      %12 = vector.load %arg7[%c0_10, %c0_11] : memref<128x128xf32, #tpu.memory_space<vmem>>, vector<128x128xf32>
      %c0_12 = arith.constant 0 : index
      %c0_13 = arith.constant 0 : index
      %13 = vector.load %arg5[%c0_12, %c0_13] : memref<1x128xf32, #tpu.memory_space<vmem>>, vector<1x128xf32>
      %14 = vector.broadcast %13 : vector<1x128xf32> to vector<128x128xf32>
      %15 = arith.addf %12, %14 : vector<128x128xf32>
      %c0_14 = arith.constant 0 : index
      %c0_15 = arith.constant 0 : index
      %16 = vector.load %arg6[%c0_14, %c0_15] : memref<128x128xf32, #tpu.memory_space<vmem>>, vector<128x128xf32>
      tpu.vector_store %arg6[%c0_14, %c0_15], %15 {strides = array<i32>} : memref<128x128xf32, #tpu.memory_space<vmem>>, vector<128x128xf32>,
    } else {
    }
    return
  }
  func.func @transform_0(%arg0: i32, %arg1: i32, %arg2: i32) -> (i32, i32) {
    %c0_i32 = arith.constant 0 : i32
    return %arg0, %arg2 : i32, i32
  }
  func.func @transform_1(%arg0: i32, %arg1: i32, %arg2: i32) -> (i32, i32) {
    %c0_i32 = arith.constant 0 : i32
    return %arg2, %arg1 : i32, i32
  }
  func.func @transform_2(%arg0: i32, %arg1: i32, %arg2: i32) -> (i32, i32) {
    %c0_i32 = arith.constant 0 : i32
    %c0_i32_0 = arith.constant 0 : i32
    return %c0_i32, %arg1 : i32, i32
  }
  func.func @transform_3(%arg0: i32, %arg1: i32, %arg2: i32) -> (i32, i32) {
    %c0_i32 = arith.constant 0 : i32
    return %arg0, %arg1 : i32, i32
  }
}

module attributes {stable_mosaic.version = 11 : i64} {
  func.func @_gemm_res_kernel(%arg0: i32, %arg1: i32, %arg2: i32, %arg3: memref<128x128xbf16, #tpu.memory_space<vmem>>, %arg4: memref<128x128xbf16, #tpu.memory_space<vmem>>, %arg5: memref<1x128xf32, #tpu.memory_space<vmem>>, %arg6: memref<128x128xf32, #tpu.memory_space<vmem>>, %arg7: memref<128x128xf32, #tpu.memory_space<vmem>>, %arg8: memref<128x128xf32, #tpu.memory_space<vmem>>) attributes {dimension_semantics = [#tpu.dimension_semantics<parallel>, #tpu.dimension_semantics<parallel>, #tpu.dimension_semantics<arbitrary>], iteration_bounds = array<i64: 1, 1, 1>, scalar_prefetch = 0 : i64, scratch_operands = 1 : i64, tpu.core_type = #tpu.core_type<tc>, window_params = [{transform_indices = @transform_0, window_bounds = array<i64: 128, 128>}, {transform_indices = @transform_1, window_bounds = array<i64: 128, 128>}, {transform_indices = @transform_2, window_bounds = array<i64: 1, 128>}, {transform_indices = @transform_3, window_bounds = array<i64: 128, 128>}, {transform_indices = @transform_4, window_bounds = array<i64: 128, 128>}]} {
    %c0_i32 = arith.constant 0 : i32
    %0 = arith.cmpi eq, %arg2, %c0_i32 : i32
    %1 = arith.extui %0 : i1 to i32
    %c0_i32_0 = arith.constant 0 : i32
    %2 = arith.cmpi ne, %1, %c0_i32_0 : i32
    scf.if %2 {
      %cst_10 = arith.constant 0.000000e+00 : f32
      %12 = vector.broadcast %cst_10 : f32 to vector<128x128xf32>
      %c0_11 = arith.constant 0 : index
      %c0_12 = arith.constant 0 : index
      %13 = vector.load %arg8[%c0_11, %c0_12] : memref<128x128xf32, #tpu.memory_space<vmem>>, vector<128x128xf32>
      tpu.vector_store %arg8[%c0_11, %c0_12], %12 {strides = array<i32>} : memref<128x128xf32, #tpu.memory_space<vmem>>, vector<128x128xf32>,
    } else {
    }
    %c0 = arith.constant 0 : index
    %c0_1 = arith.constant 0 : index
    %3 = vector.load %arg8[%c0, %c0_1] : memref<128x128xf32, #tpu.memory_space<vmem>>, vector<128x128xf32>
    %c0_2 = arith.constant 0 : index
    %c0_3 = arith.constant 0 : index
    %4 = vector.load %arg3[%c0_2, %c0_3] : memref<128x128xbf16, #tpu.memory_space<vmem>>, vector<128x128xbf16>
    %c0_4 = arith.constant 0 : index
    %c0_5 = arith.constant 0 : index
    %5 = vector.load %arg4[%c0_4, %c0_5] : memref<128x128xbf16, #tpu.memory_space<vmem>>, vector<128x128xbf16>
    %cst = arith.constant dense<0.000000e+00> : vector<128x128xf32>
    %6 = tpu.matmul %4, %5, %cst {dimension_numbers = #tpu.dot_dimension_numbers<[1], [0], [0], [1], [0, 0, 1, 1], [], []>} : vector<128x128xbf16>, vector<128x128xbf16>, vector<128x128xf32> -> vector<128x128xf32>
    %7 = arith.addf %3, %6 : vector<128x128xf32>
    %c0_6 = arith.constant 0 : index
    %c0_7 = arith.constant 0 : index
    %8 = vector.load %arg8[%c0_6, %c0_7] : memref<128x128xf32, #tpu.memory_space<vmem>>, vector<128x128xf32>
    tpu.vector_store %arg8[%c0_6, %c0_7], %7 {strides = array<i32>} : memref<128x128xf32, #tpu.memory_space<vmem>>, vector<128x128xf32>,
    %c0_i32_8 = arith.constant 0 : i32
    %9 = arith.cmpi eq, %arg2, %c0_i32_8 : i32
    %10 = arith.extui %9 : i1 to i32
    %c0_i32_9 = arith.constant 0 : i32
    %11 = arith.cmpi ne, %10, %c0_i32_9 : i32
    scf.if %11 {
      %c0_10 = arith.constant 0 : index
      %c0_11 = arith.constant 0 : index
      %12 = vector.load %arg8[%c0_10, %c0_11] : memref<128x128xf32, #tpu.memory_space<vmem>>, vector<128x128xf32>
      %c0_12 = arith.constant 0 : index
      %c0_13 = arith.constant 0 : index
      %13 = vector.load %arg5[%c0_12, %c0_13] : memref<1x128xf32, #tpu.memory_space<vmem>>, vector<1x128xf32>
      %14 = vector.broadcast %13 : vector<1x128xf32> to vector<128x128xf32>
      %15 = arith.addf %12, %14 : vector<128x128xf32>
      %c0_14 = arith.constant 0 : index
      %c0_15 = arith.constant 0 : index
      %16 = vector.load %arg6[%c0_14, %c0_15] : memref<128x128xf32, #tpu.memory_space<vmem>>, vector<128x128xf32>
      %17 = arith.addf %15, %16 : vector<128x128xf32>
      %c0_16 = arith.constant 0 : index
      %c0_17 = arith.constant 0 : index
      %18 = vector.load %arg7[%c0_16, %c0_17] : memref<128x128xf32, #tpu.memory_space<vmem>>, vector<128x128xf32>
      tpu.vector_store %arg7[%c0_16, %c0_17], %17 {strides = array<i32>} : memref<128x128xf32, #tpu.memory_space<vmem>>, vector<128x128xf32>,
    } else {
    }
    return
  }
  func.func @transform_0(%arg0: i32, %arg1: i32, %arg2: i32) -> (i32, i32) {
    %c0_i32 = arith.constant 0 : i32
    return %arg0, %arg2 : i32, i32
  }
  func.func @transform_1(%arg0: i32, %arg1: i32, %arg2: i32) -> (i32, i32) {
    %c0_i32 = arith.constant 0 : i32
    return %arg2, %arg1 : i32, i32
  }
  func.func @transform_2(%arg0: i32, %arg1: i32, %arg2: i32) -> (i32, i32) {
    %c0_i32 = arith.constant 0 : i32
    %c0_i32_0 = arith.constant 0 : i32
    return %c0_i32, %arg1 : i32, i32
  }
  func.func @transform_3(%arg0: i32, %arg1: i32, %arg2: i32) -> (i32, i32) {
    %c0_i32 = arith.constant 0 : i32
    return %arg0, %arg1 : i32, i32
  }
  func.func @transform_4(%arg0: i32, %arg1: i32, %arg2: i32) -> (i32, i32) {
    %c0_i32 = arith.constant 0 : i32
    return %arg0, %arg1 : i32, i32
  }
}

module attributes {stable_mosaic.version = 11 : i64} {
  func.func @_conv3x3_kernel(%arg0: i32, %arg1: i32, %arg2: memref<1x10x10x64xf32, #tpu.memory_space<vmem>>, %arg3: memref<576x128xbf16, #tpu.memory_space<vmem>>, %arg4: memref<1x128xf32, #tpu.memory_space<vmem>>, %arg5: memref<1x64x128xf32, #tpu.memory_space<vmem>>) attributes {dimension_semantics = [#tpu.dimension_semantics<parallel>, #tpu.dimension_semantics<parallel>], iteration_bounds = array<i64: 2, 1>, scalar_prefetch = 0 : i64, scratch_operands = 0 : i64, tpu.core_type = #tpu.core_type<tc>, window_params = [{transform_indices = @transform_0, window_bounds = array<i64: 1, 10, 10, 64>}, {transform_indices = @transform_1, window_bounds = array<i64: 576, 128>}, {transform_indices = @transform_2, window_bounds = array<i64: 1, 128>}, {transform_indices = @transform_3, window_bounds = array<i64: 1, 64, 128>}]} {
    %cst = arith.constant 0.000000e+00 : f32
    %0 = vector.broadcast %cst : f32 to vector<64x128xf32>
    %c0 = arith.constant 0 : index
    %c0_0 = arith.constant 0 : index
    %c0_1 = arith.constant 0 : index
    %c0_2 = arith.constant 0 : index
    %1 = vector.load %arg2[%c0, %c0_0, %c0_1, %c0_2] : memref<1x10x10x64xf32, #tpu.memory_space<vmem>>, vector<1x8x8x64xf32>
    %2 = vector.shape_cast %1 : vector<1x8x8x64xf32> to vector<8x8x64xf32>
    %3 = vector.shape_cast %2 : vector<8x8x64xf32> to vector<64x64xf32>
    %4 = arith.truncf %3 : vector<64x64xf32> to vector<64x64xbf16>
    %c0_3 = arith.constant 0 : index
    %c0_4 = arith.constant 0 : index
    %5 = vector.load %arg3[%c0_3, %c0_4] : memref<576x128xbf16, #tpu.memory_space<vmem>>, vector<64x128xbf16>
    %cst_5 = arith.constant dense<0.000000e+00> : vector<64x128xf32>
    %6 = tpu.matmul %4, %5, %cst_5 {dimension_numbers = #tpu.dot_dimension_numbers<[1], [0], [0], [1], [0, 0, 1, 1], [], []>} : vector<64x64xbf16>, vector<64x128xbf16>, vector<64x128xf32> -> vector<64x128xf32>
    %7 = arith.addf %0, %6 : vector<64x128xf32>
    %c0_6 = arith.constant 0 : index
    %c0_7 = arith.constant 0 : index
    %c1 = arith.constant 1 : index
    %c0_8 = arith.constant 0 : index
    %8 = vector.load %arg2[%c0_6, %c0_7, %c1, %c0_8] : memref<1x10x10x64xf32, #tpu.memory_space<vmem>>, vector<1x8x8x64xf32>
    %9 = vector.shape_cast %8 : vector<1x8x8x64xf32> to vector<8x8x64xf32>
    %10 = vector.shape_cast %9 : vector<8x8x64xf32> to vector<64x64xf32>
    %11 = arith.truncf %10 : vector<64x64xf32> to vector<64x64xbf16>
    %c64 = arith.constant 64 : index
    %c0_9 = arith.constant 0 : index
    %12 = vector.load %arg3[%c64, %c0_9] : memref<576x128xbf16, #tpu.memory_space<vmem>>, vector<64x128xbf16>
    %cst_10 = arith.constant dense<0.000000e+00> : vector<64x128xf32>
    %13 = tpu.matmul %11, %12, %cst_10 {dimension_numbers = #tpu.dot_dimension_numbers<[1], [0], [0], [1], [0, 0, 1, 1], [], []>} : vector<64x64xbf16>, vector<64x128xbf16>, vector<64x128xf32> -> vector<64x128xf32>
    %14 = arith.addf %7, %13 : vector<64x128xf32>
    %c0_11 = arith.constant 0 : index
    %c0_12 = arith.constant 0 : index
    %c2 = arith.constant 2 : index
    %c0_13 = arith.constant 0 : index
    %15 = vector.load %arg2[%c0_11, %c0_12, %c2, %c0_13] : memref<1x10x10x64xf32, #tpu.memory_space<vmem>>, vector<1x8x8x64xf32>
    %16 = vector.shape_cast %15 : vector<1x8x8x64xf32> to vector<8x8x64xf32>
    %17 = vector.shape_cast %16 : vector<8x8x64xf32> to vector<64x64xf32>
    %18 = arith.truncf %17 : vector<64x64xf32> to vector<64x64xbf16>
    %c128 = arith.constant 128 : index
    %c0_14 = arith.constant 0 : index
    %19 = vector.load %arg3[%c128, %c0_14] : memref<576x128xbf16, #tpu.memory_space<vmem>>, vector<64x128xbf16>
    %cst_15 = arith.constant dense<0.000000e+00> : vector<64x128xf32>
    %20 = tpu.matmul %18, %19, %cst_15 {dimension_numbers = #tpu.dot_dimension_numbers<[1], [0], [0], [1], [0, 0, 1, 1], [], []>} : vector<64x64xbf16>, vector<64x128xbf16>, vector<64x128xf32> -> vector<64x128xf32>
    %21 = arith.addf %14, %20 : vector<64x128xf32>
    %c0_16 = arith.constant 0 : index
    %c1_17 = arith.constant 1 : index
    %c0_18 = arith.constant 0 : index
    %c0_19 = arith.constant 0 : index
    %22 = vector.load %arg2[%c0_16, %c1_17, %c0_18, %c0_19] : memref<1x10x10x64xf32, #tpu.memory_space<vmem>>, vector<1x8x8x64xf32>
    %23 = vector.shape_cast %22 : vector<1x8x8x64xf32> to vector<8x8x64xf32>
    %24 = vector.shape_cast %23 : vector<8x8x64xf32> to vector<64x64xf32>
    %25 = arith.truncf %24 : vector<64x64xf32> to vector<64x64xbf16>
    %c192 = arith.constant 192 : index
    %c0_20 = arith.constant 0 : index
    %26 = vector.load %arg3[%c192, %c0_20] : memref<576x128xbf16, #tpu.memory_space<vmem>>, vector<64x128xbf16>
    %cst_21 = arith.constant dense<0.000000e+00> : vector<64x128xf32>
    %27 = tpu.matmul %25, %26, %cst_21 {dimension_numbers = #tpu.dot_dimension_numbers<[1], [0], [0], [1], [0, 0, 1, 1], [], []>} : vector<64x64xbf16>, vector<64x128xbf16>, vector<64x128xf32> -> vector<64x128xf32>
    %28 = arith.addf %21, %27 : vector<64x128xf32>
    %c0_22 = arith.constant 0 : index
    %c1_23 = arith.constant 1 : index
    %c1_24 = arith.constant 1 : index
    %c0_25 = arith.constant 0 : index
    %29 = vector.load %arg2[%c0_22, %c1_23, %c1_24, %c0_25] : memref<1x10x10x64xf32, #tpu.memory_space<vmem>>, vector<1x8x8x64xf32>
    %30 = vector.shape_cast %29 : vector<1x8x8x64xf32> to vector<8x8x64xf32>
    %31 = vector.shape_cast %30 : vector<8x8x64xf32> to vector<64x64xf32>
    %32 = arith.truncf %31 : vector<64x64xf32> to vector<64x64xbf16>
    %c256 = arith.constant 256 : index
    %c0_26 = arith.constant 0 : index
    %33 = vector.load %arg3[%c256, %c0_26] : memref<576x128xbf16, #tpu.memory_space<vmem>>, vector<64x128xbf16>
    %cst_27 = arith.constant dense<0.000000e+00> : vector<64x128xf32>
    %34 = tpu.matmul %32, %33, %cst_27 {dimension_numbers = #tpu.dot_dimension_numbers<[1], [0], [0], [1], [0, 0, 1, 1], [], []>} : vector<64x64xbf16>, vector<64x128xbf16>, vector<64x128xf32> -> vector<64x128xf32>
    %35 = arith.addf %28, %34 : vector<64x128xf32>
    %c0_28 = arith.constant 0 : index
    %c1_29 = arith.constant 1 : index
    %c2_30 = arith.constant 2 : index
    %c0_31 = arith.constant 0 : index
    %36 = vector.load %arg2[%c0_28, %c1_29, %c2_30, %c0_31] : memref<1x10x10x64xf32, #tpu.memory_space<vmem>>, vector<1x8x8x64xf32>
    %37 = vector.shape_cast %36 : vector<1x8x8x64xf32> to vector<8x8x64xf32>
    %38 = vector.shape_cast %37 : vector<8x8x64xf32> to vector<64x64xf32>
    %39 = arith.truncf %38 : vector<64x64xf32> to vector<64x64xbf16>
    %c320 = arith.constant 320 : index
    %c0_32 = arith.constant 0 : index
    %40 = vector.load %arg3[%c320, %c0_32] : memref<576x128xbf16, #tpu.memory_space<vmem>>, vector<64x128xbf16>
    %cst_33 = arith.constant dense<0.000000e+00> : vector<64x128xf32>
    %41 = tpu.matmul %39, %40, %cst_33 {dimension_numbers = #tpu.dot_dimension_numbers<[1], [0], [0], [1], [0, 0, 1, 1], [], []>} : vector<64x64xbf16>, vector<64x128xbf16>, vector<64x128xf32> -> vector<64x128xf32>
    %42 = arith.addf %35, %41 : vector<64x128xf32>
    %c0_34 = arith.constant 0 : index
    %c2_35 = arith.constant 2 : index
    %c0_36 = arith.constant 0 : index
    %c0_37 = arith.constant 0 : index
    %43 = vector.load %arg2[%c0_34, %c2_35, %c0_36, %c0_37] : memref<1x10x10x64xf32, #tpu.memory_space<vmem>>, vector<1x8x8x64xf32>
    %44 = vector.shape_cast %43 : vector<1x8x8x64xf32> to vector<8x8x64xf32>
    %45 = vector.shape_cast %44 : vector<8x8x64xf32> to vector<64x64xf32>
    %46 = arith.truncf %45 : vector<64x64xf32> to vector<64x64xbf16>
    %c384 = arith.constant 384 : index
    %c0_38 = arith.constant 0 : index
    %47 = vector.load %arg3[%c384, %c0_38] : memref<576x128xbf16, #tpu.memory_space<vmem>>, vector<64x128xbf16>
    %cst_39 = arith.constant dense<0.000000e+00> : vector<64x128xf32>
    %48 = tpu.matmul %46, %47, %cst_39 {dimension_numbers = #tpu.dot_dimension_numbers<[1], [0], [0], [1], [0, 0, 1, 1], [], []>} : vector<64x64xbf16>, vector<64x128xbf16>, vector<64x128xf32> -> vector<64x128xf32>
    %49 = arith.addf %42, %48 : vector<64x128xf32>
    %c0_40 = arith.constant 0 : index
    %c2_41 = arith.constant 2 : index
    %c1_42 = arith.constant 1 : index
    %c0_43 = arith.constant 0 : index
    %50 = vector.load %arg2[%c0_40, %c2_41, %c1_42, %c0_43] : memref<1x10x10x64xf32, #tpu.memory_space<vmem>>, vector<1x8x8x64xf32>
    %51 = vector.shape_cast %50 : vector<1x8x8x64xf32> to vector<8x8x64xf32>
    %52 = vector.shape_cast %51 : vector<8x8x64xf32> to vector<64x64xf32>
    %53 = arith.truncf %52 : vector<64x64xf32> to vector<64x64xbf16>
    %c448 = arith.constant 448 : index
    %c0_44 = arith.constant 0 : index
    %54 = vector.load %arg3[%c448, %c0_44] : memref<576x128xbf16, #tpu.memory_space<vmem>>, vector<64x128xbf16>
    %cst_45 = arith.constant dense<0.000000e+00> : vector<64x128xf32>
    %55 = tpu.matmul %53, %54, %cst_45 {dimension_numbers = #tpu.dot_dimension_numbers<[1], [0], [0], [1], [0, 0, 1, 1], [], []>} : vector<64x64xbf16>, vector<64x128xbf16>, vector<64x128xf32> -> vector<64x128xf32>
    %56 = arith.addf %49, %55 : vector<64x128xf32>
    %c0_46 = arith.constant 0 : index
    %c2_47 = arith.constant 2 : index
    %c2_48 = arith.constant 2 : index
    %c0_49 = arith.constant 0 : index
    %57 = vector.load %arg2[%c0_46, %c2_47, %c2_48, %c0_49] : memref<1x10x10x64xf32, #tpu.memory_space<vmem>>, vector<1x8x8x64xf32>
    %58 = vector.shape_cast %57 : vector<1x8x8x64xf32> to vector<8x8x64xf32>
    %59 = vector.shape_cast %58 : vector<8x8x64xf32> to vector<64x64xf32>
    %60 = arith.truncf %59 : vector<64x64xf32> to vector<64x64xbf16>
    %c512 = arith.constant 512 : index
    %c0_50 = arith.constant 0 : index
    %61 = vector.load %arg3[%c512, %c0_50] : memref<576x128xbf16, #tpu.memory_space<vmem>>, vector<64x128xbf16>
    %cst_51 = arith.constant dense<0.000000e+00> : vector<64x128xf32>
    %62 = tpu.matmul %60, %61, %cst_51 {dimension_numbers = #tpu.dot_dimension_numbers<[1], [0], [0], [1], [0, 0, 1, 1], [], []>} : vector<64x64xbf16>, vector<64x128xbf16>, vector<64x128xf32> -> vector<64x128xf32>
    %63 = arith.addf %56, %62 : vector<64x128xf32>
    %c0_52 = arith.constant 0 : index
    %c0_53 = arith.constant 0 : index
    %64 = vector.load %arg4[%c0_52, %c0_53] : memref<1x128xf32, #tpu.memory_space<vmem>>, vector<1x128xf32>
    %65 = vector.broadcast %64 : vector<1x128xf32> to vector<64x128xf32>
    %66 = arith.addf %63, %65 : vector<64x128xf32>
    %c0_54 = arith.constant 0 : index
    %c0_55 = arith.constant 0 : index
    %c0_56 = arith.constant 0 : index
    %67 = vector.load %arg5[%c0_54, %c0_55, %c0_56] : memref<1x64x128xf32, #tpu.memory_space<vmem>>, vector<1x64x128xf32>
    %68 = vector.shape_cast %67 : vector<1x64x128xf32> to vector<64x128xf32>
    %69 = vector.shape_cast %66 : vector<64x128xf32> to vector<1x64x128xf32>
    tpu.vector_store %arg5[%c0_54, %c0_55, %c0_56], %69 {strides = array<i32>} : memref<1x64x128xf32, #tpu.memory_space<vmem>>, vector<1x64x128xf32>,
    return
  }
  func.func @transform_0(%arg0: i32, %arg1: i32) -> (i32, i32, i32, i32) {
    %c0_i32 = arith.constant 0 : i32
    %c0_i32_0 = arith.constant 0 : i32
    %c0_i32_1 = arith.constant 0 : i32
    %c0_i32_2 = arith.constant 0 : i32
    return %arg0, %c0_i32, %c0_i32_0, %c0_i32_1 : i32, i32, i32, i32
  }
  func.func @transform_1(%arg0: i32, %arg1: i32) -> (i32, i32) {
    %c0_i32 = arith.constant 0 : i32
    %c0_i32_0 = arith.constant 0 : i32
    return %c0_i32, %arg1 : i32, i32
  }
  func.func @transform_2(%arg0: i32, %arg1: i32) -> (i32, i32) {
    %c0_i32 = arith.constant 0 : i32
    %c0_i32_0 = arith.constant 0 : i32
    return %c0_i32, %arg1 : i32, i32
  }
  func.func @transform_3(%arg0: i32, %arg1: i32) -> (i32, i32, i32) {
    %c0_i32 = arith.constant 0 : i32
    %c0_i32_0 = arith.constant 0 : i32
    return %arg0, %c0_i32, %arg1 : i32, i32, i32
  }
}

</mosaic_0001>

<bundles_post_ra>
// kernel: _lambda_.30
= control target key start
LH: loop header
LB: loop body
LE: loop exit
PB: predicated region body
PF: predicated region fallthrough
CT: control target
= control target key end

     0   :  { %s1513_s18 = smov 0   ;;  %s2387_s0 = inlined_call_operand.vmem [shape: f32[2,256,32], index: 0, kind: input, shape index: {}]   ;;  %s2388_s1 = inlined_call_operand.vmem [shape: f32[32,32], index: 1, kind: input, shape index: {}]   ;;  %s2389_s2 = inlined_call_operand.vmem [shape: f32[32,32], index: 2, kind: input, shape index: {}]   ;;  %s2390_s3 = inlined_call_operand.vmem [shape: f32[1,32], index: 3, kind: input, shape index: {}]   ;;  %s2391_s4 = inlined_call_operand.vmem [shape: f32[1,32], index: 4, kind: input, shape index: {}]   ;;  %s2392_s5 = inlined_call_operand.vmem [shape: f32[2,256,32], index: 5, kind: output, shape index: {}]  }
   0x1 LB: > { %s1192_s19 = sadd.s32 4294967295, %s1478_s18   ;;  %p1196_p0 = scmp.ge.s32.totalorder %s1478_s18, 1  ;;  %s1478_s18 = sphi %s1513_s18, %s15_s18  }
   0x2   : > { %p187_p1 = scmp.lt.s32.totalorder %s1478_s18, 3 }
   0x4   : > { %p188_p2 = pnand %p1196_p0, %p187_p1 }
   0x6   : > { %191 = sbr.rel (%p188_p2) target bundleno = 1134 (0x46e), region = 40 }
   0xd   : > { %v257_v0 = vld [vmem:[%s2388_s1] sm:$0xff]  ;;  %v258_v1 = vld [vmem:[%s2388_s1 + $0x8] sm:$0xff]  ;;  %v259_v2 = vld [vmem:[%s2388_s1 + $0x10] sm:$0xff]  ;;  %v1480_v3 = vmov 0.0|0.0   ;;  %vm1481_vm0 = vmmov 0   ;;  %v1482_v6 = vmov 0.0  }
   0xe   : > { %1307 = vmatprep.subr.bf16.mxu0 %v1480_v3  ;;  %v1531_v4 = vpack.c.bf16 %v258_v1, %v257_v0  ;;  %v260_v5 = vld [vmem:[%s2388_s1 + $0x18] sm:$0xff]  ;;  %1271 = vmatprep.mubr.msk.f32.mxu0 %vm1481_vm0, %v1482_v6  ;;  %p215_p3 = scmp.lt.s32.totalorder %s1192_s19, 1  ;;  %v261_v7 = vld [vmem:[%s2389_s2] sm:$0xff]  ;;  %v262_v8 = vld [vmem:[%s2389_s2 + $0x8] sm:$0xff]  ;;  %vm265_vm1 = vcmask 261120  }
   0xf   : > { %1313 = vmatprep.subr.bf16.mxu1 %v1480_v3  ;;  %v1545_v9 = vpack.c.bf16 %v262_v8, %v261_v7  ;;  %1282 = vmatprep.mubr.msk.f32.mxu1 %vm1481_vm0, %v1482_v6  ;;  %v1550_v10 = vpack.c.bf16 %v260_v5, %v259_v2 }
  0x10   : > { %1309 = vmatpush3.bf16.msra.mxu0 %v1531_v4  ;;  %s2397_s19 = smov (!%p215_p3, %s1192_s19), 1 }
  0x11   : > { %1310 = vmatprep.subr.bf16.mxu0 %v1480_v3  ;;  %1315 = vmatpush3.bf16.msra.mxu1 %v1545_v9  ;;  %s1241_s7 = sshll.u32 %s2397_s19, 8 }
  0x12   : > { %1316 = vmatprep.subr.bf16.mxu1 %v1480_v3  ;;  %s1563_s10 = scalar_lea.vmem %s2387_s0, %s1241_s7  ;;  %s2274_s23 = scalar_lea.vmem %s2392_s5, %s1241_s7 }
  0x13   : > { %v1567_v11 = vld [vmem:[%s1563_s10] sm:$0xff]  ;;  %v1570_v12 = vld [vmem:[%s1563_s10 + $0x8] sm:$0xff]  ;;  %v1573_v13 = vld [vmem:[%s1563_s10 + $0x10] sm:$0xff] }
  0x14   : > { %1312 = vmatpush3.bf16.msra.mxu0 %v1550_v10  ;;  %v1576_v14 = vld [vmem:[%s1563_s10 + $0x18] sm:$0xff]  ;;  %v266_v15 = vsel %vm265_vm1, %v1567_v11, 0.0  ;;  %v267_v16 = vsel %vm265_vm1, %v1570_v12, 0.0  ;;  %v269_v17 = vsel %vm265_vm1, %v1573_v13, 0.0  ;;  %v1586_v18 = vld [vmem:[%s1563_s10 + $0x20] sm:$0xff]  ;;  %v1591_v21 = vld [vmem:[%s1563_s10 + $0x28] sm:$0xff] }
  0x15   : > { %1319 = vmatprep.subr.bf16.mxu0 %v1480_v3  ;;  %v268_v19 = vadd.f32 %v267_v16, %v266_v15  ;;  %v271_v20 = vsel %vm265_vm1, %v1576_v14, 0.0  ;;  %v273_v23 = vsel %vm265_vm1, %v1586_v18, 0.0  ;;  %v1596_v24 = vld [vmem:[%s1563_s10 + $0x30] sm:$0xff]  ;;  %v275_v26 = vsel %vm265_vm1, %v1591_v21, 0.0  ;;  %v1601_v27 = vld [vmem:[%s1563_s10 + $0x38] sm:$0xff]  ;;  %v1606_v30 = vld [vmem:[%s1563_s10 + $0x40] sm:$0xff] }
  0x16   : > { %v277_v29 = vsel %vm265_vm1, %v1596_v24, 0.0  ;;  %v279_v32 = vsel %vm265_vm1, %v1601_v27, 0.0  ;;  %v1611_v33 = vld [vmem:[%s1563_s10 + $0x48] sm:$0xff]  ;;  %v281_v35 = vsel %vm265_vm1, %v1606_v30, 0.0  ;;  %v1616_v36 = vld [vmem:[%s1563_s10 + $0x50] sm:$0xff]  ;;  %v1621_v39 = vld [vmem:[%s1563_s10 + $0x58] sm:$0xff] }
  0x17   : > { %v270_v22 = vadd.f32 %v269_v17, %v268_v19  ;;  %v283_v38 = vsel %vm265_vm1, %v1611_v33, 0.0  ;;  %v285_v41 = vsel %vm265_vm1, %v1616_v36, 0.0  ;;  %v1626_v42 = vld [vmem:[%s1563_s10 + $0x60] sm:$0xff]  ;;  %v287_v44 = vsel %vm265_vm1, %v1621_v39, 0.0  ;;  %v1631_v45 = vld [vmem:[%s1563_s10 + $0x68] sm:$0xff]  ;;  %v1636_v48 = vld [vmem:[%s1563_s10 + $0x70] sm:$0xff] }
  0x18   : > { %v289_v47 = vsel %vm265_vm1, %v1626_v42, 0.0  ;;  %v291_v50 = vsel %vm265_vm1, %v1631_v45, 0.0  ;;  %v1641_v51 = vld [vmem:[%s1563_s10 + $0x78] sm:$0xff]  ;;  %v293_v53 = vsel %vm265_vm1, %v1636_v48, 0.0  ;;  %v1646_v54 = vld [vmem:[%s1563_s10 + $0x80] sm:$0xff]  ;;  %v1651_v57 = vld [vmem:[%s1563_s10 + $0x88] sm:$0xff] }
  0x19   : > { %v272_v25 = vadd.f32 %v271_v20, %v270_v22  ;;  %v295_v56 = vsel %vm265_vm1, %v1641_v51, 0.0  ;;  %v297_v59 = vsel %vm265_vm1, %v1646_v54, 0.0  ;;  %v1656_v60 = vld [vmem:[%s1563_s10 + $0x90] sm:$0xff]  ;;  %v299_v62 = vsel %vm265_vm1, %v1651_v57, 0.0  ;;  %v1661_v63 = vld [vmem:[%s1563_s10 + $0x98] sm:$0xff]  ;;  %v1666_v2 = vld [vmem:[%s1563_s10 + $0xa0] sm:$0xff] }
  0x1a   : > { %v301_v1 = vsel %vm265_vm1, %v1656_v60, 0.0  ;;  %v303_v7 = vsel %vm265_vm1, %v1661_v63, 0.0  ;;  %v1671_v8 = vld [vmem:[%s1563_s10 + $0xa8] sm:$0xff]  ;;  %v305_v16 = vsel %vm265_vm1, %v1666_v2, 0.0  ;;  %v1676_v17 = vld [vmem:[%s1563_s10 + $0xb0] sm:$0xff]  ;;  %v1681_v22 = vld [vmem:[%s1563_s10 + $0xb8] sm:$0xff] }
  0x1b   : > { %v274_v28 = vadd.f32 %v273_v23, %v272_v25  ;;  %v307_v20 = vsel %vm265_vm1, %v1671_v8, 0.0  ;;  %v309_v25 = vsel %vm265_vm1, %v1676_v17, 0.0 }
  0x1d   : > { %v276_v31 = vadd.f32 %v275_v26, %v274_v28  ;;  %v1686_v26 = vld [vmem:[%s1563_s10 + $0xc0] sm:$0xff] }
  0x1f   : > { %v278_v34 = vadd.f32 %v277_v29, %v276_v31  ;;  %v311_v29 = vsel %vm265_vm1, %v1681_v22, 0.0  ;;  %v1691_v31 = vld [vmem:[%s1563_s10 + $0xc8] sm:$0xff] }
  0x21   : > { %v280_v37 = vadd.f32 %v279_v32, %v278_v34  ;;  %v313_v34 = vsel %vm265_vm1, %v1686_v26, 0.0 }
  0x23   : > { %v282_v40 = vadd.f32 %v281_v35, %v280_v37  ;;  %v1696_v35 = vld [vmem:[%s1563_s10 + $0xd0] sm:$0xff] }
  0x25   : > { %v284_v43 = vadd.f32 %v283_v38, %v282_v40  ;;  %v315_v38 = vsel %vm265_vm1, %v1691_v31, 0.0  ;;  %v1701_v40 = vld [vmem:[%s1563_s10 + $0xd8] sm:$0xff] }
  0x27   : > { %v286_v46 = vadd.f32 %v285_v41, %v284_v43  ;;  %v317_v43 = vsel %vm265_vm1, %v1696_v35, 0.0 }
  0x29   : > { %v288_v49 = vadd.f32 %v287_v44, %v286_v46  ;;  %v1706_v44 = vld [vmem:[%s1563_s10 + $0xe0] sm:$0xff] }
  0x2b   : > { %v290_v52 = vadd.f32 %v289_v47, %v288_v49  ;;  %v319_v47 = vsel %vm265_vm1, %v1701_v40, 0.0  ;;  %v1711_v49 = vld [vmem:[%s1563_s10 + $0xe8] sm:$0xff] }
  0x2d   : > { %v292_v55 = vadd.f32 %v291_v50, %v290_v52  ;;  %v321_v52 = vsel %vm265_vm1, %v1706_v44, 0.0 }
  0x2f   : > { %v294_v58 = vadd.f32 %v293_v53, %v292_v55  ;;  %v1716_v53 = vld [vmem:[%s1563_s10 + $0xf0] sm:$0xff] }
  0x31   : > { %v296_v61 = vadd.f32 %v295_v56, %v294_v58  ;;  %v323_v56 = vsel %vm265_vm1, %v1711_v49, 0.0  ;;  %v1721_v58 = vld [vmem:[%s1563_s10 + $0xf8] sm:$0xff] }
  0x33   : > { %v298_v0 = vadd.f32 %v297_v59, %v296_v61  ;;  %v325_v61 = vsel %vm265_vm1, %v1716_v53, 0.0 }
  0x35   : > { %v300_v5 = vadd.f32 %v299_v62, %v298_v0  ;;  %v327_v0 = vsel %vm265_vm1, %v1721_v58, 0.0 }
  0x37   : > { %v302_v15 = vadd.f32 %v301_v1, %v300_v5 }
  0x39   : > { %v304_v19 = vadd.f32 %v303_v7, %v302_v15 }
  0x3b   : > { %v306_v23 = vadd.f32 %v305_v16, %v304_v19 }
  0x3d   : > { %v308_v28 = vadd.f32 %v307_v20, %v306_v23 }
  0x3f   : > { %v310_v32 = vadd.f32 %v309_v25, %v308_v28  ;;  %v263_v25 = vld [vmem:[%s2389_s2 + $0x10] sm:$0xff]  ;;  %v264_v28 = vld [vmem:[%s2389_s2 + $0x18] sm:$0xff] }
  0x41   : > { %v312_v37 = vadd.f32 %v311_v29, %v310_v32  ;;  %v1317_v29 = vpack.c.bf16 %v264_v28, %v263_v25 }
  0x43   : > { %v314_v41 = vadd.f32 %v313_v34, %v312_v37  ;;  %1318 = vmatpush3.bf16.msra.mxu1 %v1317_v29 }
  0x44   : > { %1325 = vmatprep.subr.bf16.mxu1 %v1480_v3 }
  0x45   : > { %v316_v46 = vadd.f32 %v315_v38, %v314_v41 }
  0x47   : > { %v318_v50 = vadd.f32 %v317_v43, %v316_v46 }
  0x49   : > { %v320_v55 = vadd.f32 %v319_v47, %v318_v50 }
  0x4b   : > { %v322_v59 = vadd.f32 %v321_v52, %v320_v55 }
  0x4d   : > { %v324_v62 = vadd.f32 %v323_v56, %v322_v59 }
  0x4f   : > { %v326_v1 = vadd.f32 %v325_v61, %v324_v62 }
  0x51   : > { %v328_v5 = vadd.f32 %v327_v0, %v326_v1 }
  0x53   : > { %v329_v7 = vrot.slane %v328_v5, 4 }
  0x55   : > { %v330_v15 = vadd.f32 %v329_v7, %v328_v5 }
  0x57   : > { %v331_v16 = vrot.slane %v330_v15, 2 }
  0x59   : > { %v332_v19 = vadd.f32 %v331_v16, %v330_v15 }
  0x5b   : > { %v333_v20 = vrot.slane %v332_v19, 1 }
  0x5d   : > { %v334_v23 = vadd.f32 %v333_v20, %v332_v19 }
  0x5f   : > { %1272 = vmatmul.mubr.msk.f32.vlgmr.msra.gmra.mrb[0].mxu0 %vm265_vm1, %v334_v23 }
  0x60   : > { %1321 = vmatpush3.bf16.msra.mxu0 %v1531_v4  ;;  %1293 = vmatprep.mubr.msk.f32.mxu0 %vm1481_vm0, %v1482_v6 }
  0x61   : > { %1322 = vmatprep.subr.bf16.mxu0 %v1480_v3 }
  0x64   : > { %1324 = vmatpush3.bf16.msra.mxu0 %v1550_v10  ;;  %v482_v10 = vlaneseq }
  0x66   : > { %v1745_v37 = vshrl.u32 %v482_v10, 7 }
  0x68   : > { %v484_v43 = vsub.s32 0, %v1745_v37  ;;  %v1991_v37 = vld [vmem:[%s2390_s3] ss:$0 sm:$0xff] }
 0x132   : > { %v404_v4 = vpop.f32.mrb[0].mxu0 }
 0x133   : > { %v408_v32 = vmul.f32 0.00390625, %v404_v4  ;;  %v1273_v34 = vpop.f32.mrb[1].mxu0 }
 0x135   : > { %1283 = vmatmul.mubr.msk.f32.vlgmr.msra.gmra.mrb[0].mxu1 %vm265_vm1, %v408_v32 }
 0x136   : > { %1327 = vmatpush3.bf16.msra.mxu1 %v1545_v9  ;;  %1304 = vmatprep.mubr.msk.f32.mxu1 %vm1481_vm0, %v1482_v6 }
 0x137   : > { %1328 = vmatprep.subr.bf16.mxu1 %v1480_v3 }
 0x13a   : > { %1330 = vmatpush3.bf16.msra.mxu1 %v1317_v29 }
 0x208   : > { %v478_v38 = vpop.f32.mrb[0].mxu1 }
 0x209   : > { %v1284_v41 = vpop.f32.mrb[1].mxu1  ;;  %v1750_v46 = vrot.slane %v478_v38, %v484_v43 }
 0x20b   : > { %v1754_v9 = vsub.f32 %v1567_v11, %v1750_v46  ;;  %v1758_v6 = vsub.f32 %v1570_v12, %v1750_v46  ;;  %v1762_v3 = vsub.f32 %v1573_v13, %v1750_v46  ;;  %v1766_v47 = vsub.f32 %v1576_v14, %v1750_v46 }
 0x20c   : > { %v1774_v11 = vsub.f32 %v1586_v18, %v1750_v46  ;;  %v1780_v13 = vsub.f32 %v1591_v21, %v1750_v46  ;;  %v1788_v61 = vsub.f32 %v1596_v24, %v1750_v46  ;;  %v1795_v21 = vsub.f32 %v1601_v27, %v1750_v46 }
 0x20d   : > { %v518_v50 = vmul.f32 %v1754_v9, %v1754_v9  ;;  %v519_v52 = vmul.f32 %v1758_v6, %v1758_v6  ;;  %v520_v12 = vmul.f32 %v1762_v3, %v1762_v3  ;;  %v521_v14 = vmul.f32 %v1766_v47, %v1766_v47 }
 0x20e   : > { %v522_v18 = vmul.f32 %v1774_v11, %v1774_v11  ;;  %v523_v1 = vmul.f32 %v1780_v13, %v1780_v13  ;;  %v1802_v24 = vsub.f32 %v1606_v30, %v1750_v46  ;;  %v524_v15 = vmul.f32 %v1788_v61, %v1788_v61 }
 0x20f   : > { %v550_v55 = vsel %vm265_vm1, %v518_v50, 0.0  ;;  %v551_v56 = vsel %vm265_vm1, %v519_v52, 0.0  ;;  %v553_v62 = vsel %vm265_vm1, %v520_v12, 0.0  ;;  %v555_v5 = vsel %vm265_vm1, %v521_v14, 0.0 }
 0x210   : > { %v552_v59 = vadd.f32 %v551_v56, %v550_v55  ;;  %v557_v16 = vsel %vm265_vm1, %v522_v18, 0.0  ;;  %v1809_v27 = vsub.f32 %v1611_v33, %v1750_v46  ;;  %v525_v20 = vmul.f32 %v1795_v21, %v1795_v21 }
 0x211   : > { %v559_v23 = vsel %vm265_vm1, %v523_v1, 0.0  ;;  %v1816_v30 = vsub.f32 %v1616_v36, %v1750_v46  ;;  %v526_v28 = vmul.f32 %v1802_v24, %v1802_v24  ;;  %v561_v29 = vsel %vm265_vm1, %v524_v15, 0.0 }
 0x212   : > { %v554_v0 = vadd.f32 %v553_v62, %v552_v59  ;;  %v1823_v33 = vsub.f32 %v1621_v39, %v1750_v46  ;;  %v527_v32 = vmul.f32 %v1809_v27, %v1809_v27  ;;  %v563_v34 = vsel %vm265_vm1, %v525_v20, 0.0 }
 0x213   : > { %v1830_v36 = vsub.f32 %v1626_v42, %v1750_v46  ;;  %v528_v38 = vmul.f32 %v1816_v30, %v1816_v30  ;;  %v565_v41 = vsel %vm265_vm1, %v526_v28, 0.0  ;;  %v1837_v39 = vsub.f32 %v1631_v45, %v1750_v46 }
 0x214   : > { %v556_v7 = vadd.f32 %v555_v5, %v554_v0  ;;  %v529_v52 = vmul.f32 %v1823_v33, %v1823_v33  ;;  %v567_v12 = vsel %vm265_vm1, %v527_v32, 0.0  ;;  %v1844_v42 = vsub.f32 %v1636_v48, %v1750_v46 }
 0x215   : > { %v530_v55 = vmul.f32 %v1830_v36, %v1830_v36  ;;  %v569_v56 = vsel %vm265_vm1, %v528_v38, 0.0  ;;  %v1851_v45 = vsub.f32 %v1641_v51, %v1750_v46  ;;  %v531_v18 = vmul.f32 %v1837_v39, %v1837_v39 }
 0x216   : > { %v558_v19 = vadd.f32 %v557_v16, %v556_v7  ;;  %v571_v62 = vsel %vm265_vm1, %v529_v52, 0.0  ;;  %v1858_v48 = vsub.f32 %v1646_v54, %v1750_v46  ;;  %v532_v1 = vmul.f32 %v1844_v42, %v1844_v42 }
 0x217   : > { %v573_v5 = vsel %vm265_vm1, %v530_v55, 0.0  ;;  %v1865_v51 = vsub.f32 %v1651_v57, %v1750_v46  ;;  %v533_v15 = vmul.f32 %v1851_v45, %v1851_v45  ;;  %v575_v16 = vsel %vm265_vm1, %v531_v18, 0.0 }
 0x218   : > { %v560_v25 = vadd.f32 %v559_v23, %v558_v19  ;;  %v1872_v54 = vsub.f32 %v1656_v60, %v1750_v46  ;;  %v534_v20 = vmul.f32 %v1858_v48, %v1858_v48  ;;  %v577_v23 = vsel %vm265_vm1, %v532_v1, 0.0 }
 0x219   : > { %v1879_v57 = vsub.f32 %v1661_v63, %v1750_v46  ;;  %v535_v28 = vmul.f32 %v1865_v51, %v1865_v51  ;;  %v1886_v60 = vsub.f32 %v1666_v2, %v1750_v46  ;;  %v1893_v63 = vsub.f32 %v1671_v8, %v1750_v46 }
 0x21a   : > { %v562_v4 = vadd.f32 %v561_v29, %v560_v25  ;;  %v579_v29 = vsel %vm265_vm1, %v533_v15, 0.0  ;;  %v536_v32 = vmul.f32 %v1872_v54, %v1872_v54  ;;  %v1900_v2 = vsub.f32 %v1676_v17, %v1750_v46 }
 0x21b   : > { %v537_v38 = vmul.f32 %v1879_v57, %v1879_v57  ;;  %v538_v52 = vmul.f32 %v1886_v60, %v1886_v60  ;;  %v1907_v8 = vsub.f32 %v1681_v22, %v1750_v46  ;;  %v539_v55 = vmul.f32 %v1893_v63, %v1893_v63 }
 0x21c   : > { %v564_v10 = vadd.f32 %v563_v34, %v562_v4  ;;  %v581_v34 = vsel %vm265_vm1, %v534_v20, 0.0  ;;  %v1914_v17 = vsub.f32 %v1686_v26, %v1750_v46  ;;  %v540_v18 = vmul.f32 %v1900_v2, %v1900_v2 }
 0x21d   : > { %v1921_v22 = vsub.f32 %v1691_v31, %v1750_v46  ;;  %v541_v1 = vmul.f32 %v1907_v8, %v1907_v8  ;;  %v1928_v26 = vsub.f32 %v1696_v35, %v1750_v46  ;;  %v1935_v31 = vsub.f32 %v1701_v40, %v1750_v46 }
 0x21e   : > { %v566_v50 = vadd.f32 %v565_v41, %v564_v10  ;;  %v583_v41 = vsel %vm265_vm1, %v535_v28, 0.0  ;;  %v542_v15 = vmul.f32 %v1914_v17, %v1914_v17  ;;  %v1942_v35 = vsub.f32 %v1706_v44, %v1750_v46 }
 0x21f   : > { %v543_v20 = vmul.f32 %v1921_v22, %v1921_v22  ;;  %v544_v28 = vmul.f32 %v1928_v26, %v1928_v26  ;;  %v1949_v40 = vsub.f32 %v1711_v49, %v1750_v46  ;;  %v1956_v44 = vsub.f32 %v1716_v53, %v1750_v46 }
 0x220   : > { %v568_v14 = vadd.f32 %v567_v12, %v566_v50  ;;  %v585_v12 = vsel %vm265_vm1, %v536_v32, 0.0  ;;  %v545_v32 = vmul.f32 %v1935_v31, %v1935_v31  ;;  %v1963_v49 = vsub.f32 %v1721_v58, %v1750_v46 }
 0x221   : > { %v548_v53 = vmul.f32 %v1956_v44, %v1956_v44 }
 0x222   : > { %v570_v59 = vadd.f32 %v569_v56, %v568_v14  ;;  %v587_v56 = vsel %vm265_vm1, %v537_v38, 0.0  ;;  %v546_v38 = vmul.f32 %v1942_v35, %v1942_v35 }
 0x223   : > { %v609_v58 = vsel %vm265_vm1, %v548_v53, 0.0 }
 0x224   : > { %v572_v0 = vadd.f32 %v571_v62, %v570_v59  ;;  %v589_v62 = vsel %vm265_vm1, %v538_v52, 0.0  ;;  %v547_v52 = vmul.f32 %v1949_v40, %v1949_v40 }
 0x226   : > { %v574_v7 = vadd.f32 %v573_v5, %v572_v0  ;;  %v591_v5 = vsel %vm265_vm1, %v539_v55, 0.0  ;;  %v605_v55 = vsel %vm265_vm1, %v546_v38, 0.0 }
 0x228   : > { %v576_v19 = vadd.f32 %v575_v16, %v574_v7  ;;  %v593_v16 = vsel %vm265_vm1, %v540_v18, 0.0  ;;  %v607_v18 = vsel %vm265_vm1, %v547_v52, 0.0 }
 0x22a   : > { %v578_v25 = vadd.f32 %v577_v23, %v576_v19  ;;  %v595_v23 = vsel %vm265_vm1, %v541_v1, 0.0 }
 0x22c   : > { %v580_v4 = vadd.f32 %v579_v29, %v578_v25  ;;  %v597_v29 = vsel %vm265_vm1, %v542_v15, 0.0 }
 0x22e   : > { %v582_v10 = vadd.f32 %v581_v34, %v580_v4  ;;  %v599_v34 = vsel %vm265_vm1, %v543_v20, 0.0 }
 0x230   : > { %v584_v50 = vadd.f32 %v583_v41, %v582_v10  ;;  %v601_v41 = vsel %vm265_vm1, %v544_v28, 0.0 }
 0x232   : > { %v586_v14 = vadd.f32 %v585_v12, %v584_v50  ;;  %v603_v12 = vsel %vm265_vm1, %v545_v32, 0.0 }
 0x234   : > { %v588_v59 = vadd.f32 %v587_v56, %v586_v14 }
 0x236   : > { %v590_v0 = vadd.f32 %v589_v62, %v588_v59  ;;  %v549_v59 = vmul.f32 %v1963_v49, %v1963_v49 }
 0x238   : > { %v592_v7 = vadd.f32 %v591_v5, %v590_v0  ;;  %v611_v0 = vsel %vm265_vm1, %v549_v59, 0.0 }
 0x23a   : > { %v594_v19 = vadd.f32 %v593_v16, %v592_v7 }
 0x23c   : > { %v596_v25 = vadd.f32 %v595_v23, %v594_v19 }
 0x23e   : > { %v598_v4 = vadd.f32 %v597_v29, %v596_v25 }
 0x240   : > { %v600_v10 = vadd.f32 %v599_v34, %v598_v4 }
 0x242   : > { %v602_v50 = vadd.f32 %v601_v41, %v600_v10 }
 0x244   : > { %v604_v14 = vadd.f32 %v603_v12, %v602_v50 }
 0x246   : > { %v606_v56 = vadd.f32 %v605_v55, %v604_v14 }
 0x248   : > { %v608_v62 = vadd.f32 %v607_v18, %v606_v56 }
 0x24a   : > { %v610_v46 = vadd.f32 %v609_v58, %v608_v62 }
 0x24c   : > { %v612_v1 = vadd.f32 %v611_v0, %v610_v46 }
 0x24e   : > { %v613_v5 = vrot.slane %v612_v1, 4 }
 0x250   : > { %v614_v7 = vadd.f32 %v613_v5, %v612_v1 }
 0x252   : > { %v615_v15 = vrot.slane %v614_v7, 2 }
 0x254   : > { %v616_v16 = vadd.f32 %v615_v15, %v614_v7 }
 0x256   : > { %v617_v19 = vrot.slane %v616_v16, 1 }
 0x258   : > { %v618_v20 = vadd.f32 %v617_v19, %v616_v16 }
 0x25a   : > { %1294 = vmatmul.mubr.msk.f32.vlgmr.msra.gmra.mrb[2].mxu0 %vm265_vm1, %v618_v20 }
 0x32d   : > { %v688_v23 = vpop.f32.mrb[2].mxu0 }
 0x32e   : > { %v692_v25 = vmul.f32 0.00390625, %v688_v23  ;;  %v1295_v28 = vpop.f32.mrb[3].mxu0 }
 0x330   : > { %1305 = vmatmul.mubr.msk.f32.vlgmr.msra.gmra.mrb[2].mxu1 %vm265_vm1, %v692_v25 }
 0x403   : > { %v762_v29 = vpop.f32.mrb[2].mxu1 }
 0x404   : > { %v1306_v4 = vpop.f32.mrb[3].mxu1  ;;  %v763_v32 = vadd.f32 1e-06, %v762_v29 }
 0x406   : > { %1342 = vrsqrt.f32 %v763_v32 }
 0x410   : > { %v1343_v34 = vpop.eup %1342 }
 0x411   : > { %v770_v10 = vrot.slane %v1343_v34, %v484_v43 }
 0x413   : > { %v771_v38 = vmul.f32 %v770_v10, %v1754_v9  ;;  %v772_v41 = vmul.f32 %v770_v10, %v1758_v6  ;;  %v773_v50 = vmul.f32 %v770_v10, %v1762_v3  ;;  %v774_v52 = vmul.f32 %v770_v10, %v1766_v47 }
 0x414   : > { %v775_v12 = vmul.f32 %v770_v10, %v1774_v11  ;;  %v776_v14 = vmul.f32 %v770_v10, %v1780_v13  ;;  %v777_v53 = vmul.f32 %v770_v10, %v1788_v61  ;;  %v778_v55 = vmul.f32 %v770_v10, %v1795_v21 }
 0x415   : > { %v779_v43 = vmul.f32 %v770_v10, %v1802_v24  ;;  %v780_v9 = vmul.f32 %v770_v10, %v1809_v27  ;;  %v781_v6 = vmul.f32 %v770_v10, %v1816_v30  ;;  %v782_v3 = vmul.f32 %v770_v10, %v1823_v33 }
 0x416   : > { %v783_v47 = vmul.f32 %v770_v10, %v1830_v36  ;;  %v784_v11 = vmul.f32 %v770_v10, %v1837_v39  ;;  %v785_v13 = vmul.f32 %v770_v10, %v1844_v42  ;;  %v786_v61 = vmul.f32 %v770_v10, %v1851_v45  ;;  %v2014_v42 = vld [vmem:[%s2391_s4] ss:$0 sm:$0xff] }
 0x417   : > { %v787_v21 = vmul.f32 %v770_v10, %v1858_v48  ;;  %v810_v56 = vmul.f32 %v1991_v37, %v771_v38  ;;  %v811_v24 = vmul.f32 %v1991_v37, %v772_v41  ;;  %v812_v27 = vmul.f32 %v1991_v37, %v773_v50 }
 0x418   : > { %v788_v30 = vmul.f32 %v770_v10, %v1865_v51  ;;  %v789_v33 = vmul.f32 %v770_v10, %v1872_v54  ;;  %v2008_v36 = vmul.f32 %v770_v10, %v1879_v57  ;;  %v813_v39 = vmul.f32 %v1991_v37, %v774_v52 }
 0x419   : > { %v2017_v45 = vmul.f32 %v770_v10, %v1886_v60  ;;  %v2020_v48 = vmul.f32 %v770_v10, %v1893_v63  ;;  %v2023_v51 = vmul.f32 %v770_v10, %v1900_v2  ;;  %v814_v54 = vmul.f32 %v1991_v37, %v775_v12 }
 0x41a   : > { %v2027_v57 = vmul.f32 %v770_v10, %v1907_v8  ;;  %v2030_v59 = vmul.f32 %v770_v10, %v1914_v17  ;;  %v2033_v18 = vmul.f32 %v770_v10, %v1921_v22  ;;  %v815_v60 = vmul.f32 %v1991_v37, %v776_v14 }
 0x41b   : > { %v816_v62 = vmul.f32 %v1991_v37, %v777_v53  ;;  %v2038_v63 = vadd.f32 %v2014_v42, %v810_v56  ;;  %v2041_v2 = vadd.f32 %v2014_v42, %v811_v24  ;;  %v2044_v58 = vadd.f32 %v2014_v42, %v812_v27 }
 0x41c   : > { %v2047_v8 = vmul.f32 %v770_v10, %v1928_v26  ;;  %v2050_v17 = vmul.f32 %v770_v10, %v1935_v31  ;;  %v817_v22 = vmul.f32 %v1991_v37, %v778_v55  ;;  %v2054_v46 = vadd.f32 %v2014_v42, %v813_v39 }
 0x41d   : > { %v2057_v0 = vmul.f32 %v770_v10, %v1942_v35  ;;  %v2060_v1 = vmul.f32 %v770_v10, %v1949_v40  ;;  %v818_v5 = vmul.f32 %v1991_v37, %v779_v43  ;;  %v2064_v7 = vadd.f32 %v2014_v42, %v814_v54 }
 0x41e   : > { %v2067_v26 = vmul.f32 %v770_v10, %v1956_v44  ;;  %v819_v31 = vmul.f32 %v1991_v37, %v780_v9  ;;  %v820_v15 = vmul.f32 %v1991_v37, %v781_v6  ;;  %v2072_v16 = vadd.f32 %v2014_v42, %v815_v60 }
 0x41f   : > { %v2075_v35 = vadd.f32 %v2014_v42, %v816_v62  ;;  %v1207_v40 = vmul.f32 -1.442695, %v2038_v63  ;;  %v1208_v19 = vmul.f32 -1.442695, %v2041_v2  ;;  %v1209_v20 = vmul.f32 -1.442695, %v2044_v58 }
 0x420   : > { %v2081_v23 = vmul.f32 %v770_v10, %v1963_v49  ;;  %v821_v44 = vmul.f32 %v1991_v37, %v782_v3  ;;  %v2085_v25 = vadd.f32 %v2014_v42, %v817_v22  ;;  %v1210_v28 = vmul.f32 -1.442695, %v2054_v46 }
 0x421   : > { %v822_v29 = vmul.f32 %v1991_v37, %v783_v47  ;;  %v2090_v4 = vadd.f32 %v2014_v42, %v818_v5  ;;  %1344 = vpow2.f32 %v1207_v40  ;;  %v1211_v32 = vmul.f32 -1.442695, %v2064_v7 }
 0x422   : > { %v823_v34 = vmul.f32 %v1991_v37, %v784_v11  ;;  %v2095_v49 = vadd.f32 %v2014_v42, %v819_v31  ;;  %1346 = vpow2.f32 %v1208_v19  ;;  %v1212_v10 = vmul.f32 -1.442695, %v2072_v16 }
 0x423   : > { %v824_v38 = vmul.f32 %v1991_v37, %v785_v13  ;;  %v2100_v41 = vadd.f32 %v2014_v42, %v820_v15  ;;  %1348 = vpow2.f32 %v1209_v20  ;;  %v1213_v50 = vmul.f32 -1.442695, %v2075_v35 }
 0x424   : > { %v825_v52 = vmul.f32 %v1991_v37, %v786_v61  ;;  %v2105_v12 = vadd.f32 %v2014_v42, %v821_v44  ;;  %1350 = vpow2.f32 %v1210_v28  ;;  %v1214_v14 = vmul.f32 -1.442695, %v2085_v25 }
 0x425   : > { %v826_v53 = vmul.f32 %v1991_v37, %v787_v21  ;;  %v2110_v55 = vadd.f32 %v2014_v42, %v822_v29  ;;  %1352 = vpow2.f32 %v1211_v32  ;;  %v1215_v43 = vmul.f32 -1.442695, %v2090_v4 }
 0x426   : > { %v827_v9 = vmul.f32 %v1991_v37, %v788_v30  ;;  %v2115_v6 = vadd.f32 %v2014_v42, %v823_v34  ;;  %1354 = vpow2.f32 %v1212_v10  ;;  %v1216_v3 = vmul.f32 -1.442695, %v2095_v49 }
 0x427   : > { %v828_v47 = vmul.f32 %v1991_v37, %v789_v33  ;;  %v2120_v11 = vadd.f32 %v2014_v42, %v824_v38  ;;  %1356 = vpow2.f32 %v1213_v50  ;;  %v1217_v13 = vmul.f32 -1.442695, %v2100_v41 }
 0x428   : > { %v829_v61 = vmul.f32 %v1991_v37, %v2008_v36  ;;  %v2126_v21 = vadd.f32 %v2014_v42, %v825_v52  ;;  %1358 = vpow2.f32 %v1214_v14  ;;  %v1218_v56 = vmul.f32 -1.442695, %v2105_v12 }
 0x429   : > { %v830_v24 = vmul.f32 %v1991_v37, %v2017_v45  ;;  %v2132_v27 = vadd.f32 %v2014_v42, %v826_v53  ;;  %1360 = vpow2.f32 %v1215_v43  ;;  %v1219_v30 = vmul.f32 -1.442695, %v2110_v55 }
 0x42a   : > { %v831_v33 = vmul.f32 %v1991_v37, %v2020_v48  ;;  %v2138_v36 = vadd.f32 %v2014_v42, %v827_v9  ;;  %1362 = vpow2.f32 %v1216_v3  ;;  %v1220_v39 = vmul.f32 -1.442695, %v2115_v6 }
 0x42b   : > { %v2141_v54 = vpop.eup %1344  ;;  %v832_v45 = vmul.f32 %v1991_v37, %v2023_v51  ;;  %v2146_v60 = vadd.f32 %v2014_v42, %v828_v47  ;;  %1364 = vpow2.f32 %v1217_v13  ;;  %v1221_v62 = vmul.f32 -1.442695, %v2120_v11 }
 0x42c   : > { %v2149_v22 = vpop.eup %1346  ;;  %v833_v48 = vmul.f32 %v1991_v37, %v2027_v57  ;;  %v2154_v5 = vadd.f32 %v2014_v42, %v829_v61  ;;  %1366 = vpow2.f32 %v1218_v56  ;;  %v1222_v31 = vmul.f32 -1.442695, %v2126_v21 }
 0x42d   : > { %v2157_v15 = vpop.eup %1348  ;;  %v834_v51 = vmul.f32 %v1991_v37, %v2030_v59  ;;  %v2162_v40 = vadd.f32 %v2014_v42, %v830_v24  ;;  %1368 = vpow2.f32 %v1219_v30  ;;  %v1223_v19 = vmul.f32 -1.442695, %v2132_v27 }
 0x42e   : > { %v2165_v20 = vpop.eup %1350  ;;  %v835_v57 = vmul.f32 %v1991_v37, %v2033_v18  ;;  %v2170_v44 = vadd.f32 %v2014_v42, %v831_v33  ;;  %1370 = vpow2.f32 %v1220_v39  ;;  %v1224_v28 = vmul.f32 -1.442695, %v2138_v36 }
 0x42f   : > { %v2173_v29 = vpop.eup %1352  ;;  %v836_v59 = vmul.f32 %v1991_v37, %v2047_v8  ;;  %v2178_v32 = vadd.f32 %v2014_v42, %v832_v45  ;;  %1372 = vpow2.f32 %v1221_v62  ;;  %v1225_v34 = vmul.f32 -1.442695, %v2146_v60 }
 0x430   : > { %v2181_v10 = vpop.eup %1354  ;;  %v837_v18 = vmul.f32 %v1991_v37, %v2050_v17  ;;  %v2186_v38 = vadd.f32 %v2014_v42, %v833_v48  ;;  %1374 = vpow2.f32 %v1222_v31  ;;  %v1226_v50 = vmul.f32 -1.442695, %v2154_v5 }
 0x431   : > { %v2189_v52 = vpop.eup %1356  ;;  %v838_v8 = vmul.f32 %v1991_v37, %v2057_v0  ;;  %v2194_v14 = vadd.f32 %v2014_v42, %v834_v51  ;;  %1376 = vpow2.f32 %v1223_v19  ;;  %v1227_v53 = vmul.f32 -1.442695, %v2162_v40 }
 0x432   : > { %v2197_v43 = vpop.eup %1358  ;;  %v839_v17 = vmul.f32 %v1991_v37, %v2060_v1  ;;  %v2202_v9 = vadd.f32 %v2014_v42, %v835_v57  ;;  %1378 = vpow2.f32 %v1224_v28  ;;  %v1228_v3 = vmul.f32 -1.442695, %v2170_v44 }
 0x433   : > { %v1361_v47 = vpop.eup %1360  ;;  %v840_v0 = vmul.f32 %v1991_v37, %v2067_v26  ;;  %v2208_v13 = vadd.f32 %v2014_v42, %v836_v59  ;;  %1380 = vpow2.f32 %v1225_v34  ;;  %v1229_v61 = vmul.f32 -1.442695, %v2178_v32 }
 0x434   : > { %v1363_v56 = vpop.eup %1362  ;;  %v841_v1 = vmul.f32 %v1991_v37, %v2081_v23  ;;  %v2214_v24 = vadd.f32 %v2014_v42, %v837_v18  ;;  %1382 = vpow2.f32 %v1226_v50  ;;  %v1230_v30 = vmul.f32 -1.442695, %v2186_v38 }
 0x435   : > { %v1365_v33 = vpop.eup %1364  ;;  %v2218_v39 = vadd.f32 %v2014_v42, %v838_v8  ;;  %1384 = vpow2.f32 %v1227_v53  ;;  %v1231_v26 = vmul.f32 -1.442695, %v2194_v14  ;;  %v2222_v62 = vadd.f32 %v2014_v42, %v839_v17 }
 0x436   : > { %v1367_v45 = vpop.eup %1366  ;;  %1386 = vpow2.f32 %v1228_v3  ;;  %v1232_v37 = vmul.f32 -1.442695, %v2202_v9  ;;  %v2226_v48 = vadd.f32 %v2014_v42, %v840_v0  ;;  %v1233_v31 = vmul.f32 -1.442695, %v2208_v13 }
 0x437   : > { %v1369_v23 = vpop.eup %1368  ;;  %1388 = vpow2.f32 %v1229_v61  ;;  %v2230_v19 = vadd.f32 %v2014_v42, %v841_v1  ;;  %v1234_v57 = vmul.f32 -1.442695, %v2214_v24  ;;  %v1235_v59 = vmul.f32 -1.442695, %v2218_v39 }
 0x438   : > { %v1371_v51 = vpop.eup %1370  ;;  %1390 = vpow2.f32 %v1230_v30  ;;  %v1236_v18 = vmul.f32 -1.442695, %v2222_v62  ;;  %v1237_v8 = vmul.f32 -1.442695, %v2226_v48  ;;  %v977_v3 = vadd.f32 1.0, %v2141_v54 }
 0x439   : > { %2394 = vst [vmem:[#allocation2_spill] sm:$0xff] %v2230_v19  ;;  %v1373_v28 = vpop.eup %1372  ;;  %1392 = vpow2.f32 %v1231_v26  ;;  %v1238_v42 = vmul.f32 -1.442695, %v2230_v19  ;;  %v978_v61 = vadd.f32 1.0, %v2149_v22  ;;  %v979_v30 = vadd.f32 1.0, %v2157_v15 }
 0x43a   : > { %v1375_v34 = vpop.eup %1374  ;;  %1394 = vpow2.f32 %v1232_v37  ;;  %v980_v37 = vadd.f32 1.0, %v2165_v20 }
 0x43b   : > { %v1377_v50 = vpop.eup %1376  ;;  %1396 = vpow2.f32 %v1233_v31 }
 0x43c   : > { %v1379_v53 = vpop.eup %1378  ;;  %1398 = vpow2.f32 %v1234_v57  ;;  %v981_v57 = vadd.f32 1.0, %v2173_v29 }
 0x43d   : > { %v1381_v17 = vpop.eup %1380  ;;  %1400 = vpow2.f32 %v1235_v59  ;;  %v982_v59 = vadd.f32 1.0, %v2181_v10 }
 0x43e   : > { %v1383_v0 = vpop.eup %1382  ;;  %1402 = vpow2.f32 %v1236_v18  ;;  %v983_v18 = vadd.f32 1.0, %v2189_v52 }
 0x43f   : > { %v2239_v1 = vpop.eup %1384  ;;  %1404 = vpow2.f32 %v1237_v8  ;;  %v984_v8 = vadd.f32 1.0, %v2197_v43  ;;  %v989_v43 = vadd.f32 1.0, %v1369_v23 }
 0x440   : > { %v2242_v26 = vpop.eup %1386  ;;  %1406 = vpow2.f32 %v1238_v42  ;;  %v985_v42 = vadd.f32 1.0, %v1361_v47  ;;  %v990_v47 = vadd.f32 1.0, %v1371_v51 }
 0x441   : > { %v2245_v31 = vpop.eup %1388  ;;  %1408 = vrcp.f32 %v977_v3  ;;  %v986_v3 = vadd.f32 1.0, %v1363_v56  ;;  %v991_v56 = vadd.f32 1.0, %v1373_v28 }
 0x442   : > { %v2248_v54 = vpop.eup %1390  ;;  %1410 = vrcp.f32 %v978_v61  ;;  %v987_v61 = vadd.f32 1.0, %v1365_v33 }
 0x443   : > { %v2251_v22 = vpop.eup %1392  ;;  %1412 = vrcp.f32 %v979_v30  ;;  %v988_v30 = vadd.f32 1.0, %v1367_v45  ;;  %v992_v45 = vadd.f32 1.0, %v1375_v34  ;;  %v995_v34 = vadd.f32 1.0, %v1381_v17 }
 0x444   : > { %v2254_v15 = vpop.eup %1394  ;;  %1414 = vrcp.f32 %v980_v37 }
 0x445   : > { %v2257_v20 = vpop.eup %1396  ;;  %1416 = vrcp.f32 %v981_v57 }
 0x446   : > { %v2259_v29 = vpop.eup %1398  ;;  %1418 = vrcp.f32 %v982_v59 }
 0x447   : > { %v2261_v10 = vpop.eup %1400  ;;  %1420 = vrcp.f32 %v983_v18  ;;  %v993_v18 = vadd.f32 1.0, %v1377_v50  ;;  %v996_v50 = vadd.f32 1.0, %v1383_v0 }
 0x448   : > { %v2263_v52 = vpop.eup %1402  ;;  %1422 = vrcp.f32 %v984_v8 }
 0x449   : > { %v2265_v19 = vpop.eup %1404  ;;  %1424 = vrcp.f32 %v985_v42  ;;  %v994_v42 = vadd.f32 1.0, %v1379_v53  ;;  %v997_v53 = vadd.f32 1.0, %v2239_v1 }
 0x44a   : > { %v2267_v37 = vpop.eup %1406  ;;  %1426 = vrcp.f32 %v986_v3 }
 0x44b   : > { %v1409_v57 = vpop.eup %1408  ;;  %1428 = vrcp.f32 %v987_v61 }
 0x44c   : > { %v1411_v33 = vpop.eup %1410  ;;  %1430 = vrcp.f32 %v988_v30  ;;  %v1073_v23 = vmul.f32 %v1409_v57, %v2038_v63  ;;  %v998_v30 = vadd.f32 1.0, %v2242_v26  ;;  %v1001_v57 = vadd.f32 1.0, %v2251_v22 }
 0x44d   : > { %v1413_v59 = vpop.eup %1412  ;;  %1432 = vrcp.f32 %v989_v43  ;;  %v1074_v51 = vmul.f32 %v1411_v33, %v2041_v2  ;;  %v999_v43 = vadd.f32 1.0, %v2245_v31  ;;  %v1003_v33 = vadd.f32 1.0, %v2257_v20 }
 0x44e   : > { %v1415_v8 = vpop.eup %1414  ;;  %1434 = vrcp.f32 %v990_v47  ;;  %v1075_v3 = vmul.f32 %v1413_v59, %v2044_v58  ;;  %1105 = vst.msk [vmem:[%s2274_s23] sm:$0xff] %vm265_vm1, %v1073_v23  ;;  %v1000_v47 = vadd.f32 1.0, %v2248_v54  ;;  %v1005_v23 = vadd.f32 1.0, %v2261_v10 }
 0x44f   : > { %v1417_v28 = vpop.eup %1416  ;;  %1436 = vrcp.f32 %v991_v56  ;;  %v1076_v61 = vmul.f32 %v1415_v8, %v2054_v46  ;;  %1106 = vst.msk [vmem:[%s2274_s23 + $0x8] sm:$0xff] %vm265_vm1, %v1074_v51  ;;  %v1002_v56 = vadd.f32 1.0, %v2254_v15  ;;  %v1006_v59 = vadd.f32 1.0, %v2263_v52 }
 0x450   : > { %v1419_v63 = vpop.eup %1418  ;;  %1438 = vrcp.f32 %v992_v45  ;;  %v1077_v2 = vmul.f32 %v1417_v28, %v2064_v7  ;;  %1107 = vst.msk [vmem:[%s2274_s23 + $0x10] sm:$0xff] %vm265_vm1, %v1075_v3  ;;  %v1004_v45 = vadd.f32 1.0, %v2259_v29  ;;  %v1008_v51 = vadd.f32 1.0, %v2267_v37 }
 0x451   : > { %v1421_v58 = vpop.eup %1420  ;;  %1440 = vrcp.f32 %v993_v18  ;;  %v1078_v17 = vmul.f32 %v1419_v63, %v2072_v16  ;;  %1108 = vst.msk [vmem:[%s2274_s23 + $0x18] sm:$0xff] %vm265_vm1, %v1076_v61  ;;  %v1007_v18 = vadd.f32 1.0, %v2265_v19 }
 0x452   : > { %v1423_v46 = vpop.eup %1422  ;;  %1442 = vrcp.f32 %v994_v42  ;;  %v1079_v0 = vmul.f32 %v1421_v58, %v2075_v35  ;;  %1109 = vst.msk [vmem:[%s2274_s23 + $0x20] sm:$0xff] %vm265_vm1, %v1077_v2 }
 0x453   : > { %v1425_v7 = vpop.eup %1424  ;;  %1444 = vrcp.f32 %v995_v34  ;;  %v1080_v1 = vmul.f32 %v1423_v46, %v2085_v25  ;;  %1110 = vst.msk [vmem:[%s2274_s23 + $0x28] sm:$0xff] %vm265_vm1, %v1078_v17 }
 0x454   : > { %v1427_v16 = vpop.eup %1426  ;;  %1446 = vrcp.f32 %v996_v50  ;;  %v1081_v26 = vmul.f32 %v1425_v7, %v2090_v4  ;;  %1111 = vst.msk [vmem:[%s2274_s23 + $0x30] sm:$0xff] %vm265_vm1, %v1079_v0 }
 0x455   : > { %v1429_v35 = vpop.eup %1428  ;;  %1448 = vrcp.f32 %v997_v53  ;;  %v1082_v31 = vmul.f32 %v1427_v16, %v2095_v49  ;;  %1112 = vst.msk [vmem:[%s2274_s23 + $0x38] sm:$0xff] %vm265_vm1, %v1080_v1 }
 0x456   : > { %v1431_v25 = vpop.eup %1430  ;;  %1450 = vrcp.f32 %v998_v30  ;;  %v1083_v54 = vmul.f32 %v1429_v35, %v2100_v41  ;;  %1113 = vst.msk [vmem:[%s2274_s23 + $0x40] sm:$0xff] %vm265_vm1, %v1081_v26  ;;  %v2395_v30 = vld [vmem:[#allocation2_spill] sm:$0xff] }
 0x457   : > { %v1433_v4 = vpop.eup %1432  ;;  %1452 = vrcp.f32 %v999_v43  ;;  %v1084_v22 = vmul.f32 %v1431_v25, %v2105_v12  ;;  %1114 = vst.msk [vmem:[%s2274_s23 + $0x48] sm:$0xff] %vm265_vm1, %v1082_v31 }
 0x458   : > { %v1435_v49 = vpop.eup %1434  ;;  %1454 = vrcp.f32 %v1000_v47  ;;  %v1085_v15 = vmul.f32 %v1433_v4, %v2110_v55  ;;  %1115 = vst.msk [vmem:[%s2274_s23 + $0x50] sm:$0xff] %vm265_vm1, %v1083_v54 }
 0x459   : > { %v1437_v41 = vpop.eup %1436  ;;  %1456 = vrcp.f32 %v1001_v57  ;;  %v1086_v20 = vmul.f32 %v1435_v49, %v2115_v6  ;;  %1116 = vst.msk [vmem:[%s2274_s23 + $0x58] sm:$0xff] %vm265_vm1, %v1084_v22 }
 0x45a   : > { %v1439_v12 = vpop.eup %1438  ;;  %1458 = vrcp.f32 %v1002_v56  ;;  %v1087_v29 = vmul.f32 %v1437_v41, %v2120_v11  ;;  %1117 = vst.msk [vmem:[%s2274_s23 + $0x60] sm:$0xff] %vm265_vm1, %v1085_v15 }
 0x45b   : > { %v1441_v55 = vpop.eup %1440  ;;  %1460 = vrcp.f32 %v1003_v33  ;;  %v1088_v10 = vmul.f32 %v1439_v12, %v2126_v21  ;;  %1118 = vst.msk [vmem:[%s2274_s23 + $0x68] sm:$0xff] %vm265_vm1, %v1086_v20 }
 0x45c   : > { %v1443_v6 = vpop.eup %1442  ;;  %1462 = vrcp.f32 %v1004_v45  ;;  %v1089_v52 = vmul.f32 %v1441_v55, %v2132_v27  ;;  %1119 = vst.msk [vmem:[%s2274_s23 + $0x70] sm:$0xff] %vm265_vm1, %v1087_v29 }
 0x45d   : > { %v1445_v11 = vpop.eup %1444  ;;  %1464 = vrcp.f32 %v1005_v23  ;;  %v1090_v19 = vmul.f32 %v1443_v6, %v2138_v36  ;;  %1120 = vst.msk [vmem:[%s2274_s23 + $0x78] sm:$0xff] %vm265_vm1, %v1088_v10 }
 0x45e   : > { %v1447_v21 = vpop.eup %1446  ;;  %1466 = vrcp.f32 %v1006_v59  ;;  %v1091_v8 = vmul.f32 %v1445_v11, %v2146_v60  ;;  %1121 = vst.msk [vmem:[%s2274_s23 + $0x80] sm:$0xff] %vm265_vm1, %v1089_v52 }
 0x45f   : > { %v1449_v37 = vpop.eup %1448  ;;  %1468 = vrcp.f32 %v1007_v18  ;;  %v1092_v27 = vmul.f32 %v1447_v21, %v2154_v5  ;;  %1122 = vst.msk [vmem:[%s2274_s23 + $0x88] sm:$0xff] %vm265_vm1, %v1090_v19 }
 0x460   : > { %v1451_v42 = vpop.eup %1450  ;;  %1470 = vrcp.f32 %v1008_v51  ;;  %v1093_v36 = vmul.f32 %v1449_v37, %v2162_v40  ;;  %1123 = vst.msk [vmem:[%s2274_s23 + $0x90] sm:$0xff] %vm265_vm1, %v1091_v8 }
 0x461   : > { %v1453_v3 = vpop.eup %1452  ;;  %v1094_v60 = vmul.f32 %v1451_v42, %v2170_v44  ;;  %1124 = vst.msk [vmem:[%s2274_s23 + $0x98] sm:$0xff] %vm265_vm1, %v1092_v27 }
 0x462   : > { %v1455_v28 = vpop.eup %1454  ;;  %v1095_v34 = vmul.f32 %v1453_v3, %v2178_v32  ;;  %1125 = vst.msk [vmem:[%s2274_s23 + $0xa0] sm:$0xff] %vm265_vm1, %v1093_v36 }
 0x463   : > { %v1457_v5 = vpop.eup %1456  ;;  %v1096_v61 = vmul.f32 %v1455_v28, %v2186_v38  ;;  %1126 = vst.msk [vmem:[%s2274_s23 + $0xa8] sm:$0xff] %vm265_vm1, %v1094_v60 }
 0x464   : > { %v1459_v40 = vpop.eup %1458  ;;  %v1097_v63 = vmul.f32 %v1457_v5, %v2194_v14  ;;  %1127 = vst.msk [vmem:[%s2274_s23 + $0xb0] sm:$0xff] %vm265_vm1, %v1095_v34 }
 0x465   : > { %v1461_v44 = vpop.eup %1460  ;;  %v1098_v50 = vmul.f32 %v1459_v40, %v2202_v9  ;;  %1128 = vst.msk [vmem:[%s2274_s23 + $0xb8] sm:$0xff] %vm265_vm1, %v1096_v61 }
 0x466   : > { %v1463_v32 = vpop.eup %1462  ;;  %v1099_v2 = vmul.f32 %v1461_v44, %v2208_v13  ;;  %1129 = vst.msk [vmem:[%s2274_s23 + $0xc0] sm:$0xff] %vm265_vm1, %v1097_v63 }
 0x467   : > { %v1465_v38 = vpop.eup %1464  ;;  %v1100_v14 = vmul.f32 %v1463_v32, %v2214_v24  ;;  %1130 = vst.msk [vmem:[%s2274_s23 + $0xc8] sm:$0xff] %vm265_vm1, %v1098_v50 }
 0x468   : > { %v1467_v58 = vpop.eup %1466  ;;  %v1101_v53 = vmul.f32 %v1465_v38, %v2218_v39  ;;  %1131 = vst.msk [vmem:[%s2274_s23 + $0xd0] sm:$0xff] %vm265_vm1, %v1099_v2 }
 0x469   : > { %v1469_v9 = vpop.eup %1468  ;;  %v1102_v17 = vmul.f32 %v1467_v58, %v2222_v62  ;;  %1132 = vst.msk [vmem:[%s2274_s23 + $0xd8] sm:$0xff] %vm265_vm1, %v1100_v14 }
 0x46a   : > { %v1471_v13 = vpop.eup %1470  ;;  %v1103_v46 = vmul.f32 %v1469_v9, %v2226_v48  ;;  %1133 = vst.msk [vmem:[%s2274_s23 + $0xe0] sm:$0xff] %vm265_vm1, %v1101_v53 }
 0x46b   : > { %v1104_v0 = vmul.f32 %v1471_v13, %v2395_v30  ;;  %1134 = vst.msk [vmem:[%s2274_s23 + $0xe8] sm:$0xff] %vm265_vm1, %v1102_v17 }
 0x46c   : > { %1135 = vst.msk [vmem:[%s2274_s23 + $0xf0] sm:$0xff] %vm265_vm1, %v1103_v46 }
 0x46d   : > { %1136 = vst.msk [vmem:[%s2274_s23 + $0xf8] sm:$0xff] %vm265_vm1, %v1104_v0 }
 0x46e PF: > { %s15_s18 = sadd.s32 1, %s1478_s18  }
 0x46f   : > { %p12_p4 = scmp.ge.s32.totalorder %s15_s18, 4  }
 0x471   :  { %14 = sbr.rel (!%p12_p4) target bundleno = 1 (0x1), region = 70 }

// kernel: _lambda_.29
= control target key start
LH: loop header
LB: loop body
LE: loop exit
PB: predicated region body
PF: predicated region fallthrough
CT: control target
= control target key end

     0   :  { %s4122_s12 = smov 0   ;;  %s4124_s13 = smov 0   ;;  %s4777_s0 = inlined_call_operand.vmem [shape: f32[2,18,18,8], index: 0, kind: input, shape index: {}]   ;;  %s4778_s1 = inlined_call_operand.vmem [shape: bf16[72,128], index: 1, kind: input, shape index: {}]   ;;  %s4779_s2 = inlined_call_operand.vmem [shape: f32[1,128], index: 2, kind: input, shape index: {}]   ;;  %s4780_s3 = inlined_call_operand.vmem [shape: f32[2,256,128], index: 3, kind: output, shape index: {}]  }
   0x1   :  { %s4126_s14 = smov 0  }
   0x2 LB: > { %s25_s15 = sadd.s32 1, %s4096_s13  ;;  %p2982_p0 = scmp.ge.s32.totalorder %s4100_s14, 1  ;;  %s4100_s14 = sphi %s4126_s14, %s13_s14   ;;  %s4096_s13 = sphi %s4124_s13, %s4782_s13   ;;  %s4092_s12 = sphi %s4122_s12, %s4781_s12  }
   0x3   : > { %p27_p1 = scmp.ge.s32.totalorder %s25_s15, 2  ;;  %p168_p2 = scmp.lt.s32.totalorder %s4100_s14, 3 }
   0x5   : > { %s4784_s15 = smov (%p27_p1, %s25_s15), 0  ;;  %p169_p3 = pnand %p2982_p0, %p168_p2 }
   0x6   : > { %v320_v0 = vld [vmem:[%s4778_s1 + $0x4] sm:$0xf] (!%p169_p3)  ;;  %vm370_vm0 = vcmask (!%p169_p3), 1043456   ;;  %v4146_v1 = vld [vmem:[%s4778_s1 + $0x10] sm:$0xf] (!%p169_p3)  ;;  %p202_p4 = scmp.lt.s32.totalorder (!%p169_p3), %s4092_s12, 1 }
   0x7   : > { %172 = sbr.rel (%p169_p3) target bundleno = 523 (0x20b), region = 32  ;;  %4043 = vmatprep.subr.msk.bf16.mxu1 (!%p169_p3), %vm370_vm0, %v320_v0  ;;  %4047 = vmatprep.subr.msk.bf16.mxu0 (!%p169_p3), %vm370_vm0, %v4146_v1  ;;  %v372_v2 = vsel (!%p169_p3), %vm370_vm0, %v320_v0, 0  ;;  %v4154_v3 = vsel (!%p169_p3), %vm370_vm0, %v4146_v1, 0  ;;  %v271_v4 = vld [vmem:[%s4778_s1] sm:$0xf] (!%p169_p3)  ;;  %vm321_vm1 = vcmask (!%p169_p3), 64512  }
   0x8   : > { %3480 = vmatpush3.bf16.msra.mxu1 (!%p169_p3), %v372_v2  ;;  %3616 = vmatpush3.bf16.msra.mxu0 (!%p169_p3), %v4154_v3  ;;  %v1675_v5 = vld [vmem:[%s4778_s1 + $0x14] sm:$0xf] (!%p169_p3)  ;;  %v584_v14 = vsel (!%p169_p3), %vm370_vm0, %v271_v4, 0  ;;  %v1969_v20 = vld [vmem:[%s4778_s1 + $0x18] sm:$0xf] (!%p169_p3) }
   0x9   : > { %4044 = vmatprep.subr.msk.bf16.mxu1 (!%p169_p3), %vm370_vm0, %v271_v4  ;;  %4049 = vmatprep.subr.msk.bf16.mxu0 (!%p169_p3), %vm370_vm0, %v1675_v5  ;;  %v1725_v18 = vsel (!%p169_p3), %vm370_vm0, %v1675_v5, 0  ;;  %v4198_v21 = vld [vmem:[%s4778_s1 + $0x8] sm:$0xf] (!%p169_p3)  ;;  %v2019_v52 = vsel (!%p169_p3), %vm370_vm0, %v1969_v20, 0  ;;  %v4277_v53 = vld [vmem:[%s4778_s1 + $0x1c] sm:$0xf] (!%p169_p3) }
   0xe   : > { %s4786_s12 = smov (!%p202_p4, %s4092_s12), 1 }
   0xf   : > { %s4053_s24 = smul.u32 432, %s4786_s12  ;;  %s3325_s11 = sshll.u32 %s4786_s12, 8 }
  0x10   : > { %s4702_s20 = scalar_lea.vmem %s4780_s3, %s3325_s11 }
  0x11   : > { %s4171_s27 = scalar_lea.vmem %s4777_s0, %s4053_s24 }
  0x12   : > { %v272_v6 = vld [vmem:[%s4171_s27 + $0x1] sm:$0xff]  ;;  %v273_v7 = vld [vmem:[%s4171_s27 + $0x9] sm:$0xff]  ;;  %v3082_v8 = vld [vmem:[%s4171_s27 + $0x19] sm:$0xff] }
  0x13   : > { %v304_v9 = vpack.c.bf16 %v273_v7, %v272_v6  ;;  %v3083_v10 = vld [vmem:[%s4171_s27 + $0x21] sm:$0xff]  ;;  %v3084_v11 = vld [vmem:[%s4171_s27 + $0x31] sm:$0xff]  ;;  %v3085_v12 = vld [vmem:[%s4171_s27 + $0x39] sm:$0xff] }
  0x14   : > { %v1366_v13 = vpack.c.bf16 %v3083_v10, %v3082_v8  ;;  %v4180_v15 = vpack.c.bf16 %v3085_v12, %v3084_v11  ;;  %v3086_v16 = vld [vmem:[%s4171_s27 + $0x49] sm:$0xff]  ;;  %v3087_v17 = vld [vmem:[%s4171_s27 + $0x51] sm:$0xff]  ;;  %v3088_v22 = vld [vmem:[%s4171_s27 + $0x61] sm:$0xff] }
  0x15   : > { %3481 = vmatprep.mubr.msk.bf16.mxu1 %vm321_vm1, %v304_v9  ;;  %v4186_v19 = vpack.c.bf16 %v3087_v17, %v3086_v16  ;;  %v3089_v23 = vld [vmem:[%s4171_s27 + $0x69] sm:$0xff]  ;;  %v3090_v24 = vld [vmem:[%s4171_s27 + $0x79] sm:$0xff]  ;;  %v3091_v25 = vld [vmem:[%s4171_s27 + $0x81] sm:$0xff] }
  0x16   : > { %3617 = vmatprep.mubr.msk.bf16.mxu0 %vm321_vm1, %v1366_v13  ;;  %3482 = vmatmul.mubr.msk.bf16.vlgmr.msra.gmra.mrb[0].mxu1 %vm321_vm1, %v1366_v13  ;;  %v4211_v26 = vpack.c.bf16 %v3089_v23, %v3088_v22  ;;  %v4213_v27 = vpack.c.bf16 %v3091_v25, %v3090_v24  ;;  %v3092_v28 = vld [vmem:[%s4171_s27 + $0x91] sm:$0xff]  ;;  %v3093_v29 = vld [vmem:[%s4171_s27 + $0x99] sm:$0xff]  ;;  %v3094_v30 = vld [vmem:[%s4171_s27 + $0xa9] sm:$0xff] }
  0x17   : > { %3514 = vmatpush3.bf16.msra.mxu1 %v584_v14  ;;  %3618 = vmatmul.mubr.msk.bf16.vlgmr.msra.gmra.mrb[0].mxu0 %vm321_vm1, %v4180_v15  ;;  %v3095_v31 = vld [vmem:[%s4171_s27 + $0xb1] sm:$0xff]  ;;  %v4227_v32 = vpack.c.bf16 %v3093_v29, %v3092_v28  ;;  %v3096_v34 = vld [vmem:[%s4171_s27 + $0xc1] sm:$0xff]  ;;  %v3097_v35 = vld [vmem:[%s4171_s27 + $0xc9] sm:$0xff] }
  0x18   : > { %3650 = vmatpush3.bf16.msra.mxu0 %v1725_v18  ;;  %3485 = vmatprep.mubr.msk.bf16.mxu1 %vm321_vm1, %v4180_v15  ;;  %v4229_v33 = vpack.c.bf16 %v3095_v31, %v3094_v30  ;;  %v3130_v36 = vld [vmem:[%s4171_s27 + $0x1a] sm:$0xff]  ;;  %v3131_v37 = vld [vmem:[%s4171_s27 + $0x22] sm:$0xff]  ;;  %v4243_v38 = vpack.c.bf16 %v3097_v35, %v3096_v34  ;;  %v3132_v42 = vld [vmem:[%s4171_s27 + $0x32] sm:$0xff] }
  0x19   : > { %3621 = vmatprep.mubr.msk.bf16.mxu0 %vm321_vm1, %v4186_v19  ;;  %4050 = vmatprep.subr.msk.bf16.mxu0 %vm370_vm0, %v1969_v20  ;;  %v4245_v39 = vpack.c.bf16 %v3131_v37, %v3130_v36  ;;  %v290_v40 = vld [vmem:[%s4171_s27 + $0xd9] sm:$0xff]  ;;  %v291_v41 = vld [vmem:[%s4171_s27 + $0xe1] sm:$0xff]  ;;  %v292_v44 = vld [vmem:[%s4171_s27 + $0xf1] sm:$0xff] }
  0x1a   : > { %4045 = vmatprep.subr.msk.bf16.mxu1 %vm370_vm0, %v4198_v21  ;;  %v3133_v43 = vld [vmem:[%s4171_s27 + $0x3a] sm:$0xff]  ;;  %v3134_v46 = vld [vmem:[%s4171_s27 + $0x4a] sm:$0xff]  ;;  %v3135_v47 = vld [vmem:[%s4171_s27 + $0x52] sm:$0xff]  ;;  %v4263_v48 = vpack.c.bf16 %v291_v41, %v290_v40 }
  0x1b   : > { %v293_v45 = vld [vmem:[%s4171_s27 + $0xf9] sm:$0xff]  ;;  %v4265_v49 = vpack.c.bf16 %v3133_v43, %v3132_v42  ;;  %v4269_v51 = vpack.c.bf16 %v3135_v47, %v3134_v46  ;;  %v294_v54 = vld [vmem:[%s4171_s27 + $0x109] sm:$0xff]  ;;  %v295_v55 = vld [vmem:[%s4171_s27 + $0x111] sm:$0xff]  ;;  %v845_v47 = vsel %vm370_vm0, %v4198_v21, 0 }
  0x1c   : > { %v4267_v50 = vpack.c.bf16 %v293_v45, %v292_v44  ;;  %v3136_v56 = vld [vmem:[%s4171_s27 + $0x62] sm:$0xff]  ;;  %v3137_v57 = vld [vmem:[%s4171_s27 + $0x6a] sm:$0xff]  ;;  %v3138_v60 = vld [vmem:[%s4171_s27 + $0x7a] sm:$0xff]  ;;  %v4295_v62 = vpack.c.bf16 %v295_v55, %v294_v54 }
  0x1d   : > { %v296_v58 = vld [vmem:[%s4171_s27 + $0x121] sm:$0xff]  ;;  %v297_v59 = vld [vmem:[%s4171_s27 + $0x129] sm:$0xff]  ;;  %v4297_v63 = vpack.c.bf16 %v3137_v57, %v3136_v56  ;;  %v298_v4 = vld [vmem:[%s4171_s27 + $0x139] sm:$0xff] }
  0x1e   : > { %3486 = vmatmul.mubr.msk.bf16.gmra.mrb[4].mxu1 %vm321_vm1, %v4186_v19  ;;  %v3139_v61 = vld [vmem:[%s4171_s27 + $0x82] sm:$0xff]  ;;  %v4299_v0 = vpack.c.bf16 %v297_v59, %v296_v58  ;;  %v3140_v6 = vld [vmem:[%s4171_s27 + $0x92] sm:$0xff]  ;;  %v3141_v7 = vld [vmem:[%s4171_s27 + $0x9a] sm:$0xff] }
  0x1f   : > { %3622 = vmatmul.mubr.msk.bf16.gmra.mrb[4].mxu0 %vm321_vm1, %v4211_v26  ;;  %3489 = vmatprep.mubr.msk.bf16.mxu1 %vm321_vm1, %v4211_v26  ;;  %v4301_v2 = vpack.c.bf16 %v3139_v61, %v3138_v60  ;;  %v299_v5 = vld [vmem:[%s4171_s27 + $0x141] sm:$0xff]  ;;  %v300_v8 = vld [vmem:[%s4171_s27 + $0x151] sm:$0xff]  ;;  %v301_v9 = vld [vmem:[%s4171_s27 + $0x159] sm:$0xff]  ;;  %v4321_v13 = vpack.c.bf16 %v3141_v7, %v3140_v6 }
  0x20   : > { %3625 = vmatprep.mubr.msk.bf16.mxu0 %vm321_vm1, %v4213_v27  ;;  %v3142_v10 = vld [vmem:[%s4171_s27 + $0xaa] sm:$0xff]  ;;  %v3143_v11 = vld [vmem:[%s4171_s27 + $0xb2] sm:$0xff]  ;;  %v4319_v12 = vpack.c.bf16 %v299_v5, %v298_v4  ;;  %v4323_v14 = vpack.c.bf16 %v301_v9, %v300_v8  ;;  %v3144_v20 = vld [vmem:[%s4171_s27 + $0xc2] sm:$0xff] }
  0x21   : > { %v4325_v16 = vpack.c.bf16 %v3143_v11, %v3142_v10  ;;  %v302_v17 = vld [vmem:[%s4171_s27 + $0x169] sm:$0xff]  ;;  %v303_v18 = vld [vmem:[%s4171_s27 + $0x171] sm:$0xff]  ;;  %v223_v23 = vld [vmem:[%s4171_s27] sm:$0xff] }
  0x22   : > { %v3145_v22 = vld [vmem:[%s4171_s27 + $0xca] sm:$0xff]  ;;  %v3146_v25 = vld [vmem:[%s4171_s27 + $0xda] sm:$0xff]  ;;  %v3147_v28 = vld [vmem:[%s4171_s27 + $0xe2] sm:$0xff]  ;;  %v4343_v29 = vpack.c.bf16 %v303_v18, %v302_v17 }
  0x23   : > { %v224_v24 = vld [vmem:[%s4171_s27 + $0x8] sm:$0xff]  ;;  %v4345_v30 = vpack.c.bf16 %v3145_v22, %v3144_v20  ;;  %v4347_v34 = vpack.c.bf16 %v3147_v28, %v3146_v25  ;;  %v225_v35 = vld [vmem:[%s4171_s27 + $0x18] sm:$0xff]  ;;  %v226_v36 = vld [vmem:[%s4171_s27 + $0x20] sm:$0xff] }
  0x24   : > { %v255_v31 = vpack.c.bf16 %v224_v24, %v223_v23  ;;  %v3148_v37 = vld [vmem:[%s4171_s27 + $0xf2] sm:$0xff]  ;;  %v3149_v40 = vld [vmem:[%s4171_s27 + $0xfa] sm:$0xff]  ;;  %v3150_v43 = vld [vmem:[%s4171_s27 + $0x10a] sm:$0xff]  ;;  %v4364_v45 = vpack.c.bf16 %v226_v36, %v225_v35 }
  0x25   : > { %v227_v41 = vld [vmem:[%s4171_s27 + $0x30] sm:$0xff]  ;;  %v228_v42 = vld [vmem:[%s4171_s27 + $0x38] sm:$0xff]  ;;  %v4366_v46 = vpack.c.bf16 %v3149_v40, %v3148_v37  ;;  %v4379_v55 = vld [vmem:[%s4778_s1 + $0xc] sm:$0xf] }
  0x26   : > { %3490 = vmatmul.mubr.msk.bf16.gmra.mrb[8].mxu1 %vm321_vm1, %v4213_v27  ;;  %v3151_v44 = vld [vmem:[%s4171_s27 + $0x112] sm:$0xff]  ;;  %v229_v56 = vld [vmem:[%s4171_s27 + $0x48] sm:$0xff]  ;;  %v231_v59 = vld [vmem:[%s4171_s27 + $0x60] sm:$0xff] }
  0x27   : > { %3626 = vmatmul.mubr.msk.bf16.gmra.mrb[8].mxu0 %vm321_vm1, %v4227_v32  ;;  %3493 = vmatprep.mubr.msk.bf16.mxu1 %vm321_vm1, %v4227_v32  ;;  %v4372_v54 = vpack.c.bf16 %v3151_v44, %v3150_v43  ;;  %v230_v57 = vld [vmem:[%s4171_s27 + $0x50] sm:$0xff]  ;;  %v3152_v21 = vld [vmem:[%s4171_s27 + $0x122] sm:$0xff]  ;;  %v3154_v61 = vld [vmem:[%s4171_s27 + $0x13a] sm:$0xff] }
  0x28   : > { %3629 = vmatprep.mubr.msk.bf16.mxu0 %vm321_vm1, %v4229_v33  ;;  %v3153_v58 = vld [vmem:[%s4171_s27 + $0x12a] sm:$0xff]  ;;  %v3155_v4 = vld [vmem:[%s4171_s27 + $0x142] sm:$0xff]  ;;  %v4397_v5 = vpack.c.bf16 %v230_v57, %v229_v56  ;;  %v233_v9 = vld [vmem:[%s4171_s27 + $0x78] sm:$0xff] }
  0x29   : > { %v232_v60 = vld [vmem:[%s4171_s27 + $0x68] sm:$0xff]  ;;  %v4399_v6 = vpack.c.bf16 %v3153_v58, %v3152_v21  ;;  %v4403_v8 = vpack.c.bf16 %v3155_v4, %v3154_v61  ;;  %v234_v10 = vld [vmem:[%s4171_s27 + $0x80] sm:$0xff]  ;;  %v3156_v11 = vld [vmem:[%s4171_s27 + $0x152] sm:$0xff]  ;;  %v2312_v61 = vsel %vm370_vm0, %v4277_v53, 0 }
  0x2a   : > { %v4401_v7 = vpack.c.bf16 %v232_v60, %v231_v59  ;;  %v3157_v17 = vld [vmem:[%s4171_s27 + $0x15a] sm:$0xff]  ;;  %v235_v18 = vld [vmem:[%s4171_s27 + $0x90] sm:$0xff]  ;;  %v4421_v24 = vpack.c.bf16 %v234_v10, %v233_v9  ;;  %v237_v35 = vld [vmem:[%s4171_s27 + $0xa8] sm:$0xff] }
  0x2b   : > { %v236_v20 = vld [vmem:[%s4171_s27 + $0x98] sm:$0xff]  ;;  %v3158_v22 = vld [vmem:[%s4171_s27 + $0x16a] sm:$0xff]  ;;  %v4423_v25 = vpack.c.bf16 %v3157_v17, %v3156_v11  ;;  %v3160_v37 = vld [vmem:[%s4171_s27 + $0x182] sm:$0xff] }
  0x2c   : > { %v3159_v23 = vld [vmem:[%s4171_s27 + $0x172] sm:$0xff]  ;;  %v4425_v28 = vpack.c.bf16 %v236_v20, %v235_v18  ;;  %v3161_v40 = vld [vmem:[%s4171_s27 + $0x18a] sm:$0xff]  ;;  %v242_v57 = vld [vmem:[%s4171_s27 + $0xe0] sm:$0xff] }
  0x2d   : > { %v238_v36 = vld [vmem:[%s4171_s27 + $0xb0] sm:$0xff]  ;;  %v4445_v44 = vpack.c.bf16 %v3161_v40, %v3160_v37  ;;  %v241_v56 = vld [vmem:[%s4171_s27 + $0xd8] sm:$0xff]  ;;  %v2555_v4 = vld [vmem:[%s4778_s1 + $0x20] sm:$0xf] }
  0x2e   : > { %3494 = vmatmul.mubr.msk.bf16.gmra.mrb[12].mxu1 %vm321_vm1, %v4229_v33  ;;  %v4443_v43 = vpack.c.bf16 %v238_v36, %v237_v35  ;;  %v243_v21 = vld [vmem:[%s4171_s27 + $0xf0] sm:$0xff]  ;;  %v244_v58 = vld [vmem:[%s4171_s27 + $0xf8] sm:$0xff]  ;;  %v4461_v59 = vpack.c.bf16 %v242_v57, %v241_v56  ;;  %v245_v9 = vld [vmem:[%s4171_s27 + $0x108] sm:$0xff] }
  0x2f   : > { %3630 = vmatmul.mubr.msk.bf16.gmra.mrb[12].mxu0 %vm321_vm1, %v4243_v38  ;;  %3497 = vmatprep.mubr.msk.bf16.mxu1 %vm321_vm1, %v4243_v38  ;;  %v4463_v60 = vpack.c.bf16 %v244_v58, %v243_v21  ;;  %v246_v10 = vld [vmem:[%s4171_s27 + $0x110] sm:$0xff]  ;;  %v248_v11 = vld [vmem:[%s4171_s27 + $0x128] sm:$0xff]  ;;  %v249_v20 = vld [vmem:[%s4171_s27 + $0x138] sm:$0xff]  ;;  %v1139_v58 = vsel %vm370_vm0, %v4379_v55, 0 }
  0x30   : > { %3651 = vmatprep.mubr.msk.bf16.mxu0 %vm321_vm1, %v4245_v39  ;;  %v4483_v17 = vpack.c.bf16 %v246_v10, %v245_v9  ;;  %v252_v35 = vld [vmem:[%s4171_s27 + $0x158] sm:$0xff]  ;;  %v253_v40 = vld [vmem:[%s4171_s27 + $0x168] sm:$0xff]  ;;  %v3209_v9 = vld [vmem:[%s4171_s27 + $0x1a0] sm:$0xff] }
  0x31   : > { %v748_v56 = vld [vmem:[%s4171_s27 + $0xa] sm:$0xff] }
  0x36   : > { %3498 = vmatmul.mubr.msk.bf16.gmra.mrb[16].mxu1 %vm321_vm1, %v4263_v48 }
  0x37   : > { %3652 = vmatmul.mubr.msk.bf16.vlgmr.msra.gmra.mrb[0].mxu0 %vm321_vm1, %v4265_v49  ;;  %3501 = vmatprep.mubr.msk.bf16.mxu1 %vm321_vm1, %v4267_v50 }
  0x38   : > { %3684 = vmatpush3.bf16.msra.mxu0 %v2019_v52  ;;  %3655 = vmatprep.mubr.msk.bf16.mxu0 %vm321_vm1, %v4269_v51  ;;  %v4370_v52 = vpack.c.bf16 %v228_v42, %v227_v41  ;;  %v239_v41 = vld [vmem:[%s4171_s27 + $0xc0] sm:$0xff]  ;;  %v240_v42 = vld [vmem:[%s4171_s27 + $0xc8] sm:$0xff] }
  0x39   : > { %4051 = vmatprep.subr.msk.bf16.mxu0 %vm370_vm0, %v4277_v53  ;;  %v247_v53 = vld [vmem:[%s4171_s27 + $0x120] sm:$0xff] }
  0x3a   : > { %v4485_v18 = vpack.c.bf16 %v248_v11, %v247_v53  ;;  %v2605_v53 = vsel %vm370_vm0, %v2555_v4, 0 }
  0x3e   : > { %3502 = vmatmul.mubr.msk.bf16.gmra.mrb[20].mxu1 %vm321_vm1, %v4295_v62 }
  0x3f   : > { %3656 = vmatmul.mubr.msk.bf16.gmra.mrb[4].mxu0 %vm321_vm1, %v4297_v63  ;;  %3505 = vmatprep.mubr.msk.bf16.mxu1 %vm321_vm1, %v4299_v0 }
  0x40   : > { %3659 = vmatprep.mubr.msk.bf16.mxu0 %vm321_vm1, %v4301_v2 }
  0x46   : > { %3506 = vmatmul.mubr.msk.bf16.gmra.mrb[24].mxu1 %vm321_vm1, %v4319_v12 }
  0x47   : > { %3660 = vmatmul.mubr.msk.bf16.gmra.mrb[8].mxu0 %vm321_vm1, %v4321_v13  ;;  %3509 = vmatprep.mubr.msk.bf16.mxu1 %vm321_vm1, %v4323_v14 }
  0x48   : > { %3663 = vmatprep.mubr.msk.bf16.mxu0 %vm321_vm1, %v4325_v16 }
  0x4e   : > { %3510 = vmatmul.mubr.msk.bf16.gmra.mrb[28].mxu1 %vm321_vm1, %v4343_v29 }
  0x4f   : > { %3664 = vmatmul.mubr.msk.bf16.gmra.mrb[12].mxu0 %vm321_vm1, %v4345_v30  ;;  %3515 = vmatprep.mubr.msk.bf16.mxu1 %vm321_vm1, %v255_v31  ;;  %v4427_v31 = vpack.c.bf16 %v3159_v23, %v3158_v22  ;;  %v250_v22 = vld [vmem:[%s4171_s27 + $0x140] sm:$0xff]  ;;  %v251_v23 = vld [vmem:[%s4171_s27 + $0x150] sm:$0xff] }
  0x50   : > { %3667 = vmatprep.mubr.msk.bf16.mxu0 %vm321_vm1, %v4347_v34  ;;  %v4499_v36 = vpack.c.bf16 %v250_v22, %v249_v20  ;;  %v4501_v37 = vpack.c.bf16 %v252_v35, %v251_v23 }
  0x56   : > { %3516 = vmatmul.mubr.msk.bf16.vlgmr.msra.gmra.mrb[0].mxu1 %vm321_vm1, %v4364_v45 }
  0x57   : > { %3548 = vmatpush3.bf16.msra.mxu1 %v845_v47  ;;  %3668 = vmatmul.mubr.msk.bf16.gmra.mrb[16].mxu0 %vm321_vm1, %v4366_v46  ;;  %v4447_v47 = vpack.c.bf16 %v240_v42, %v239_v41  ;;  %v254_v41 = vld [vmem:[%s4171_s27 + $0x170] sm:$0xff]  ;;  %v747_v42 = vld [vmem:[%s4171_s27 + $0x2] sm:$0xff] }
  0x58   : > { %3519 = vmatprep.mubr.msk.bf16.mxu1 %vm321_vm1, %v4370_v52  ;;  %3671 = vmatprep.mubr.msk.bf16.mxu0 %vm321_vm1, %v4372_v54  ;;  %v4515_v57 = vpack.c.bf16 %v254_v41, %v253_v40  ;;  %v779_v21 = vpack.c.bf16 %v748_v56, %v747_v42 }
  0x59   : > { %4046 = vmatprep.subr.msk.bf16.mxu1 %vm370_vm0, %v4379_v55  ;;  %v3207_v55 = vld [vmem:[%s4171_s27 + $0x188] sm:$0xff] }
  0x5e   : > { %3520 = vmatmul.mubr.msk.bf16.gmra.mrb[4].mxu1 %vm321_vm1, %v4397_v5 }
  0x5f   : > { %3672 = vmatmul.mubr.msk.bf16.gmra.mrb[20].mxu0 %vm321_vm1, %v4399_v6  ;;  %3523 = vmatprep.mubr.msk.bf16.mxu1 %vm321_vm1, %v4401_v7 }
  0x60   : > { %3675 = vmatprep.mubr.msk.bf16.mxu0 %vm321_vm1, %v4403_v8 }
  0x66   : > { %3524 = vmatmul.mubr.msk.bf16.gmra.mrb[8].mxu1 %vm321_vm1, %v4421_v24 }
  0x67   : > { %3676 = vmatmul.mubr.msk.bf16.gmra.mrb[24].mxu0 %vm321_vm1, %v4423_v25  ;;  %3527 = vmatprep.mubr.msk.bf16.mxu1 %vm321_vm1, %v4425_v28 }
  0x68   : > { %3679 = vmatprep.mubr.msk.bf16.mxu0 %vm321_vm1, %v4427_v31 }
  0x6e   : > { %3528 = vmatmul.mubr.msk.bf16.gmra.mrb[12].mxu1 %vm321_vm1, %v4443_v43 }
  0x6f   : > { %3680 = vmatmul.mubr.msk.bf16.gmra.mrb[28].mxu0 %vm321_vm1, %v4445_v44  ;;  %3531 = vmatprep.mubr.msk.bf16.mxu1 %vm321_vm1, %v4447_v47 }
  0x70   : > { %3685 = vmatprep.mubr.msk.bf16.mxu0 %vm321_vm1, %v4370_v52 }
  0x76   : > { %3532 = vmatmul.mubr.msk.bf16.gmra.mrb[16].mxu1 %vm321_vm1, %v4461_v59 }
  0x77   : > { %3686 = vmatmul.mubr.msk.bf16.vlgmr.msra.gmra.mrb[0].mxu0 %vm321_vm1, %v4397_v5  ;;  %3535 = vmatprep.mubr.msk.bf16.mxu1 %vm321_vm1, %v4463_v60 }
  0x78   : > { %3718 = vmatpush3.bf16.msra.mxu0 %v2312_v61  ;;  %3689 = vmatprep.mubr.msk.bf16.mxu0 %vm321_vm1, %v4401_v7 }
  0x79   : > { %4052 = vmatprep.subr.msk.bf16.mxu0 %vm370_vm0, %v2555_v4 }
  0x7e   : > { %3536 = vmatmul.mubr.msk.bf16.gmra.mrb[20].mxu1 %vm321_vm1, %v4483_v17 }
  0x7f   : > { %3690 = vmatmul.mubr.msk.bf16.gmra.mrb[4].mxu0 %vm321_vm1, %v4421_v24  ;;  %3539 = vmatprep.mubr.msk.bf16.mxu1 %vm321_vm1, %v4485_v18 }
  0x80   : > { %3693 = vmatprep.mubr.msk.bf16.mxu0 %vm321_vm1, %v4425_v28 }
  0x86   : > { %3540 = vmatmul.mubr.msk.bf16.gmra.mrb[24].mxu1 %vm321_vm1, %v4499_v36 }
  0x87   : > { %3694 = vmatmul.mubr.msk.bf16.gmra.mrb[8].mxu0 %vm321_vm1, %v4443_v43  ;;  %3543 = vmatprep.mubr.msk.bf16.mxu1 %vm321_vm1, %v4501_v37 }
  0x88   : > { %3697 = vmatprep.mubr.msk.bf16.mxu0 %vm321_vm1, %v4447_v47 }
  0x8e   : > { %3544 = vmatmul.mubr.msk.bf16.gmra.mrb[28].mxu1 %vm321_vm1, %v4515_v57 }
  0x8f   : > { %3698 = vmatmul.mubr.msk.bf16.gmra.mrb[12].mxu0 %vm321_vm1, %v4461_v59  ;;  %3549 = vmatprep.mubr.msk.bf16.mxu1 %vm321_vm1, %v779_v21 }
  0x90   : > { %3701 = vmatprep.mubr.msk.bf16.mxu0 %vm321_vm1, %v4463_v60 }
  0x96   : > { %3550 = vmatmul.mubr.msk.bf16.vlgmr.msra.gmra.mrb[0].mxu1 %vm321_vm1, %v4245_v39  ;;  %v3206_v39 = vld [vmem:[%s4171_s27 + $0x180] sm:$0xff] }
  0x97   : > { %3582 = vmatpush3.bf16.msra.mxu1 %v1139_v58  ;;  %3702 = vmatmul.mubr.msk.bf16.gmra.mrb[16].mxu0 %vm321_vm1, %v4483_v17  ;;  %v4546_v61 = vpack.c.bf16 %v3207_v55, %v3206_v39 }
  0x98   : > { %3553 = vmatprep.mubr.msk.bf16.mxu1 %vm321_vm1, %v4265_v49  ;;  %3705 = vmatprep.mubr.msk.bf16.mxu0 %vm321_vm1, %v4485_v18 }
  0x99   : > { %4048 = vmatprep.subr.msk.bf16.mxu1 %vm370_vm0, %v4146_v1  ;;  %v3208_v1 = vld [vmem:[%s4171_s27 + $0x198] sm:$0xff] }
  0x9a   : > { %v1968_v10 = vpack.c.bf16 %v3209_v9, %v3208_v1 }
  0x9e   : > { %3554 = vmatmul.mubr.msk.bf16.gmra.mrb[4].mxu1 %vm321_vm1, %v4269_v51 }
  0x9f   : > { %3706 = vmatmul.mubr.msk.bf16.gmra.mrb[20].mxu0 %vm321_vm1, %v4499_v36  ;;  %3557 = vmatprep.mubr.msk.bf16.mxu1 %vm321_vm1, %v4297_v63 }
  0xa0   : > { %3709 = vmatprep.mubr.msk.bf16.mxu0 %vm321_vm1, %v4501_v37 }
  0xa6   : > { %3558 = vmatmul.mubr.msk.bf16.gmra.mrb[8].mxu1 %vm321_vm1, %v4301_v2 }
  0xa7   : > { %3710 = vmatmul.mubr.msk.bf16.gmra.mrb[24].mxu0 %vm321_vm1, %v4515_v57  ;;  %3561 = vmatprep.mubr.msk.bf16.mxu1 %vm321_vm1, %v4321_v13 }
  0xa8   : > { %3713 = vmatprep.mubr.msk.bf16.mxu0 %vm321_vm1, %v4546_v61 }
  0xae   : > { %3562 = vmatmul.mubr.msk.bf16.gmra.mrb[12].mxu1 %vm321_vm1, %v4325_v16 }
  0xaf   : > { %3714 = vmatmul.mubr.msk.bf16.gmra.mrb[28].mxu0 %vm321_vm1, %v1968_v10  ;;  %3565 = vmatprep.mubr.msk.bf16.mxu1 %vm321_vm1, %v4345_v30 }
  0xb0   : > { %3719 = vmatprep.mubr.msk.bf16.mxu0 %vm321_vm1, %v4180_v15  ;;  %v3255_v15 = vld [vmem:[%s4171_s27 + $0x189] sm:$0xff] }
  0xb6   : > { %3566 = vmatmul.mubr.msk.bf16.gmra.mrb[16].mxu1 %vm321_vm1, %v4347_v34 }
  0xb7   : > { %3720 = vmatmul.mubr.msk.bf16.vlgmr.msra.gmra.mrb[0].mxu0 %vm321_vm1, %v4186_v19  ;;  %3569 = vmatprep.mubr.msk.bf16.mxu1 %vm321_vm1, %v4366_v46 }
  0xb8   : > { %3752 = vmatpush3.bf16.msra.mxu0 %v2605_v53  ;;  %3723 = vmatprep.mubr.msk.bf16.mxu0 %vm321_vm1, %v4211_v26  ;;  %v3256_v26 = vld [vmem:[%s4171_s27 + $0x199] sm:$0xff] }
  0xbe   : > { %3570 = vmatmul.mubr.msk.bf16.gmra.mrb[20].mxu1 %vm321_vm1, %v4372_v54 }
  0xbf   : > { %3724 = vmatmul.mubr.msk.bf16.gmra.mrb[4].mxu0 %vm321_vm1, %v4213_v27  ;;  %3573 = vmatprep.mubr.msk.bf16.mxu1 %vm321_vm1, %v4399_v6  ;;  %v3257_v27 = vld [vmem:[%s4171_s27 + $0x1a1] sm:$0xff] }
  0xc0   : > { %3727 = vmatprep.mubr.msk.bf16.mxu0 %vm321_vm1, %v4227_v32  ;;  %v2261_v32 = vpack.c.bf16 %v3257_v27, %v3256_v26 }
  0xc6   : > { %3574 = vmatmul.mubr.msk.bf16.gmra.mrb[24].mxu1 %vm321_vm1, %v4403_v8 }
  0xc7   : > { %3728 = vmatmul.mubr.msk.bf16.gmra.mrb[8].mxu0 %vm321_vm1, %v4229_v33  ;;  %3577 = vmatprep.mubr.msk.bf16.mxu1 %vm321_vm1, %v4423_v25  ;;  %v3304_v33 = vld [vmem:[%s4171_s27 + $0x19a] sm:$0xff] }
  0xc8   : > { %3731 = vmatprep.mubr.msk.bf16.mxu0 %vm321_vm1, %v4243_v38  ;;  %v3305_v38 = vld [vmem:[%s4171_s27 + $0x1a2] sm:$0xff] }
  0xce   : > { %3578 = vmatmul.mubr.msk.bf16.gmra.mrb[28].mxu1 %vm321_vm1, %v4427_v31 }
  0xcf   : > { %3732 = vmatmul.mubr.msk.bf16.gmra.mrb[12].mxu0 %vm321_vm1, %v4263_v48  ;;  %3583 = vmatprep.mubr.msk.bf16.mxu1 %vm321_vm1, %v4364_v45 }
  0xd0   : > { %3735 = vmatprep.mubr.msk.bf16.mxu0 %vm321_vm1, %v4267_v50 }
  0xd6   : > { %3584 = vmatmul.mubr.msk.bf16.vlgmr.msra.gmra.mrb[0].mxu1 %vm321_vm1, %v4370_v52 }
  0xd7   : > { %3786 = vmatpush3.bf16.msra.mxu1 %v4154_v3  ;;  %3736 = vmatmul.mubr.msk.bf16.gmra.mrb[16].mxu0 %vm321_vm1, %v4295_v62  ;;  %v3254_v3 = vld [vmem:[%s4171_s27 + $0x181] sm:$0xff] }
  0xd8   : > { %3587 = vmatprep.mubr.msk.bf16.mxu1 %vm321_vm1, %v4397_v5  ;;  %3739 = vmatprep.mubr.msk.bf16.mxu0 %vm321_vm1, %v4299_v0  ;;  %v2260_v19 = vpack.c.bf16 %v3255_v15, %v3254_v3 }
  0xde   : > { %3588 = vmatmul.mubr.msk.bf16.gmra.mrb[4].mxu1 %vm321_vm1, %v4401_v7 }
  0xdf   : > { %3740 = vmatmul.mubr.msk.bf16.gmra.mrb[20].mxu0 %vm321_vm1, %v4319_v12  ;;  %3591 = vmatprep.mubr.msk.bf16.mxu1 %vm321_vm1, %v4421_v24 }
  0xe0   : > { %3743 = vmatprep.mubr.msk.bf16.mxu0 %vm321_vm1, %v4323_v14 }
  0xe6   : > { %3592 = vmatmul.mubr.msk.bf16.gmra.mrb[8].mxu1 %vm321_vm1, %v4425_v28 }
  0xe7   : > { %3744 = vmatmul.mubr.msk.bf16.gmra.mrb[24].mxu0 %vm321_vm1, %v4343_v29  ;;  %3595 = vmatprep.mubr.msk.bf16.mxu1 %vm321_vm1, %v4443_v43 }
  0xe8   : > { %3747 = vmatprep.mubr.msk.bf16.mxu0 %vm321_vm1, %v2260_v19 }
  0xee   : > { %3596 = vmatmul.mubr.msk.bf16.gmra.mrb[12].mxu1 %vm321_vm1, %v4447_v47 }
  0xef   : > { %3748 = vmatmul.mubr.msk.bf16.gmra.mrb[28].mxu0 %vm321_vm1, %v2261_v32  ;;  %3599 = vmatprep.mubr.msk.bf16.mxu1 %vm321_vm1, %v4461_v59 }
  0xf0   : > { %3753 = vmatprep.mubr.msk.bf16.mxu0 %vm321_vm1, %v4265_v49 }
  0xf6   : > { %3600 = vmatmul.mubr.msk.bf16.gmra.mrb[16].mxu1 %vm321_vm1, %v4463_v60 }
  0xf7   : > { %3754 = vmatmul.mubr.msk.bf16.vlgmr.msra.gmra.mrb[0].mxu0 %vm321_vm1, %v4269_v51  ;;  %3603 = vmatprep.mubr.msk.bf16.mxu1 %vm321_vm1, %v4483_v17 }
  0xf8   : > { %3757 = vmatprep.mubr.msk.bf16.mxu0 %vm321_vm1, %v4297_v63 }
  0xfe   : > { %3604 = vmatmul.mubr.msk.bf16.gmra.mrb[20].mxu1 %vm321_vm1, %v4485_v18 }
  0xff   : > { %3758 = vmatmul.mubr.msk.bf16.gmra.mrb[4].mxu0 %vm321_vm1, %v4301_v2  ;;  %3607 = vmatprep.mubr.msk.bf16.mxu1 %vm321_vm1, %v4499_v36 }
 0x100   : > { %3761 = vmatprep.mubr.msk.bf16.mxu0 %vm321_vm1, %v4321_v13 }
 0x106   : > { %3608 = vmatmul.mubr.msk.bf16.gmra.mrb[24].mxu1 %vm321_vm1, %v4501_v37 }
 0x107   : > { %3762 = vmatmul.mubr.msk.bf16.gmra.mrb[8].mxu0 %vm321_vm1, %v4325_v16  ;;  %3611 = vmatprep.mubr.msk.bf16.mxu1 %vm321_vm1, %v4515_v57 }
 0x108   : > { %3765 = vmatprep.mubr.msk.bf16.mxu0 %vm321_vm1, %v4345_v30 }
 0x10e   : > { %3612 = vmatmul.mubr.msk.bf16.gmra.mrb[28].mxu1 %vm321_vm1, %v4546_v61 }
 0x10f   : > { %3766 = vmatmul.mubr.msk.bf16.gmra.mrb[12].mxu0 %vm321_vm1, %v4347_v34  ;;  %3633 = vmatprep.mubr.msk.bf16.mxu1 %vm321_vm1, %v4263_v48  ;;  %v2554_v48 = vpack.c.bf16 %v3305_v38, %v3304_v33 }
 0x110   : > { %3769 = vmatprep.mubr.msk.bf16.mxu0 %vm321_vm1, %v4366_v46 }
 0x116   : > { %3634 = vmatmul.mubr.msk.bf16.vlgmr.msra.gmra.mrb[16].mxu1 %vm321_vm1, %v4267_v50 }
 0x117   : > { %3770 = vmatmul.mubr.msk.bf16.gmra.mrb[16].mxu0 %vm321_vm1, %v4372_v54  ;;  %3637 = vmatprep.mubr.msk.bf16.mxu1 %vm321_vm1, %v4295_v62  ;;  %v4697_v54 = vld [vmem:[%s4779_s2] ss:$0 sm:$0xff] }
 0x118   : > { %3773 = vmatprep.mubr.msk.bf16.mxu0 %vm321_vm1, %v4399_v6 }
 0x11e   : > { %3638 = vmatmul.mubr.msk.bf16.gmra.mrb[20].mxu1 %vm321_vm1, %v4299_v0 }
 0x11f   : > { %3774 = vmatmul.mubr.msk.bf16.gmra.mrb[20].mxu0 %vm321_vm1, %v4403_v8  ;;  %3641 = vmatprep.mubr.msk.bf16.mxu1 %vm321_vm1, %v4319_v12 }
 0x120   : > { %3777 = vmatprep.mubr.msk.bf16.mxu0 %vm321_vm1, %v4423_v25 }
 0x126   : > { %3642 = vmatmul.mubr.msk.bf16.gmra.mrb[24].mxu1 %vm321_vm1, %v4323_v14 }
 0x127   : > { %3778 = vmatmul.mubr.msk.bf16.gmra.mrb[24].mxu0 %vm321_vm1, %v4427_v31  ;;  %3645 = vmatprep.mubr.msk.bf16.mxu1 %vm321_vm1, %v4343_v29 }
 0x128   : > { %3781 = vmatprep.mubr.msk.bf16.mxu0 %vm321_vm1, %v4445_v44 }
 0x12e   : > { %3646 = vmatmul.mubr.msk.bf16.gmra.mrb[28].mxu1 %vm321_vm1, %v2260_v19 }
 0x12f   : > { %3782 = vmatmul.mubr.msk.bf16.gmra.mrb[28].mxu0 %vm321_vm1, %v2554_v48 }
 0x1a9   : > { %v3585_v49 = vpop.f32.mrb[0].mxu1 }
 0x1aa   : > { %v1175_v50 = vpop.f32.mrb[1].mxu1 }
 0x1ab   : > { %v3586_v51 = vpop.f32.mrb[2].mxu1 }
 0x1ac   : > { %v1178_v62 = vpop.f32.mrb[3].mxu1 }
 0x1b1   : > { %v3589_v63 = vpop.f32.mrb[4].mxu1 }
 0x1b2   : > { %v1191_v0 = vpop.f32.mrb[5].mxu1 }
 0x1b3   : > { %v3590_v2 = vpop.f32.mrb[6].mxu1 }
 0x1b4   : > { %v1194_v12 = vpop.f32.mrb[7].mxu1 }
 0x1b9   : > { %v3593_v13 = vpop.f32.mrb[8].mxu1 }
 0x1ba   : > { %v1207_v14 = vpop.f32.mrb[9].mxu1 }
 0x1bb   : > { %v3594_v16 = vpop.f32.mrb[10].mxu1 }
 0x1bc   : > { %v1210_v29 = vpop.f32.mrb[11].mxu1 }
 0x1c1   : > { %v3597_v30 = vpop.f32.mrb[12].mxu1 }
 0x1c2   : > { %v1223_v34 = vpop.f32.mrb[13].mxu1 }
 0x1c3   : > { %v3598_v45 = vpop.f32.mrb[14].mxu1 }
 0x1c4   : > { %v1226_v46 = vpop.f32.mrb[15].mxu1 }
 0x1ca   : > { %v3755_v52 = vpop.f32.mrb[0].mxu0 }
 0x1cb   : > { %v3787_v5 = vadd.f32 %v3755_v52, %v3585_v49  ;;  %v2641_v6 = vpop.f32.mrb[1].mxu0 }
 0x1cc   : > { %v3788_v7 = vadd.f32 %v2641_v6, %v1175_v50  ;;  %v3756_v8 = vpop.f32.mrb[2].mxu0 }
 0x1cd   : > { %v2809_v24 = vadd.f32 %v3787_v5, %v4697_v54  ;;  %v3789_v25 = vadd.f32 %v3756_v8, %v3586_v51  ;;  %v2644_v28 = vpop.f32.mrb[3].mxu0 }
 0x1ce   : > { %v2807_v31 = vadd.f32 %v3788_v7, %v4697_v54  ;;  %v3790_v43 = vadd.f32 %v2644_v28, %v1178_v62 }
 0x1cf   : > { %2841 = vst [vmem:[%s4702_s20 + $0x10] sm:$0xff] %v2809_v24  ;;  %v2810_v44 = vadd.f32 %v3789_v25, %v4697_v54 }
 0x1d0   : > { %2839 = vst [vmem:[%s4702_s20] sm:$0xff] %v2807_v31  ;;  %v2808_v47 = vadd.f32 %v3790_v43, %v4697_v54 }
 0x1d1   : > { %2842 = vst [vmem:[%s4702_s20 + $0x18] sm:$0xff] %v2810_v44 }
 0x1d2   : > { %2840 = vst [vmem:[%s4702_s20 + $0x8] sm:$0xff] %v2808_v47  ;;  %v3759_v59 = vpop.f32.mrb[4].mxu0 }
 0x1d3   : > { %v3791_v60 = vadd.f32 %v3759_v59, %v3589_v63  ;;  %v2657_v4 = vpop.f32.mrb[5].mxu0 }
 0x1d4   : > { %v3792_v11 = vadd.f32 %v2657_v4, %v1191_v0  ;;  %v3760_v17 = vpop.f32.mrb[6].mxu0 }
 0x1d5   : > { %v2813_v18 = vadd.f32 %v3791_v60, %v4697_v54  ;;  %v3793_v20 = vadd.f32 %v3760_v17, %v3590_v2  ;;  %v2660_v22 = vpop.f32.mrb[7].mxu0 }
 0x1d6   : > { %v2811_v23 = vadd.f32 %v3792_v11, %v4697_v54  ;;  %v3794_v35 = vadd.f32 %v2660_v22, %v1194_v12 }
 0x1d7   : > { %2845 = vst [vmem:[%s4702_s20 + $0x30] sm:$0xff] %v2813_v18  ;;  %v2814_v36 = vadd.f32 %v3793_v20, %v4697_v54 }
 0x1d8   : > { %2843 = vst [vmem:[%s4702_s20 + $0x20] sm:$0xff] %v2811_v23  ;;  %v2812_v37 = vadd.f32 %v3794_v35, %v4697_v54 }
 0x1d9   : > { %2846 = vst [vmem:[%s4702_s20 + $0x38] sm:$0xff] %v2814_v36 }
 0x1da   : > { %2844 = vst [vmem:[%s4702_s20 + $0x28] sm:$0xff] %v2812_v37  ;;  %v3763_v40 = vpop.f32.mrb[8].mxu0 }
 0x1db   : > { %v3795_v41 = vadd.f32 %v3763_v40, %v3593_v13  ;;  %v2673_v42 = vpop.f32.mrb[9].mxu0 }
 0x1dc   : > { %v3796_v56 = vadd.f32 %v2673_v42, %v1207_v14  ;;  %v3764_v57 = vpop.f32.mrb[10].mxu0 }
 0x1dd   : > { %v2817_v21 = vadd.f32 %v3795_v41, %v4697_v54  ;;  %v3797_v58 = vadd.f32 %v3764_v57, %v3594_v16  ;;  %v2676_v39 = vpop.f32.mrb[11].mxu0 }
 0x1de   : > { %v2815_v55 = vadd.f32 %v3796_v56, %v4697_v54  ;;  %v3798_v61 = vadd.f32 %v2676_v39, %v1210_v29 }
 0x1df   : > { %2849 = vst [vmem:[%s4702_s20 + $0x50] sm:$0xff] %v2817_v21  ;;  %v2818_v1 = vadd.f32 %v3797_v58, %v4697_v54 }
 0x1e0   : > { %2847 = vst [vmem:[%s4702_s20 + $0x40] sm:$0xff] %v2815_v55  ;;  %v2816_v9 = vadd.f32 %v3798_v61, %v4697_v54 }
 0x1e1   : > { %2850 = vst [vmem:[%s4702_s20 + $0x58] sm:$0xff] %v2818_v1 }
 0x1e2   : > { %2848 = vst [vmem:[%s4702_s20 + $0x48] sm:$0xff] %v2816_v9  ;;  %v3767_v10 = vpop.f32.mrb[12].mxu0 }
 0x1e3   : > { %v3799_v53 = vadd.f32 %v3767_v10, %v3597_v30  ;;  %v2689_v3 = vpop.f32.mrb[13].mxu0 }
 0x1e4   : > { %v3800_v15 = vadd.f32 %v2689_v3, %v1223_v34  ;;  %v3768_v19 = vpop.f32.mrb[14].mxu0 }
 0x1e5   : > { %v2821_v26 = vadd.f32 %v3799_v53, %v4697_v54  ;;  %v3801_v27 = vadd.f32 %v3768_v19, %v3598_v45  ;;  %v2692_v32 = vpop.f32.mrb[15].mxu0 }
 0x1e6   : > { %v2819_v33 = vadd.f32 %v3800_v15, %v4697_v54  ;;  %v3802_v38 = vadd.f32 %v2692_v32, %v1226_v46 }
 0x1e7   : > { %2853 = vst [vmem:[%s4702_s20 + $0x70] sm:$0xff] %v2821_v26  ;;  %v2822_v48 = vadd.f32 %v3801_v27, %v4697_v54 }
 0x1e8   : > { %2851 = vst [vmem:[%s4702_s20 + $0x60] sm:$0xff] %v2819_v33  ;;  %v2820_v49 = vadd.f32 %v3802_v38, %v4697_v54 }
 0x1e9   : > { %2854 = vst [vmem:[%s4702_s20 + $0x78] sm:$0xff] %v2822_v48  ;;  %v3635_v50 = vpop.f32.mrb[16].mxu1 }
 0x1ea   : > { %2852 = vst [vmem:[%s4702_s20 + $0x68] sm:$0xff] %v2820_v49  ;;  %v3771_v51 = vpop.f32.mrb[16].mxu0  ;;  %v1532_v62 = vpop.f32.mrb[17].mxu1 }
 0x1eb   : > { %v3803_v63 = vadd.f32 %v3771_v51, %v3635_v50  ;;  %v2705_v0 = vpop.f32.mrb[17].mxu0  ;;  %v3636_v2 = vpop.f32.mrb[18].mxu1 }
 0x1ec   : > { %v3804_v12 = vadd.f32 %v2705_v0, %v1532_v62  ;;  %v3772_v13 = vpop.f32.mrb[18].mxu0  ;;  %v1535_v14 = vpop.f32.mrb[19].mxu1 }
 0x1ed   : > { %v2825_v16 = vadd.f32 %v3803_v63, %v4697_v54  ;;  %v3805_v29 = vadd.f32 %v3772_v13, %v3636_v2  ;;  %v2708_v30 = vpop.f32.mrb[19].mxu0 }
 0x1ee   : > { %v2823_v34 = vadd.f32 %v3804_v12, %v4697_v54  ;;  %v3806_v45 = vadd.f32 %v2708_v30, %v1535_v14 }
 0x1ef   : > { %2857 = vst [vmem:[%s4702_s20 + $0x90] sm:$0xff] %v2825_v16  ;;  %v2826_v46 = vadd.f32 %v3805_v29, %v4697_v54 }
 0x1f0   : > { %2855 = vst [vmem:[%s4702_s20 + $0x80] sm:$0xff] %v2823_v34  ;;  %v2824_v52 = vadd.f32 %v3806_v45, %v4697_v54 }
 0x1f1   : > { %2858 = vst [vmem:[%s4702_s20 + $0x98] sm:$0xff] %v2826_v46  ;;  %v3639_v5 = vpop.f32.mrb[20].mxu1 }
 0x1f2   : > { %2856 = vst [vmem:[%s4702_s20 + $0x88] sm:$0xff] %v2824_v52  ;;  %v3775_v6 = vpop.f32.mrb[20].mxu0  ;;  %v1548_v7 = vpop.f32.mrb[21].mxu1 }
 0x1f3   : > { %v3807_v8 = vadd.f32 %v3775_v6, %v3639_v5  ;;  %v2721_v24 = vpop.f32.mrb[21].mxu0  ;;  %v3640_v25 = vpop.f32.mrb[22].mxu1 }
 0x1f4   : > { %v3808_v28 = vadd.f32 %v2721_v24, %v1548_v7  ;;  %v3776_v31 = vpop.f32.mrb[22].mxu0  ;;  %v1551_v43 = vpop.f32.mrb[23].mxu1 }
 0x1f5   : > { %v2829_v44 = vadd.f32 %v3807_v8, %v4697_v54  ;;  %v3809_v47 = vadd.f32 %v3776_v31, %v3640_v25  ;;  %v2724_v59 = vpop.f32.mrb[23].mxu0 }
 0x1f6   : > { %v2827_v60 = vadd.f32 %v3808_v28, %v4697_v54  ;;  %v3810_v4 = vadd.f32 %v2724_v59, %v1551_v43 }
 0x1f7   : > { %2861 = vst [vmem:[%s4702_s20 + $0xb0] sm:$0xff] %v2829_v44  ;;  %v2830_v11 = vadd.f32 %v3809_v47, %v4697_v54 }
 0x1f8   : > { %2859 = vst [vmem:[%s4702_s20 + $0xa0] sm:$0xff] %v2827_v60  ;;  %v2828_v17 = vadd.f32 %v3810_v4, %v4697_v54 }
 0x1f9   : > { %2862 = vst [vmem:[%s4702_s20 + $0xb8] sm:$0xff] %v2830_v11  ;;  %v3643_v18 = vpop.f32.mrb[24].mxu1 }
 0x1fa   : > { %2860 = vst [vmem:[%s4702_s20 + $0xa8] sm:$0xff] %v2828_v17  ;;  %v3779_v20 = vpop.f32.mrb[24].mxu0  ;;  %v1564_v22 = vpop.f32.mrb[25].mxu1 }
 0x1fb   : > { %v3811_v23 = vadd.f32 %v3779_v20, %v3643_v18  ;;  %v2737_v35 = vpop.f32.mrb[25].mxu0  ;;  %v3644_v36 = vpop.f32.mrb[26].mxu1 }
 0x1fc   : > { %v3812_v37 = vadd.f32 %v2737_v35, %v1564_v22  ;;  %v3780_v40 = vpop.f32.mrb[26].mxu0  ;;  %v1567_v41 = vpop.f32.mrb[27].mxu1 }
 0x1fd   : > { %v2833_v42 = vadd.f32 %v3811_v23, %v4697_v54  ;;  %v3813_v56 = vadd.f32 %v3780_v40, %v3644_v36  ;;  %v2740_v57 = vpop.f32.mrb[27].mxu0 }
 0x1fe   : > { %v2831_v21 = vadd.f32 %v3812_v37, %v4697_v54  ;;  %v3814_v58 = vadd.f32 %v2740_v57, %v1567_v41 }
 0x1ff   : > { %2865 = vst [vmem:[%s4702_s20 + $0xd0] sm:$0xff] %v2833_v42  ;;  %v2834_v39 = vadd.f32 %v3813_v56, %v4697_v54 }
 0x200   : > { %2863 = vst [vmem:[%s4702_s20 + $0xc0] sm:$0xff] %v2831_v21  ;;  %v2832_v55 = vadd.f32 %v3814_v58, %v4697_v54 }
 0x201   : > { %2866 = vst [vmem:[%s4702_s20 + $0xd8] sm:$0xff] %v2834_v39  ;;  %v3647_v61 = vpop.f32.mrb[28].mxu1 }
 0x202   : > { %2864 = vst [vmem:[%s4702_s20 + $0xc8] sm:$0xff] %v2832_v55  ;;  %v3783_v1 = vpop.f32.mrb[28].mxu0  ;;  %v1580_v9 = vpop.f32.mrb[29].mxu1 }
 0x203   : > { %v3815_v10 = vadd.f32 %v3783_v1, %v3647_v61  ;;  %v2753_v53 = vpop.f32.mrb[29].mxu0  ;;  %v3648_v3 = vpop.f32.mrb[30].mxu1 }
 0x204   : > { %v3816_v15 = vadd.f32 %v2753_v53, %v1580_v9  ;;  %v3784_v19 = vpop.f32.mrb[30].mxu0  ;;  %v1583_v26 = vpop.f32.mrb[31].mxu1 }
 0x205   : > { %v2837_v27 = vadd.f32 %v3815_v10, %v4697_v54  ;;  %v3817_v32 = vadd.f32 %v3784_v19, %v3648_v3  ;;  %v2756_v33 = vpop.f32.mrb[31].mxu0 }
 0x206   : > { %v2835_v38 = vadd.f32 %v3816_v15, %v4697_v54  ;;  %v3818_v48 = vadd.f32 %v2756_v33, %v1583_v26 }
 0x207   : > { %2869 = vst [vmem:[%s4702_s20 + $0xf0] sm:$0xff] %v2837_v27  ;;  %v2838_v49 = vadd.f32 %v3817_v32, %v4697_v54 }
 0x208   : > { %2867 = vst [vmem:[%s4702_s20 + $0xe0] sm:$0xff] %v2835_v38  ;;  %v2836_v50 = vadd.f32 %v3818_v48, %v4697_v54 }
 0x209   : > { %2870 = vst [vmem:[%s4702_s20 + $0xf8] sm:$0xff] %v2838_v49 }
 0x20a   : > { %2868 = vst [vmem:[%s4702_s20 + $0xe8] sm:$0xff] %v2836_v50 }
 0x20b PF: > { %s13_s14 = sadd.s32 1, %s4100_s14   ;;  %s4781_s12 = smov %s4096_s13 }
 0x20c   : > { %p10_p5 = scmp.ge.s32.totalorder %s13_s14, 4   ;;  %s4782_s13 = smov %s4784_s15 }
 0x20e   :  { %12 = sbr.rel (!%p10_p5) target bundleno = 2 (0x2), region = 70 }

// kernel: _lambda_.31
= control target key start
LH: loop header
LB: loop body
LE: loop exit
PB: predicated region body
PF: predicated region fallthrough
CT: control target
= control target key end

     0   :  { %s4284_s12 = smov 0   ;;  %s4286_s13 = smov 0   ;;  %s4950_s0 = inlined_call_operand.vmem [shape: f32[2,18,18,32], index: 0, kind: input, shape index: {}]   ;;  %s4951_s1 = inlined_call_operand.vmem [shape: bf16[288,128], index: 1, kind: input, shape index: {}]   ;;  %s4952_s2 = inlined_call_operand.vmem [shape: f32[1,128], index: 2, kind: input, shape index: {}]   ;;  %s4953_s3 = inlined_call_operand.vmem [shape: f32[2,256,128], index: 3, kind: output, shape index: {}]  }
   0x1   :  { %s4288_s14 = smov 0  }
   0x2 LB: > { %s25_s15 = sadd.s32 1, %s4258_s13  ;;  %p3089_p0 = scmp.ge.s32.totalorder %s4262_s14, 1  ;;  %s4262_s14 = sphi %s4288_s14, %s13_s14   ;;  %s4258_s13 = sphi %s4286_s13, %s4955_s13   ;;  %s4254_s12 = sphi %s4284_s12, %s4954_s12  }
   0x3   : > { %p27_p1 = scmp.ge.s32.totalorder %s25_s15, 2  ;;  %p168_p2 = scmp.lt.s32.totalorder %s4262_s14, 3 }
   0x5   : > { %s4957_s15 = smov (%p27_p1, %s25_s15), 0  ;;  %p169_p3 = pnand %p3089_p0, %p168_p2 }
   0x6   : > { %v4222_v0 = vld [vmem:[%s4951_s1 + $0x10] sm:$0xff] (!%p169_p3)   ;;  %p202_p4 = scmp.lt.s32.totalorder (!%p169_p3), %s4254_s12, 1  ;;  %v4308_v1 = vld [vmem:[%s4951_s1 + $0x40] sm:$0xff] (!%p169_p3)   ;;  %v4224_v2 = vld [vmem:[%s4951_s1 + $0x18] sm:$0xff] (!%p169_p3)   ;;  %vm339_vm0 = vcmask (!%p169_p3), 261120  }
   0x7   : > { %172 = sbr.rel (%p169_p3) target bundleno = 523 (0x20b), region = 32  ;;  %3613 = vmatprep.subr.bf16.mxu1 (!%p169_p3), %v4222_v0  ;;  %3757 = vmatprep.subr.bf16.mxu0 (!%p169_p3), %v4308_v1  ;;  %v4319_v3 = vld [vmem:[%s4951_s1 + $0x48] sm:$0xff] (!%p169_p3)   ;;  %v4226_v4 = vld [vmem:[%s4951_s1] sm:$0xff] (!%p169_p3)   ;;  %v4227_v5 = vld [vmem:[%s4951_s1 + $0x50] sm:$0xff] (!%p169_p3)  }
   0x8   : > { %3614 = vmatpush3.bf16.msra.mxu1 (!%p169_p3), %v4222_v0  ;;  %3758 = vmatpush3.bf16.msra.mxu0 (!%p169_p3), %v4308_v1  ;;  %v4228_v18 = vld [vmem:[%s4951_s1 + $0x58] sm:$0xff] (!%p169_p3)   ;;  %v4229_v23 = vld [vmem:[%s4951_s1 + $0x8] sm:$0xff] (!%p169_p3)   ;;  %v4230_v25 = vld [vmem:[%s4951_s1 + $0x60] sm:$0xff] (!%p169_p3)  }
   0x9   : > { %3615 = vmatprep.subr.bf16.mxu1 (!%p169_p3), %v4224_v2  ;;  %3759 = vmatprep.subr.bf16.mxu0 (!%p169_p3), %v4319_v3  ;;  %v4395_v33 = vld [vmem:[%s4951_s1 + $0x20] sm:$0xff] (!%p169_p3)   ;;  %v4232_v52 = vld [vmem:[%s4951_s1 + $0x68] sm:$0xff] (!%p169_p3)   ;;  %v4458_v61 = vld [vmem:[%s4951_s1 + $0x70] sm:$0xff] (!%p169_p3)  }
   0xc   : > { %3616 = vmatpush3.bf16.msra.mxu1 (!%p169_p3), %v4224_v2  ;;  %3760 = vmatpush3.bf16.msra.mxu0 (!%p169_p3), %v4319_v3 }
   0xd   : > { %3649 = vmatprep.subr.bf16.mxu1 (!%p169_p3), %v4226_v4  ;;  %3793 = vmatprep.subr.bf16.mxu0 (!%p169_p3), %v4227_v5 }
   0xe   : > { %s4959_s12 = smov (!%p202_p4, %s4254_s12), 1 }
   0xf   : > { %s4197_s24 = smul.u32 432, %s4959_s12 }
  0x11   : > { %s4333_s4 = scalar_lea.vmem %s4950_s0, %s4197_s24 }
  0x12   : > { %v275_v6 = vld [vmem:[%s4333_s4 + $0x1] sm:$0xff]  ;;  %v276_v7 = vld [vmem:[%s4333_s4 + $0x9] sm:$0xff]  ;;  %v3197_v8 = vld [vmem:[%s4333_s4 + $0x19] sm:$0xff] }
  0x13   : > { %v307_v9 = vpack.c.bf16 %v276_v7, %v275_v6  ;;  %v3198_v10 = vld [vmem:[%s4333_s4 + $0x21] sm:$0xff]  ;;  %v3199_v11 = vld [vmem:[%s4333_s4 + $0x31] sm:$0xff]  ;;  %v3200_v12 = vld [vmem:[%s4333_s4 + $0x39] sm:$0xff] }
  0x14   : > { %v1413_v13 = vpack.c.bf16 %v3198_v10, %v3197_v8  ;;  %v4342_v14 = vpack.c.bf16 %v3200_v12, %v3199_v11  ;;  %v3201_v15 = vld [vmem:[%s4333_s4 + $0x49] sm:$0xff]  ;;  %v3202_v16 = vld [vmem:[%s4333_s4 + $0x51] sm:$0xff]  ;;  %v3203_v19 = vld [vmem:[%s4333_s4 + $0x61] sm:$0xff] }
  0x15   : > { %3617 = vmatprep.mubr.msk.bf16.mxu1 %vm339_vm0, %v307_v9  ;;  %v4347_v17 = vpack.c.bf16 %v3202_v16, %v3201_v15  ;;  %v3204_v20 = vld [vmem:[%s4333_s4 + $0x69] sm:$0xff]  ;;  %v3205_v21 = vld [vmem:[%s4333_s4 + $0x79] sm:$0xff]  ;;  %v3206_v22 = vld [vmem:[%s4333_s4 + $0x81] sm:$0xff] }
  0x16   : > { %3761 = vmatprep.mubr.msk.bf16.mxu0 %vm339_vm0, %v1413_v13  ;;  %3618 = vmatmul.mubr.msk.bf16.vlgmr.msra.gmra.mrb[0].mxu1 %vm339_vm0, %v1413_v13  ;;  %v4367_v24 = vpack.c.bf16 %v3204_v20, %v3203_v19  ;;  %v4372_v26 = vpack.c.bf16 %v3206_v22, %v3205_v21  ;;  %v3207_v27 = vld [vmem:[%s4333_s4 + $0x91] sm:$0xff]  ;;  %v3208_v28 = vld [vmem:[%s4333_s4 + $0x99] sm:$0xff]  ;;  %v3209_v29 = vld [vmem:[%s4333_s4 + $0xa9] sm:$0xff] }
  0x17   : > { %3762 = vmatmul.mubr.msk.bf16.vlgmr.msra.gmra.mrb[0].mxu0 %vm339_vm0, %v4342_v14  ;;  %3650 = vmatpush3.bf16.msra.mxu1 %v4226_v4  ;;  %v3210_v30 = vld [vmem:[%s4333_s4 + $0xb1] sm:$0xff]  ;;  %v4386_v31 = vpack.c.bf16 %v3208_v28, %v3207_v27  ;;  %v3211_v34 = vld [vmem:[%s4333_s4 + $0xc1] sm:$0xff]  ;;  %v3212_v35 = vld [vmem:[%s4333_s4 + $0xc9] sm:$0xff] }
  0x18   : > { %3794 = vmatpush3.bf16.msra.mxu0 %v4227_v5  ;;  %3621 = vmatprep.mubr.msk.bf16.mxu1 %vm339_vm0, %v4342_v14  ;;  %v4388_v32 = vpack.c.bf16 %v3210_v30, %v3209_v29  ;;  %v3247_v36 = vld [vmem:[%s4333_s4 + $0x1a] sm:$0xff]  ;;  %v3248_v37 = vld [vmem:[%s4333_s4 + $0x22] sm:$0xff]  ;;  %v4408_v38 = vpack.c.bf16 %v3212_v35, %v3211_v34  ;;  %v3249_v42 = vld [vmem:[%s4333_s4 + $0x32] sm:$0xff] }
  0x19   : > { %3765 = vmatprep.mubr.msk.bf16.mxu0 %vm339_vm0, %v4347_v17  ;;  %3795 = vmatprep.subr.bf16.mxu0 %v4228_v18  ;;  %v4410_v39 = vpack.c.bf16 %v3248_v37, %v3247_v36  ;;  %v293_v40 = vld [vmem:[%s4333_s4 + $0xd9] sm:$0xff]  ;;  %v294_v41 = vld [vmem:[%s4333_s4 + $0xe1] sm:$0xff]  ;;  %v295_v44 = vld [vmem:[%s4333_s4 + $0xf1] sm:$0xff] }
  0x1a   : > { %3651 = vmatprep.subr.bf16.mxu1 %v4229_v23  ;;  %v3250_v43 = vld [vmem:[%s4333_s4 + $0x3a] sm:$0xff]  ;;  %v3251_v46 = vld [vmem:[%s4333_s4 + $0x4a] sm:$0xff]  ;;  %v3252_v47 = vld [vmem:[%s4333_s4 + $0x52] sm:$0xff]  ;;  %v4428_v48 = vpack.c.bf16 %v294_v41, %v293_v40 }
  0x1b   : > { %3652 = vmatpush3.bf16.msra.mxu1 %v4229_v23  ;;  %v296_v45 = vld [vmem:[%s4333_s4 + $0xf9] sm:$0xff]  ;;  %v4430_v49 = vpack.c.bf16 %v3250_v43, %v3249_v42  ;;  %v4434_v51 = vpack.c.bf16 %v3252_v47, %v3251_v46  ;;  %v297_v53 = vld [vmem:[%s4333_s4 + $0x109] sm:$0xff]  ;;  %v298_v54 = vld [vmem:[%s4333_s4 + $0x111] sm:$0xff] }
  0x1c   : > { %3796 = vmatpush3.bf16.msra.mxu0 %v4228_v18  ;;  %3685 = vmatprep.subr.bf16.mxu1 %v4395_v33  ;;  %v4432_v50 = vpack.c.bf16 %v296_v45, %v295_v44  ;;  %v3253_v55 = vld [vmem:[%s4333_s4 + $0x62] sm:$0xff]  ;;  %v3254_v56 = vld [vmem:[%s4333_s4 + $0x6a] sm:$0xff]  ;;  %v3255_v59 = vld [vmem:[%s4333_s4 + $0x7a] sm:$0xff]  ;;  %v4460_v62 = vpack.c.bf16 %v298_v54, %v297_v53 }
  0x1d   : > { %3829 = vmatprep.subr.bf16.mxu0 %v4230_v25  ;;  %v299_v57 = vld [vmem:[%s4333_s4 + $0x121] sm:$0xff]  ;;  %v300_v58 = vld [vmem:[%s4333_s4 + $0x129] sm:$0xff]  ;;  %v4462_v63 = vpack.c.bf16 %v3254_v56, %v3253_v55  ;;  %v301_v4 = vld [vmem:[%s4333_s4 + $0x139] sm:$0xff] }
  0x1e   : > { %3622 = vmatmul.mubr.msk.bf16.gmra.mrb[4].mxu1 %vm339_vm0, %v4347_v17  ;;  %v3256_v60 = vld [vmem:[%s4333_s4 + $0x82] sm:$0xff]  ;;  %v4464_v0 = vpack.c.bf16 %v300_v58, %v299_v57  ;;  %v3257_v6 = vld [vmem:[%s4333_s4 + $0x92] sm:$0xff]  ;;  %v3258_v7 = vld [vmem:[%s4333_s4 + $0x9a] sm:$0xff] }
  0x1f   : > { %3766 = vmatmul.mubr.msk.bf16.gmra.mrb[4].mxu0 %vm339_vm0, %v4367_v24  ;;  %3625 = vmatprep.mubr.msk.bf16.mxu1 %vm339_vm0, %v4367_v24  ;;  %v4466_v2 = vpack.c.bf16 %v3256_v60, %v3255_v59  ;;  %v302_v5 = vld [vmem:[%s4333_s4 + $0x141] sm:$0xff]  ;;  %v303_v8 = vld [vmem:[%s4333_s4 + $0x151] sm:$0xff]  ;;  %v304_v9 = vld [vmem:[%s4333_s4 + $0x159] sm:$0xff]  ;;  %v4487_v13 = vpack.c.bf16 %v3258_v7, %v3257_v6 }
  0x20   : > { %3769 = vmatprep.mubr.msk.bf16.mxu0 %vm339_vm0, %v4372_v26  ;;  %v3259_v10 = vld [vmem:[%s4333_s4 + $0xaa] sm:$0xff]  ;;  %v3260_v11 = vld [vmem:[%s4333_s4 + $0xb2] sm:$0xff]  ;;  %v4485_v12 = vpack.c.bf16 %v302_v5, %v301_v4  ;;  %v4489_v15 = vpack.c.bf16 %v304_v9, %v303_v8  ;;  %v3261_v20 = vld [vmem:[%s4333_s4 + $0xc2] sm:$0xff] }
  0x21   : > { %v4491_v16 = vpack.c.bf16 %v3260_v11, %v3259_v10  ;;  %v305_v18 = vld [vmem:[%s4333_s4 + $0x169] sm:$0xff]  ;;  %v306_v19 = vld [vmem:[%s4333_s4 + $0x171] sm:$0xff]  ;;  %v223_v22 = vld [vmem:[%s4333_s4] sm:$0xff] }
  0x22   : > { %v3262_v21 = vld [vmem:[%s4333_s4 + $0xca] sm:$0xff]  ;;  %v3264_v27 = vld [vmem:[%s4333_s4 + $0xe2] sm:$0xff]  ;;  %v4509_v28 = vpack.c.bf16 %v306_v19, %v305_v18  ;;  %v225_v35 = vld [vmem:[%s4333_s4 + $0x18] sm:$0xff] }
  0x23   : > { %v224_v23 = vld [vmem:[%s4333_s4 + $0x8] sm:$0xff]  ;;  %v4511_v29 = vpack.c.bf16 %v3262_v21, %v3261_v20  ;;  %v226_v36 = vld [vmem:[%s4333_s4 + $0x20] sm:$0xff]  ;;  %v3265_v37 = vld [vmem:[%s4333_s4 + $0xf2] sm:$0xff] }
  0x24   : > { %v255_v30 = vpack.c.bf16 %v224_v23, %v223_v22  ;;  %v3266_v40 = vld [vmem:[%s4333_s4 + $0xfa] sm:$0xff]  ;;  %v227_v41 = vld [vmem:[%s4333_s4 + $0x30] sm:$0xff]  ;;  %v4530_v45 = vpack.c.bf16 %v226_v36, %v225_v35  ;;  %v4233_v53 = vld [vmem:[%s4951_s1 + $0x28] sm:$0xff]  }
  0x25   : > { %v228_v42 = vld [vmem:[%s4333_s4 + $0x38] sm:$0xff]  ;;  %v3267_v43 = vld [vmem:[%s4333_s4 + $0x10a] sm:$0xff]  ;;  %v4532_v46 = vpack.c.bf16 %v3266_v40, %v3265_v37  ;;  %v3269_v56 = vld [vmem:[%s4333_s4 + $0x122] sm:$0xff] }
  0x26   : > { %3626 = vmatmul.mubr.msk.bf16.gmra.mrb[8].mxu1 %vm339_vm0, %v4372_v26  ;;  %v3268_v44 = vld [vmem:[%s4333_s4 + $0x112] sm:$0xff]  ;;  %v4534_v47 = vpack.c.bf16 %v228_v42, %v227_v41  ;;  %v229_v54 = vld [vmem:[%s4333_s4 + $0x48] sm:$0xff]  ;;  %v231_v58 = vld [vmem:[%s4333_s4 + $0x60] sm:$0xff] }
  0x27   : > { %3770 = vmatmul.mubr.msk.bf16.gmra.mrb[8].mxu0 %vm339_vm0, %v4386_v31  ;;  %3629 = vmatprep.mubr.msk.bf16.mxu1 %vm339_vm0, %v4386_v31  ;;  %v230_v55 = vld [vmem:[%s4333_s4 + $0x50] sm:$0xff]  ;;  %v232_v59 = vld [vmem:[%s4333_s4 + $0x68] sm:$0xff]  ;;  %v233_v9 = vld [vmem:[%s4333_s4 + $0x78] sm:$0xff] }
  0x28   : > { %3773 = vmatprep.mubr.msk.bf16.mxu0 %vm339_vm0, %v4388_v32  ;;  %v3270_v57 = vld [vmem:[%s4333_s4 + $0x12a] sm:$0xff]  ;;  %v3272_v4 = vld [vmem:[%s4333_s4 + $0x142] sm:$0xff]  ;;  %v4563_v5 = vpack.c.bf16 %v230_v55, %v229_v54  ;;  %v4567_v7 = vpack.c.bf16 %v232_v59, %v231_v58  ;;  %v3273_v11 = vld [vmem:[%s4333_s4 + $0x152] sm:$0xff] }
  0x29   : > { %v4559_v60 = vld [vmem:[%s4951_s1 + $0x30] sm:$0xff]   ;;  %v4565_v6 = vpack.c.bf16 %v3270_v57, %v3269_v56  ;;  %v234_v10 = vld [vmem:[%s4333_s4 + $0x80] sm:$0xff]  ;;  %v236_v20 = vld [vmem:[%s4333_s4 + $0x98] sm:$0xff] }
  0x2a   : > { %v3274_v18 = vld [vmem:[%s4333_s4 + $0x15a] sm:$0xff]  ;;  %v235_v19 = vld [vmem:[%s4333_s4 + $0x90] sm:$0xff]  ;;  %v4588_v23 = vpack.c.bf16 %v234_v10, %v233_v9  ;;  %v237_v35 = vld [vmem:[%s4333_s4 + $0xa8] sm:$0xff] }
  0x2b   : > { %v3275_v21 = vld [vmem:[%s4333_s4 + $0x16a] sm:$0xff]  ;;  %v3276_v22 = vld [vmem:[%s4333_s4 + $0x172] sm:$0xff]  ;;  %v3277_v37 = vld [vmem:[%s4333_s4 + $0x182] sm:$0xff] }
  0x2c   : > { %v238_v36 = vld [vmem:[%s4333_s4 + $0xb0] sm:$0xff]  ;;  %v239_v41 = vld [vmem:[%s4333_s4 + $0xc0] sm:$0xff]  ;;  %v240_v42 = vld [vmem:[%s4333_s4 + $0xc8] sm:$0xff] }
  0x2d   : > { %v3278_v40 = vld [vmem:[%s4333_s4 + $0x18a] sm:$0xff]  ;;  %v241_v54 = vld [vmem:[%s4333_s4 + $0xd8] sm:$0xff]  ;;  %v242_v55 = vld [vmem:[%s4333_s4 + $0xe0] sm:$0xff] }
  0x2e   : > { %3630 = vmatmul.mubr.msk.bf16.gmra.mrb[12].mxu1 %vm339_vm0, %v4388_v32  ;;  %v243_v56 = vld [vmem:[%s4333_s4 + $0xf0] sm:$0xff]  ;;  %v244_v57 = vld [vmem:[%s4333_s4 + $0xf8] sm:$0xff]  ;;  %v4628_v58 = vpack.c.bf16 %v242_v55, %v241_v54  ;;  %v247_v10 = vld [vmem:[%s4333_s4 + $0x120] sm:$0xff] }
  0x2f   : > { %3774 = vmatmul.mubr.msk.bf16.gmra.mrb[12].mxu0 %vm339_vm0, %v4408_v38  ;;  %3633 = vmatprep.mubr.msk.bf16.mxu1 %vm339_vm0, %v4408_v38  ;;  %v4630_v59 = vpack.c.bf16 %v244_v57, %v243_v56  ;;  %v246_v9 = vld [vmem:[%s4333_s4 + $0x110] sm:$0xff]  ;;  %v4237_v57 = vld [vmem:[%s4951_s1 + $0x38] sm:$0xff]  }
  0x30   : > { %3797 = vmatprep.mubr.msk.bf16.mxu0 %vm339_vm0, %v4410_v39  ;;  %v771_v54 = vld [vmem:[%s4333_s4 + $0xa] sm:$0xff] }
  0x36   : > { %3634 = vmatmul.mubr.msk.bf16.gmra.mrb[16].mxu1 %vm339_vm0, %v4428_v48 }
  0x37   : > { %3798 = vmatmul.mubr.msk.bf16.vlgmr.msra.gmra.mrb[0].mxu0 %vm339_vm0, %v4430_v49  ;;  %3637 = vmatprep.mubr.msk.bf16.mxu1 %vm339_vm0, %v4432_v50 }
  0x38   : > { %3830 = vmatpush3.bf16.msra.mxu0 %v4230_v25  ;;  %3801 = vmatprep.mubr.msk.bf16.mxu0 %vm339_vm0, %v4434_v51  ;;  %v3263_v25 = vld [vmem:[%s4333_s4 + $0xda] sm:$0xff] }
  0x39   : > { %3831 = vmatprep.subr.bf16.mxu0 %v4232_v52  ;;  %v4513_v34 = vpack.c.bf16 %v3264_v27, %v3263_v25  ;;  %v4590_v25 = vpack.c.bf16 %v3274_v18, %v3273_v11  ;;  %v4592_v27 = vpack.c.bf16 %v236_v20, %v235_v19  ;;  %v248_v11 = vld [vmem:[%s4333_s4 + $0x128] sm:$0xff]  ;;  %v4238_v18 = vld [vmem:[%s4951_s1 + $0x80] sm:$0xff]  }
  0x3a   : > { %v4653_v20 = vpack.c.bf16 %v248_v11, %v247_v10  ;;  %v4239_v11 = vld [vmem:[%s4951_s1 + $0x88] sm:$0xff]  }
  0x3c   : > { %3832 = vmatpush3.bf16.msra.mxu0 %v4232_v52  ;;  %v4536_v52 = vpack.c.bf16 %v3268_v44, %v3267_v43  ;;  %v4610_v43 = vpack.c.bf16 %v238_v36, %v237_v35  ;;  %v4612_v44 = vpack.c.bf16 %v3278_v40, %v3277_v37  ;;  %v252_v35 = vld [vmem:[%s4333_s4 + $0x158] sm:$0xff]  ;;  %v253_v40 = vld [vmem:[%s4333_s4 + $0x168] sm:$0xff] }
  0x3d   : > { %3865 = vmatprep.subr.bf16.mxu0 %v4458_v61 }
  0x3e   : > { %3638 = vmatmul.mubr.msk.bf16.gmra.mrb[20].mxu1 %vm339_vm0, %v4460_v62 }
  0x3f   : > { %3802 = vmatmul.mubr.msk.bf16.gmra.mrb[4].mxu0 %vm339_vm0, %v4462_v63  ;;  %3641 = vmatprep.mubr.msk.bf16.mxu1 %vm339_vm0, %v4464_v0 }
  0x40   : > { %3805 = vmatprep.mubr.msk.bf16.mxu0 %vm339_vm0, %v4466_v2 }
  0x46   : > { %3642 = vmatmul.mubr.msk.bf16.gmra.mrb[24].mxu1 %vm339_vm0, %v4485_v12 }
  0x47   : > { %3806 = vmatmul.mubr.msk.bf16.gmra.mrb[8].mxu0 %vm339_vm0, %v4487_v13  ;;  %3645 = vmatprep.mubr.msk.bf16.mxu1 %vm339_vm0, %v4489_v15 }
  0x48   : > { %3809 = vmatprep.mubr.msk.bf16.mxu0 %vm339_vm0, %v4491_v16 }
  0x4e   : > { %3646 = vmatmul.mubr.msk.bf16.gmra.mrb[28].mxu1 %vm339_vm0, %v4509_v28 }
  0x4f   : > { %3810 = vmatmul.mubr.msk.bf16.gmra.mrb[12].mxu0 %vm339_vm0, %v4511_v29  ;;  %3653 = vmatprep.mubr.msk.bf16.mxu1 %vm339_vm0, %v255_v30  ;;  %v4594_v30 = vpack.c.bf16 %v3276_v22, %v3275_v21  ;;  %v250_v21 = vld [vmem:[%s4333_s4 + $0x140] sm:$0xff]  ;;  %v251_v22 = vld [vmem:[%s4333_s4 + $0x150] sm:$0xff] }
  0x50   : > { %3813 = vmatprep.mubr.msk.bf16.mxu0 %vm339_vm0, %v4513_v34  ;;  %v4669_v37 = vpack.c.bf16 %v252_v35, %v251_v22 }
  0x56   : > { %3654 = vmatmul.mubr.msk.bf16.vlgmr.msra.gmra.mrb[0].mxu1 %vm339_vm0, %v4530_v45 }
  0x57   : > { %3814 = vmatmul.mubr.msk.bf16.gmra.mrb[16].mxu0 %vm339_vm0, %v4532_v46  ;;  %3686 = vmatpush3.bf16.msra.mxu1 %v4395_v33  ;;  %v3271_v33 = vld [vmem:[%s4333_s4 + $0x13a] sm:$0xff] }
  0x58   : > { %3657 = vmatprep.mubr.msk.bf16.mxu1 %vm339_vm0, %v4534_v47  ;;  %3817 = vmatprep.mubr.msk.bf16.mxu0 %vm339_vm0, %v4536_v52  ;;  %v4569_v8 = vpack.c.bf16 %v3272_v4, %v3271_v33  ;;  %v4236_v33 = vld [vmem:[%s4951_s1 + $0x78] sm:$0xff]   ;;  %v245_v4 = vld [vmem:[%s4333_s4 + $0x108] sm:$0xff] }
  0x59   : > { %3687 = vmatprep.subr.bf16.mxu1 %v4233_v53  ;;  %v4651_v19 = vpack.c.bf16 %v246_v9, %v245_v4  ;;  %v3327_v4 = vld [vmem:[%s4333_s4 + $0x198] sm:$0xff]  ;;  %v3328_v9 = vld [vmem:[%s4333_s4 + $0x1a0] sm:$0xff] }
  0x5a   : > { %v2039_v10 = vpack.c.bf16 %v3328_v9, %v3327_v4 }
  0x5b   : > { %3688 = vmatpush3.bf16.msra.mxu1 %v4233_v53  ;;  %v4614_v53 = vpack.c.bf16 %v240_v42, %v239_v41  ;;  %v254_v41 = vld [vmem:[%s4333_s4 + $0x170] sm:$0xff]  ;;  %v770_v42 = vld [vmem:[%s4333_s4 + $0x2] sm:$0xff] }
  0x5c   : > { %3721 = vmatprep.subr.bf16.mxu1 %v4559_v60  ;;  %v4683_v55 = vpack.c.bf16 %v254_v41, %v253_v40  ;;  %v802_v56 = vpack.c.bf16 %v771_v54, %v770_v42 }
  0x5e   : > { %3658 = vmatmul.mubr.msk.bf16.gmra.mrb[4].mxu1 %vm339_vm0, %v4563_v5 }
  0x5f   : > { %3818 = vmatmul.mubr.msk.bf16.gmra.mrb[20].mxu0 %vm339_vm0, %v4565_v6  ;;  %3661 = vmatprep.mubr.msk.bf16.mxu1 %vm339_vm0, %v4567_v7 }
  0x60   : > { %3821 = vmatprep.mubr.msk.bf16.mxu0 %vm339_vm0, %v4569_v8 }
  0x66   : > { %3662 = vmatmul.mubr.msk.bf16.gmra.mrb[8].mxu1 %vm339_vm0, %v4588_v23 }
  0x67   : > { %3822 = vmatmul.mubr.msk.bf16.gmra.mrb[24].mxu0 %vm339_vm0, %v4590_v25  ;;  %3665 = vmatprep.mubr.msk.bf16.mxu1 %vm339_vm0, %v4592_v27 }
  0x68   : > { %3825 = vmatprep.mubr.msk.bf16.mxu0 %vm339_vm0, %v4594_v30 }
  0x6e   : > { %3666 = vmatmul.mubr.msk.bf16.gmra.mrb[12].mxu1 %vm339_vm0, %v4610_v43 }
  0x6f   : > { %3826 = vmatmul.mubr.msk.bf16.gmra.mrb[28].mxu0 %vm339_vm0, %v4612_v44  ;;  %3669 = vmatprep.mubr.msk.bf16.mxu1 %vm339_vm0, %v4614_v53 }
  0x70   : > { %3833 = vmatprep.mubr.msk.bf16.mxu0 %vm339_vm0, %v4534_v47 }
  0x76   : > { %3670 = vmatmul.mubr.msk.bf16.gmra.mrb[16].mxu1 %vm339_vm0, %v4628_v58 }
  0x77   : > { %3834 = vmatmul.mubr.msk.bf16.vlgmr.msra.gmra.mrb[0].mxu0 %vm339_vm0, %v4563_v5  ;;  %3673 = vmatprep.mubr.msk.bf16.mxu1 %vm339_vm0, %v4630_v59 }
  0x78   : > { %3866 = vmatpush3.bf16.msra.mxu0 %v4458_v61  ;;  %3837 = vmatprep.mubr.msk.bf16.mxu0 %vm339_vm0, %v4567_v7  ;;  %v249_v61 = vld [vmem:[%s4333_s4 + $0x138] sm:$0xff] }
  0x79   : > { %3867 = vmatprep.subr.bf16.mxu0 %v4236_v33  ;;  %v4667_v36 = vpack.c.bf16 %v250_v21, %v249_v61 }
  0x7c   : > { %3868 = vmatpush3.bf16.msra.mxu0 %v4236_v33 }
  0x7d   : > { %3901 = vmatprep.subr.bf16.mxu0 %v4238_v18 }
  0x7e   : > { %3674 = vmatmul.mubr.msk.bf16.gmra.mrb[20].mxu1 %vm339_vm0, %v4651_v19 }
  0x7f   : > { %3838 = vmatmul.mubr.msk.bf16.gmra.mrb[4].mxu0 %vm339_vm0, %v4588_v23  ;;  %3677 = vmatprep.mubr.msk.bf16.mxu1 %vm339_vm0, %v4653_v20 }
  0x80   : > { %3841 = vmatprep.mubr.msk.bf16.mxu0 %vm339_vm0, %v4592_v27 }
  0x86   : > { %3678 = vmatmul.mubr.msk.bf16.gmra.mrb[24].mxu1 %vm339_vm0, %v4667_v36 }
  0x87   : > { %3842 = vmatmul.mubr.msk.bf16.gmra.mrb[8].mxu0 %vm339_vm0, %v4610_v43  ;;  %3681 = vmatprep.mubr.msk.bf16.mxu1 %vm339_vm0, %v4669_v37 }
  0x88   : > { %3845 = vmatprep.mubr.msk.bf16.mxu0 %vm339_vm0, %v4614_v53 }
  0x8e   : > { %3682 = vmatmul.mubr.msk.bf16.gmra.mrb[28].mxu1 %vm339_vm0, %v4683_v55 }
  0x8f   : > { %3846 = vmatmul.mubr.msk.bf16.gmra.mrb[12].mxu0 %vm339_vm0, %v4628_v58  ;;  %3689 = vmatprep.mubr.msk.bf16.mxu1 %vm339_vm0, %v802_v56 }
  0x90   : > { %3849 = vmatprep.mubr.msk.bf16.mxu0 %vm339_vm0, %v4630_v59 }
  0x96   : > { %3690 = vmatmul.mubr.msk.bf16.vlgmr.msra.gmra.mrb[0].mxu1 %vm339_vm0, %v4410_v39  ;;  %v3325_v39 = vld [vmem:[%s4333_s4 + $0x180] sm:$0xff] }
  0x97   : > { %3850 = vmatmul.mubr.msk.bf16.gmra.mrb[16].mxu0 %vm339_vm0, %v4651_v19  ;;  %3722 = vmatpush3.bf16.msra.mxu1 %v4559_v60  ;;  %v3326_v60 = vld [vmem:[%s4333_s4 + $0x188] sm:$0xff] }
  0x98   : > { %3693 = vmatprep.mubr.msk.bf16.mxu1 %vm339_vm0, %v4430_v49  ;;  %3853 = vmatprep.mubr.msk.bf16.mxu0 %vm339_vm0, %v4653_v20  ;;  %v4715_v33 = vpack.c.bf16 %v3326_v60, %v3325_v39 }
  0x99   : > { %3723 = vmatprep.subr.bf16.mxu1 %v4237_v57 }
  0x9b   : > { %3724 = vmatpush3.bf16.msra.mxu1 %v4237_v57 }
  0x9c   : > { %3937 = vmatprep.subr.bf16.mxu1 %v4308_v1 }
  0x9e   : > { %3694 = vmatmul.mubr.msk.bf16.gmra.mrb[4].mxu1 %vm339_vm0, %v4434_v51 }
  0x9f   : > { %3854 = vmatmul.mubr.msk.bf16.gmra.mrb[20].mxu0 %vm339_vm0, %v4667_v36  ;;  %3697 = vmatprep.mubr.msk.bf16.mxu1 %vm339_vm0, %v4462_v63 }
  0xa0   : > { %3857 = vmatprep.mubr.msk.bf16.mxu0 %vm339_vm0, %v4669_v37 }
  0xa6   : > { %3698 = vmatmul.mubr.msk.bf16.gmra.mrb[8].mxu1 %vm339_vm0, %v4466_v2 }
  0xa7   : > { %3858 = vmatmul.mubr.msk.bf16.gmra.mrb[24].mxu0 %vm339_vm0, %v4683_v55  ;;  %3701 = vmatprep.mubr.msk.bf16.mxu1 %vm339_vm0, %v4487_v13 }
  0xa8   : > { %3861 = vmatprep.mubr.msk.bf16.mxu0 %vm339_vm0, %v4715_v33 }
  0xae   : > { %3702 = vmatmul.mubr.msk.bf16.gmra.mrb[12].mxu1 %vm339_vm0, %v4491_v16 }
  0xaf   : > { %3862 = vmatmul.mubr.msk.bf16.gmra.mrb[28].mxu0 %vm339_vm0, %v2039_v10  ;;  %3705 = vmatprep.mubr.msk.bf16.mxu1 %vm339_vm0, %v4511_v29 }
  0xb0   : > { %3869 = vmatprep.mubr.msk.bf16.mxu0 %vm339_vm0, %v4342_v14  ;;  %v3376_v14 = vld [vmem:[%s4333_s4 + $0x189] sm:$0xff] }
  0xb6   : > { %3706 = vmatmul.mubr.msk.bf16.gmra.mrb[16].mxu1 %vm339_vm0, %v4513_v34 }
  0xb7   : > { %3870 = vmatmul.mubr.msk.bf16.vlgmr.msra.gmra.mrb[0].mxu0 %vm339_vm0, %v4347_v17  ;;  %3709 = vmatprep.mubr.msk.bf16.mxu1 %vm339_vm0, %v4532_v46 }
  0xb8   : > { %3902 = vmatpush3.bf16.msra.mxu0 %v4238_v18  ;;  %3873 = vmatprep.mubr.msk.bf16.mxu0 %vm339_vm0, %v4367_v24  ;;  %v3378_v24 = vld [vmem:[%s4333_s4 + $0x1a1] sm:$0xff] }
  0xb9   : > { %3903 = vmatprep.subr.bf16.mxu0 %v4239_v11 }
  0xbc   : > { %3904 = vmatpush3.bf16.msra.mxu0 %v4239_v11 }
  0xbe   : > { %3710 = vmatmul.mubr.msk.bf16.gmra.mrb[20].mxu1 %vm339_vm0, %v4536_v52 }
  0xbf   : > { %3874 = vmatmul.mubr.msk.bf16.gmra.mrb[4].mxu0 %vm339_vm0, %v4372_v26  ;;  %3713 = vmatprep.mubr.msk.bf16.mxu1 %vm339_vm0, %v4565_v6 }
  0xc0   : > { %3877 = vmatprep.mubr.msk.bf16.mxu0 %vm339_vm0, %v4386_v31  ;;  %v3427_v31 = vld [vmem:[%s4333_s4 + $0x19a] sm:$0xff] }
  0xc6   : > { %3714 = vmatmul.mubr.msk.bf16.gmra.mrb[24].mxu1 %vm339_vm0, %v4569_v8 }
  0xc7   : > { %3878 = vmatmul.mubr.msk.bf16.gmra.mrb[8].mxu0 %vm339_vm0, %v4388_v32  ;;  %3717 = vmatprep.mubr.msk.bf16.mxu1 %vm339_vm0, %v4590_v25  ;;  %v3428_v32 = vld [vmem:[%s4333_s4 + $0x1a2] sm:$0xff] }
  0xc8   : > { %3881 = vmatprep.mubr.msk.bf16.mxu0 %vm339_vm0, %v4408_v38  ;;  %v2649_v38 = vpack.c.bf16 %v3428_v32, %v3427_v31 }
  0xce   : > { %3718 = vmatmul.mubr.msk.bf16.gmra.mrb[28].mxu1 %vm339_vm0, %v4594_v30 }
  0xcf   : > { %3882 = vmatmul.mubr.msk.bf16.gmra.mrb[12].mxu0 %vm339_vm0, %v4428_v48  ;;  %3725 = vmatprep.mubr.msk.bf16.mxu1 %vm339_vm0, %v4530_v45 }
  0xd0   : > { %3885 = vmatprep.mubr.msk.bf16.mxu0 %vm339_vm0, %v4432_v50 }
  0xd6   : > { %3726 = vmatmul.mubr.msk.bf16.vlgmr.msra.gmra.mrb[0].mxu1 %vm339_vm0, %v4534_v47  ;;  %v4870_v47 = vld [vmem:[%s4952_s2] ss:$0 sm:$0xff] }
  0xd7   : > { %3886 = vmatmul.mubr.msk.bf16.gmra.mrb[16].mxu0 %vm339_vm0, %v4460_v62  ;;  %3939 = vmatpush3.bf16.msra.mxu1 %v4308_v1  ;;  %v3375_v1 = vld [vmem:[%s4333_s4 + $0x181] sm:$0xff] }
  0xd8   : > { %3729 = vmatprep.mubr.msk.bf16.mxu1 %vm339_vm0, %v4563_v5  ;;  %3889 = vmatprep.mubr.msk.bf16.mxu0 %vm339_vm0, %v4464_v0  ;;  %v2343_v17 = vpack.c.bf16 %v3376_v14, %v3375_v1 }
  0xd9   : > { %3938 = vmatprep.subr.bf16.mxu1 %v4319_v3 }
  0xdb   : > { %3940 = vmatpush3.bf16.msra.mxu1 %v4319_v3  ;;  %v3377_v3 = vld [vmem:[%s4333_s4 + $0x199] sm:$0xff]  ;;  %s3450_s4 = sshll.u32 %s4959_s12, 8 }
  0xdc   : > { %v2344_v26 = vpack.c.bf16 %v3378_v24, %v3377_v3  ;;  %s4875_s11 = scalar_lea.vmem %s4953_s3, %s3450_s4 }
  0xde   : > { %3730 = vmatmul.mubr.msk.bf16.gmra.mrb[4].mxu1 %vm339_vm0, %v4567_v7 }
  0xdf   : > { %3890 = vmatmul.mubr.msk.bf16.gmra.mrb[20].mxu0 %vm339_vm0, %v4485_v12  ;;  %3733 = vmatprep.mubr.msk.bf16.mxu1 %vm339_vm0, %v4588_v23 }
  0xe0   : > { %3893 = vmatprep.mubr.msk.bf16.mxu0 %vm339_vm0, %v4489_v15 }
  0xe6   : > { %3734 = vmatmul.mubr.msk.bf16.gmra.mrb[8].mxu1 %vm339_vm0, %v4592_v27 }
  0xe7   : > { %3894 = vmatmul.mubr.msk.bf16.gmra.mrb[24].mxu0 %vm339_vm0, %v4509_v28  ;;  %3737 = vmatprep.mubr.msk.bf16.mxu1 %vm339_vm0, %v4610_v43 }
  0xe8   : > { %3897 = vmatprep.mubr.msk.bf16.mxu0 %vm339_vm0, %v2343_v17 }
  0xee   : > { %3738 = vmatmul.mubr.msk.bf16.gmra.mrb[12].mxu1 %vm339_vm0, %v4614_v53 }
  0xef   : > { %3898 = vmatmul.mubr.msk.bf16.gmra.mrb[28].mxu0 %vm339_vm0, %v2344_v26  ;;  %3741 = vmatprep.mubr.msk.bf16.mxu1 %vm339_vm0, %v4628_v58 }
  0xf0   : > { %3905 = vmatprep.mubr.msk.bf16.mxu0 %vm339_vm0, %v4430_v49 }
  0xf6   : > { %3742 = vmatmul.mubr.msk.bf16.gmra.mrb[16].mxu1 %vm339_vm0, %v4630_v59 }
  0xf7   : > { %3906 = vmatmul.mubr.msk.bf16.vlgmr.msra.gmra.mrb[0].mxu0 %vm339_vm0, %v4434_v51  ;;  %3745 = vmatprep.mubr.msk.bf16.mxu1 %vm339_vm0, %v4651_v19 }
  0xf8   : > { %3909 = vmatprep.mubr.msk.bf16.mxu0 %vm339_vm0, %v4462_v63 }
  0xfe   : > { %3746 = vmatmul.mubr.msk.bf16.gmra.mrb[20].mxu1 %vm339_vm0, %v4653_v20 }
  0xff   : > { %3910 = vmatmul.mubr.msk.bf16.gmra.mrb[4].mxu0 %vm339_vm0, %v4466_v2  ;;  %3749 = vmatprep.mubr.msk.bf16.mxu1 %vm339_vm0, %v4667_v36 }
 0x100   : > { %3913 = vmatprep.mubr.msk.bf16.mxu0 %vm339_vm0, %v4487_v13 }
 0x106   : > { %3750 = vmatmul.mubr.msk.bf16.gmra.mrb[24].mxu1 %vm339_vm0, %v4669_v37 }
 0x107   : > { %3914 = vmatmul.mubr.msk.bf16.gmra.mrb[8].mxu0 %vm339_vm0, %v4491_v16  ;;  %3753 = vmatprep.mubr.msk.bf16.mxu1 %vm339_vm0, %v4683_v55 }
 0x108   : > { %3917 = vmatprep.mubr.msk.bf16.mxu0 %vm339_vm0, %v4511_v29 }
 0x10e   : > { %3754 = vmatmul.mubr.msk.bf16.gmra.mrb[28].mxu1 %vm339_vm0, %v4715_v33 }
 0x10f   : > { %3918 = vmatmul.mubr.msk.bf16.gmra.mrb[12].mxu0 %vm339_vm0, %v4513_v34  ;;  %3777 = vmatprep.mubr.msk.bf16.mxu1 %vm339_vm0, %v4428_v48 }
 0x110   : > { %3921 = vmatprep.mubr.msk.bf16.mxu0 %vm339_vm0, %v4532_v46 }
 0x116   : > { %3778 = vmatmul.mubr.msk.bf16.vlgmr.msra.gmra.mrb[16].mxu1 %vm339_vm0, %v4432_v50 }
 0x117   : > { %3922 = vmatmul.mubr.msk.bf16.gmra.mrb[16].mxu0 %vm339_vm0, %v4536_v52  ;;  %3781 = vmatprep.mubr.msk.bf16.mxu1 %vm339_vm0, %v4460_v62 }
 0x118   : > { %3925 = vmatprep.mubr.msk.bf16.mxu0 %vm339_vm0, %v4565_v6 }
 0x11e   : > { %3782 = vmatmul.mubr.msk.bf16.gmra.mrb[20].mxu1 %vm339_vm0, %v4464_v0 }
 0x11f   : > { %3926 = vmatmul.mubr.msk.bf16.gmra.mrb[20].mxu0 %vm339_vm0, %v4569_v8  ;;  %3785 = vmatprep.mubr.msk.bf16.mxu1 %vm339_vm0, %v4485_v12 }
 0x120   : > { %3929 = vmatprep.mubr.msk.bf16.mxu0 %vm339_vm0, %v4590_v25 }
 0x126   : > { %3786 = vmatmul.mubr.msk.bf16.gmra.mrb[24].mxu1 %vm339_vm0, %v4489_v15 }
 0x127   : > { %3930 = vmatmul.mubr.msk.bf16.gmra.mrb[24].mxu0 %vm339_vm0, %v4594_v30  ;;  %3789 = vmatprep.mubr.msk.bf16.mxu1 %vm339_vm0, %v4509_v28 }
 0x128   : > { %3933 = vmatprep.mubr.msk.bf16.mxu0 %vm339_vm0, %v4612_v44 }
 0x12e   : > { %3790 = vmatmul.mubr.msk.bf16.gmra.mrb[28].mxu1 %vm339_vm0, %v2343_v17 }
 0x12f   : > { %3934 = vmatmul.mubr.msk.bf16.gmra.mrb[28].mxu0 %vm339_vm0, %v2649_v38 }
 0x1a9   : > { %v3727_v48 = vpop.f32.mrb[0].mxu1 }
 0x1aa   : > { %v1222_v49 = vpop.f32.mrb[1].mxu1 }
 0x1ab   : > { %v3728_v50 = vpop.f32.mrb[2].mxu1 }
 0x1ac   : > { %v1225_v51 = vpop.f32.mrb[3].mxu1 }
 0x1b1   : > { %v3731_v62 = vpop.f32.mrb[4].mxu1 }
 0x1b2   : > { %v1238_v63 = vpop.f32.mrb[5].mxu1 }
 0x1b3   : > { %v3732_v0 = vpop.f32.mrb[6].mxu1 }
 0x1b4   : > { %v1241_v2 = vpop.f32.mrb[7].mxu1 }
 0x1b9   : > { %v3735_v12 = vpop.f32.mrb[8].mxu1 }
 0x1ba   : > { %v1254_v13 = vpop.f32.mrb[9].mxu1 }
 0x1bb   : > { %v3736_v15 = vpop.f32.mrb[10].mxu1 }
 0x1bc   : > { %v1257_v16 = vpop.f32.mrb[11].mxu1 }
 0x1c1   : > { %v3739_v28 = vpop.f32.mrb[12].mxu1 }
 0x1c2   : > { %v1270_v29 = vpop.f32.mrb[13].mxu1 }
 0x1c3   : > { %v3740_v34 = vpop.f32.mrb[14].mxu1 }
 0x1c4   : > { %v1273_v45 = vpop.f32.mrb[15].mxu1 }
 0x1ca   : > { %v3907_v46 = vpop.f32.mrb[0].mxu0 }
 0x1cb   : > { %v3941_v52 = vadd.f32 %v3907_v46, %v3727_v48  ;;  %v2748_v5 = vpop.f32.mrb[1].mxu0 }
 0x1cc   : > { %v3942_v6 = vadd.f32 %v2748_v5, %v1222_v49  ;;  %v3908_v7 = vpop.f32.mrb[2].mxu0 }
 0x1cd   : > { %v2916_v8 = vadd.f32 %v3941_v52, %v4870_v47  ;;  %v3943_v23 = vadd.f32 %v3908_v7, %v3728_v50  ;;  %v2751_v25 = vpop.f32.mrb[3].mxu0 }
 0x1ce   : > { %v2914_v27 = vadd.f32 %v3942_v6, %v4870_v47  ;;  %v3944_v30 = vadd.f32 %v2751_v25, %v1225_v51 }
 0x1cf   : > { %2948 = vst [vmem:[%s4875_s11 + $0x10] sm:$0xff] %v2916_v8  ;;  %v2917_v43 = vadd.f32 %v3943_v23, %v4870_v47 }
 0x1d0   : > { %2946 = vst [vmem:[%s4875_s11] sm:$0xff] %v2914_v27  ;;  %v2915_v44 = vadd.f32 %v3944_v30, %v4870_v47 }
 0x1d1   : > { %2949 = vst [vmem:[%s4875_s11 + $0x18] sm:$0xff] %v2917_v43 }
 0x1d2   : > { %2947 = vst [vmem:[%s4875_s11 + $0x8] sm:$0xff] %v2915_v44  ;;  %v3911_v53 = vpop.f32.mrb[4].mxu0 }
 0x1d3   : > { %v3945_v58 = vadd.f32 %v3911_v53, %v3731_v62  ;;  %v2764_v59 = vpop.f32.mrb[5].mxu0 }
 0x1d4   : > { %v3946_v18 = vadd.f32 %v2764_v59, %v1238_v63  ;;  %v3912_v19 = vpop.f32.mrb[6].mxu0 }
 0x1d5   : > { %v2920_v20 = vadd.f32 %v3945_v58, %v4870_v47  ;;  %v3947_v61 = vadd.f32 %v3912_v19, %v3732_v0  ;;  %v2767_v21 = vpop.f32.mrb[7].mxu0 }
 0x1d6   : > { %v2918_v22 = vadd.f32 %v3946_v18, %v4870_v47  ;;  %v3948_v35 = vadd.f32 %v2767_v21, %v1241_v2 }
 0x1d7   : > { %2952 = vst [vmem:[%s4875_s11 + $0x30] sm:$0xff] %v2920_v20  ;;  %v2921_v36 = vadd.f32 %v3947_v61, %v4870_v47 }
 0x1d8   : > { %2950 = vst [vmem:[%s4875_s11 + $0x20] sm:$0xff] %v2918_v22  ;;  %v2919_v37 = vadd.f32 %v3948_v35, %v4870_v47 }
 0x1d9   : > { %2953 = vst [vmem:[%s4875_s11 + $0x38] sm:$0xff] %v2921_v36 }
 0x1da   : > { %2951 = vst [vmem:[%s4875_s11 + $0x28] sm:$0xff] %v2919_v37  ;;  %v3915_v40 = vpop.f32.mrb[8].mxu0 }
 0x1db   : > { %v3949_v41 = vadd.f32 %v3915_v40, %v3735_v12  ;;  %v2780_v42 = vpop.f32.mrb[9].mxu0 }
 0x1dc   : > { %v3950_v54 = vadd.f32 %v2780_v42, %v1254_v13  ;;  %v3916_v55 = vpop.f32.mrb[10].mxu0 }
 0x1dd   : > { %v2924_v56 = vadd.f32 %v3949_v41, %v4870_v47  ;;  %v3951_v57 = vadd.f32 %v3916_v55, %v3736_v15  ;;  %v2783_v39 = vpop.f32.mrb[11].mxu0 }
 0x1de   : > { %v2922_v60 = vadd.f32 %v3950_v54, %v4870_v47  ;;  %v3952_v33 = vadd.f32 %v2783_v39, %v1257_v16 }
 0x1df   : > { %2956 = vst [vmem:[%s4875_s11 + $0x50] sm:$0xff] %v2924_v56  ;;  %v2925_v4 = vadd.f32 %v3951_v57, %v4870_v47 }
 0x1e0   : > { %2954 = vst [vmem:[%s4875_s11 + $0x40] sm:$0xff] %v2922_v60  ;;  %v2923_v9 = vadd.f32 %v3952_v33, %v4870_v47 }
 0x1e1   : > { %2957 = vst [vmem:[%s4875_s11 + $0x58] sm:$0xff] %v2925_v4 }
 0x1e2   : > { %2955 = vst [vmem:[%s4875_s11 + $0x48] sm:$0xff] %v2923_v9  ;;  %v3919_v10 = vpop.f32.mrb[12].mxu0 }
 0x1e3   : > { %v3953_v11 = vadd.f32 %v3919_v10, %v3739_v28  ;;  %v2796_v1 = vpop.f32.mrb[13].mxu0 }
 0x1e4   : > { %v3954_v14 = vadd.f32 %v2796_v1, %v1270_v29  ;;  %v3920_v17 = vpop.f32.mrb[14].mxu0 }
 0x1e5   : > { %v2928_v3 = vadd.f32 %v3953_v11, %v4870_v47  ;;  %v3955_v24 = vadd.f32 %v3920_v17, %v3740_v34  ;;  %v2799_v26 = vpop.f32.mrb[15].mxu0 }
 0x1e6   : > { %v2926_v31 = vadd.f32 %v3954_v14, %v4870_v47  ;;  %v3956_v32 = vadd.f32 %v2799_v26, %v1273_v45 }
 0x1e7   : > { %2960 = vst [vmem:[%s4875_s11 + $0x70] sm:$0xff] %v2928_v3  ;;  %v2929_v38 = vadd.f32 %v3955_v24, %v4870_v47 }
 0x1e8   : > { %2958 = vst [vmem:[%s4875_s11 + $0x60] sm:$0xff] %v2926_v31  ;;  %v2927_v48 = vadd.f32 %v3956_v32, %v4870_v47 }
 0x1e9   : > { %2961 = vst [vmem:[%s4875_s11 + $0x78] sm:$0xff] %v2929_v38  ;;  %v3779_v49 = vpop.f32.mrb[16].mxu1 }
 0x1ea   : > { %2959 = vst [vmem:[%s4875_s11 + $0x68] sm:$0xff] %v2927_v48  ;;  %v3923_v50 = vpop.f32.mrb[16].mxu0  ;;  %v1591_v51 = vpop.f32.mrb[17].mxu1 }
 0x1eb   : > { %v3957_v62 = vadd.f32 %v3923_v50, %v3779_v49  ;;  %v2812_v63 = vpop.f32.mrb[17].mxu0  ;;  %v3780_v0 = vpop.f32.mrb[18].mxu1 }
 0x1ec   : > { %v3958_v2 = vadd.f32 %v2812_v63, %v1591_v51  ;;  %v3924_v12 = vpop.f32.mrb[18].mxu0  ;;  %v1594_v13 = vpop.f32.mrb[19].mxu1 }
 0x1ed   : > { %v2932_v15 = vadd.f32 %v3957_v62, %v4870_v47  ;;  %v3959_v16 = vadd.f32 %v3924_v12, %v3780_v0  ;;  %v2815_v28 = vpop.f32.mrb[19].mxu0 }
 0x1ee   : > { %v2930_v29 = vadd.f32 %v3958_v2, %v4870_v47  ;;  %v3960_v34 = vadd.f32 %v2815_v28, %v1594_v13 }
 0x1ef   : > { %2964 = vst [vmem:[%s4875_s11 + $0x90] sm:$0xff] %v2932_v15  ;;  %v2933_v45 = vadd.f32 %v3959_v16, %v4870_v47 }
 0x1f0   : > { %2962 = vst [vmem:[%s4875_s11 + $0x80] sm:$0xff] %v2930_v29  ;;  %v2931_v46 = vadd.f32 %v3960_v34, %v4870_v47 }
 0x1f1   : > { %2965 = vst [vmem:[%s4875_s11 + $0x98] sm:$0xff] %v2933_v45  ;;  %v3783_v52 = vpop.f32.mrb[20].mxu1 }
 0x1f2   : > { %2963 = vst [vmem:[%s4875_s11 + $0x88] sm:$0xff] %v2931_v46  ;;  %v3927_v5 = vpop.f32.mrb[20].mxu0  ;;  %v1607_v6 = vpop.f32.mrb[21].mxu1 }
 0x1f3   : > { %v3961_v7 = vadd.f32 %v3927_v5, %v3783_v52  ;;  %v2828_v8 = vpop.f32.mrb[21].mxu0  ;;  %v3784_v23 = vpop.f32.mrb[22].mxu1 }
 0x1f4   : > { %v3962_v25 = vadd.f32 %v2828_v8, %v1607_v6  ;;  %v3928_v27 = vpop.f32.mrb[22].mxu0  ;;  %v1610_v30 = vpop.f32.mrb[23].mxu1 }
 0x1f5   : > { %v2936_v43 = vadd.f32 %v3961_v7, %v4870_v47  ;;  %v3963_v44 = vadd.f32 %v3928_v27, %v3784_v23  ;;  %v2831_v53 = vpop.f32.mrb[23].mxu0 }
 0x1f6   : > { %v2934_v58 = vadd.f32 %v3962_v25, %v4870_v47  ;;  %v3964_v59 = vadd.f32 %v2831_v53, %v1610_v30 }
 0x1f7   : > { %2968 = vst [vmem:[%s4875_s11 + $0xb0] sm:$0xff] %v2936_v43  ;;  %v2937_v18 = vadd.f32 %v3963_v44, %v4870_v47 }
 0x1f8   : > { %2966 = vst [vmem:[%s4875_s11 + $0xa0] sm:$0xff] %v2934_v58  ;;  %v2935_v19 = vadd.f32 %v3964_v59, %v4870_v47 }
 0x1f9   : > { %2969 = vst [vmem:[%s4875_s11 + $0xb8] sm:$0xff] %v2937_v18  ;;  %v3787_v20 = vpop.f32.mrb[24].mxu1 }
 0x1fa   : > { %2967 = vst [vmem:[%s4875_s11 + $0xa8] sm:$0xff] %v2935_v19  ;;  %v3931_v61 = vpop.f32.mrb[24].mxu0  ;;  %v1623_v21 = vpop.f32.mrb[25].mxu1 }
 0x1fb   : > { %v3965_v22 = vadd.f32 %v3931_v61, %v3787_v20  ;;  %v2844_v35 = vpop.f32.mrb[25].mxu0  ;;  %v3788_v36 = vpop.f32.mrb[26].mxu1 }
 0x1fc   : > { %v3966_v37 = vadd.f32 %v2844_v35, %v1623_v21  ;;  %v3932_v40 = vpop.f32.mrb[26].mxu0  ;;  %v1626_v41 = vpop.f32.mrb[27].mxu1 }
 0x1fd   : > { %v2940_v42 = vadd.f32 %v3965_v22, %v4870_v47  ;;  %v3967_v54 = vadd.f32 %v3932_v40, %v3788_v36  ;;  %v2847_v55 = vpop.f32.mrb[27].mxu0 }
 0x1fe   : > { %v2938_v56 = vadd.f32 %v3966_v37, %v4870_v47  ;;  %v3968_v57 = vadd.f32 %v2847_v55, %v1626_v41 }
 0x1ff   : > { %2972 = vst [vmem:[%s4875_s11 + $0xd0] sm:$0xff] %v2940_v42  ;;  %v2941_v39 = vadd.f32 %v3967_v54, %v4870_v47 }
 0x200   : > { %2970 = vst [vmem:[%s4875_s11 + $0xc0] sm:$0xff] %v2938_v56  ;;  %v2939_v60 = vadd.f32 %v3968_v57, %v4870_v47 }
 0x201   : > { %2973 = vst [vmem:[%s4875_s11 + $0xd8] sm:$0xff] %v2941_v39  ;;  %v3791_v33 = vpop.f32.mrb[28].mxu1 }
 0x202   : > { %2971 = vst [vmem:[%s4875_s11 + $0xc8] sm:$0xff] %v2939_v60  ;;  %v3935_v4 = vpop.f32.mrb[28].mxu0  ;;  %v1639_v9 = vpop.f32.mrb[29].mxu1 }
 0x203   : > { %v3969_v10 = vadd.f32 %v3935_v4, %v3791_v33  ;;  %v2860_v11 = vpop.f32.mrb[29].mxu0  ;;  %v3792_v1 = vpop.f32.mrb[30].mxu1 }
 0x204   : > { %v3970_v14 = vadd.f32 %v2860_v11, %v1639_v9  ;;  %v3936_v17 = vpop.f32.mrb[30].mxu0  ;;  %v1642_v3 = vpop.f32.mrb[31].mxu1 }
 0x205   : > { %v2944_v24 = vadd.f32 %v3969_v10, %v4870_v47  ;;  %v3971_v26 = vadd.f32 %v3936_v17, %v3792_v1  ;;  %v2863_v31 = vpop.f32.mrb[31].mxu0 }
 0x206   : > { %v2942_v32 = vadd.f32 %v3970_v14, %v4870_v47  ;;  %v3972_v38 = vadd.f32 %v2863_v31, %v1642_v3 }
 0x207   : > { %2976 = vst [vmem:[%s4875_s11 + $0xf0] sm:$0xff] %v2944_v24  ;;  %v2945_v48 = vadd.f32 %v3971_v26, %v4870_v47 }
 0x208   : > { %2974 = vst [vmem:[%s4875_s11 + $0xe0] sm:$0xff] %v2942_v32  ;;  %v2943_v49 = vadd.f32 %v3972_v38, %v4870_v47 }
 0x209   : > { %2977 = vst [vmem:[%s4875_s11 + $0xf8] sm:$0xff] %v2945_v48 }
 0x20a   : > { %2975 = vst [vmem:[%s4875_s11 + $0xe8] sm:$0xff] %v2943_v49 }
 0x20b PF: > { %s13_s14 = sadd.s32 1, %s4262_s14   ;;  %s4954_s12 = smov %s4258_s13 }
 0x20c   : > { %p10_p5 = scmp.ge.s32.totalorder %s13_s14, 4   ;;  %s4955_s13 = smov %s4957_s15 }
 0x20e   :  { %12 = sbr.rel (!%p10_p5) target bundleno = 2 (0x2), region = 70 }

// kernel: _lambda_.33
= control target key start
LH: loop header
LB: loop body
LE: loop exit
PB: predicated region body
PF: predicated region fallthrough
CT: control target
= control target key end

     0   :  { %s4432_s15 = smov 0   ;;  %s4434_s16 = smov 0   ;;  %s5156_s0 = inlined_call_operand.vmem [shape: f32[2,18,18,32], index: 0, kind: input, shape index: {}]   ;;  %s5157_s1 = inlined_call_operand.vmem [shape: bf16[288,128], index: 1, kind: input, shape index: {}]   ;;  %s5158_s2 = inlined_call_operand.vmem [shape: f32[1,128], index: 2, kind: input, shape index: {}]   ;;  %s5159_s3 = inlined_call_operand.vmem [shape: f32[2,256,128], index: 3, kind: input, shape index: {}]   ;;  %s5160_s4 = inlined_call_operand.vmem [shape: f32[2,256,128], index: 4, kind: output, shape index: {}]  }
   0x1   :  { %s4436_s17 = smov 0  }
   0x2 LB: > { %s26_s18 = sadd.s32 1, %s4401_s16  ;;  %p3229_p0 = scmp.ge.s32.totalorder %s4405_s17, 1  ;;  %s4405_s17 = sphi %s4436_s17, %s14_s17   ;;  %s4401_s16 = sphi %s4434_s16, %s5162_s16   ;;  %s4397_s15 = sphi %s4432_s15, %s5161_s15  }
   0x3   : > { %p28_p1 = scmp.ge.s32.totalorder %s26_s18, 2  ;;  %p208_p2 = scmp.lt.s32.totalorder %s4405_s17, 3 }
   0x5   : > { %s5164_s18 = smov (%p28_p1, %s26_s18), 0  ;;  %p209_p3 = pnand %p3229_p0, %p208_p2 }
   0x6   : > { %v4365_v0 = vld [vmem:[%s5157_s1 + $0x10] sm:$0xff] (!%p209_p3)   ;;  %p252_p4 = scmp.lt.s32.totalorder (!%p209_p3), %s4397_s15, 1  ;;  %v4456_v1 = vld [vmem:[%s5157_s1 + $0x40] sm:$0xff] (!%p209_p3)   ;;  %v4367_v2 = vld [vmem:[%s5157_s1 + $0x18] sm:$0xff] (!%p209_p3)   ;;  %vm397_vm0 = vcmask (!%p209_p3), 261120  }
   0x7   : > { %212 = sbr.rel (%p209_p3) target bundleno = 525 (0x20d), region = 36  ;;  %3756 = vmatprep.subr.bf16.mxu1 (!%p209_p3), %v4365_v0  ;;  %3900 = vmatprep.subr.bf16.mxu0 (!%p209_p3), %v4456_v1  ;;  %v4467_v3 = vld [vmem:[%s5157_s1 + $0x48] sm:$0xff] (!%p209_p3)   ;;  %v4369_v4 = vld [vmem:[%s5157_s1] sm:$0xff] (!%p209_p3)   ;;  %v4370_v5 = vld [vmem:[%s5157_s1 + $0x50] sm:$0xff] (!%p209_p3)  }
   0x8   : > { %3757 = vmatpush3.bf16.msra.mxu1 (!%p209_p3), %v4365_v0  ;;  %3901 = vmatpush3.bf16.msra.mxu0 (!%p209_p3), %v4456_v1  ;;  %v4371_v18 = vld [vmem:[%s5157_s1 + $0x58] sm:$0xff] (!%p209_p3)   ;;  %v4372_v23 = vld [vmem:[%s5157_s1 + $0x8] sm:$0xff] (!%p209_p3)   ;;  %v4373_v25 = vld [vmem:[%s5157_s1 + $0x60] sm:$0xff] (!%p209_p3)  }
   0x9   : > { %3758 = vmatprep.subr.bf16.mxu1 (!%p209_p3), %v4367_v2  ;;  %3902 = vmatprep.subr.bf16.mxu0 (!%p209_p3), %v4467_v3  ;;  %v4543_v33 = vld [vmem:[%s5157_s1 + $0x20] sm:$0xff] (!%p209_p3)   ;;  %v4375_v52 = vld [vmem:[%s5157_s1 + $0x68] sm:$0xff] (!%p209_p3)   ;;  %v4606_v61 = vld [vmem:[%s5157_s1 + $0x70] sm:$0xff] (!%p209_p3)  }
   0xc   : > { %3759 = vmatpush3.bf16.msra.mxu1 (!%p209_p3), %v4367_v2  ;;  %3903 = vmatpush3.bf16.msra.mxu0 (!%p209_p3), %v4467_v3 }
   0xd   : > { %3792 = vmatprep.subr.bf16.mxu1 (!%p209_p3), %v4369_v4  ;;  %3936 = vmatprep.subr.bf16.mxu0 (!%p209_p3), %v4370_v5 }
   0xe   : > { %s5166_s15 = smov (!%p252_p4, %s4397_s15), 1 }
   0xf   : > { %s4340_s27 = smul.u32 432, %s5166_s15 }
  0x11   : > { %s4481_s8 = scalar_lea.vmem %s5156_s0, %s4340_s27 }
  0x12   : > { %v333_v6 = vld [vmem:[%s4481_s8 + $0x1] sm:$0xff]  ;;  %v334_v7 = vld [vmem:[%s4481_s8 + $0x9] sm:$0xff]  ;;  %v3339_v8 = vld [vmem:[%s4481_s8 + $0x19] sm:$0xff] }
  0x13   : > { %v365_v9 = vpack.c.bf16 %v334_v7, %v333_v6  ;;  %v3340_v10 = vld [vmem:[%s4481_s8 + $0x21] sm:$0xff]  ;;  %v3341_v11 = vld [vmem:[%s4481_s8 + $0x31] sm:$0xff]  ;;  %v3342_v12 = vld [vmem:[%s4481_s8 + $0x39] sm:$0xff] }
  0x14   : > { %v1471_v13 = vpack.c.bf16 %v3340_v10, %v3339_v8  ;;  %v4490_v14 = vpack.c.bf16 %v3342_v12, %v3341_v11  ;;  %v3343_v15 = vld [vmem:[%s4481_s8 + $0x49] sm:$0xff]  ;;  %v3344_v16 = vld [vmem:[%s4481_s8 + $0x51] sm:$0xff]  ;;  %v3345_v19 = vld [vmem:[%s4481_s8 + $0x61] sm:$0xff] }
  0x15   : > { %3760 = vmatprep.mubr.msk.bf16.mxu1 %vm397_vm0, %v365_v9  ;;  %v4495_v17 = vpack.c.bf16 %v3344_v16, %v3343_v15  ;;  %v3346_v20 = vld [vmem:[%s4481_s8 + $0x69] sm:$0xff]  ;;  %v3347_v21 = vld [vmem:[%s4481_s8 + $0x79] sm:$0xff]  ;;  %v3348_v22 = vld [vmem:[%s4481_s8 + $0x81] sm:$0xff] }
  0x16   : > { %3904 = vmatprep.mubr.msk.bf16.mxu0 %vm397_vm0, %v1471_v13  ;;  %3761 = vmatmul.mubr.msk.bf16.vlgmr.msra.gmra.mrb[0].mxu1 %vm397_vm0, %v1471_v13  ;;  %v4515_v24 = vpack.c.bf16 %v3346_v20, %v3345_v19  ;;  %v4520_v26 = vpack.c.bf16 %v3348_v22, %v3347_v21  ;;  %v3349_v27 = vld [vmem:[%s4481_s8 + $0x91] sm:$0xff]  ;;  %v3350_v28 = vld [vmem:[%s4481_s8 + $0x99] sm:$0xff]  ;;  %v3351_v29 = vld [vmem:[%s4481_s8 + $0xa9] sm:$0xff] }
  0x17   : > { %3905 = vmatmul.mubr.msk.bf16.vlgmr.msra.gmra.mrb[0].mxu0 %vm397_vm0, %v4490_v14  ;;  %3793 = vmatpush3.bf16.msra.mxu1 %v4369_v4  ;;  %v3352_v30 = vld [vmem:[%s4481_s8 + $0xb1] sm:$0xff]  ;;  %v4534_v31 = vpack.c.bf16 %v3350_v28, %v3349_v27  ;;  %v3353_v34 = vld [vmem:[%s4481_s8 + $0xc1] sm:$0xff]  ;;  %v3354_v35 = vld [vmem:[%s4481_s8 + $0xc9] sm:$0xff] }
  0x18   : > { %3937 = vmatpush3.bf16.msra.mxu0 %v4370_v5  ;;  %3764 = vmatprep.mubr.msk.bf16.mxu1 %vm397_vm0, %v4490_v14  ;;  %v4536_v32 = vpack.c.bf16 %v3352_v30, %v3351_v29  ;;  %v3389_v36 = vld [vmem:[%s4481_s8 + $0x1a] sm:$0xff]  ;;  %v3390_v37 = vld [vmem:[%s4481_s8 + $0x22] sm:$0xff]  ;;  %v4556_v38 = vpack.c.bf16 %v3354_v35, %v3353_v34  ;;  %v3391_v42 = vld [vmem:[%s4481_s8 + $0x32] sm:$0xff] }
  0x19   : > { %3908 = vmatprep.mubr.msk.bf16.mxu0 %vm397_vm0, %v4495_v17  ;;  %3938 = vmatprep.subr.bf16.mxu0 %v4371_v18  ;;  %v4558_v39 = vpack.c.bf16 %v3390_v37, %v3389_v36  ;;  %v351_v40 = vld [vmem:[%s4481_s8 + $0xd9] sm:$0xff]  ;;  %v352_v41 = vld [vmem:[%s4481_s8 + $0xe1] sm:$0xff]  ;;  %v353_v44 = vld [vmem:[%s4481_s8 + $0xf1] sm:$0xff] }
  0x1a   : > { %3794 = vmatprep.subr.bf16.mxu1 %v4372_v23  ;;  %v3392_v43 = vld [vmem:[%s4481_s8 + $0x3a] sm:$0xff]  ;;  %v3393_v46 = vld [vmem:[%s4481_s8 + $0x4a] sm:$0xff]  ;;  %v3394_v47 = vld [vmem:[%s4481_s8 + $0x52] sm:$0xff]  ;;  %v4576_v48 = vpack.c.bf16 %v352_v41, %v351_v40 }
  0x1b   : > { %3795 = vmatpush3.bf16.msra.mxu1 %v4372_v23  ;;  %v354_v45 = vld [vmem:[%s4481_s8 + $0xf9] sm:$0xff]  ;;  %v4578_v49 = vpack.c.bf16 %v3392_v43, %v3391_v42  ;;  %v4582_v51 = vpack.c.bf16 %v3394_v47, %v3393_v46  ;;  %v355_v53 = vld [vmem:[%s4481_s8 + $0x109] sm:$0xff]  ;;  %v356_v54 = vld [vmem:[%s4481_s8 + $0x111] sm:$0xff] }
  0x1c   : > { %3939 = vmatpush3.bf16.msra.mxu0 %v4371_v18  ;;  %3828 = vmatprep.subr.bf16.mxu1 %v4543_v33  ;;  %v4580_v50 = vpack.c.bf16 %v354_v45, %v353_v44  ;;  %v3395_v55 = vld [vmem:[%s4481_s8 + $0x62] sm:$0xff]  ;;  %v3396_v56 = vld [vmem:[%s4481_s8 + $0x6a] sm:$0xff]  ;;  %v3397_v59 = vld [vmem:[%s4481_s8 + $0x7a] sm:$0xff]  ;;  %v4608_v62 = vpack.c.bf16 %v356_v54, %v355_v53 }
  0x1d   : > { %3972 = vmatprep.subr.bf16.mxu0 %v4373_v25  ;;  %v357_v57 = vld [vmem:[%s4481_s8 + $0x121] sm:$0xff]  ;;  %v358_v58 = vld [vmem:[%s4481_s8 + $0x129] sm:$0xff]  ;;  %v4610_v63 = vpack.c.bf16 %v3396_v56, %v3395_v55  ;;  %v359_v4 = vld [vmem:[%s4481_s8 + $0x139] sm:$0xff] }
  0x1e   : > { %3765 = vmatmul.mubr.msk.bf16.gmra.mrb[4].mxu1 %vm397_vm0, %v4495_v17  ;;  %v3398_v60 = vld [vmem:[%s4481_s8 + $0x82] sm:$0xff]  ;;  %v4612_v0 = vpack.c.bf16 %v358_v58, %v357_v57  ;;  %v3399_v6 = vld [vmem:[%s4481_s8 + $0x92] sm:$0xff]  ;;  %v3400_v7 = vld [vmem:[%s4481_s8 + $0x9a] sm:$0xff] }
  0x1f   : > { %3909 = vmatmul.mubr.msk.bf16.gmra.mrb[4].mxu0 %vm397_vm0, %v4515_v24  ;;  %3768 = vmatprep.mubr.msk.bf16.mxu1 %vm397_vm0, %v4515_v24  ;;  %v4614_v2 = vpack.c.bf16 %v3398_v60, %v3397_v59  ;;  %v360_v5 = vld [vmem:[%s4481_s8 + $0x141] sm:$0xff]  ;;  %v361_v8 = vld [vmem:[%s4481_s8 + $0x151] sm:$0xff]  ;;  %v362_v9 = vld [vmem:[%s4481_s8 + $0x159] sm:$0xff]  ;;  %v4635_v13 = vpack.c.bf16 %v3400_v7, %v3399_v6 }
  0x20   : > { %3912 = vmatprep.mubr.msk.bf16.mxu0 %vm397_vm0, %v4520_v26  ;;  %v3401_v10 = vld [vmem:[%s4481_s8 + $0xaa] sm:$0xff]  ;;  %v3402_v11 = vld [vmem:[%s4481_s8 + $0xb2] sm:$0xff]  ;;  %v4633_v12 = vpack.c.bf16 %v360_v5, %v359_v4  ;;  %v4637_v15 = vpack.c.bf16 %v362_v9, %v361_v8  ;;  %v3403_v20 = vld [vmem:[%s4481_s8 + $0xc2] sm:$0xff] }
  0x21   : > { %v4639_v16 = vpack.c.bf16 %v3402_v11, %v3401_v10  ;;  %v363_v18 = vld [vmem:[%s4481_s8 + $0x169] sm:$0xff]  ;;  %v364_v19 = vld [vmem:[%s4481_s8 + $0x171] sm:$0xff]  ;;  %v281_v22 = vld [vmem:[%s4481_s8] sm:$0xff] }
  0x22   : > { %v3404_v21 = vld [vmem:[%s4481_s8 + $0xca] sm:$0xff]  ;;  %v3406_v27 = vld [vmem:[%s4481_s8 + $0xe2] sm:$0xff]  ;;  %v4657_v28 = vpack.c.bf16 %v364_v19, %v363_v18  ;;  %v283_v35 = vld [vmem:[%s4481_s8 + $0x18] sm:$0xff] }
  0x23   : > { %v282_v23 = vld [vmem:[%s4481_s8 + $0x8] sm:$0xff]  ;;  %v4659_v29 = vpack.c.bf16 %v3404_v21, %v3403_v20  ;;  %v284_v36 = vld [vmem:[%s4481_s8 + $0x20] sm:$0xff]  ;;  %v3407_v37 = vld [vmem:[%s4481_s8 + $0xf2] sm:$0xff] }
  0x24   : > { %v313_v30 = vpack.c.bf16 %v282_v23, %v281_v22  ;;  %v3408_v40 = vld [vmem:[%s4481_s8 + $0xfa] sm:$0xff]  ;;  %v285_v41 = vld [vmem:[%s4481_s8 + $0x30] sm:$0xff]  ;;  %v4678_v45 = vpack.c.bf16 %v284_v36, %v283_v35  ;;  %v4376_v53 = vld [vmem:[%s5157_s1 + $0x28] sm:$0xff]  }
  0x25   : > { %v286_v42 = vld [vmem:[%s4481_s8 + $0x38] sm:$0xff]  ;;  %v3409_v43 = vld [vmem:[%s4481_s8 + $0x10a] sm:$0xff]  ;;  %v4680_v46 = vpack.c.bf16 %v3408_v40, %v3407_v37  ;;  %v3411_v56 = vld [vmem:[%s4481_s8 + $0x122] sm:$0xff] }
  0x26   : > { %3769 = vmatmul.mubr.msk.bf16.gmra.mrb[8].mxu1 %vm397_vm0, %v4520_v26  ;;  %v3410_v44 = vld [vmem:[%s4481_s8 + $0x112] sm:$0xff]  ;;  %v4682_v47 = vpack.c.bf16 %v286_v42, %v285_v41  ;;  %v287_v54 = vld [vmem:[%s4481_s8 + $0x48] sm:$0xff]  ;;  %v289_v58 = vld [vmem:[%s4481_s8 + $0x60] sm:$0xff] }
  0x27   : > { %3913 = vmatmul.mubr.msk.bf16.gmra.mrb[8].mxu0 %vm397_vm0, %v4534_v31  ;;  %3772 = vmatprep.mubr.msk.bf16.mxu1 %vm397_vm0, %v4534_v31  ;;  %v288_v55 = vld [vmem:[%s4481_s8 + $0x50] sm:$0xff]  ;;  %v290_v59 = vld [vmem:[%s4481_s8 + $0x68] sm:$0xff]  ;;  %v291_v9 = vld [vmem:[%s4481_s8 + $0x78] sm:$0xff] }
  0x28   : > { %3916 = vmatprep.mubr.msk.bf16.mxu0 %vm397_vm0, %v4536_v32  ;;  %v3412_v57 = vld [vmem:[%s4481_s8 + $0x12a] sm:$0xff]  ;;  %v3414_v4 = vld [vmem:[%s4481_s8 + $0x142] sm:$0xff]  ;;  %v4711_v5 = vpack.c.bf16 %v288_v55, %v287_v54  ;;  %v4715_v7 = vpack.c.bf16 %v290_v59, %v289_v58  ;;  %v3415_v11 = vld [vmem:[%s4481_s8 + $0x152] sm:$0xff] }
  0x29   : > { %v4707_v60 = vld [vmem:[%s5157_s1 + $0x30] sm:$0xff]   ;;  %v4713_v6 = vpack.c.bf16 %v3412_v57, %v3411_v56  ;;  %v292_v10 = vld [vmem:[%s4481_s8 + $0x80] sm:$0xff]  ;;  %v294_v20 = vld [vmem:[%s4481_s8 + $0x98] sm:$0xff] }
  0x2a   : > { %v3416_v18 = vld [vmem:[%s4481_s8 + $0x15a] sm:$0xff]  ;;  %v293_v19 = vld [vmem:[%s4481_s8 + $0x90] sm:$0xff]  ;;  %v4736_v23 = vpack.c.bf16 %v292_v10, %v291_v9  ;;  %v295_v35 = vld [vmem:[%s4481_s8 + $0xa8] sm:$0xff] }
  0x2b   : > { %v3417_v21 = vld [vmem:[%s4481_s8 + $0x16a] sm:$0xff]  ;;  %v3418_v22 = vld [vmem:[%s4481_s8 + $0x172] sm:$0xff]  ;;  %v3419_v37 = vld [vmem:[%s4481_s8 + $0x182] sm:$0xff] }
  0x2c   : > { %v296_v36 = vld [vmem:[%s4481_s8 + $0xb0] sm:$0xff]  ;;  %v297_v41 = vld [vmem:[%s4481_s8 + $0xc0] sm:$0xff]  ;;  %v298_v42 = vld [vmem:[%s4481_s8 + $0xc8] sm:$0xff] }
  0x2d   : > { %v3420_v40 = vld [vmem:[%s4481_s8 + $0x18a] sm:$0xff]  ;;  %v299_v54 = vld [vmem:[%s4481_s8 + $0xd8] sm:$0xff]  ;;  %v300_v55 = vld [vmem:[%s4481_s8 + $0xe0] sm:$0xff] }
  0x2e   : > { %3773 = vmatmul.mubr.msk.bf16.gmra.mrb[12].mxu1 %vm397_vm0, %v4536_v32  ;;  %v301_v56 = vld [vmem:[%s4481_s8 + $0xf0] sm:$0xff]  ;;  %v302_v57 = vld [vmem:[%s4481_s8 + $0xf8] sm:$0xff]  ;;  %v4776_v58 = vpack.c.bf16 %v300_v55, %v299_v54  ;;  %v305_v10 = vld [vmem:[%s4481_s8 + $0x120] sm:$0xff] }
  0x2f   : > { %3917 = vmatmul.mubr.msk.bf16.gmra.mrb[12].mxu0 %vm397_vm0, %v4556_v38  ;;  %3776 = vmatprep.mubr.msk.bf16.mxu1 %vm397_vm0, %v4556_v38  ;;  %v4778_v59 = vpack.c.bf16 %v302_v57, %v301_v56  ;;  %v304_v9 = vld [vmem:[%s4481_s8 + $0x110] sm:$0xff]  ;;  %v4380_v57 = vld [vmem:[%s5157_s1 + $0x38] sm:$0xff]  }
  0x30   : > { %3940 = vmatprep.mubr.msk.bf16.mxu0 %vm397_vm0, %v4558_v39  ;;  %v829_v54 = vld [vmem:[%s4481_s8 + $0xa] sm:$0xff] }
  0x36   : > { %3777 = vmatmul.mubr.msk.bf16.gmra.mrb[16].mxu1 %vm397_vm0, %v4576_v48 }
  0x37   : > { %3941 = vmatmul.mubr.msk.bf16.vlgmr.msra.gmra.mrb[0].mxu0 %vm397_vm0, %v4578_v49  ;;  %3780 = vmatprep.mubr.msk.bf16.mxu1 %vm397_vm0, %v4580_v50 }
  0x38   : > { %3973 = vmatpush3.bf16.msra.mxu0 %v4373_v25  ;;  %3944 = vmatprep.mubr.msk.bf16.mxu0 %vm397_vm0, %v4582_v51  ;;  %v3405_v25 = vld [vmem:[%s4481_s8 + $0xda] sm:$0xff] }
  0x39   : > { %3974 = vmatprep.subr.bf16.mxu0 %v4375_v52  ;;  %v4661_v34 = vpack.c.bf16 %v3406_v27, %v3405_v25  ;;  %v4738_v25 = vpack.c.bf16 %v3416_v18, %v3415_v11  ;;  %v4740_v27 = vpack.c.bf16 %v294_v20, %v293_v19  ;;  %v306_v11 = vld [vmem:[%s4481_s8 + $0x128] sm:$0xff]  ;;  %v4381_v18 = vld [vmem:[%s5157_s1 + $0x80] sm:$0xff]  }
  0x3a   : > { %v4801_v20 = vpack.c.bf16 %v306_v11, %v305_v10  ;;  %v4382_v11 = vld [vmem:[%s5157_s1 + $0x88] sm:$0xff]  }
  0x3c   : > { %3975 = vmatpush3.bf16.msra.mxu0 %v4375_v52  ;;  %v4684_v52 = vpack.c.bf16 %v3410_v44, %v3409_v43  ;;  %v4758_v43 = vpack.c.bf16 %v296_v36, %v295_v35  ;;  %v4760_v44 = vpack.c.bf16 %v3420_v40, %v3419_v37  ;;  %v310_v35 = vld [vmem:[%s4481_s8 + $0x158] sm:$0xff]  ;;  %v311_v40 = vld [vmem:[%s4481_s8 + $0x168] sm:$0xff] }
  0x3d   : > { %4008 = vmatprep.subr.bf16.mxu0 %v4606_v61 }
  0x3e   : > { %3781 = vmatmul.mubr.msk.bf16.gmra.mrb[20].mxu1 %vm397_vm0, %v4608_v62 }
  0x3f   : > { %3945 = vmatmul.mubr.msk.bf16.gmra.mrb[4].mxu0 %vm397_vm0, %v4610_v63  ;;  %3784 = vmatprep.mubr.msk.bf16.mxu1 %vm397_vm0, %v4612_v0 }
  0x40   : > { %3948 = vmatprep.mubr.msk.bf16.mxu0 %vm397_vm0, %v4614_v2 }
  0x46   : > { %3785 = vmatmul.mubr.msk.bf16.gmra.mrb[24].mxu1 %vm397_vm0, %v4633_v12 }
  0x47   : > { %3949 = vmatmul.mubr.msk.bf16.gmra.mrb[8].mxu0 %vm397_vm0, %v4635_v13  ;;  %3788 = vmatprep.mubr.msk.bf16.mxu1 %vm397_vm0, %v4637_v15 }
  0x48   : > { %3952 = vmatprep.mubr.msk.bf16.mxu0 %vm397_vm0, %v4639_v16 }
  0x4e   : > { %3789 = vmatmul.mubr.msk.bf16.gmra.mrb[28].mxu1 %vm397_vm0, %v4657_v28 }
  0x4f   : > { %3953 = vmatmul.mubr.msk.bf16.gmra.mrb[12].mxu0 %vm397_vm0, %v4659_v29  ;;  %3796 = vmatprep.mubr.msk.bf16.mxu1 %vm397_vm0, %v313_v30  ;;  %v4742_v30 = vpack.c.bf16 %v3418_v22, %v3417_v21  ;;  %v308_v21 = vld [vmem:[%s4481_s8 + $0x140] sm:$0xff]  ;;  %v309_v22 = vld [vmem:[%s4481_s8 + $0x150] sm:$0xff] }
  0x50   : > { %3956 = vmatprep.mubr.msk.bf16.mxu0 %vm397_vm0, %v4661_v34  ;;  %v4817_v37 = vpack.c.bf16 %v310_v35, %v309_v22 }
  0x56   : > { %3797 = vmatmul.mubr.msk.bf16.vlgmr.msra.gmra.mrb[0].mxu1 %vm397_vm0, %v4678_v45 }
  0x57   : > { %3957 = vmatmul.mubr.msk.bf16.gmra.mrb[16].mxu0 %vm397_vm0, %v4680_v46  ;;  %3829 = vmatpush3.bf16.msra.mxu1 %v4543_v33  ;;  %v3413_v33 = vld [vmem:[%s4481_s8 + $0x13a] sm:$0xff] }
  0x58   : > { %3800 = vmatprep.mubr.msk.bf16.mxu1 %vm397_vm0, %v4682_v47  ;;  %3960 = vmatprep.mubr.msk.bf16.mxu0 %vm397_vm0, %v4684_v52  ;;  %v4717_v8 = vpack.c.bf16 %v3414_v4, %v3413_v33  ;;  %v4379_v33 = vld [vmem:[%s5157_s1 + $0x78] sm:$0xff]   ;;  %v303_v4 = vld [vmem:[%s4481_s8 + $0x108] sm:$0xff] }
  0x59   : > { %3830 = vmatprep.subr.bf16.mxu1 %v4376_v53  ;;  %v4799_v19 = vpack.c.bf16 %v304_v9, %v303_v4  ;;  %v3469_v4 = vld [vmem:[%s4481_s8 + $0x198] sm:$0xff]  ;;  %v3470_v9 = vld [vmem:[%s4481_s8 + $0x1a0] sm:$0xff] }
  0x5a   : > { %v2097_v10 = vpack.c.bf16 %v3470_v9, %v3469_v4 }
  0x5b   : > { %3831 = vmatpush3.bf16.msra.mxu1 %v4376_v53  ;;  %v4762_v53 = vpack.c.bf16 %v298_v42, %v297_v41  ;;  %v312_v41 = vld [vmem:[%s4481_s8 + $0x170] sm:$0xff]  ;;  %v828_v42 = vld [vmem:[%s4481_s8 + $0x2] sm:$0xff] }
  0x5c   : > { %3864 = vmatprep.subr.bf16.mxu1 %v4707_v60  ;;  %v4831_v55 = vpack.c.bf16 %v312_v41, %v311_v40  ;;  %v860_v56 = vpack.c.bf16 %v829_v54, %v828_v42 }
  0x5e   : > { %3801 = vmatmul.mubr.msk.bf16.gmra.mrb[4].mxu1 %vm397_vm0, %v4711_v5 }
  0x5f   : > { %3961 = vmatmul.mubr.msk.bf16.gmra.mrb[20].mxu0 %vm397_vm0, %v4713_v6  ;;  %3804 = vmatprep.mubr.msk.bf16.mxu1 %vm397_vm0, %v4715_v7 }
  0x60   : > { %3964 = vmatprep.mubr.msk.bf16.mxu0 %vm397_vm0, %v4717_v8 }
  0x66   : > { %3805 = vmatmul.mubr.msk.bf16.gmra.mrb[8].mxu1 %vm397_vm0, %v4736_v23 }
  0x67   : > { %3965 = vmatmul.mubr.msk.bf16.gmra.mrb[24].mxu0 %vm397_vm0, %v4738_v25  ;;  %3808 = vmatprep.mubr.msk.bf16.mxu1 %vm397_vm0, %v4740_v27 }
  0x68   : > { %3968 = vmatprep.mubr.msk.bf16.mxu0 %vm397_vm0, %v4742_v30 }
  0x6e   : > { %3809 = vmatmul.mubr.msk.bf16.gmra.mrb[12].mxu1 %vm397_vm0, %v4758_v43 }
  0x6f   : > { %3969 = vmatmul.mubr.msk.bf16.gmra.mrb[28].mxu0 %vm397_vm0, %v4760_v44  ;;  %3812 = vmatprep.mubr.msk.bf16.mxu1 %vm397_vm0, %v4762_v53 }
  0x70   : > { %3976 = vmatprep.mubr.msk.bf16.mxu0 %vm397_vm0, %v4682_v47 }
  0x76   : > { %3813 = vmatmul.mubr.msk.bf16.gmra.mrb[16].mxu1 %vm397_vm0, %v4776_v58 }
  0x77   : > { %3977 = vmatmul.mubr.msk.bf16.vlgmr.msra.gmra.mrb[0].mxu0 %vm397_vm0, %v4711_v5  ;;  %3816 = vmatprep.mubr.msk.bf16.mxu1 %vm397_vm0, %v4778_v59 }
  0x78   : > { %4009 = vmatpush3.bf16.msra.mxu0 %v4606_v61  ;;  %3980 = vmatprep.mubr.msk.bf16.mxu0 %vm397_vm0, %v4715_v7  ;;  %v307_v61 = vld [vmem:[%s4481_s8 + $0x138] sm:$0xff] }
  0x79   : > { %4010 = vmatprep.subr.bf16.mxu0 %v4379_v33  ;;  %v4815_v36 = vpack.c.bf16 %v308_v21, %v307_v61 }
  0x7c   : > { %4011 = vmatpush3.bf16.msra.mxu0 %v4379_v33 }
  0x7d   : > { %4044 = vmatprep.subr.bf16.mxu0 %v4381_v18 }
  0x7e   : > { %3817 = vmatmul.mubr.msk.bf16.gmra.mrb[20].mxu1 %vm397_vm0, %v4799_v19 }
  0x7f   : > { %3981 = vmatmul.mubr.msk.bf16.gmra.mrb[4].mxu0 %vm397_vm0, %v4736_v23  ;;  %3820 = vmatprep.mubr.msk.bf16.mxu1 %vm397_vm0, %v4801_v20 }
  0x80   : > { %3984 = vmatprep.mubr.msk.bf16.mxu0 %vm397_vm0, %v4740_v27 }
  0x86   : > { %3821 = vmatmul.mubr.msk.bf16.gmra.mrb[24].mxu1 %vm397_vm0, %v4815_v36 }
  0x87   : > { %3985 = vmatmul.mubr.msk.bf16.gmra.mrb[8].mxu0 %vm397_vm0, %v4758_v43  ;;  %3824 = vmatprep.mubr.msk.bf16.mxu1 %vm397_vm0, %v4817_v37 }
  0x88   : > { %3988 = vmatprep.mubr.msk.bf16.mxu0 %vm397_vm0, %v4762_v53 }
  0x8e   : > { %3825 = vmatmul.mubr.msk.bf16.gmra.mrb[28].mxu1 %vm397_vm0, %v4831_v55 }
  0x8f   : > { %3989 = vmatmul.mubr.msk.bf16.gmra.mrb[12].mxu0 %vm397_vm0, %v4776_v58  ;;  %3832 = vmatprep.mubr.msk.bf16.mxu1 %vm397_vm0, %v860_v56 }
  0x90   : > { %3992 = vmatprep.mubr.msk.bf16.mxu0 %vm397_vm0, %v4778_v59 }
  0x96   : > { %3833 = vmatmul.mubr.msk.bf16.vlgmr.msra.gmra.mrb[0].mxu1 %vm397_vm0, %v4558_v39  ;;  %v3467_v39 = vld [vmem:[%s4481_s8 + $0x180] sm:$0xff] }
  0x97   : > { %3993 = vmatmul.mubr.msk.bf16.gmra.mrb[16].mxu0 %vm397_vm0, %v4799_v19  ;;  %3865 = vmatpush3.bf16.msra.mxu1 %v4707_v60  ;;  %v3468_v60 = vld [vmem:[%s4481_s8 + $0x188] sm:$0xff] }
  0x98   : > { %3836 = vmatprep.mubr.msk.bf16.mxu1 %vm397_vm0, %v4578_v49  ;;  %3996 = vmatprep.mubr.msk.bf16.mxu0 %vm397_vm0, %v4801_v20  ;;  %v4863_v33 = vpack.c.bf16 %v3468_v60, %v3467_v39 }
  0x99   : > { %3866 = vmatprep.subr.bf16.mxu1 %v4380_v57 }
  0x9b   : > { %3867 = vmatpush3.bf16.msra.mxu1 %v4380_v57 }
  0x9c   : > { %4080 = vmatprep.subr.bf16.mxu1 %v4456_v1 }
  0x9e   : > { %3837 = vmatmul.mubr.msk.bf16.gmra.mrb[4].mxu1 %vm397_vm0, %v4582_v51 }
  0x9f   : > { %3997 = vmatmul.mubr.msk.bf16.gmra.mrb[20].mxu0 %vm397_vm0, %v4815_v36  ;;  %3840 = vmatprep.mubr.msk.bf16.mxu1 %vm397_vm0, %v4610_v63 }
  0xa0   : > { %4000 = vmatprep.mubr.msk.bf16.mxu0 %vm397_vm0, %v4817_v37 }
  0xa6   : > { %3841 = vmatmul.mubr.msk.bf16.gmra.mrb[8].mxu1 %vm397_vm0, %v4614_v2 }
  0xa7   : > { %4001 = vmatmul.mubr.msk.bf16.gmra.mrb[24].mxu0 %vm397_vm0, %v4831_v55  ;;  %3844 = vmatprep.mubr.msk.bf16.mxu1 %vm397_vm0, %v4635_v13 }
  0xa8   : > { %4004 = vmatprep.mubr.msk.bf16.mxu0 %vm397_vm0, %v4863_v33 }
  0xae   : > { %3845 = vmatmul.mubr.msk.bf16.gmra.mrb[12].mxu1 %vm397_vm0, %v4639_v16 }
  0xaf   : > { %4005 = vmatmul.mubr.msk.bf16.gmra.mrb[28].mxu0 %vm397_vm0, %v2097_v10  ;;  %3848 = vmatprep.mubr.msk.bf16.mxu1 %vm397_vm0, %v4659_v29 }
  0xb0   : > { %4012 = vmatprep.mubr.msk.bf16.mxu0 %vm397_vm0, %v4490_v14  ;;  %v3518_v14 = vld [vmem:[%s4481_s8 + $0x189] sm:$0xff] }
  0xb6   : > { %3849 = vmatmul.mubr.msk.bf16.gmra.mrb[16].mxu1 %vm397_vm0, %v4661_v34 }
  0xb7   : > { %4013 = vmatmul.mubr.msk.bf16.vlgmr.msra.gmra.mrb[0].mxu0 %vm397_vm0, %v4495_v17  ;;  %3852 = vmatprep.mubr.msk.bf16.mxu1 %vm397_vm0, %v4680_v46 }
  0xb8   : > { %4045 = vmatpush3.bf16.msra.mxu0 %v4381_v18  ;;  %4016 = vmatprep.mubr.msk.bf16.mxu0 %vm397_vm0, %v4515_v24  ;;  %v3520_v24 = vld [vmem:[%s4481_s8 + $0x1a1] sm:$0xff] }
  0xb9   : > { %4046 = vmatprep.subr.bf16.mxu0 %v4382_v11 }
  0xbc   : > { %4047 = vmatpush3.bf16.msra.mxu0 %v4382_v11 }
  0xbe   : > { %3853 = vmatmul.mubr.msk.bf16.gmra.mrb[20].mxu1 %vm397_vm0, %v4684_v52 }
  0xbf   : > { %4017 = vmatmul.mubr.msk.bf16.gmra.mrb[4].mxu0 %vm397_vm0, %v4520_v26  ;;  %3856 = vmatprep.mubr.msk.bf16.mxu1 %vm397_vm0, %v4713_v6 }
  0xc0   : > { %4020 = vmatprep.mubr.msk.bf16.mxu0 %vm397_vm0, %v4534_v31  ;;  %v3569_v31 = vld [vmem:[%s4481_s8 + $0x19a] sm:$0xff] }
  0xc6   : > { %3857 = vmatmul.mubr.msk.bf16.gmra.mrb[24].mxu1 %vm397_vm0, %v4717_v8 }
  0xc7   : > { %4021 = vmatmul.mubr.msk.bf16.gmra.mrb[8].mxu0 %vm397_vm0, %v4536_v32  ;;  %3860 = vmatprep.mubr.msk.bf16.mxu1 %vm397_vm0, %v4738_v25  ;;  %v3570_v32 = vld [vmem:[%s4481_s8 + $0x1a2] sm:$0xff] }
  0xc8   : > { %4024 = vmatprep.mubr.msk.bf16.mxu0 %vm397_vm0, %v4556_v38  ;;  %v2707_v38 = vpack.c.bf16 %v3570_v32, %v3569_v31 }
  0xce   : > { %3861 = vmatmul.mubr.msk.bf16.gmra.mrb[28].mxu1 %vm397_vm0, %v4742_v30 }
  0xcf   : > { %4025 = vmatmul.mubr.msk.bf16.gmra.mrb[12].mxu0 %vm397_vm0, %v4576_v48  ;;  %3868 = vmatprep.mubr.msk.bf16.mxu1 %vm397_vm0, %v4678_v45 }
  0xd0   : > { %4028 = vmatprep.mubr.msk.bf16.mxu0 %vm397_vm0, %v4580_v50 }
  0xd6   : > { %3869 = vmatmul.mubr.msk.bf16.vlgmr.msra.gmra.mrb[0].mxu1 %vm397_vm0, %v4682_v47  ;;  %v5037_v47 = vld [vmem:[%s5158_s2] ss:$0 sm:$0xff] }
  0xd7   : > { %4029 = vmatmul.mubr.msk.bf16.gmra.mrb[16].mxu0 %vm397_vm0, %v4608_v62  ;;  %4082 = vmatpush3.bf16.msra.mxu1 %v4456_v1  ;;  %v3517_v1 = vld [vmem:[%s4481_s8 + $0x181] sm:$0xff] }
  0xd8   : > { %3872 = vmatprep.mubr.msk.bf16.mxu1 %vm397_vm0, %v4711_v5  ;;  %4032 = vmatprep.mubr.msk.bf16.mxu0 %vm397_vm0, %v4612_v0  ;;  %v2401_v17 = vpack.c.bf16 %v3518_v14, %v3517_v1 }
  0xd9   : > { %4081 = vmatprep.subr.bf16.mxu1 %v4467_v3 }
  0xdb   : > { %4083 = vmatpush3.bf16.msra.mxu1 %v4467_v3  ;;  %v3519_v3 = vld [vmem:[%s4481_s8 + $0x199] sm:$0xff]  ;;  %s3592_s8 = sshll.u32 %s5166_s15, 8 }
  0xdc   : > { %v2402_v26 = vpack.c.bf16 %v3520_v24, %v3519_v3  ;;  %s5032_s14 = scalar_lea.vmem %s5159_s3, %s3592_s8  ;;  %s5045_s22 = scalar_lea.vmem %s5160_s4, %s3592_s8 }
  0xdd   : > { %v3005_v18 = vld [vmem:[%s5032_s14 + $0x8] sm:$0xff]  ;;  %v3008_v54 = vld [vmem:[%s5032_s14 + $0x20] sm:$0xff]  ;;  %v3011_v39 = vld [vmem:[%s5032_s14 + $0x38] sm:$0xff] }
  0xde   : > { %3873 = vmatmul.mubr.msk.bf16.gmra.mrb[4].mxu1 %vm397_vm0, %v4715_v7  ;;  %v3009_v9 = vld [vmem:[%s5032_s14 + $0x28] sm:$0xff] }
  0xdf   : > { %4033 = vmatmul.mubr.msk.bf16.gmra.mrb[20].mxu0 %vm397_vm0, %v4633_v12  ;;  %3876 = vmatprep.mubr.msk.bf16.mxu1 %vm397_vm0, %v4736_v23 }
  0xe0   : > { %4036 = vmatprep.mubr.msk.bf16.mxu0 %vm397_vm0, %v4637_v15 }
  0xe6   : > { %3877 = vmatmul.mubr.msk.bf16.gmra.mrb[8].mxu1 %vm397_vm0, %v4740_v27 }
  0xe7   : > { %4037 = vmatmul.mubr.msk.bf16.gmra.mrb[24].mxu0 %vm397_vm0, %v4657_v28  ;;  %3880 = vmatprep.mubr.msk.bf16.mxu1 %vm397_vm0, %v4758_v43 }
  0xe8   : > { %4040 = vmatprep.mubr.msk.bf16.mxu0 %vm397_vm0, %v2401_v17 }
  0xee   : > { %3881 = vmatmul.mubr.msk.bf16.gmra.mrb[12].mxu1 %vm397_vm0, %v4762_v53 }
  0xef   : > { %4041 = vmatmul.mubr.msk.bf16.gmra.mrb[28].mxu0 %vm397_vm0, %v2402_v26  ;;  %3884 = vmatprep.mubr.msk.bf16.mxu1 %vm397_vm0, %v4776_v58  ;;  %v3014_v26 = vld [vmem:[%s5032_s14 + $0x50] sm:$0xff] }
  0xf0   : > { %4048 = vmatprep.mubr.msk.bf16.mxu0 %vm397_vm0, %v4578_v49 }
  0xf6   : > { %3885 = vmatmul.mubr.msk.bf16.gmra.mrb[16].mxu1 %vm397_vm0, %v4778_v59 }
  0xf7   : > { %4049 = vmatmul.mubr.msk.bf16.vlgmr.msra.gmra.mrb[0].mxu0 %vm397_vm0, %v4582_v51  ;;  %3888 = vmatprep.mubr.msk.bf16.mxu1 %vm397_vm0, %v4799_v19 }
  0xf8   : > { %4052 = vmatprep.mubr.msk.bf16.mxu0 %vm397_vm0, %v4610_v63 }
  0xfe   : > { %3889 = vmatmul.mubr.msk.bf16.gmra.mrb[20].mxu1 %vm397_vm0, %v4801_v20 }
  0xff   : > { %4053 = vmatmul.mubr.msk.bf16.gmra.mrb[4].mxu0 %vm397_vm0, %v4614_v2  ;;  %3892 = vmatprep.mubr.msk.bf16.mxu1 %vm397_vm0, %v4815_v36 }
 0x100   : > { %4056 = vmatprep.mubr.msk.bf16.mxu0 %vm397_vm0, %v4635_v13 }
 0x106   : > { %3893 = vmatmul.mubr.msk.bf16.gmra.mrb[24].mxu1 %vm397_vm0, %v4817_v37  ;;  %v3010_v37 = vld [vmem:[%s5032_s14 + $0x30] sm:$0xff] }
 0x107   : > { %4057 = vmatmul.mubr.msk.bf16.gmra.mrb[8].mxu0 %vm397_vm0, %v4639_v16  ;;  %3896 = vmatprep.mubr.msk.bf16.mxu1 %vm397_vm0, %v4831_v55 }
 0x108   : > { %4060 = vmatprep.mubr.msk.bf16.mxu0 %vm397_vm0, %v4659_v29 }
 0x10e   : > { %3897 = vmatmul.mubr.msk.bf16.gmra.mrb[28].mxu1 %vm397_vm0, %v4863_v33 }
 0x10f   : > { %4061 = vmatmul.mubr.msk.bf16.gmra.mrb[12].mxu0 %vm397_vm0, %v4661_v34  ;;  %3920 = vmatprep.mubr.msk.bf16.mxu1 %vm397_vm0, %v4576_v48 }
 0x110   : > { %4064 = vmatprep.mubr.msk.bf16.mxu0 %vm397_vm0, %v4680_v46 }
 0x116   : > { %3921 = vmatmul.mubr.msk.bf16.vlgmr.msra.gmra.mrb[16].mxu1 %vm397_vm0, %v4580_v50 }
 0x117   : > { %4065 = vmatmul.mubr.msk.bf16.gmra.mrb[16].mxu0 %vm397_vm0, %v4684_v52  ;;  %3924 = vmatprep.mubr.msk.bf16.mxu1 %vm397_vm0, %v4608_v62 }
 0x118   : > { %4068 = vmatprep.mubr.msk.bf16.mxu0 %vm397_vm0, %v4713_v6  ;;  %v3006_v6 = vld [vmem:[%s5032_s14 + $0x10] sm:$0xff] }
 0x11e   : > { %3925 = vmatmul.mubr.msk.bf16.gmra.mrb[20].mxu1 %vm397_vm0, %v4612_v0 }
 0x11f   : > { %4069 = vmatmul.mubr.msk.bf16.gmra.mrb[20].mxu0 %vm397_vm0, %v4717_v8  ;;  %3928 = vmatprep.mubr.msk.bf16.mxu1 %vm397_vm0, %v4633_v12 }
 0x120   : > { %4072 = vmatprep.mubr.msk.bf16.mxu0 %vm397_vm0, %v4738_v25  ;;  %v3004_v25 = vld [vmem:[%s5032_s14] sm:$0xff] }
 0x126   : > { %3929 = vmatmul.mubr.msk.bf16.gmra.mrb[24].mxu1 %vm397_vm0, %v4637_v15 }
 0x127   : > { %4073 = vmatmul.mubr.msk.bf16.gmra.mrb[24].mxu0 %vm397_vm0, %v4742_v30  ;;  %3932 = vmatprep.mubr.msk.bf16.mxu1 %vm397_vm0, %v4657_v28 }
 0x128   : > { %4076 = vmatprep.mubr.msk.bf16.mxu0 %vm397_vm0, %v4760_v44  ;;  %v3007_v44 = vld [vmem:[%s5032_s14 + $0x18] sm:$0xff] }
 0x12e   : > { %3933 = vmatmul.mubr.msk.bf16.gmra.mrb[28].mxu1 %vm397_vm0, %v2401_v17 }
 0x12f   : > { %4077 = vmatmul.mubr.msk.bf16.gmra.mrb[28].mxu0 %vm397_vm0, %v2707_v38 }
 0x1a9   : > { %v3870_v48 = vpop.f32.mrb[0].mxu1 }
 0x1aa   : > { %v1280_v49 = vpop.f32.mrb[1].mxu1 }
 0x1ab   : > { %v3871_v50 = vpop.f32.mrb[2].mxu1 }
 0x1ac   : > { %v1283_v51 = vpop.f32.mrb[3].mxu1 }
 0x1b1   : > { %v3874_v62 = vpop.f32.mrb[4].mxu1 }
 0x1b2   : > { %v1296_v63 = vpop.f32.mrb[5].mxu1 }
 0x1b3   : > { %v3875_v0 = vpop.f32.mrb[6].mxu1 }
 0x1b4   : > { %v1299_v2 = vpop.f32.mrb[7].mxu1 }
 0x1b9   : > { %v3878_v12 = vpop.f32.mrb[8].mxu1 }
 0x1ba   : > { %v5014_v13 = vpop.f32.mrb[9].mxu1 }
 0x1bb   : > { %v5016_v15 = vpop.f32.mrb[10].mxu1 }
 0x1bc   : > { %v5018_v16 = vpop.f32.mrb[11].mxu1 }
 0x1c1   : > { %v5020_v28 = vpop.f32.mrb[12].mxu1 }
 0x1c2   : > { %v5022_v29 = vpop.f32.mrb[13].mxu1 }
 0x1c3   : > { %v5024_v34 = vpop.f32.mrb[14].mxu1 }
 0x1c4   : > { %v5026_v45 = vpop.f32.mrb[15].mxu1 }
 0x1ca   : > { %v4050_v46 = vpop.f32.mrb[0].mxu0 }
 0x1cb   : > { %v4084_v52 = vadd.f32 %v4050_v46, %v3870_v48  ;;  %v2806_v5 = vpop.f32.mrb[1].mxu0  ;;  %v3012_v48 = vld [vmem:[%s5032_s14 + $0x40] sm:$0xff] }
 0x1cc   : > { %v4085_v7 = vadd.f32 %v2806_v5, %v1280_v49  ;;  %v4051_v8 = vpop.f32.mrb[2].mxu0 }
 0x1cd   : > { %v2974_v23 = vadd.f32 %v4084_v52, %v5037_v47  ;;  %v4086_v27 = vadd.f32 %v4051_v8, %v3871_v50  ;;  %v2809_v30 = vpop.f32.mrb[3].mxu0 }
 0x1ce   : > { %v2972_v43 = vadd.f32 %v4085_v7, %v5037_v47  ;;  %v4087_v53 = vadd.f32 %v2809_v30, %v1283_v51 }
 0x1cf   : > { %v3038_v58 = vadd.f32 %v3006_v6, %v2974_v23  ;;  %v2975_v59 = vadd.f32 %v4086_v27, %v5037_v47  ;;  %v3016_v27 = vld [vmem:[%s5032_s14 + $0x60] sm:$0xff] }
 0x1d0   : > { %v3036_v19 = vadd.f32 %v3004_v25, %v2972_v43  ;;  %v2973_v20 = vadd.f32 %v4087_v53, %v5037_v47  ;;  %v3019_v53 = vld [vmem:[%s5032_s14 + $0x78] sm:$0xff] }
 0x1d1   : > { %3070 = vst [vmem:[%s5045_s22 + $0x10] sm:$0xff] %v3038_v58  ;;  %v3039_v61 = vadd.f32 %v3007_v44, %v2975_v59 }
 0x1d2   : > { %3068 = vst [vmem:[%s5045_s22] sm:$0xff] %v3036_v19  ;;  %v3037_v21 = vadd.f32 %v3005_v18, %v2973_v20  ;;  %v4054_v22 = vpop.f32.mrb[4].mxu0 }
 0x1d3   : > { %3071 = vst [vmem:[%s5045_s22 + $0x18] sm:$0xff] %v3039_v61  ;;  %v4088_v35 = vadd.f32 %v4054_v22, %v3874_v62  ;;  %v2822_v36 = vpop.f32.mrb[5].mxu0  ;;  %v3015_v62 = vld [vmem:[%s5032_s14 + $0x58] sm:$0xff] }
 0x1d4   : > { %3069 = vst [vmem:[%s5045_s22 + $0x8] sm:$0xff] %v3037_v21  ;;  %v4089_v40 = vadd.f32 %v2822_v36, %v1296_v63  ;;  %v4055_v41 = vpop.f32.mrb[6].mxu0 }
 0x1d5   : > { %v2978_v42 = vadd.f32 %v4088_v35, %v5037_v47  ;;  %v4090_v55 = vadd.f32 %v4055_v41, %v3875_v0  ;;  %v2825_v56 = vpop.f32.mrb[7].mxu0 }
 0x1d6   : > { %v2976_v57 = vadd.f32 %v4089_v40, %v5037_v47  ;;  %v4091_v60 = vadd.f32 %v2825_v56, %v1299_v2 }
 0x1d7   : > { %v3042_v33 = vadd.f32 %v3010_v37, %v2978_v42  ;;  %v2979_v4 = vadd.f32 %v4090_v55, %v5037_v47  ;;  %v3022_v37 = vld [vmem:[%s5032_s14 + $0x90] sm:$0xff]  ;;  %v3020_v55 = vld [vmem:[%s5032_s14 + $0x80] sm:$0xff] }
 0x1d8   : > { %v3040_v10 = vadd.f32 %v3008_v54, %v2976_v57  ;;  %v2977_v11 = vadd.f32 %v4091_v60, %v5037_v47  ;;  %v3023_v60 = vld [vmem:[%s5032_s14 + $0x98] sm:$0xff] }
 0x1d9   : > { %3074 = vst [vmem:[%s5045_s22 + $0x30] sm:$0xff] %v3042_v33  ;;  %v3043_v1 = vadd.f32 %v3011_v39, %v2979_v4 }
 0x1da   : > { %3072 = vst [vmem:[%s5045_s22 + $0x20] sm:$0xff] %v3040_v10  ;;  %v3041_v14 = vadd.f32 %v3009_v9, %v2977_v11  ;;  %v4058_v17 = vpop.f32.mrb[8].mxu0  ;;  %v3021_v10 = vld [vmem:[%s5032_s14 + $0x88] sm:$0xff] }
 0x1db   : > { %3075 = vst [vmem:[%s5045_s22 + $0x38] sm:$0xff] %v3043_v1  ;;  %v4092_v3 = vadd.f32 %v4058_v17, %v3878_v12  ;;  %v2838_v24 = vpop.f32.mrb[9].mxu0  ;;  %v3013_v12 = vld [vmem:[%s5032_s14 + $0x48] sm:$0xff] }
 0x1dc   : > { %3073 = vst [vmem:[%s5045_s22 + $0x28] sm:$0xff] %v3041_v14  ;;  %v4093_v31 = vadd.f32 %v2838_v24, %v5014_v13  ;;  %v4059_v32 = vpop.f32.mrb[10].mxu0 }
 0x1dd   : > { %v2982_v38 = vadd.f32 %v4092_v3, %v5037_v47  ;;  %v4094_v49 = vadd.f32 %v4059_v32, %v5016_v15  ;;  %v2841_v50 = vpop.f32.mrb[11].mxu0 }
 0x1de   : > { %v2980_v51 = vadd.f32 %v4093_v31, %v5037_v47  ;;  %v4095_v63 = vadd.f32 %v2841_v50, %v5018_v16  ;;  %v3018_v16 = vld [vmem:[%s5032_s14 + $0x70] sm:$0xff] }
 0x1df   : > { %v3046_v0 = vadd.f32 %v3014_v26, %v2982_v38  ;;  %v2983_v2 = vadd.f32 %v4094_v49, %v5037_v47 }
 0x1e0   : > { %v3044_v13 = vadd.f32 %v3012_v48, %v2980_v51  ;;  %v2981_v46 = vadd.f32 %v4095_v63, %v5037_v47  ;;  %v3026_v48 = vld [vmem:[%s5032_s14 + $0xb0] sm:$0xff]  ;;  %v3024_v63 = vld [vmem:[%s5032_s14 + $0xa0] sm:$0xff] }
 0x1e1   : > { %3078 = vst [vmem:[%s5045_s22 + $0x50] sm:$0xff] %v3046_v0  ;;  %v3047_v52 = vadd.f32 %v3015_v62, %v2983_v2 }
 0x1e2   : > { %3076 = vst [vmem:[%s5045_s22 + $0x40] sm:$0xff] %v3044_v13  ;;  %v3045_v15 = vadd.f32 %v3013_v12, %v2981_v46  ;;  %v4062_v5 = vpop.f32.mrb[12].mxu0  ;;  %v3027_v13 = vld [vmem:[%s5032_s14 + $0xb8] sm:$0xff] }
 0x1e3   : > { %3079 = vst [vmem:[%s5045_s22 + $0x58] sm:$0xff] %v3047_v52  ;;  %v4096_v6 = vadd.f32 %v4062_v5, %v5020_v28  ;;  %v2854_v7 = vpop.f32.mrb[13].mxu0  ;;  %v3025_v5 = vld [vmem:[%s5032_s14 + $0xa8] sm:$0xff] }
 0x1e4   : > { %3077 = vst [vmem:[%s5045_s22 + $0x48] sm:$0xff] %v3045_v15  ;;  %v4097_v8 = vadd.f32 %v2854_v7, %v5022_v29  ;;  %v4063_v23 = vpop.f32.mrb[14].mxu0  ;;  %v3017_v29 = vld [vmem:[%s5032_s14 + $0x68] sm:$0xff] }
 0x1e5   : > { %v2986_v25 = vadd.f32 %v4096_v6, %v5037_v47  ;;  %v4098_v30 = vadd.f32 %v4063_v23, %v5024_v34  ;;  %v2857_v43 = vpop.f32.mrb[15].mxu0 }
 0x1e6   : > { %v2984_v44 = vadd.f32 %v4097_v8, %v5037_v47  ;;  %v4099_v28 = vadd.f32 %v2857_v43, %v5026_v45 }
 0x1e7   : > { %v3050_v58 = vadd.f32 %v3018_v16, %v2986_v25  ;;  %v2987_v59 = vadd.f32 %v4098_v30, %v5037_v47 }
 0x1e8   : > { %v3048_v18 = vadd.f32 %v3016_v27, %v2984_v44  ;;  %v2985_v19 = vadd.f32 %v4099_v28, %v5037_v47 }
 0x1e9   : > { %3082 = vst [vmem:[%s5045_s22 + $0x70] sm:$0xff] %v3050_v58  ;;  %v3051_v20 = vadd.f32 %v3019_v53, %v2987_v59  ;;  %v3922_v34 = vpop.f32.mrb[16].mxu1  ;;  %v3030_v53 = vld [vmem:[%s5032_s14 + $0xd0] sm:$0xff] }
 0x1ea   : > { %3080 = vst [vmem:[%s5045_s22 + $0x60] sm:$0xff] %v3048_v18  ;;  %v3049_v61 = vadd.f32 %v3017_v29, %v2985_v19  ;;  %v4066_v21 = vpop.f32.mrb[16].mxu0  ;;  %v1649_v22 = vpop.f32.mrb[17].mxu1  ;;  %v3028_v18 = vld [vmem:[%s5032_s14 + $0xc0] sm:$0xff] }
 0x1eb   : > { %3083 = vst [vmem:[%s5045_s22 + $0x78] sm:$0xff] %v3051_v20  ;;  %v4100_v45 = vadd.f32 %v4066_v21, %v3922_v34  ;;  %v2870_v35 = vpop.f32.mrb[17].mxu0  ;;  %v3923_v36 = vpop.f32.mrb[18].mxu1 }
 0x1ec   : > { %3081 = vst [vmem:[%s5045_s22 + $0x68] sm:$0xff] %v3049_v61  ;;  %v4101_v40 = vadd.f32 %v2870_v35, %v1649_v22  ;;  %v4067_v41 = vpop.f32.mrb[18].mxu0  ;;  %v1652_v42 = vpop.f32.mrb[19].mxu1  ;;  %v3031_v61 = vld [vmem:[%s5032_s14 + $0xd8] sm:$0xff]  ;;  %v3029_v35 = vld [vmem:[%s5032_s14 + $0xc8] sm:$0xff] }
 0x1ed   : > { %v2990_v54 = vadd.f32 %v4100_v45, %v5037_v47  ;;  %v4102_v56 = vadd.f32 %v4067_v41, %v3923_v36  ;;  %v2873_v57 = vpop.f32.mrb[19].mxu0 }
 0x1ee   : > { %v2988_v39 = vadd.f32 %v4101_v40, %v5037_v47  ;;  %v4103_v33 = vadd.f32 %v2873_v57, %v1652_v42 }
 0x1ef   : > { %v3054_v4 = vadd.f32 %v3022_v37, %v2990_v54  ;;  %v2991_v9 = vadd.f32 %v4102_v56, %v5037_v47 }
 0x1f0   : > { %v3052_v11 = vadd.f32 %v3020_v55, %v2988_v39  ;;  %v2989_v1 = vadd.f32 %v4103_v33, %v5037_v47 }
 0x1f1   : > { %3086 = vst [vmem:[%s5045_s22 + $0x90] sm:$0xff] %v3054_v4  ;;  %v3055_v14 = vadd.f32 %v3023_v60, %v2991_v9  ;;  %v3926_v17 = vpop.f32.mrb[20].mxu1  ;;  %v3034_v60 = vld [vmem:[%s5032_s14 + $0xf0] sm:$0xff] }
 0x1f2   : > { %3084 = vst [vmem:[%s5045_s22 + $0x80] sm:$0xff] %v3052_v11  ;;  %v3053_v3 = vadd.f32 %v3021_v10, %v2989_v1  ;;  %v4070_v24 = vpop.f32.mrb[20].mxu0  ;;  %v1665_v26 = vpop.f32.mrb[21].mxu1  ;;  %v3032_v11 = vld [vmem:[%s5032_s14 + $0xe0] sm:$0xff] }
 0x1f3   : > { %3087 = vst [vmem:[%s5045_s22 + $0x98] sm:$0xff] %v3055_v14  ;;  %v4104_v31 = vadd.f32 %v4070_v24, %v3926_v17  ;;  %v2886_v32 = vpop.f32.mrb[21].mxu0  ;;  %v3927_v38 = vpop.f32.mrb[22].mxu1 }
 0x1f4   : > { %3085 = vst [vmem:[%s5045_s22 + $0x88] sm:$0xff] %v3053_v3  ;;  %v4105_v49 = vadd.f32 %v2886_v32, %v1665_v26  ;;  %v4071_v50 = vpop.f32.mrb[22].mxu0  ;;  %v1668_v51 = vpop.f32.mrb[23].mxu1  ;;  %v3035_v3 = vld [vmem:[%s5032_s14 + $0xf8] sm:$0xff]  ;;  %v3033_v32 = vld [vmem:[%s5032_s14 + $0xe8] sm:$0xff] }
 0x1f5   : > { %v2994_v62 = vadd.f32 %v4104_v31, %v5037_v47  ;;  %v4106_v0 = vadd.f32 %v4071_v50, %v3927_v38  ;;  %v2889_v2 = vpop.f32.mrb[23].mxu0 }
 0x1f6   : > { %v2992_v12 = vadd.f32 %v4105_v49, %v5037_v47  ;;  %v4107_v46 = vadd.f32 %v2889_v2, %v1668_v51 }
 0x1f7   : > { %v3058_v52 = vadd.f32 %v3026_v48, %v2994_v62  ;;  %v2995_v15 = vadd.f32 %v4106_v0, %v5037_v47 }
 0x1f8   : > { %v3056_v6 = vadd.f32 %v3024_v63, %v2992_v12  ;;  %v2993_v7 = vadd.f32 %v4107_v46, %v5037_v47 }
 0x1f9   : > { %3090 = vst [vmem:[%s5045_s22 + $0xb0] sm:$0xff] %v3058_v52  ;;  %v3059_v16 = vadd.f32 %v3027_v13, %v2995_v15  ;;  %v3930_v8 = vpop.f32.mrb[24].mxu1 }
 0x1fa   : > { %3088 = vst [vmem:[%s5045_s22 + $0xa0] sm:$0xff] %v3056_v6  ;;  %v3057_v23 = vadd.f32 %v3025_v5, %v2993_v7  ;;  %v4074_v25 = vpop.f32.mrb[24].mxu0  ;;  %v1681_v27 = vpop.f32.mrb[25].mxu1 }
 0x1fb   : > { %3091 = vst [vmem:[%s5045_s22 + $0xb8] sm:$0xff] %v3059_v16  ;;  %v4108_v30 = vadd.f32 %v4074_v25, %v3930_v8  ;;  %v2902_v43 = vpop.f32.mrb[25].mxu0  ;;  %v3931_v44 = vpop.f32.mrb[26].mxu1 }
 0x1fc   : > { %3089 = vst [vmem:[%s5045_s22 + $0xa8] sm:$0xff] %v3057_v23  ;;  %v4109_v28 = vadd.f32 %v2902_v43, %v1681_v27  ;;  %v4075_v58 = vpop.f32.mrb[26].mxu0  ;;  %v1684_v59 = vpop.f32.mrb[27].mxu1 }
 0x1fd   : > { %v2998_v29 = vadd.f32 %v4108_v30, %v5037_v47  ;;  %v4110_v19 = vadd.f32 %v4075_v58, %v3931_v44  ;;  %v2905_v20 = vpop.f32.mrb[27].mxu0 }
 0x1fe   : > { %v2996_v34 = vadd.f32 %v4109_v28, %v5037_v47  ;;  %v4111_v21 = vadd.f32 %v2905_v20, %v1684_v59 }
 0x1ff   : > { %v3062_v22 = vadd.f32 %v3030_v53, %v2998_v29  ;;  %v2999_v45 = vadd.f32 %v4110_v19, %v5037_v47 }
 0x200   : > { %v3060_v36 = vadd.f32 %v3028_v18, %v2996_v34  ;;  %v2997_v37 = vadd.f32 %v4111_v21, %v5037_v47 }
 0x201   : > { %3094 = vst [vmem:[%s5045_s22 + $0xd0] sm:$0xff] %v3062_v22  ;;  %v3063_v40 = vadd.f32 %v3031_v61, %v2999_v45  ;;  %v3934_v41 = vpop.f32.mrb[28].mxu1 }
 0x202   : > { %3092 = vst [vmem:[%s5045_s22 + $0xc0] sm:$0xff] %v3060_v36  ;;  %v3061_v42 = vadd.f32 %v3029_v35, %v2997_v37  ;;  %v4078_v54 = vpop.f32.mrb[28].mxu0  ;;  %v1697_v55 = vpop.f32.mrb[29].mxu1 }
 0x203   : > { %3095 = vst [vmem:[%s5045_s22 + $0xd8] sm:$0xff] %v3063_v40  ;;  %v4112_v56 = vadd.f32 %v4078_v54, %v3934_v41  ;;  %v2918_v57 = vpop.f32.mrb[29].mxu0  ;;  %v3935_v39 = vpop.f32.mrb[30].mxu1 }
 0x204   : > { %3093 = vst [vmem:[%s5045_s22 + $0xc8] sm:$0xff] %v3061_v42  ;;  %v4113_v33 = vadd.f32 %v2918_v57, %v1697_v55  ;;  %v4079_v4 = vpop.f32.mrb[30].mxu0  ;;  %v1700_v9 = vpop.f32.mrb[31].mxu1 }
 0x205   : > { %v3002_v10 = vadd.f32 %v4112_v56, %v5037_v47  ;;  %v4114_v1 = vadd.f32 %v4079_v4, %v3935_v39  ;;  %v2921_v14 = vpop.f32.mrb[31].mxu0 }
 0x206   : > { %v3000_v17 = vadd.f32 %v4113_v33, %v5037_v47  ;;  %v4115_v24 = vadd.f32 %v2921_v14, %v1700_v9 }
 0x207   : > { %v3066_v26 = vadd.f32 %v3034_v60, %v3002_v10  ;;  %v3003_v31 = vadd.f32 %v4114_v1, %v5037_v47 }
 0x208   : > { %v3064_v38 = vadd.f32 %v3032_v11, %v3000_v17  ;;  %v3001_v48 = vadd.f32 %v4115_v24, %v5037_v47 }
 0x209   : > { %3098 = vst [vmem:[%s5045_s22 + $0xf0] sm:$0xff] %v3066_v26  ;;  %v3067_v49 = vadd.f32 %v3035_v3, %v3003_v31 }
 0x20a   : > { %3096 = vst [vmem:[%s5045_s22 + $0xe0] sm:$0xff] %v3064_v38  ;;  %v3065_v50 = vadd.f32 %v3033_v32, %v3001_v48 }
 0x20b   : > { %3099 = vst [vmem:[%s5045_s22 + $0xf8] sm:$0xff] %v3067_v49 }
 0x20c   : > { %3097 = vst [vmem:[%s5045_s22 + $0xe8] sm:$0xff] %v3065_v50 }
 0x20d PF: > { %s14_s17 = sadd.s32 1, %s4405_s17   ;;  %s5161_s15 = smov %s4401_s16 }
 0x20e   : > { %p11_p5 = scmp.ge.s32.totalorder %s14_s17, 4   ;;  %s5162_s16 = smov %s5164_s18 }
 0x210   :  { %13 = sbr.rel (!%p11_p5) target bundleno = 2 (0x2), region = 77 }

// kernel: _lambda_.34
= control target key start
LH: loop header
LB: loop body
LE: loop exit
PB: predicated region body
PF: predicated region fallthrough
CT: control target
= control target key end

     0   :  { %s1141_s1 = inlined_call_operand.vmem [shape: bf16[384,128], index: 1, kind: input, shape index: {}]   ;;  %s1142_s0 = inlined_call_operand.vmem [shape: bf16[128,384], index: 0, kind: input, shape index: {}]   ;;  %s1143_s2 = inlined_call_operand.vmem [shape: f32[1,128], index: 2, kind: input, shape index: {}]   ;;  %s1144_s3 = inlined_call_operand.vmem [shape: f32[128,128], index: 3, kind: output, shape index: {}]  }
   0x1   :  { %v852_v0 = vld [vmem:[%s1141_s1 + $0x40] sm:$0xff]   ;;  %v855_v3 = vld [vmem:[%s1141_s1 + $0x48] sm:$0xff]   ;;  %v858_v6 = vld [vmem:[%s1141_s1 + $0x50] sm:$0xff]  }
   0x2   :  { %v853_v1 = vld [vmem:[%s1141_s1] sm:$0xff]   ;;  %740 = vmatprep.subr.bf16.mxu0 %v852_v0  ;;  %v856_v4 = vld [vmem:[%s1141_s1 + $0x8] sm:$0xff]   ;;  %v859_v7 = vld [vmem:[%s1141_s1 + $0x10] sm:$0xff]  }
   0x3   :  { %v854_v2 = vld [vmem:[%s1141_s1 + $0x80] sm:$0xff]   ;;  %741 = vmatpush3.bf16.msra.mxu0 %v853_v1  ;;  %v857_v5 = vld [vmem:[%s1141_s1 + $0x88] sm:$0xff]   ;;  %v860_v8 = vld [vmem:[%s1141_s1 + $0x90] sm:$0xff]  }
   0x4   :  { %820 = vmatprep.subr.bf16.mxu1 %v854_v2  ;;  %742 = vmatprep.subr.bf16.mxu0 %v855_v3  ;;  %v861_v9 = vld [vmem:[%s1141_s1 + $0x58] sm:$0xff]   ;;  %v864_v12 = vld [vmem:[%s1141_s1 + $0x60] sm:$0xff]   ;;  %v867_v15 = vld [vmem:[%s1141_s1 + $0x68] sm:$0xff]  }
   0x5   :  { %821 = vmatpush3.bf16.msra.mxu1 %v854_v2  ;;  %v862_v10 = vld [vmem:[%s1141_s1 + $0x18] sm:$0xff]   ;;  %v866_v13 = vld [vmem:[%s1141_s1 + $0xa0] sm:$0xff]   ;;  %v869_v16 = vld [vmem:[%s1141_s1 + $0xa8] sm:$0xff]  }
   0x6   :  { %822 = vmatprep.subr.bf16.mxu1 %v857_v5  ;;  %v863_v11 = vld [vmem:[%s1141_s1 + $0x98] sm:$0xff]   ;;  %v865_v14 = vld [vmem:[%s1141_s1 + $0x20] sm:$0xff]   ;;  %v868_v17 = vld [vmem:[%s1141_s1 + $0x28] sm:$0xff]  }
   0x7   :  { %743 = vmatpush3.bf16.msra.mxu0 %v856_v4  ;;  %v870_v18 = vld [vmem:[%s1141_s1 + $0x70] sm:$0xff]   ;;  %v873_v21 = vld [vmem:[%s1141_s1 + $0x78] sm:$0xff]   ;;  %v876_v26 = vld [vmem:[%s1142_s0] ss:$12 sps:$4 sm:$0xff]  }
   0x8   :  { %744 = vmatprep.subr.bf16.mxu0 %v858_v6  ;;  %v871_v19 = vld [vmem:[%s1141_s1 + $0x30] sm:$0xff]   ;;  %v875_v22 = vld [vmem:[%s1141_s1 + $0xb8] sm:$0xff]   ;;  %v880_v28 = vld [vmem:[%s1142_s0 + $0x20] ss:$12 sps:$4 sm:$0xff]  }
   0x9   :  { %823 = vmatpush3.bf16.msra.mxu1 %v857_v5  ;;  %v872_v20 = vld [vmem:[%s1141_s1 + $0xb0] sm:$0xff]   ;;  %v874_v25 = vld [vmem:[%s1141_s1 + $0x38] sm:$0xff]   ;;  %v896_v36 = vld [vmem:[%s1142_s0 + $0x80] ss:$12 sps:$4 sm:$0xff]  }
   0xa   :  { %824 = vmatprep.subr.bf16.mxu1 %v860_v8  ;;  %v878_v23 = vld [vmem:[%s1142_s0 + $0x4] ss:$12 sps:$4 sm:$0xff]   ;;  %v879_v24 = vld [vmem:[%s1142_s0 + $0x8] ss:$12 sps:$4 sm:$0xff]   ;;  %v889_v35 = vld [vmem:[%s1142_s0 + $0x4c] ss:$12 sps:$4 sm:$0xff]  }
   0xb   :  { %745 = vmatpush3.bf16.msra.mxu0 %v859_v7  ;;  %435 = vmatprep.mubr.bf16.mxu0 %v878_v23  ;;  %v881_v27 = vld [vmem:[%s1142_s0 + $0x1c] ss:$12 sps:$4 sm:$0xff]   ;;  %v887_v29 = vld [vmem:[%s1142_s0 + $0x38] ss:$12 sps:$4 sm:$0xff]   ;;  %v884_v31 = vld [vmem:[%s1142_s0 + $0x34] ss:$12 sps:$4 sm:$0xff]  }
   0xc   :  { %746 = vmatprep.subr.bf16.mxu0 %v861_v9  ;;  %836 = vmatprep.mubr.bf16.mxu1 %v879_v24  ;;  %v883_v30 = vld [vmem:[%s1142_s0 + $0x18] ss:$12 sps:$4 sm:$0xff]   ;;  %v888_v32 = vld [vmem:[%s1142_s0 + $0x50] ss:$12 sps:$4 sm:$0xff]   ;;  %v895_v33 = vld [vmem:[%s1142_s0 + $0x68] ss:$12 sps:$4 sm:$0xff]  }
   0xd   :  { %825 = vmatpush3.bf16.msra.mxu1 %v860_v8  ;;  %v886_v34 = vld [vmem:[%s1142_s0 + $0x30] ss:$12 sps:$4 sm:$0xff]   ;;  %v903_v37 = vld [vmem:[%s1142_s0 + $0x98] ss:$12 sps:$4 sm:$0xff]   ;;  %v891_v38 = vld [vmem:[%s1142_s0 + $0x48] ss:$12 sps:$4 sm:$0xff]  }
   0xe   :  { %826 = vmatprep.subr.bf16.mxu1 %v863_v11  ;;  %v892_v39 = vld [vmem:[%s1142_s0 + $0x64] ss:$12 sps:$4 sm:$0xff]   ;;  %v894_v41 = vld [vmem:[%s1142_s0 + $0x60] ss:$12 sps:$4 sm:$0xff]   ;;  %v897_v42 = vld [vmem:[%s1142_s0 + $0x7c] ss:$12 sps:$4 sm:$0xff]  }
   0xf   :  { %747 = vmatpush3.bf16.msra.mxu0 %v862_v10  ;;  %v904_v40 = vld [vmem:[%s1142_s0 + $0xb0] ss:$12 sps:$4 sm:$0xff]   ;;  %v899_v43 = vld [vmem:[%s1142_s0 + $0x78] ss:$12 sps:$4 sm:$0xff]   ;;  %v900_v44 = vld [vmem:[%s1142_s0 + $0x94] ss:$12 sps:$4 sm:$0xff]  }
  0x10   :  { %748 = vmatprep.subr.bf16.mxu0 %v864_v12  ;;  %v902_v45 = vld [vmem:[%s1142_s0 + $0x90] ss:$12 sps:$4 sm:$0xff]   ;;  %v905_v46 = vld [vmem:[%s1142_s0 + $0xac] ss:$12 sps:$4 sm:$0xff]   ;;  %v907_v47 = vld [vmem:[%s1142_s0 + $0xa8] ss:$12 sps:$4 sm:$0xff]  }
  0x11   :  { %827 = vmatpush3.bf16.msra.mxu1 %v863_v11  ;;  %v1075_v55 = vld [vmem:[%s1143_s2] ss:$0 sm:$0xff] }
  0x12   :  { %828 = vmatprep.subr.bf16.mxu1 %v866_v13 }
  0x13   :  { %749 = vmatpush3.bf16.msra.mxu0 %v865_v14 }
  0x14   :  { %750 = vmatprep.subr.bf16.mxu0 %v867_v15 }
  0x15   :  { %829 = vmatpush3.bf16.msra.mxu1 %v866_v13 }
  0x16   :  { %830 = vmatprep.subr.bf16.mxu1 %v869_v16 }
  0x17   :  { %751 = vmatpush3.bf16.msra.mxu0 %v868_v17 }
  0x18   :  { %752 = vmatprep.subr.bf16.mxu0 %v870_v18 }
  0x19   :  { %831 = vmatpush3.bf16.msra.mxu1 %v869_v16 }
  0x1a   :  { %832 = vmatprep.subr.bf16.mxu1 %v872_v20 }
  0x1b   :  { %753 = vmatpush3.bf16.msra.mxu0 %v871_v19 }
  0x1c   :  { %754 = vmatprep.subr.bf16.mxu0 %v873_v21 }
  0x1d   :  { %833 = vmatpush3.bf16.msra.mxu1 %v872_v20 }
  0x1e   :  { %834 = vmatprep.subr.bf16.mxu1 %v875_v22 }
  0x1f   :  { %755 = vmatpush3.bf16.msra.mxu0 %v874_v25 }
  0x21   :  { %835 = vmatpush3.bf16.msra.mxu1 %v875_v22 }
  0x22   :  { %436 = vmatmul.mubr.bf16.vlgmr.msra.gmra.mrb[0].mxu0 %v876_v26 }
  0x23   :  { %443 = vmatprep.mubr.bf16.mxu0 %v881_v27 }
  0x24   :  { %837 = vmatmul.mubr.bf16.vlgmr.msra.gmra.mrb[0].mxu1 %v880_v28 }
  0x25   :  { %840 = vmatprep.mubr.bf16.mxu1 %v887_v29 }
  0x2a   :  { %444 = vmatmul.mubr.bf16.gmra.mrb[4].mxu0 %v883_v30 }
  0x2b   :  { %451 = vmatprep.mubr.bf16.mxu0 %v884_v31 }
  0x2c   :  { %841 = vmatmul.mubr.bf16.gmra.mrb[4].mxu1 %v888_v32 }
  0x2d   :  { %844 = vmatprep.mubr.bf16.mxu1 %v895_v33 }
  0x32   :  { %452 = vmatmul.mubr.bf16.gmra.mrb[8].mxu0 %v886_v34 }
  0x33   :  { %459 = vmatprep.mubr.bf16.mxu0 %v889_v35 }
  0x34   :  { %845 = vmatmul.mubr.bf16.gmra.mrb[8].mxu1 %v896_v36 }
  0x35   :  { %848 = vmatprep.mubr.bf16.mxu1 %v903_v37 }
  0x3a   :  { %460 = vmatmul.mubr.bf16.gmra.mrb[12].mxu0 %v891_v38 }
  0x3b   :  { %467 = vmatprep.mubr.bf16.mxu0 %v892_v39 }
  0x3c   :  { %849 = vmatmul.mubr.bf16.gmra.mrb[12].mxu1 %v904_v40 }
  0x42   :  { %468 = vmatmul.mubr.bf16.gmra.mrb[16].mxu0 %v894_v41 }
  0x43   :  { %475 = vmatprep.mubr.bf16.mxu0 %v897_v42 }
  0x4a   :  { %476 = vmatmul.mubr.bf16.gmra.mrb[20].mxu0 %v899_v43 }
  0x4b   :  { %483 = vmatprep.mubr.bf16.mxu0 %v900_v44 }
  0x52   :  { %484 = vmatmul.mubr.bf16.gmra.mrb[24].mxu0 %v902_v45 }
  0x53   :  { %491 = vmatprep.mubr.bf16.mxu0 %v905_v46 }
  0x5a   :  { %492 = vmatmul.mubr.bf16.gmra.mrb[28].mxu0 %v907_v47 }
  0xf5   :  { %v756_v48 = vpop.f32.mrb[0].mxu0 }
  0xf6   :  { %v757_v49 = vpop.f32.mrb[1].mxu0 }
  0xf7   :  { %v758_v50 = vadd.f32 %v757_v49, %v756_v48  ;;  %v759_v51 = vpop.f32.mrb[2].mxu0  ;;  %v838_v52 = vpop.f32.mrb[0].mxu1 }
  0xf8   :  { %v760_v53 = vpop.f32.mrb[3].mxu0  ;;  %v534_v54 = vpop.f32.mrb[1].mxu1 }
  0xf9   :  { %v761_v56 = vadd.f32 %v760_v53, %v759_v51  ;;  %v535_v57 = vadd.f32 %v758_v50, %v534_v54  ;;  %v839_v58 = vpop.f32.mrb[2].mxu1 }
  0xfa   :  { %v537_v59 = vpop.f32.mrb[3].mxu1 }
  0xfb   :  { %v655_v60 = vadd.f32 %v1075_v55, %v535_v57  ;;  %v538_v61 = vadd.f32 %v761_v56, %v537_v59 }
  0xfd   :  { %671 = vst [vmem:[%s1144_s3] sm:$0xff] %v655_v60  ;;  %v656_v62 = vadd.f32 %v1075_v55, %v538_v61  ;;  %v762_v63 = vpop.f32.mrb[4].mxu0 }
  0xfe   :  { %v763_v0 = vpop.f32.mrb[5].mxu0 }
  0xff   :  { %672 = vst [vmem:[%s1144_s3 + $0x8] sm:$0xff] %v656_v62  ;;  %v764_v1 = vadd.f32 %v763_v0, %v762_v63  ;;  %v765_v2 = vpop.f32.mrb[6].mxu0  ;;  %v842_v3 = vpop.f32.mrb[4].mxu1 }
 0x100   :  { %v766_v4 = vpop.f32.mrb[7].mxu0  ;;  %v550_v5 = vpop.f32.mrb[5].mxu1 }
 0x101   :  { %v543_v6 = vadd.f32 %v838_v52, %v764_v1  ;;  %v767_v7 = vadd.f32 %v766_v4, %v765_v2  ;;  %v843_v8 = vpop.f32.mrb[6].mxu1 }
 0x102   :  { %v553_v9 = vpop.f32.mrb[7].mxu1 }
 0x103   :  { %v657_v10 = vadd.f32 %v1075_v55, %v543_v6  ;;  %v546_v11 = vadd.f32 %v839_v58, %v767_v7 }
 0x105   :  { %673 = vst [vmem:[%s1144_s3 + $0x10] sm:$0xff] %v657_v10  ;;  %v658_v12 = vadd.f32 %v1075_v55, %v546_v11  ;;  %v768_v13 = vpop.f32.mrb[8].mxu0 }
 0x106   :  { %v769_v14 = vpop.f32.mrb[9].mxu0 }
 0x107   :  { %674 = vst [vmem:[%s1144_s3 + $0x18] sm:$0xff] %v658_v12  ;;  %v770_v15 = vadd.f32 %v769_v14, %v768_v13  ;;  %v771_v16 = vpop.f32.mrb[10].mxu0  ;;  %v846_v17 = vpop.f32.mrb[8].mxu1 }
 0x108   :  { %v772_v18 = vpop.f32.mrb[11].mxu0  ;;  %v566_v19 = vpop.f32.mrb[9].mxu1 }
 0x109   :  { %v773_v20 = vadd.f32 %v772_v18, %v771_v16  ;;  %v551_v21 = vadd.f32 %v770_v15, %v550_v5  ;;  %v847_v22 = vpop.f32.mrb[10].mxu1 }
 0x10a   :  { %v569_v23 = vpop.f32.mrb[11].mxu1 }
 0x10b   :  { %v659_v24 = vadd.f32 %v1075_v55, %v551_v21  ;;  %v554_v25 = vadd.f32 %v773_v20, %v553_v9 }
 0x10d   :  { %675 = vst [vmem:[%s1144_s3 + $0x20] sm:$0xff] %v659_v24  ;;  %v660_v26 = vadd.f32 %v1075_v55, %v554_v25  ;;  %v774_v27 = vpop.f32.mrb[12].mxu0 }
 0x10e   :  { %v775_v28 = vpop.f32.mrb[13].mxu0 }
 0x10f   :  { %676 = vst [vmem:[%s1144_s3 + $0x28] sm:$0xff] %v660_v26  ;;  %v776_v29 = vadd.f32 %v775_v28, %v774_v27  ;;  %v777_v30 = vpop.f32.mrb[14].mxu0  ;;  %v850_v31 = vpop.f32.mrb[12].mxu1 }
 0x110   :  { %v778_v32 = vpop.f32.mrb[15].mxu0  ;;  %v582_v33 = vpop.f32.mrb[13].mxu1 }
 0x111   :  { %v559_v34 = vadd.f32 %v842_v3, %v776_v29  ;;  %v779_v35 = vadd.f32 %v778_v32, %v777_v30  ;;  %v851_v36 = vpop.f32.mrb[14].mxu1 }
 0x112   :  { %v585_v37 = vpop.f32.mrb[15].mxu1 }
 0x113   :  { %v661_v38 = vadd.f32 %v1075_v55, %v559_v34  ;;  %v562_v39 = vadd.f32 %v843_v8, %v779_v35 }
 0x115   :  { %677 = vst [vmem:[%s1144_s3 + $0x30] sm:$0xff] %v661_v38  ;;  %v662_v40 = vadd.f32 %v1075_v55, %v562_v39  ;;  %v780_v41 = vpop.f32.mrb[16].mxu0 }
 0x116   :  { %v781_v42 = vpop.f32.mrb[17].mxu0 }
 0x117   :  { %678 = vst [vmem:[%s1144_s3 + $0x38] sm:$0xff] %v662_v40  ;;  %v782_v43 = vadd.f32 %v781_v42, %v780_v41  ;;  %v783_v44 = vpop.f32.mrb[18].mxu0 }
 0x118   :  { %v784_v45 = vpop.f32.mrb[19].mxu0 }
 0x119   :  { %v785_v46 = vadd.f32 %v784_v45, %v783_v44  ;;  %v567_v47 = vadd.f32 %v782_v43, %v566_v19 }
 0x11b   :  { %v663_v48 = vadd.f32 %v1075_v55, %v567_v47  ;;  %v570_v49 = vadd.f32 %v785_v46, %v569_v23 }
 0x11d   :  { %679 = vst [vmem:[%s1144_s3 + $0x40] sm:$0xff] %v663_v48  ;;  %v664_v50 = vadd.f32 %v1075_v55, %v570_v49  ;;  %v786_v51 = vpop.f32.mrb[20].mxu0 }
 0x11e   :  { %v787_v52 = vpop.f32.mrb[21].mxu0 }
 0x11f   :  { %680 = vst [vmem:[%s1144_s3 + $0x48] sm:$0xff] %v664_v50  ;;  %v788_v53 = vadd.f32 %v787_v52, %v786_v51  ;;  %v789_v54 = vpop.f32.mrb[22].mxu0 }
 0x120   :  { %v790_v56 = vpop.f32.mrb[23].mxu0 }
 0x121   :  { %v575_v57 = vadd.f32 %v846_v17, %v788_v53  ;;  %v791_v58 = vadd.f32 %v790_v56, %v789_v54 }
 0x123   :  { %v665_v59 = vadd.f32 %v1075_v55, %v575_v57  ;;  %v578_v60 = vadd.f32 %v847_v22, %v791_v58 }
 0x125   :  { %681 = vst [vmem:[%s1144_s3 + $0x50] sm:$0xff] %v665_v59  ;;  %v666_v61 = vadd.f32 %v1075_v55, %v578_v60  ;;  %v792_v62 = vpop.f32.mrb[24].mxu0 }
 0x126   :  { %v793_v63 = vpop.f32.mrb[25].mxu0 }
 0x127   :  { %682 = vst [vmem:[%s1144_s3 + $0x58] sm:$0xff] %v666_v61  ;;  %v794_v0 = vadd.f32 %v793_v63, %v792_v62  ;;  %v795_v1 = vpop.f32.mrb[26].mxu0 }
 0x128   :  { %v796_v2 = vpop.f32.mrb[27].mxu0 }
 0x129   :  { %v797_v3 = vadd.f32 %v796_v2, %v795_v1  ;;  %v583_v4 = vadd.f32 %v794_v0, %v582_v33 }
 0x12b   :  { %v667_v5 = vadd.f32 %v1075_v55, %v583_v4  ;;  %v586_v6 = vadd.f32 %v797_v3, %v585_v37 }
 0x12d   :  { %683 = vst [vmem:[%s1144_s3 + $0x60] sm:$0xff] %v667_v5  ;;  %v668_v7 = vadd.f32 %v1075_v55, %v586_v6  ;;  %v798_v8 = vpop.f32.mrb[28].mxu0 }
 0x12e   :  { %v799_v9 = vpop.f32.mrb[29].mxu0 }
 0x12f   :  { %684 = vst [vmem:[%s1144_s3 + $0x68] sm:$0xff] %v668_v7  ;;  %v800_v10 = vadd.f32 %v799_v9, %v798_v8  ;;  %v801_v11 = vpop.f32.mrb[30].mxu0 }
 0x130   :  { %v802_v12 = vpop.f32.mrb[31].mxu0 }
 0x131   :  { %v591_v13 = vadd.f32 %v850_v31, %v800_v10  ;;  %v803_v14 = vadd.f32 %v802_v12, %v801_v11 }
 0x133   :  { %v669_v15 = vadd.f32 %v1075_v55, %v591_v13  ;;  %v594_v16 = vadd.f32 %v851_v36, %v803_v14 }
 0x135   :  { %685 = vst [vmem:[%s1144_s3 + $0x70] sm:$0xff] %v669_v15  ;;  %v670_v17 = vadd.f32 %v1075_v55, %v594_v16 }
 0x137   :  { %686 = vst [vmem:[%s1144_s3 + $0x78] sm:$0xff] %v670_v17 }

// kernel: _lambda_.35
= control target key start
LH: loop header
LB: loop body
LE: loop exit
PB: predicated region body
PF: predicated region fallthrough
CT: control target
= control target key end

     0   :  { %s961_s18 = smov 0   ;;  %s1059_s0 = inlined_call_operand.vmem [shape: f32[2,64,32], index: 0, kind: input, shape index: {}]   ;;  %s1060_s1 = inlined_call_operand.vmem [shape: f32[32,32], index: 1, kind: input, shape index: {}]   ;;  %s1061_s2 = inlined_call_operand.vmem [shape: f32[32,32], index: 2, kind: input, shape index: {}]   ;;  %s1062_s3 = inlined_call_operand.vmem [shape: f32[1,32], index: 3, kind: input, shape index: {}]   ;;  %s1063_s4 = inlined_call_operand.vmem [shape: f32[1,32], index: 4, kind: input, shape index: {}]   ;;  %s1064_s5 = inlined_call_operand.vmem [shape: f32[2,64,32], index: 5, kind: output, shape index: {}]  }
   0x1 LB: > { %s760_s19 = sadd.s32 4294967295, %s926_s18   ;;  %p764_p0 = scmp.ge.s32.totalorder %s926_s18, 1  ;;  %s926_s18 = sphi %s961_s18, %s15_s18  }
   0x2   : > { %p187_p1 = scmp.lt.s32.totalorder %s926_s18, 3 }
   0x4   : > { %p188_p2 = pnand %p764_p0, %p187_p1 }
   0x5   : > { %v233_v0 = vld [vmem:[%s1060_s1] sm:$0xff] (!%p188_p2)  ;;  %v234_v1 = vld [vmem:[%s1060_s1 + $0x8] sm:$0xff] (!%p188_p2)  ;;  %v235_v2 = vld [vmem:[%s1060_s1 + $0x10] sm:$0xff] (!%p188_p2)  ;;  %v928_v3 = vmov (!%p188_p2), 0.0|0.0   ;;  %vm929_vm0 = vmmov (!%p188_p2), 0   ;;  %v930_v6 = vmov (!%p188_p2), 0.0   ;;  %v410_v46 = vlaneseq (!%p188_p2) }
   0x6   : > { %191 = sbr.rel (%p188_p2) target bundleno = 986 (0x3da), region = 40  ;;  %851 = vmatprep.subr.bf16.mxu0 (!%p188_p2), %v928_v3  ;;  %v852_v4 = vpack.c.bf16 (!%p188_p2), %v234_v1, %v233_v0  ;;  %v236_v5 = vld [vmem:[%s1060_s1 + $0x18] sm:$0xff] (!%p188_p2)  ;;  %815 = vmatprep.mubr.msk.f32.mxu0 (!%p188_p2), %vm929_vm0, %v930_v6  ;;  %p215_p3 = scmp.lt.s32.totalorder (!%p188_p2), %s760_s19, 1  ;;  %v237_v7 = vld [vmem:[%s1061_s2] sm:$0xff] (!%p188_p2)  ;;  %v238_v8 = vld [vmem:[%s1061_s2 + $0x8] sm:$0xff] (!%p188_p2)  ;;  %vm241_vm1 = vcmask (!%p188_p2), 261120  }
   0x7   : > { %857 = vmatprep.subr.bf16.mxu1 (!%p188_p2), %v928_v3  ;;  %v858_v9 = vpack.c.bf16 (!%p188_p2), %v238_v8, %v237_v7  ;;  %826 = vmatprep.mubr.msk.f32.mxu1 (!%p188_p2), %vm929_vm0, %v930_v6  ;;  %v855_v10 = vpack.c.bf16 (!%p188_p2), %v236_v5, %v235_v2  ;;  %v239_v40 = vld [vmem:[%s1061_s2 + $0x10] sm:$0xff] (!%p188_p2)  ;;  %v240_v41 = vld [vmem:[%s1061_s2 + $0x18] sm:$0xff] (!%p188_p2)  ;;  %v411_v47 = vshrl.u32 (!%p188_p2), %v410_v46, 7 }
   0x8   : > { %853 = vmatpush3.bf16.msra.mxu0 (!%p188_p2), %v852_v4  ;;  %v861_v42 = vpack.c.bf16 (!%p188_p2), %v240_v41, %v239_v40 }
   0x9   : > { %854 = vmatprep.subr.bf16.mxu0 (!%p188_p2), %v928_v3  ;;  %859 = vmatpush3.bf16.msra.mxu1 (!%p188_p2), %v858_v9  ;;  %v412_v48 = vsub.s32 (!%p188_p2), 0, %v411_v47 }
   0xa   : > { %860 = vmatprep.subr.bf16.mxu1 (!%p188_p2), %v928_v3 }
   0xc   : > { %856 = vmatpush3.bf16.msra.mxu0 (!%p188_p2), %v855_v10 }
   0xd   : > { %s1066_s19 = smov (!%p215_p3, %s760_s19), 1  ;;  %863 = vmatprep.subr.bf16.mxu0 %v928_v3  ;;  %862 = vmatpush3.bf16.msra.mxu1 %v861_v42 }
   0xe   : > { %s785_s7 = sshll.u32 %s1066_s19, 6  ;;  %869 = vmatprep.subr.bf16.mxu1 %v928_v3 }
   0xf   : > { %s219_s10 = scalar_lea.vmem %s1059_s0, %s785_s7  ;;  %s224_s23 = scalar_lea.vmem %s1064_s5, %s785_s7 }
  0x10   : > { %v225_v11 = vld [vmem:[%s219_s10] sm:$0xff]  ;;  %v226_v12 = vld [vmem:[%s219_s10 + $0x8] sm:$0xff]  ;;  %v227_v13 = vld [vmem:[%s219_s10 + $0x10] sm:$0xff] }
  0x11   : > { %v228_v14 = vld [vmem:[%s219_s10 + $0x18] sm:$0xff]  ;;  %v242_v15 = vsel %vm241_vm1, %v225_v11, 0.0  ;;  %v243_v16 = vsel %vm241_vm1, %v226_v12, 0.0  ;;  %v245_v17 = vsel %vm241_vm1, %v227_v13, 0.0  ;;  %v229_v18 = vld [vmem:[%s219_s10 + $0x20] sm:$0xff]  ;;  %v230_v21 = vld [vmem:[%s219_s10 + $0x28] sm:$0xff] }
  0x12   : > { %v244_v19 = vadd.f32 %v243_v16, %v242_v15  ;;  %v247_v20 = vsel %vm241_vm1, %v228_v14, 0.0  ;;  %v249_v23 = vsel %vm241_vm1, %v229_v18, 0.0  ;;  %v231_v24 = vld [vmem:[%s219_s10 + $0x30] sm:$0xff]  ;;  %v251_v26 = vsel %vm241_vm1, %v230_v21, 0.0  ;;  %v232_v27 = vld [vmem:[%s219_s10 + $0x38] sm:$0xff] }
  0x13   : > { %v253_v29 = vsel %vm241_vm1, %v231_v24, 0.0  ;;  %v255_v31 = vsel %vm241_vm1, %v232_v27, 0.0 }
  0x14   : > { %v246_v22 = vadd.f32 %v245_v17, %v244_v19 }
  0x16   : > { %v248_v25 = vadd.f32 %v247_v20, %v246_v22 }
  0x18   : > { %v250_v28 = vadd.f32 %v249_v23, %v248_v25 }
  0x1a   : > { %v252_v30 = vadd.f32 %v251_v26, %v250_v28 }
  0x1c   : > { %v254_v32 = vadd.f32 %v253_v29, %v252_v30 }
  0x1e   : > { %v256_v33 = vadd.f32 %v255_v31, %v254_v32 }
  0x20   : > { %v257_v34 = vrot.slane %v256_v33, 4 }
  0x22   : > { %v258_v35 = vadd.f32 %v257_v34, %v256_v33  ;;  %v773_v33 = vld [vmem:[%s1062_s3] ss:$0 sm:$0xff] }
  0x24   : > { %v259_v36 = vrot.slane %v258_v35, 2 }
  0x26   : > { %v260_v37 = vadd.f32 %v259_v36, %v258_v35 }
  0x28   : > { %v261_v38 = vrot.slane %v260_v37, 1 }
  0x2a   : > { %v262_v39 = vadd.f32 %v261_v38, %v260_v37 }
  0x2c   : > { %816 = vmatmul.mubr.msk.f32.vlgmr.msra.gmra.mrb[0].mxu0 %vm241_vm1, %v262_v39 }
  0x2d   : > { %865 = vmatpush3.bf16.msra.mxu0 %v852_v4  ;;  %837 = vmatprep.mubr.msk.f32.mxu0 %vm929_vm0, %v930_v6 }
  0x2e   : > { %866 = vmatprep.subr.bf16.mxu0 %v928_v3 }
  0x31   : > { %868 = vmatpush3.bf16.msra.mxu0 %v855_v10 }
  0xff   : > { %v332_v43 = vpop.f32.mrb[0].mxu0 }
 0x100   : > { %v336_v44 = vmul.f32 0.015625, %v332_v43  ;;  %v817_v45 = vpop.f32.mrb[1].mxu0 }
 0x102   : > { %827 = vmatmul.mubr.msk.f32.vlgmr.msra.gmra.mrb[0].mxu1 %vm241_vm1, %v336_v44 }
 0x103   : > { %871 = vmatpush3.bf16.msra.mxu1 %v858_v9  ;;  %848 = vmatprep.mubr.msk.f32.mxu1 %vm929_vm0, %v930_v6 }
 0x104   : > { %872 = vmatprep.subr.bf16.mxu1 %v928_v3 }
 0x107   : > { %874 = vmatpush3.bf16.msra.mxu1 %v861_v42  ;;  %v774_v42 = vld [vmem:[%s1063_s4] ss:$0 sm:$0xff] }
 0x1d5   : > { %v406_v49 = vpop.f32.mrb[0].mxu1 }
 0x1d6   : > { %v413_v50 = vrot.slane %v406_v49, %v412_v48  ;;  %v828_v51 = vpop.f32.mrb[1].mxu1 }
 0x1d8   : > { %v414_v52 = vsub.f32 %v225_v11, %v413_v50  ;;  %v415_v53 = vsub.f32 %v226_v12, %v413_v50  ;;  %v416_v54 = vsub.f32 %v227_v13, %v413_v50  ;;  %v417_v55 = vsub.f32 %v228_v14, %v413_v50 }
 0x1d9   : > { %v418_v56 = vsub.f32 %v229_v18, %v413_v50  ;;  %v419_v60 = vsub.f32 %v230_v21, %v413_v50  ;;  %v420_v1 = vsub.f32 %v231_v24, %v413_v50  ;;  %v421_v5 = vsub.f32 %v232_v27, %v413_v50 }
 0x1da   : > { %v422_v57 = vmul.f32 %v414_v52, %v414_v52  ;;  %v423_v58 = vmul.f32 %v415_v53, %v415_v53  ;;  %v424_v59 = vmul.f32 %v416_v54, %v416_v54  ;;  %v425_v61 = vmul.f32 %v417_v55, %v417_v55 }
 0x1db   : > { %v426_v2 = vmul.f32 %v418_v56, %v418_v56  ;;  %v427_v6 = vmul.f32 %v419_v60, %v419_v60  ;;  %v428_v9 = vmul.f32 %v420_v1, %v420_v1  ;;  %v429_v12 = vmul.f32 %v421_v5, %v421_v5 }
 0x1dc   : > { %v430_v62 = vsel %vm241_vm1, %v422_v57, 0.0  ;;  %v431_v63 = vsel %vm241_vm1, %v423_v58, 0.0  ;;  %v433_v3 = vsel %vm241_vm1, %v424_v59, 0.0  ;;  %v435_v7 = vsel %vm241_vm1, %v425_v61, 0.0 }
 0x1dd   : > { %v432_v0 = vadd.f32 %v431_v63, %v430_v62  ;;  %v437_v10 = vsel %vm241_vm1, %v426_v2, 0.0  ;;  %v439_v13 = vsel %vm241_vm1, %v427_v6, 0.0  ;;  %v441_v15 = vsel %vm241_vm1, %v428_v9, 0.0 }
 0x1de   : > { %v443_v17 = vsel %vm241_vm1, %v429_v12, 0.0 }
 0x1df   : > { %v434_v4 = vadd.f32 %v433_v3, %v432_v0 }
 0x1e1   : > { %v436_v8 = vadd.f32 %v435_v7, %v434_v4 }
 0x1e3   : > { %v438_v11 = vadd.f32 %v437_v10, %v436_v8 }
 0x1e5   : > { %v440_v14 = vadd.f32 %v439_v13, %v438_v11 }
 0x1e7   : > { %v442_v16 = vadd.f32 %v441_v15, %v440_v14 }
 0x1e9   : > { %v444_v18 = vadd.f32 %v443_v17, %v442_v16 }
 0x1eb   : > { %v445_v19 = vrot.slane %v444_v18, 4 }
 0x1ed   : > { %v446_v20 = vadd.f32 %v445_v19, %v444_v18 }
 0x1ef   : > { %v447_v21 = vrot.slane %v446_v20, 2 }
 0x1f1   : > { %v448_v22 = vadd.f32 %v447_v21, %v446_v20 }
 0x1f3   : > { %v449_v23 = vrot.slane %v448_v22, 1 }
 0x1f5   : > { %v450_v24 = vadd.f32 %v449_v23, %v448_v22 }
 0x1f7   : > { %838 = vmatmul.mubr.msk.f32.vlgmr.msra.gmra.mrb[2].mxu0 %vm241_vm1, %v450_v24 }
 0x2ca   : > { %v520_v25 = vpop.f32.mrb[2].mxu0 }
 0x2cb   : > { %v524_v26 = vmul.f32 0.015625, %v520_v25  ;;  %v839_v27 = vpop.f32.mrb[3].mxu0 }
 0x2cd   : > { %849 = vmatmul.mubr.msk.f32.vlgmr.msra.gmra.mrb[2].mxu1 %vm241_vm1, %v524_v26 }
 0x3a0   : > { %v594_v28 = vpop.f32.mrb[2].mxu1 }
 0x3a1   : > { %v595_v29 = vadd.f32 1e-06, %v594_v28  ;;  %v850_v30 = vpop.f32.mrb[3].mxu1 }
 0x3a3   : > { %886 = vrsqrt.f32 %v595_v29 }
 0x3ad   : > { %v887_v31 = vpop.eup %886 }
 0x3ae   : > { %v602_v32 = vrot.slane %v887_v31, %v412_v48 }
 0x3b0   : > { %v603_v34 = vmul.f32 %v602_v32, %v414_v52  ;;  %v604_v35 = vmul.f32 %v602_v32, %v415_v53  ;;  %v605_v36 = vmul.f32 %v602_v32, %v416_v54  ;;  %v606_v37 = vmul.f32 %v602_v32, %v417_v55 }
 0x3b1   : > { %v607_v38 = vmul.f32 %v602_v32, %v418_v56  ;;  %v608_v39 = vmul.f32 %v602_v32, %v419_v60  ;;  %v609_v40 = vmul.f32 %v602_v32, %v420_v1  ;;  %v610_v41 = vmul.f32 %v602_v32, %v421_v5 }
 0x3b2   : > { %v618_v43 = vmul.f32 %v773_v33, %v603_v34  ;;  %v619_v44 = vmul.f32 %v773_v33, %v604_v35  ;;  %v620_v45 = vmul.f32 %v773_v33, %v605_v36  ;;  %v621_v46 = vmul.f32 %v773_v33, %v606_v37 }
 0x3b3   : > { %v622_v47 = vmul.f32 %v773_v33, %v607_v38  ;;  %v623_v48 = vmul.f32 %v773_v33, %v608_v39  ;;  %v624_v49 = vmul.f32 %v773_v33, %v609_v40  ;;  %v625_v50 = vmul.f32 %v773_v33, %v610_v41 }
 0x3b4   : > { %v633_v51 = vadd.f32 %v774_v42, %v618_v43  ;;  %v634_v52 = vadd.f32 %v774_v42, %v619_v44  ;;  %v635_v53 = vadd.f32 %v774_v42, %v620_v45  ;;  %v636_v54 = vadd.f32 %v774_v42, %v621_v46 }
 0x3b5   : > { %v637_v55 = vadd.f32 %v774_v42, %v622_v47  ;;  %v638_v56 = vadd.f32 %v774_v42, %v623_v48  ;;  %v639_v57 = vadd.f32 %v774_v42, %v624_v49  ;;  %v640_v61 = vadd.f32 %v774_v42, %v625_v50 }
 0x3b6   : > { %v775_v58 = vmul.f32 -1.442695, %v633_v51  ;;  %v776_v59 = vmul.f32 -1.442695, %v634_v52  ;;  %v777_v60 = vmul.f32 -1.442695, %v635_v53 }
 0x3b7   : > { %v778_v62 = vmul.f32 -1.442695, %v636_v54  ;;  %v779_v63 = vmul.f32 -1.442695, %v637_v55  ;;  %v780_v0 = vmul.f32 -1.442695, %v638_v56 }
 0x3b8   : > { %888 = vpow2.f32 %v775_v58  ;;  %v781_v1 = vmul.f32 -1.442695, %v639_v57  ;;  %v782_v2 = vmul.f32 -1.442695, %v640_v61 }
 0x3b9   : > { %890 = vpow2.f32 %v776_v59 }
 0x3ba   : > { %892 = vpow2.f32 %v777_v60 }
 0x3bb   : > { %894 = vpow2.f32 %v778_v62 }
 0x3bc   : > { %896 = vpow2.f32 %v779_v63 }
 0x3bd   : > { %898 = vpow2.f32 %v780_v0 }
 0x3be   : > { %900 = vpow2.f32 %v781_v1 }
 0x3bf   : > { %902 = vpow2.f32 %v782_v2 }
 0x3c2   : > { %v889_v3 = vpop.eup %888 }
 0x3c3   : > { %v891_v4 = vpop.eup %890  ;;  %v665_v5 = vadd.f32 1.0, %v889_v3 }
 0x3c4   : > { %v893_v6 = vpop.eup %892  ;;  %v666_v7 = vadd.f32 1.0, %v891_v4 }
 0x3c5   : > { %v895_v8 = vpop.eup %894  ;;  %v667_v9 = vadd.f32 1.0, %v893_v6  ;;  %904 = vrcp.f32 %v665_v5 }
 0x3c6   : > { %v897_v10 = vpop.eup %896  ;;  %v668_v11 = vadd.f32 1.0, %v895_v8  ;;  %906 = vrcp.f32 %v666_v7 }
 0x3c7   : > { %v899_v12 = vpop.eup %898  ;;  %v669_v13 = vadd.f32 1.0, %v897_v10  ;;  %908 = vrcp.f32 %v667_v9 }
 0x3c8   : > { %v901_v14 = vpop.eup %900  ;;  %v670_v15 = vadd.f32 1.0, %v899_v12  ;;  %910 = vrcp.f32 %v668_v11 }
 0x3c9   : > { %v903_v16 = vpop.eup %902  ;;  %v671_v17 = vadd.f32 1.0, %v901_v14  ;;  %912 = vrcp.f32 %v669_v13 }
 0x3ca   : > { %v672_v18 = vadd.f32 1.0, %v903_v16  ;;  %914 = vrcp.f32 %v670_v15 }
 0x3cb   : > { %916 = vrcp.f32 %v671_v17 }
 0x3cc   : > { %918 = vrcp.f32 %v672_v18 }
 0x3cf   : > { %v905_v19 = vpop.eup %904 }
 0x3d0   : > { %v907_v20 = vpop.eup %906  ;;  %v689_v21 = vmul.f32 %v905_v19, %v633_v51 }
 0x3d1   : > { %v909_v22 = vpop.eup %908  ;;  %v690_v23 = vmul.f32 %v907_v20, %v634_v52 }
 0x3d2   : > { %v911_v24 = vpop.eup %910  ;;  %v691_v25 = vmul.f32 %v909_v22, %v635_v53  ;;  %697 = vst.msk [vmem:[%s224_s23] sm:$0xff] %vm241_vm1, %v689_v21 }
 0x3d3   : > { %v913_v26 = vpop.eup %912  ;;  %v692_v27 = vmul.f32 %v911_v24, %v636_v54  ;;  %698 = vst.msk [vmem:[%s224_s23 + $0x8] sm:$0xff] %vm241_vm1, %v690_v23 }
 0x3d4   : > { %v915_v28 = vpop.eup %914  ;;  %v693_v29 = vmul.f32 %v913_v26, %v637_v55  ;;  %699 = vst.msk [vmem:[%s224_s23 + $0x10] sm:$0xff] %vm241_vm1, %v691_v25 }
 0x3d5   : > { %v917_v30 = vpop.eup %916  ;;  %v694_v31 = vmul.f32 %v915_v28, %v638_v56  ;;  %700 = vst.msk [vmem:[%s224_s23 + $0x18] sm:$0xff] %vm241_vm1, %v692_v27 }
 0x3d6   : > { %v919_v32 = vpop.eup %918  ;;  %v695_v33 = vmul.f32 %v917_v30, %v639_v57  ;;  %701 = vst.msk [vmem:[%s224_s23 + $0x20] sm:$0xff] %vm241_vm1, %v693_v29 }
 0x3d7   : > { %v696_v34 = vmul.f32 %v919_v32, %v640_v61  ;;  %702 = vst.msk [vmem:[%s224_s23 + $0x28] sm:$0xff] %vm241_vm1, %v694_v31 }
 0x3d8   : > { %703 = vst.msk [vmem:[%s224_s23 + $0x30] sm:$0xff] %vm241_vm1, %v695_v33 }
 0x3d9   : > { %704 = vst.msk [vmem:[%s224_s23 + $0x38] sm:$0xff] %vm241_vm1, %v696_v34 }
 0x3da PF: > { %s15_s18 = sadd.s32 1, %s926_s18  }
 0x3db   : > { %p12_p4 = scmp.ge.s32.totalorder %s15_s18, 4  }
 0x3dd   :  { %14 = sbr.rel (!%p12_p4) target bundleno = 1 (0x1), region = 70 }

// kernel: _lambda_.36
= control target key start
LH: loop header
LB: loop body
LE: loop exit
PB: predicated region body
PF: predicated region fallthrough
CT: control target
= control target key end

     0   :  { %s1788_s12 = smov 0   ;;  %s1790_s13 = smov 0   ;;  %s2024_s0 = inlined_call_operand.vmem [shape: f32[2,10,10,32], index: 0, kind: input, shape index: {}]   ;;  %s2025_s1 = inlined_call_operand.vmem [shape: bf16[288,128], index: 1, kind: input, shape index: {}]   ;;  %s2026_s2 = inlined_call_operand.vmem [shape: f32[1,128], index: 2, kind: input, shape index: {}]   ;;  %s2027_s3 = inlined_call_operand.vmem [shape: f32[2,64,128], index: 3, kind: output, shape index: {}]  }
   0x1   :  { %s1792_s14 = smov 0  }
   0x2 LB: > { %s25_s15 = sadd.s32 1, %s1762_s13  ;;  %p1361_p0 = scmp.ge.s32.totalorder %s1766_s14, 1  ;;  %s1766_s14 = sphi %s1792_s14, %s13_s14   ;;  %s1762_s13 = sphi %s1790_s13, %s2029_s13   ;;  %s1758_s12 = sphi %s1788_s12, %s2028_s12  }
   0x3   : > { %p27_p1 = scmp.ge.s32.totalorder %s25_s15, 2  ;;  %p168_p2 = scmp.lt.s32.totalorder %s1766_s14, 3 }
   0x5   : > { %s2031_s15 = smov (%p27_p1, %s25_s15), 0  ;;  %p169_p3 = pnand %p1361_p0, %p168_p2 }
   0x6   : > { %v1726_v0 = vld [vmem:[%s2025_s1 + $0x10] sm:$0xff] (!%p169_p3)   ;;  %p202_p4 = scmp.lt.s32.totalorder (!%p169_p3), %s1758_s12, 1  ;;  %v1812_v1 = vld [vmem:[%s2025_s1 + $0x40] sm:$0xff] (!%p169_p3)   ;;  %v1728_v2 = vld [vmem:[%s2025_s1 + $0x18] sm:$0xff] (!%p169_p3)   ;;  %vm267_vm0 = vcmask (!%p169_p3), 261120  }
   0x7   : > { %172 = sbr.rel (%p169_p3) target bundleno = 311 (0x137), region = 32  ;;  %1525 = vmatprep.subr.bf16.mxu1 (!%p169_p3), %v1726_v0  ;;  %1573 = vmatprep.subr.bf16.mxu0 (!%p169_p3), %v1812_v1  ;;  %v1823_v3 = vld [vmem:[%s2025_s1 + $0x48] sm:$0xff] (!%p169_p3)   ;;  %v1730_v4 = vld [vmem:[%s2025_s1] sm:$0xff] (!%p169_p3)   ;;  %v1731_v5 = vld [vmem:[%s2025_s1 + $0x50] sm:$0xff] (!%p169_p3)  }
   0x8   : > { %1526 = vmatpush3.bf16.msra.mxu1 (!%p169_p3), %v1726_v0  ;;  %1574 = vmatpush3.bf16.msra.mxu0 (!%p169_p3), %v1812_v1  ;;  %v1732_v16 = vld [vmem:[%s2025_s1 + $0x58] sm:$0xff] (!%p169_p3)   ;;  %v1733_v18 = vld [vmem:[%s2025_s1 + $0x8] sm:$0xff] (!%p169_p3)   ;;  %v1734_v24 = vld [vmem:[%s2025_s1 + $0x60] sm:$0xff] (!%p169_p3)  }
   0x9   : > { %1527 = vmatprep.subr.bf16.mxu1 (!%p169_p3), %v1728_v2  ;;  %1575 = vmatprep.subr.bf16.mxu0 (!%p169_p3), %v1823_v3  ;;  %v1735_v28 = vld [vmem:[%s2025_s1 + $0x20] sm:$0xff] (!%p169_p3)   ;;  %v1736_v38 = vld [vmem:[%s2025_s1 + $0x68] sm:$0xff] (!%p169_p3)   ;;  %v1738_v46 = vld [vmem:[%s2025_s1 + $0x70] sm:$0xff] (!%p169_p3)  }
   0xa   : > { %v1737_v45 = vld [vmem:[%s2025_s1 + $0x28] sm:$0xff] (!%p169_p3)   ;;  %v1739_v51 = vld [vmem:[%s2025_s1 + $0x30] sm:$0xff] (!%p169_p3)   ;;  %v1740_v54 = vld [vmem:[%s2025_s1 + $0x78] sm:$0xff] (!%p169_p3)  }
   0xb   : > { %v1741_v59 = vld [vmem:[%s2025_s1 + $0x38] sm:$0xff] (!%p169_p3)   ;;  %v1742_v60 = vld [vmem:[%s2025_s1 + $0x80] sm:$0xff] (!%p169_p3)   ;;  %v1743_v0 = vld [vmem:[%s2025_s1 + $0x88] sm:$0xff] (!%p169_p3)  }
   0xc   : > { %1528 = vmatpush3.bf16.msra.mxu1 (!%p169_p3), %v1728_v2  ;;  %1576 = vmatpush3.bf16.msra.mxu0 (!%p169_p3), %v1823_v3 }
   0xd   : > { %1537 = vmatprep.subr.bf16.mxu1 (!%p169_p3), %v1730_v4  ;;  %1585 = vmatprep.subr.bf16.mxu0 (!%p169_p3), %v1731_v5 }
   0xe   : > { %s2033_s12 = smov (!%p202_p4, %s1758_s12), 1 }
   0xf   : > { %s1701_s24 = smul.u32 160, %s2033_s12  ;;  %s1470_s7 = sshll.u32 %s2033_s12, 6 }
  0x10   : > { %s2005_s11 = scalar_lea.vmem %s2027_s3, %s1470_s7 }
  0x11   : > { %s1837_s4 = scalar_lea.vmem %s2024_s0, %s1701_s24 }
  0x12   : > { %v239_v6 = vld [vmem:[%s1837_s4 + $0x1] sm:$0xff]  ;;  %v240_v7 = vld [vmem:[%s1837_s4 + $0x11] sm:$0xff] }
  0x13   : > { %v1398_v8 = vld [vmem:[%s1837_s4 + $0x21] sm:$0xff]  ;;  %v247_v9 = vpack.c.bf16 %v240_v7, %v239_v6  ;;  %v242_v11 = vld [vmem:[%s1837_s4 + $0x31] sm:$0xff] }
  0x14   : > { %v669_v10 = vpack.c.bf16 %v1398_v8, %v240_v7  ;;  %v1400_v12 = vld [vmem:[%s1837_s4 + $0x41] sm:$0xff]  ;;  %v1846_v13 = vld [vmem:[%s1837_s4 + $0x51] sm:$0xff]  ;;  %v1848_v14 = vpack.c.bf16 %v242_v11, %v1398_v8 }
  0x15   : > { %v670_v15 = vpack.c.bf16 %v1400_v12, %v242_v11  ;;  %v1854_v17 = vpack.c.bf16 %v1846_v13, %v1400_v12  ;;  %1529 = vmatprep.mubr.msk.bf16.mxu1 %vm267_vm0, %v247_v9  ;;  %v1862_v19 = vld [vmem:[%s1837_s4 + $0x12] sm:$0xff]  ;;  %v1868_v20 = vld [vmem:[%s1837_s4 + $0x61] sm:$0xff] }
  0x16   : > { %1577 = vmatprep.mubr.msk.bf16.mxu0 %vm267_vm0, %v669_v10  ;;  %1530 = vmatmul.mubr.msk.bf16.vlgmr.msra.gmra.mrb[0].mxu1 %vm267_vm0, %v1848_v14  ;;  %v1871_v21 = vld [vmem:[%s1837_s4 + $0x22] sm:$0xff]  ;;  %v1874_v22 = vld [vmem:[%s1837_s4 + $0x71] sm:$0xff]  ;;  %v671_v9 = vpack.c.bf16 %v1868_v20, %v1846_v13 }
  0x17   : > { %1578 = vmatmul.mubr.msk.bf16.vlgmr.msra.gmra.mrb[0].mxu0 %vm267_vm0, %v670_v15  ;;  %1538 = vmatpush3.bf16.msra.mxu1 %v1730_v4  ;;  %v782_v23 = vpack.c.bf16 %v1871_v21, %v1862_v19  ;;  %v223_v25 = vld [vmem:[%s1837_s4] sm:$0xff]  ;;  %v1885_v26 = vld [vmem:[%s1837_s4 + $0x10] sm:$0xff]  ;;  %v1890_v27 = vpack.c.bf16 %v1874_v22, %v1868_v20 }
  0x18   : > { %1586 = vmatpush3.bf16.msra.mxu0 %v1731_v5  ;;  %1533 = vmatprep.mubr.msk.bf16.mxu1 %vm267_vm0, %v1854_v17  ;;  %v1413_v29 = vld [vmem:[%s1837_s4 + $0x32] sm:$0xff]  ;;  %v1414_v30 = vld [vmem:[%s1837_s4 + $0x42] sm:$0xff]  ;;  %v231_v31 = vpack.c.bf16 %v1885_v26, %v223_v25 }
  0x19   : > { %1587 = vmatprep.subr.bf16.mxu0 %v1732_v16  ;;  %1539 = vmatprep.subr.bf16.mxu1 %v1733_v18  ;;  %v1415_v32 = vld [vmem:[%s1837_s4 + $0x52] sm:$0xff]  ;;  %v1416_v33 = vld [vmem:[%s1837_s4 + $0x62] sm:$0xff]  ;;  %v783_v34 = vpack.c.bf16 %v1414_v30, %v1413_v29  ;;  %v443_v55 = vpack.c.bf16 %v1413_v29, %v1871_v21 }
  0x1a   : > { %1589 = vmatprep.mubr.msk.bf16.mxu0 %vm267_vm0, %v782_v23  ;;  %v225_v35 = vld [vmem:[%s1837_s4 + $0x20] sm:$0xff]  ;;  %v1905_v36 = vld [vmem:[%s1837_s4 + $0x30] sm:$0xff]  ;;  %v784_v37 = vpack.c.bf16 %v1416_v33, %v1415_v32  ;;  %v444_v58 = vpack.c.bf16 %v1415_v32, %v1414_v30 }
  0x1b   : > { %1540 = vmatpush3.bf16.msra.mxu1 %v1733_v18  ;;  %v1911_v39 = vld [vmem:[%s1837_s4 + $0x40] sm:$0xff]  ;;  %v1914_v40 = vld [vmem:[%s1837_s4 + $0x50] sm:$0xff]  ;;  %v232_v41 = vpack.c.bf16 %v1905_v36, %v225_v35  ;;  %v556_v63 = vpack.c.bf16 %v225_v35, %v1885_v26 }
  0x1c   : > { %1588 = vmatpush3.bf16.msra.mxu0 %v1732_v16  ;;  %1549 = vmatprep.subr.bf16.mxu1 %v1735_v28  ;;  %v1417_v42 = vld [vmem:[%s1837_s4 + $0x72] sm:$0xff]  ;;  %v1921_v43 = vld [vmem:[%s1837_s4 + $0x82] sm:$0xff]  ;;  %v233_v44 = vpack.c.bf16 %v1914_v40, %v1911_v39  ;;  %v557_v2 = vpack.c.bf16 %v1911_v39, %v1905_v36  ;;  %v1467_v16 = vld [vmem:[%s2026_s2] ss:$0 sm:$0xff] }
  0x1d   : > { %1597 = vmatprep.subr.bf16.mxu0 %v1734_v24  ;;  %v785_v47 = vpack.c.bf16 %v1921_v43, %v1417_v42  ;;  %v229_v48 = vld [vmem:[%s1837_s4 + $0x60] sm:$0xff]  ;;  %v230_v49 = vld [vmem:[%s1837_s4 + $0x70] sm:$0xff]  ;;  %v445_v62 = vpack.c.bf16 %v1417_v42, %v1416_v33 }
  0x1e   : > { %1534 = vmatmul.mubr.msk.bf16.gmra.mrb[4].mxu1 %vm267_vm0, %v1890_v27  ;;  %v434_v50 = vld [vmem:[%s1837_s4 + $0x2] sm:$0xff]  ;;  %v234_v52 = vpack.c.bf16 %v230_v49, %v229_v48  ;;  %v1432_v57 = vld [vmem:[%s1837_s4 + $0x90] sm:$0xff]  ;;  %v558_v6 = vpack.c.bf16 %v229_v48, %v1914_v40 }
  0x1f   : > { %1541 = vmatprep.mubr.msk.bf16.mxu1 %vm267_vm0, %v231_v31  ;;  %v442_v53 = vpack.c.bf16 %v1862_v19, %v434_v50  ;;  %v1431_v56 = vld [vmem:[%s1837_s4 + $0x80] sm:$0xff]  ;;  %v1446_v5 = vld [vmem:[%s1837_s4 + $0x91] sm:$0xff] }
  0x20   : > { %v899_v61 = vpack.c.bf16 %v1432_v57, %v1431_v56  ;;  %v1445_v4 = vld [vmem:[%s1837_s4 + $0x81] sm:$0xff]  ;;  %v559_v8 = vpack.c.bf16 %v1431_v56, %v230_v49 }
  0x21   : > { %v1012_v7 = vpack.c.bf16 %v1446_v5, %v1445_v4  ;;  %v672_v10 = vpack.c.bf16 %v1445_v4, %v1874_v22 }
  0x23   : > { %1590 = vmatmul.mubr.msk.bf16.vlgmr.msra.gmra.mrb[0].mxu0 %vm267_vm0, %v783_v34 }
  0x24   : > { %1598 = vmatpush3.bf16.msra.mxu0 %v1734_v24  ;;  %1593 = vmatprep.mubr.msk.bf16.mxu0 %vm267_vm0, %v784_v37 }
  0x25   : > { %1599 = vmatprep.subr.bf16.mxu0 %v1736_v38 }
  0x26   : > { %1542 = vmatmul.mubr.msk.bf16.vlgmr.msra.gmra.mrb[0].mxu1 %vm267_vm0, %v232_v41 }
  0x27   : > { %1550 = vmatpush3.bf16.msra.mxu1 %v1735_v28  ;;  %1545 = vmatprep.mubr.msk.bf16.mxu1 %vm267_vm0, %v233_v44 }
  0x28   : > { %1600 = vmatpush3.bf16.msra.mxu0 %v1736_v38  ;;  %1551 = vmatprep.subr.bf16.mxu1 %v1737_v45 }
  0x29   : > { %1609 = vmatprep.subr.bf16.mxu0 %v1738_v46 }
  0x2b   : > { %1594 = vmatmul.mubr.msk.bf16.gmra.mrb[4].mxu0 %vm267_vm0, %v785_v47  ;;  %1552 = vmatpush3.bf16.msra.mxu1 %v1737_v45 }
  0x2c   : > { %1601 = vmatprep.mubr.msk.bf16.mxu0 %vm267_vm0, %v232_v41  ;;  %1561 = vmatprep.subr.bf16.mxu1 %v1739_v51 }
  0x2e   : > { %1546 = vmatmul.mubr.msk.bf16.gmra.mrb[4].mxu1 %vm267_vm0, %v234_v52 }
  0x2f   : > { %1553 = vmatprep.mubr.msk.bf16.mxu1 %vm267_vm0, %v442_v53 }
  0x33   : > { %1602 = vmatmul.mubr.msk.bf16.vlgmr.msra.gmra.mrb[0].mxu0 %vm267_vm0, %v233_v44 }
  0x34   : > { %1610 = vmatpush3.bf16.msra.mxu0 %v1738_v46  ;;  %1605 = vmatprep.mubr.msk.bf16.mxu0 %vm267_vm0, %v234_v52 }
  0x35   : > { %1611 = vmatprep.subr.bf16.mxu0 %v1740_v54 }
  0x36   : > { %1554 = vmatmul.mubr.msk.bf16.vlgmr.msra.gmra.mrb[0].mxu1 %vm267_vm0, %v443_v55 }
  0x37   : > { %1562 = vmatpush3.bf16.msra.mxu1 %v1739_v51  ;;  %1557 = vmatprep.mubr.msk.bf16.mxu1 %vm267_vm0, %v444_v58 }
  0x38   : > { %1612 = vmatpush3.bf16.msra.mxu0 %v1740_v54  ;;  %1563 = vmatprep.subr.bf16.mxu1 %v1741_v59 }
  0x39   : > { %1621 = vmatprep.subr.bf16.mxu0 %v1742_v60 }
  0x3b   : > { %1606 = vmatmul.mubr.msk.bf16.gmra.mrb[4].mxu0 %vm267_vm0, %v899_v61  ;;  %1564 = vmatpush3.bf16.msra.mxu1 %v1741_v59 }
  0x3c   : > { %1613 = vmatprep.mubr.msk.bf16.mxu0 %vm267_vm0, %v1848_v14  ;;  %1633 = vmatprep.subr.bf16.mxu1 %v1812_v1 }
  0x3e   : > { %1558 = vmatmul.mubr.msk.bf16.gmra.mrb[4].mxu1 %vm267_vm0, %v445_v62 }
  0x3f   : > { %1565 = vmatprep.mubr.msk.bf16.mxu1 %vm267_vm0, %v556_v63 }
  0x43   : > { %1614 = vmatmul.mubr.msk.bf16.vlgmr.msra.gmra.mrb[0].mxu0 %vm267_vm0, %v1854_v17 }
  0x44   : > { %1622 = vmatpush3.bf16.msra.mxu0 %v1742_v60  ;;  %1617 = vmatprep.mubr.msk.bf16.mxu0 %vm267_vm0, %v1890_v27 }
  0x45   : > { %1623 = vmatprep.subr.bf16.mxu0 %v1743_v0 }
  0x46   : > { %1566 = vmatmul.mubr.msk.bf16.vlgmr.msra.gmra.mrb[0].mxu1 %vm267_vm0, %v557_v2 }
  0x47   : > { %1635 = vmatpush3.bf16.msra.mxu1 %v1812_v1  ;;  %1569 = vmatprep.mubr.msk.bf16.mxu1 %vm267_vm0, %v558_v6  ;;  %v1460_v1 = vld [vmem:[%s1837_s4 + $0x92] sm:$0xff] }
  0x48   : > { %1624 = vmatpush3.bf16.msra.mxu0 %v1743_v0  ;;  %1634 = vmatprep.subr.bf16.mxu1 %v1823_v3  ;;  %v1125_v11 = vpack.c.bf16 %v1460_v1, %v1921_v43 }
  0x4b   : > { %1618 = vmatmul.mubr.msk.bf16.gmra.mrb[4].mxu0 %vm267_vm0, %v1012_v7  ;;  %1636 = vmatpush3.bf16.msra.mxu1 %v1823_v3 }
  0x4c   : > { %1625 = vmatprep.mubr.msk.bf16.mxu0 %vm267_vm0, %v443_v55 }
  0x4e   : > { %1570 = vmatmul.mubr.msk.bf16.gmra.mrb[4].mxu1 %vm267_vm0, %v559_v8 }
  0x4f   : > { %1581 = vmatprep.mubr.msk.bf16.mxu1 %vm267_vm0, %v671_v9 }
  0x53   : > { %1626 = vmatmul.mubr.msk.bf16.vlgmr.msra.gmra.mrb[0].mxu0 %vm267_vm0, %v444_v58 }
  0x54   : > { %1629 = vmatprep.mubr.msk.bf16.mxu0 %vm267_vm0, %v445_v62 }
  0x5a   : > { %1582 = vmatmul.mubr.msk.bf16.vlgmr.msra.gmra.mrb[4].mxu1 %vm267_vm0, %v672_v10 }
  0x5b   : > { %1630 = vmatmul.mubr.msk.bf16.gmra.mrb[4].mxu0 %vm267_vm0, %v1125_v11 }
 0x119   : > { %v1567_v3 = vpop.f32.mrb[0].mxu1 }
 0x11a   : > { %v622_v12 = vpop.f32.mrb[1].mxu1 }
 0x11b   : > { %v1568_v13 = vpop.f32.mrb[2].mxu1 }
 0x11c   : > { %v625_v14 = vpop.f32.mrb[3].mxu1 }
 0x126   : > { %v1627_v15 = vpop.f32.mrb[0].mxu0 }
 0x127   : > { %v1637_v17 = vadd.f32 %v1627_v15, %v1567_v3  ;;  %v1188_v18 = vpop.f32.mrb[1].mxu0 }
 0x128   : > { %v1638_v19 = vadd.f32 %v1188_v18, %v622_v12  ;;  %v1628_v20 = vpop.f32.mrb[2].mxu0 }
 0x129   : > { %v1236_v21 = vadd.f32 %v1637_v17, %v1467_v16  ;;  %v1639_v22 = vadd.f32 %v1628_v20, %v1568_v13  ;;  %v1191_v23 = vpop.f32.mrb[3].mxu0 }
 0x12a   : > { %v1234_v24 = vadd.f32 %v1638_v19, %v1467_v16  ;;  %v1640_v25 = vadd.f32 %v1191_v23, %v625_v14 }
 0x12b   : > { %1244 = vst [vmem:[%s2005_s11 + $0x10] sm:$0xff] %v1236_v21  ;;  %v1237_v26 = vadd.f32 %v1639_v22, %v1467_v16 }
 0x12c   : > { %1242 = vst [vmem:[%s2005_s11] sm:$0xff] %v1234_v24  ;;  %v1235_v27 = vadd.f32 %v1640_v25, %v1467_v16 }
 0x12d   : > { %1245 = vst [vmem:[%s2005_s11 + $0x18] sm:$0xff] %v1237_v26  ;;  %v1583_v28 = vpop.f32.mrb[4].mxu1 }
 0x12e   : > { %1243 = vst [vmem:[%s2005_s11 + $0x8] sm:$0xff] %v1235_v27  ;;  %v1631_v29 = vpop.f32.mrb[4].mxu0  ;;  %v751_v31 = vpop.f32.mrb[5].mxu1 }
 0x12f   : > { %v1641_v30 = vadd.f32 %v1631_v29, %v1583_v28  ;;  %v1204_v32 = vpop.f32.mrb[5].mxu0  ;;  %v1584_v34 = vpop.f32.mrb[6].mxu1 }
 0x130   : > { %v1642_v33 = vadd.f32 %v1204_v32, %v751_v31  ;;  %v1632_v35 = vpop.f32.mrb[6].mxu0  ;;  %v754_v38 = vpop.f32.mrb[7].mxu1 }
 0x131   : > { %v1240_v36 = vadd.f32 %v1641_v30, %v1467_v16  ;;  %v1643_v37 = vadd.f32 %v1632_v35, %v1584_v34  ;;  %v1207_v39 = vpop.f32.mrb[7].mxu0 }
 0x132   : > { %v1238_v40 = vadd.f32 %v1642_v33, %v1467_v16  ;;  %v1644_v41 = vadd.f32 %v1207_v39, %v754_v38 }
 0x133   : > { %1248 = vst [vmem:[%s2005_s11 + $0x30] sm:$0xff] %v1240_v36  ;;  %v1241_v42 = vadd.f32 %v1643_v37, %v1467_v16 }
 0x134   : > { %1246 = vst [vmem:[%s2005_s11 + $0x20] sm:$0xff] %v1238_v40  ;;  %v1239_v43 = vadd.f32 %v1644_v41, %v1467_v16 }
 0x135   : > { %1249 = vst [vmem:[%s2005_s11 + $0x38] sm:$0xff] %v1241_v42 }
 0x136   : > { %1247 = vst [vmem:[%s2005_s11 + $0x28] sm:$0xff] %v1239_v43 }
 0x137 PF: > { %s13_s14 = sadd.s32 1, %s1766_s14   ;;  %s2028_s12 = smov %s1762_s13 }
 0x138   : > { %p10_p5 = scmp.ge.s32.totalorder %s13_s14, 4   ;;  %s2029_s13 = smov %s2031_s15 }
 0x13a   :  { %12 = sbr.rel (!%p10_p5) target bundleno = 2 (0x2), region = 70 }

// kernel: _lambda_.37
= control target key start
LH: loop header
LB: loop body
LE: loop exit
PB: predicated region body
PF: predicated region fallthrough
CT: control target
= control target key end

     0   :  { %s1002_s18 = smov 0   ;;  %s1140_s0 = inlined_call_operand.vmem [shape: f32[2,64,64], index: 0, kind: input, shape index: {}]   ;;  %s1141_s1 = inlined_call_operand.vmem [shape: f32[64,32], index: 1, kind: input, shape index: {}]   ;;  %s1142_s2 = inlined_call_operand.vmem [shape: f32[32,64], index: 2, kind: input, shape index: {}]   ;;  %s1143_s3 = inlined_call_operand.vmem [shape: f32[1,64], index: 3, kind: input, shape index: {}]   ;;  %s1144_s4 = inlined_call_operand.vmem [shape: f32[1,64], index: 4, kind: input, shape index: {}]   ;;  %s1145_s5 = inlined_call_operand.vmem [shape: f32[2,64,64], index: 5, kind: output, shape index: {}]  }
   0x1 LB: > { %s765_s19 = sadd.s32 4294967295, %s967_s18   ;;  %p769_p0 = scmp.ge.s32.totalorder %s967_s18, 1  ;;  %s967_s18 = sphi %s1002_s18, %s15_s18  }
   0x2   : > { %p187_p1 = scmp.lt.s32.totalorder %s967_s18, 3 }
   0x4   : > { %p188_p2 = pnand %p769_p0, %p187_p1 }
   0x5   : > { %v233_v0 = vld [vmem:[%s1141_s1] sm:$0xff] (!%p188_p2)  ;;  %v234_v1 = vld [vmem:[%s1141_s1 + $0x8] sm:$0xff] (!%p188_p2)  ;;  %v235_v2 = vld [vmem:[%s1141_s1 + $0x10] sm:$0xff] (!%p188_p2)  ;;  %v969_v3 = vmov (!%p188_p2), 0.0|0.0   ;;  %vm970_vm0 = vmmov (!%p188_p2), 0   ;;  %v971_v6 = vmov (!%p188_p2), 0.0   ;;  %v415_v52 = vlaneseq (!%p188_p2) }
   0x6   : > { %191 = sbr.rel (%p188_p2) target bundleno = 986 (0x3da), region = 40  ;;  %880 = vmatprep.subr.bf16.mxu0 (!%p188_p2), %v969_v3  ;;  %v1020_v4 = vpack.c.bf16 (!%p188_p2), %v234_v1, %v233_v0  ;;  %v236_v5 = vld [vmem:[%s1141_s1 + $0x18] sm:$0xff] (!%p188_p2)  ;;  %836 = vmatprep.mubr.msk.f32.mxu0 (!%p188_p2), %vm970_vm0, %v971_v6  ;;  %p215_p3 = scmp.lt.s32.totalorder (!%p188_p2), %s765_s19, 1  ;;  %v241_v7 = vld [vmem:[%s1142_s2] sm:$0xff] (!%p188_p2)  ;;  %v242_v9 = vld [vmem:[%s1142_s2 + $0x8] sm:$0xff] (!%p188_p2)  ;;  %vm245_vm1 = vcmask (!%p188_p2), 523264  }
   0x7   : > { %892 = vmatprep.subr.bf16.mxu1 (!%p188_p2), %v969_v3  ;;  %847 = vmatprep.mubr.msk.f32.mxu1 (!%p188_p2), %vm970_vm0, %v971_v6  ;;  %v1034_v8 = vpack.c.bf16 (!%p188_p2), %v236_v5, %v235_v2  ;;  %v237_v10 = vld [vmem:[%s1141_s1 + $0x20] sm:$0xff] (!%p188_p2)  ;;  %v238_v11 = vld [vmem:[%s1141_s1 + $0x28] sm:$0xff] (!%p188_p2)  ;;  %v893_v12 = vpack.c.bf16 (!%p188_p2), %v242_v9, %v241_v7  ;;  %v239_v17 = vld [vmem:[%s1141_s1 + $0x30] sm:$0xff] (!%p188_p2)  ;;  %vm341_vm2 = vcmask (!%p188_p2), 261120   ;;  %v416_v53 = vshrl.u32 (!%p188_p2), %v415_v52, 7 }
   0x8   : > { %882 = vmatpush3.bf16.msra.mxu0 (!%p188_p2), %v1020_v4  ;;  %v887_v13 = vpack.c.bf16 (!%p188_p2), %v238_v11, %v237_v10  ;;  %v240_v18 = vld [vmem:[%s1141_s1 + $0x38] sm:$0xff] (!%p188_p2)  ;;  %v243_v46 = vld [vmem:[%s1142_s2 + $0x10] sm:$0xff] (!%p188_p2) }
   0x9   : > { %883 = vmatprep.subr.bf16.mxu0 (!%p188_p2), %v969_v3  ;;  %894 = vmatpush3.bf16.msra.mxu1 (!%p188_p2), %v893_v12  ;;  %v890_v26 = vpack.c.bf16 (!%p188_p2), %v240_v18, %v239_v17  ;;  %v244_v47 = vld [vmem:[%s1142_s2 + $0x18] sm:$0xff] (!%p188_p2)  ;;  %v417_v54 = vsub.s32 (!%p188_p2), 0, %v416_v53 }
   0xa   : > { %895 = vmatprep.subr.bf16.mxu1 (!%p188_p2), %v969_v3  ;;  %v896_v48 = vpack.c.bf16 (!%p188_p2), %v244_v47, %v243_v46 }
   0xc   : > { %885 = vmatpush3.bf16.msra.mxu0 (!%p188_p2), %v1034_v8 }
   0xd   : > { %s1147_s19 = smov (!%p215_p3, %s765_s19), 1  ;;  %886 = vmatprep.subr.bf16.mxu0 %v969_v3  ;;  %897 = vmatpush3.bf16.msra.mxu1 %v896_v48 }
   0xe   : > { %s790_s11 = sshll.u32 %s1147_s19, 6  ;;  %898 = vmatprep.subr.bf16.mxu1 %v969_v3 }
   0xf   : > { %s219_s14 = scalar_lea.vmem %s1140_s0, %s790_s11  ;;  %s224_s6 = scalar_lea.vmem %s1145_s5, %s790_s11 }
  0x10   : > { %v1055_v14 = vld [vmem:[%s219_s14] sm:$0xff]  ;;  %v1057_v15 = vld [vmem:[%s219_s14 + $0x8] sm:$0xff]  ;;  %v1059_v16 = vld [vmem:[%s219_s14 + $0x10] sm:$0xff]  ;;  %888 = vmatpush3.bf16.msra.mxu0 %v887_v13 }
  0x11   : > { %v1069_v19 = vld [vmem:[%s219_s14 + $0x18] sm:$0xff]  ;;  %v246_v20 = vsel %vm245_vm1, %v1055_v14, 0.0  ;;  %v247_v21 = vsel %vm245_vm1, %v1057_v15, 0.0  ;;  %v249_v22 = vsel %vm245_vm1, %v1059_v16, 0.0  ;;  %v229_v23 = vld [vmem:[%s219_s14 + $0x20] sm:$0xff]  ;;  %v230_v27 = vld [vmem:[%s219_s14 + $0x28] sm:$0xff]  ;;  %889 = vmatprep.subr.bf16.mxu0 %v969_v3 }
  0x12   : > { %v248_v24 = vadd.f32 %v247_v21, %v246_v20  ;;  %v251_v25 = vsel %vm245_vm1, %v1069_v19, 0.0  ;;  %v253_v29 = vsel %vm245_vm1, %v229_v23, 0.0  ;;  %v231_v30 = vld [vmem:[%s219_s14 + $0x30] sm:$0xff]  ;;  %v255_v32 = vsel %vm245_vm1, %v230_v27, 0.0  ;;  %v232_v33 = vld [vmem:[%s219_s14 + $0x38] sm:$0xff] }
  0x13   : > { %v257_v35 = vsel %vm245_vm1, %v231_v30, 0.0  ;;  %v259_v37 = vsel %vm245_vm1, %v232_v33, 0.0 }
  0x14   : > { %v250_v28 = vadd.f32 %v249_v22, %v248_v24  ;;  %891 = vmatpush3.bf16.msra.mxu0 %v890_v26 }
  0x15   : > { %910 = vmatprep.subr.bf16.mxu0 %v969_v3 }
  0x16   : > { %v252_v31 = vadd.f32 %v251_v25, %v250_v28 }
  0x18   : > { %v254_v34 = vadd.f32 %v253_v29, %v252_v31 }
  0x1a   : > { %v256_v36 = vadd.f32 %v255_v32, %v254_v34 }
  0x1c   : > { %v258_v38 = vadd.f32 %v257_v35, %v256_v36 }
  0x1e   : > { %v260_v39 = vadd.f32 %v259_v37, %v258_v38 }
  0x20   : > { %v261_v40 = vrot.slane %v260_v39, 4 }
  0x22   : > { %v262_v41 = vadd.f32 %v261_v40, %v260_v39  ;;  %v778_v39 = vld [vmem:[%s1143_s3] ss:$0 sm:$0xff] }
  0x24   : > { %v263_v42 = vrot.slane %v262_v41, 2 }
  0x26   : > { %v264_v43 = vadd.f32 %v263_v42, %v262_v41 }
  0x28   : > { %v265_v44 = vrot.slane %v264_v43, 1 }
  0x2a   : > { %v266_v45 = vadd.f32 %v265_v44, %v264_v43 }
  0x2c   : > { %837 = vmatmul.mubr.msk.f32.vlgmr.msra.gmra.mrb[0].mxu0 %vm245_vm1, %v266_v45 }
  0x2d   : > { %912 = vmatpush3.bf16.msra.mxu0 %v893_v12  ;;  %877 = vmatprep.mubr.msk.f32.mxu0 %vm970_vm0, %v971_v6 }
  0x2e   : > { %913 = vmatprep.subr.bf16.mxu0 %v969_v3 }
  0x31   : > { %915 = vmatpush3.bf16.msra.mxu0 %v896_v48  ;;  %v779_v48 = vld [vmem:[%s1144_s4] ss:$0 sm:$0xff] }
  0xff   : > { %v336_v49 = vpop.f32.mrb[0].mxu0 }
 0x100   : > { %v340_v50 = vmul.f32 0.0078125, %v336_v49  ;;  %v838_v51 = vpop.f32.mrb[1].mxu0 }
 0x102   : > { %848 = vmatmul.mubr.msk.f32.vlgmr.msra.gmra.mrb[0].mxu1 %vm341_vm2, %v340_v50 }
 0x103   : > { %900 = vmatpush3.bf16.msra.mxu1 %v1020_v4  ;;  %866 = vmatprep.mubr.msk.f32.mxu1 %vm970_vm0, %v971_v6 }
 0x104   : > { %901 = vmatprep.subr.bf16.mxu1 %v969_v3 }
 0x107   : > { %903 = vmatpush3.bf16.msra.mxu1 %v1034_v8 }
 0x108   : > { %904 = vmatprep.subr.bf16.mxu1 %v969_v3 }
 0x10b   : > { %906 = vmatpush3.bf16.msra.mxu1 %v887_v13 }
 0x10c   : > { %907 = vmatprep.subr.bf16.mxu1 %v969_v3 }
 0x10f   : > { %909 = vmatpush3.bf16.msra.mxu1 %v890_v26 }
 0x1d5   : > { %v411_v55 = vpop.f32.mrb[0].mxu1 }
 0x1d6   : > { %v418_v56 = vrot.slane %v411_v55, %v417_v54  ;;  %v849_v57 = vpop.f32.mrb[1].mxu1 }
 0x1d8   : > { %v419_v58 = vsub.f32 %v1055_v14, %v418_v56  ;;  %v420_v59 = vsub.f32 %v1057_v15, %v418_v56  ;;  %v421_v60 = vsub.f32 %v1059_v16, %v418_v56  ;;  %v422_v61 = vsub.f32 %v1069_v19, %v418_v56 }
 0x1d9   : > { %v423_v62 = vsub.f32 %v229_v23, %v418_v56  ;;  %v424_v2 = vsub.f32 %v230_v27, %v418_v56  ;;  %v425_v7 = vsub.f32 %v231_v30, %v418_v56  ;;  %v426_v11 = vsub.f32 %v232_v33, %v418_v56 }
 0x1da   : > { %v427_v63 = vmul.f32 %v419_v58, %v419_v58  ;;  %v428_v0 = vmul.f32 %v420_v59, %v420_v59  ;;  %v429_v1 = vmul.f32 %v421_v60, %v421_v60  ;;  %v430_v3 = vmul.f32 %v422_v61, %v422_v61 }
 0x1db   : > { %v431_v8 = vmul.f32 %v423_v62, %v423_v62  ;;  %v432_v12 = vmul.f32 %v424_v2, %v424_v2  ;;  %v433_v15 = vmul.f32 %v425_v7, %v425_v7  ;;  %v434_v18 = vmul.f32 %v426_v11, %v426_v11 }
 0x1dc   : > { %v435_v4 = vsel %vm245_vm1, %v427_v63, 0.0  ;;  %v436_v5 = vsel %vm245_vm1, %v428_v0, 0.0  ;;  %v438_v9 = vsel %vm245_vm1, %v429_v1, 0.0  ;;  %v440_v13 = vsel %vm245_vm1, %v430_v3, 0.0 }
 0x1dd   : > { %v437_v6 = vadd.f32 %v436_v5, %v435_v4  ;;  %v442_v16 = vsel %vm245_vm1, %v431_v8, 0.0  ;;  %v444_v19 = vsel %vm245_vm1, %v432_v12, 0.0  ;;  %v446_v21 = vsel %vm245_vm1, %v433_v15, 0.0 }
 0x1de   : > { %v448_v23 = vsel %vm245_vm1, %v434_v18, 0.0 }
 0x1df   : > { %v439_v10 = vadd.f32 %v438_v9, %v437_v6 }
 0x1e1   : > { %v441_v14 = vadd.f32 %v440_v13, %v439_v10 }
 0x1e3   : > { %v443_v17 = vadd.f32 %v442_v16, %v441_v14 }
 0x1e5   : > { %v445_v20 = vadd.f32 %v444_v19, %v443_v17 }
 0x1e7   : > { %v447_v22 = vadd.f32 %v446_v21, %v445_v20 }
 0x1e9   : > { %v449_v24 = vadd.f32 %v448_v23, %v447_v22 }
 0x1eb   : > { %v450_v25 = vrot.slane %v449_v24, 4 }
 0x1ed   : > { %v451_v26 = vadd.f32 %v450_v25, %v449_v24 }
 0x1ef   : > { %v452_v27 = vrot.slane %v451_v26, 2 }
 0x1f1   : > { %v453_v28 = vadd.f32 %v452_v27, %v451_v26 }
 0x1f3   : > { %v454_v29 = vrot.slane %v453_v28, 1 }
 0x1f5   : > { %v455_v30 = vadd.f32 %v454_v29, %v453_v28 }
 0x1f7   : > { %867 = vmatmul.mubr.msk.f32.vlgmr.msra.gmra.mrb[2].mxu1 %vm245_vm1, %v455_v30 }
 0x2ca   : > { %v525_v31 = vpop.f32.mrb[2].mxu1 }
 0x2cb   : > { %v529_v32 = vmul.f32 0.0078125, %v525_v31  ;;  %v868_v33 = vpop.f32.mrb[3].mxu1 }
 0x2cd   : > { %878 = vmatmul.mubr.msk.f32.vlgmr.msra.gmra.mrb[2].mxu0 %vm341_vm2, %v529_v32 }
 0x3a0   : > { %v599_v34 = vpop.f32.mrb[2].mxu0 }
 0x3a1   : > { %v600_v35 = vadd.f32 1e-06, %v599_v34  ;;  %v879_v36 = vpop.f32.mrb[3].mxu0 }
 0x3a3   : > { %927 = vrsqrt.f32 %v600_v35 }
 0x3ad   : > { %v928_v37 = vpop.eup %927 }
 0x3ae   : > { %v607_v38 = vrot.slane %v928_v37, %v417_v54 }
 0x3b0   : > { %v608_v40 = vmul.f32 %v607_v38, %v419_v58  ;;  %v609_v41 = vmul.f32 %v607_v38, %v420_v59  ;;  %v610_v42 = vmul.f32 %v607_v38, %v421_v60  ;;  %v611_v43 = vmul.f32 %v607_v38, %v422_v61 }
 0x3b1   : > { %v612_v44 = vmul.f32 %v607_v38, %v423_v62  ;;  %v613_v45 = vmul.f32 %v607_v38, %v424_v2  ;;  %v614_v46 = vmul.f32 %v607_v38, %v425_v7  ;;  %v615_v47 = vmul.f32 %v607_v38, %v426_v11 }
 0x3b2   : > { %v623_v49 = vmul.f32 %v778_v39, %v608_v40  ;;  %v624_v50 = vmul.f32 %v778_v39, %v609_v41  ;;  %v625_v51 = vmul.f32 %v778_v39, %v610_v42  ;;  %v626_v52 = vmul.f32 %v778_v39, %v611_v43 }
 0x3b3   : > { %v627_v53 = vmul.f32 %v778_v39, %v612_v44  ;;  %v628_v54 = vmul.f32 %v778_v39, %v613_v45  ;;  %v629_v55 = vmul.f32 %v778_v39, %v614_v46  ;;  %v630_v56 = vmul.f32 %v778_v39, %v615_v47 }
 0x3b4   : > { %v638_v57 = vadd.f32 %v779_v48, %v623_v49  ;;  %v639_v58 = vadd.f32 %v779_v48, %v624_v50  ;;  %v640_v59 = vadd.f32 %v779_v48, %v625_v51  ;;  %v641_v60 = vadd.f32 %v779_v48, %v626_v52 }
 0x3b5   : > { %v642_v61 = vadd.f32 %v779_v48, %v627_v53  ;;  %v643_v62 = vadd.f32 %v779_v48, %v628_v54  ;;  %v644_v63 = vadd.f32 %v779_v48, %v629_v55  ;;  %v645_v3 = vadd.f32 %v779_v48, %v630_v56 }
 0x3b6   : > { %v780_v0 = vmul.f32 -1.442695, %v638_v57  ;;  %v781_v1 = vmul.f32 -1.442695, %v639_v58  ;;  %v782_v2 = vmul.f32 -1.442695, %v640_v59 }
 0x3b7   : > { %v783_v4 = vmul.f32 -1.442695, %v641_v60  ;;  %v784_v5 = vmul.f32 -1.442695, %v642_v61  ;;  %v785_v6 = vmul.f32 -1.442695, %v643_v62 }
 0x3b8   : > { %929 = vpow2.f32 %v780_v0  ;;  %v786_v7 = vmul.f32 -1.442695, %v644_v63  ;;  %v787_v8 = vmul.f32 -1.442695, %v645_v3 }
 0x3b9   : > { %931 = vpow2.f32 %v781_v1 }
 0x3ba   : > { %933 = vpow2.f32 %v782_v2 }
 0x3bb   : > { %935 = vpow2.f32 %v783_v4 }
 0x3bc   : > { %937 = vpow2.f32 %v784_v5 }
 0x3bd   : > { %939 = vpow2.f32 %v785_v6 }
 0x3be   : > { %941 = vpow2.f32 %v786_v7 }
 0x3bf   : > { %943 = vpow2.f32 %v787_v8 }
 0x3c2   : > { %v930_v9 = vpop.eup %929 }
 0x3c3   : > { %v932_v10 = vpop.eup %931  ;;  %v670_v11 = vadd.f32 1.0, %v930_v9 }
 0x3c4   : > { %v934_v12 = vpop.eup %933  ;;  %v671_v13 = vadd.f32 1.0, %v932_v10 }
 0x3c5   : > { %v936_v14 = vpop.eup %935  ;;  %v672_v15 = vadd.f32 1.0, %v934_v12  ;;  %945 = vrcp.f32 %v670_v11 }
 0x3c6   : > { %v938_v16 = vpop.eup %937  ;;  %v673_v17 = vadd.f32 1.0, %v936_v14  ;;  %947 = vrcp.f32 %v671_v13 }
 0x3c7   : > { %v940_v18 = vpop.eup %939  ;;  %v674_v19 = vadd.f32 1.0, %v938_v16  ;;  %949 = vrcp.f32 %v672_v15 }
 0x3c8   : > { %v942_v20 = vpop.eup %941  ;;  %v675_v21 = vadd.f32 1.0, %v940_v18  ;;  %951 = vrcp.f32 %v673_v17 }
 0x3c9   : > { %v944_v22 = vpop.eup %943  ;;  %v676_v23 = vadd.f32 1.0, %v942_v20  ;;  %953 = vrcp.f32 %v674_v19 }
 0x3ca   : > { %v677_v24 = vadd.f32 1.0, %v944_v22  ;;  %955 = vrcp.f32 %v675_v21 }
 0x3cb   : > { %957 = vrcp.f32 %v676_v23 }
 0x3cc   : > { %959 = vrcp.f32 %v677_v24 }
 0x3cf   : > { %v946_v25 = vpop.eup %945 }
 0x3d0   : > { %v948_v26 = vpop.eup %947  ;;  %v694_v27 = vmul.f32 %v946_v25, %v638_v57 }
 0x3d1   : > { %v950_v28 = vpop.eup %949  ;;  %v695_v29 = vmul.f32 %v948_v26, %v639_v58 }
 0x3d2   : > { %v952_v30 = vpop.eup %951  ;;  %v696_v31 = vmul.f32 %v950_v28, %v640_v59  ;;  %702 = vst.msk [vmem:[%s224_s6] sm:$0xff] %vm245_vm1, %v694_v27 }
 0x3d3   : > { %v954_v32 = vpop.eup %953  ;;  %v697_v33 = vmul.f32 %v952_v30, %v641_v60  ;;  %703 = vst.msk [vmem:[%s224_s6 + $0x8] sm:$0xff] %vm245_vm1, %v695_v29 }
 0x3d4   : > { %v956_v34 = vpop.eup %955  ;;  %v698_v35 = vmul.f32 %v954_v32, %v642_v61  ;;  %704 = vst.msk [vmem:[%s224_s6 + $0x10] sm:$0xff] %vm245_vm1, %v696_v31 }
 0x3d5   : > { %v958_v36 = vpop.eup %957  ;;  %v699_v37 = vmul.f32 %v956_v34, %v643_v62  ;;  %705 = vst.msk [vmem:[%s224_s6 + $0x18] sm:$0xff] %vm245_vm1, %v697_v33 }
 0x3d6   : > { %v960_v38 = vpop.eup %959  ;;  %v700_v39 = vmul.f32 %v958_v36, %v644_v63  ;;  %706 = vst.msk [vmem:[%s224_s6 + $0x20] sm:$0xff] %vm245_vm1, %v698_v35 }
 0x3d7   : > { %v701_v40 = vmul.f32 %v960_v38, %v645_v3  ;;  %707 = vst.msk [vmem:[%s224_s6 + $0x28] sm:$0xff] %vm245_vm1, %v699_v37 }
 0x3d8   : > { %708 = vst.msk [vmem:[%s224_s6 + $0x30] sm:$0xff] %vm245_vm1, %v700_v39 }
 0x3d9   : > { %709 = vst.msk [vmem:[%s224_s6 + $0x38] sm:$0xff] %vm245_vm1, %v701_v40 }
 0x3da PF: > { %s15_s18 = sadd.s32 1, %s967_s18  }
 0x3db   : > { %p12_p4 = scmp.ge.s32.totalorder %s15_s18, 4  }
 0x3dd   :  { %14 = sbr.rel (!%p12_p4) target bundleno = 1 (0x1), region = 70 }

// kernel: _lambda_.38
= control target key start
LH: loop header
LB: loop body
LE: loop exit
PB: predicated region body
PF: predicated region fallthrough
CT: control target
= control target key end

     0   :  { %s586_s1 = inlined_call_operand.vmem [shape: bf16[128,128], index: 1, kind: input, shape index: {}]   ;;  %s587_s0 = inlined_call_operand.vmem [shape: bf16[128,128], index: 0, kind: input, shape index: {}]   ;;  %s588_s2 = inlined_call_operand.vmem [shape: f32[1,128], index: 2, kind: input, shape index: {}]   ;;  %s589_s3 = inlined_call_operand.vmem [shape: f32[128,128], index: 3, kind: output, shape index: {}]  }
   0x1   :  { %v451_v0 = vld [vmem:[%s586_s1] sm:$0xff]   ;;  %v452_v1 = vld [vmem:[%s586_s1 + $0x8] sm:$0xff]   ;;  %v453_v2 = vld [vmem:[%s586_s1 + $0x10] sm:$0xff]  }
   0x2   :  { %403 = vmatprep.subr.bf16.mxu0 %v451_v0  ;;  %435 = vmatprep.subr.bf16.mxu1 %v451_v0  ;;  %v454_v3 = vld [vmem:[%s586_s1 + $0x18] sm:$0xff]   ;;  %v459_v4 = vld [vmem:[%s587_s0] sm:$0xff]   ;;  %v456_v7 = vld [vmem:[%s586_s1 + $0x28] sm:$0xff]  }
   0x3   :  { %404 = vmatpush3.bf16.msra.mxu0 %v451_v0  ;;  %443 = vmatpush3.bf16.msra.mxu1 %v451_v0  ;;  %v460_v5 = vld [vmem:[%s587_s0 + $0x20] sm:$0xff]   ;;  %v457_v8 = vld [vmem:[%s586_s1 + $0x30] sm:$0xff]   ;;  %v458_v9 = vld [vmem:[%s586_s1 + $0x38] sm:$0xff]  }
   0x4   :  { %405 = vmatprep.subr.bf16.mxu0 %v452_v1  ;;  %436 = vmatprep.subr.bf16.mxu1 %v452_v1  ;;  %v455_v6 = vld [vmem:[%s586_s1 + $0x20] sm:$0xff]   ;;  %v461_v10 = vld [vmem:[%s587_s0 + $0x8] sm:$0xff]   ;;  %v463_v12 = vld [vmem:[%s587_s0 + $0x10] sm:$0xff]  }
   0x5   :  { %419 = vmatprep.mubr.bf16.mxu0 %v459_v4  ;;  %427 = vmatprep.mubr.bf16.mxu1 %v460_v5  ;;  %v462_v11 = vld [vmem:[%s587_s0 + $0x28] sm:$0xff]   ;;  %v464_v13 = vld [vmem:[%s587_s0 + $0x30] sm:$0xff]   ;;  %v465_v14 = vld [vmem:[%s587_s0 + $0x18] sm:$0xff]  }
   0x6   :  { %v466_v15 = vld [vmem:[%s587_s0 + $0x38] sm:$0xff]   ;;  %v386_v16 = vld [vmem:[%s588_s2] ss:$0 sm:$0xff] }
   0x7   :  { %406 = vmatpush3.bf16.msra.mxu0 %v452_v1  ;;  %444 = vmatpush3.bf16.msra.mxu1 %v452_v1 }
   0x8   :  { %407 = vmatprep.subr.bf16.mxu0 %v453_v2  ;;  %437 = vmatprep.subr.bf16.mxu1 %v453_v2 }
   0xb   :  { %408 = vmatpush3.bf16.msra.mxu0 %v453_v2  ;;  %445 = vmatpush3.bf16.msra.mxu1 %v453_v2 }
   0xc   :  { %409 = vmatprep.subr.bf16.mxu0 %v454_v3  ;;  %438 = vmatprep.subr.bf16.mxu1 %v454_v3 }
   0xf   :  { %410 = vmatpush3.bf16.msra.mxu0 %v454_v3  ;;  %446 = vmatpush3.bf16.msra.mxu1 %v454_v3 }
  0x10   :  { %411 = vmatprep.subr.bf16.mxu0 %v455_v6  ;;  %439 = vmatprep.subr.bf16.mxu1 %v455_v6 }
  0x13   :  { %412 = vmatpush3.bf16.msra.mxu0 %v455_v6  ;;  %447 = vmatpush3.bf16.msra.mxu1 %v455_v6 }
  0x14   :  { %413 = vmatprep.subr.bf16.mxu0 %v456_v7  ;;  %440 = vmatprep.subr.bf16.mxu1 %v456_v7 }
  0x17   :  { %414 = vmatpush3.bf16.msra.mxu0 %v456_v7  ;;  %448 = vmatpush3.bf16.msra.mxu1 %v456_v7 }
  0x18   :  { %415 = vmatprep.subr.bf16.mxu0 %v457_v8  ;;  %441 = vmatprep.subr.bf16.mxu1 %v457_v8 }
  0x1b   :  { %416 = vmatpush3.bf16.msra.mxu0 %v457_v8  ;;  %449 = vmatpush3.bf16.msra.mxu1 %v457_v8 }
  0x1c   :  { %417 = vmatprep.subr.bf16.mxu0 %v458_v9  ;;  %442 = vmatprep.subr.bf16.mxu1 %v458_v9 }
  0x1f   :  { %418 = vmatpush3.bf16.msra.mxu0 %v458_v9  ;;  %450 = vmatpush3.bf16.msra.mxu1 %v458_v9 }
  0x22   :  { %420 = vmatmul.mubr.bf16.vlgmr.msra.gmra.mrb[0].mxu0 %v461_v10  ;;  %428 = vmatmul.mubr.bf16.vlgmr.msra.gmra.mrb[0].mxu1 %v462_v11 }
  0x23   :  { %423 = vmatprep.mubr.bf16.mxu0 %v463_v12  ;;  %431 = vmatprep.mubr.bf16.mxu1 %v464_v13 }
  0x2a   :  { %424 = vmatmul.mubr.bf16.gmra.mrb[4].mxu0 %v465_v14  ;;  %432 = vmatmul.mubr.bf16.gmra.mrb[4].mxu1 %v466_v15 }
  0xf5   :  { %v421_v17 = vpop.f32.mrb[0].mxu0  ;;  %v429_v18 = vpop.f32.mrb[0].mxu1 }
  0xf6   :  { %v336_v19 = vadd.f32 %v421_v17, %v386_v16  ;;  %v344_v20 = vadd.f32 %v429_v18, %v386_v16  ;;  %v213_v21 = vpop.f32.mrb[1].mxu0  ;;  %v245_v22 = vpop.f32.mrb[1].mxu1 }
  0xf7   :  { %v334_v23 = vadd.f32 %v386_v16, %v213_v21  ;;  %v342_v24 = vadd.f32 %v386_v16, %v245_v22  ;;  %v422_v25 = vpop.f32.mrb[2].mxu0  ;;  %v430_v26 = vpop.f32.mrb[2].mxu1 }
  0xf8   :  { %352 = vst [vmem:[%s589_s3 + $0x10] sm:$0xff] %v336_v19  ;;  %360 = vst [vmem:[%s589_s3 + $0x50] sm:$0xff] %v344_v20  ;;  %v337_v27 = vadd.f32 %v422_v25, %v386_v16  ;;  %v345_v28 = vadd.f32 %v430_v26, %v386_v16  ;;  %v216_v29 = vpop.f32.mrb[3].mxu0  ;;  %v248_v30 = vpop.f32.mrb[3].mxu1 }
  0xf9   :  { %350 = vst [vmem:[%s589_s3] sm:$0xff] %v334_v23  ;;  %358 = vst [vmem:[%s589_s3 + $0x40] sm:$0xff] %v342_v24  ;;  %v335_v31 = vadd.f32 %v386_v16, %v216_v29  ;;  %v343_v32 = vadd.f32 %v386_v16, %v248_v30 }
  0xfa   :  { %353 = vst [vmem:[%s589_s3 + $0x18] sm:$0xff] %v337_v27  ;;  %361 = vst [vmem:[%s589_s3 + $0x58] sm:$0xff] %v345_v28 }
  0xfb   :  { %351 = vst [vmem:[%s589_s3 + $0x8] sm:$0xff] %v335_v31  ;;  %359 = vst [vmem:[%s589_s3 + $0x48] sm:$0xff] %v343_v32 }
  0xfd   :  { %v425_v33 = vpop.f32.mrb[4].mxu0  ;;  %v433_v34 = vpop.f32.mrb[4].mxu1 }
  0xfe   :  { %v340_v35 = vadd.f32 %v425_v33, %v386_v16  ;;  %v348_v36 = vadd.f32 %v433_v34, %v386_v16  ;;  %v229_v37 = vpop.f32.mrb[5].mxu0  ;;  %v261_v38 = vpop.f32.mrb[5].mxu1 }
  0xff   :  { %v338_v39 = vadd.f32 %v386_v16, %v229_v37  ;;  %v346_v40 = vadd.f32 %v386_v16, %v261_v38  ;;  %v426_v41 = vpop.f32.mrb[6].mxu0  ;;  %v434_v42 = vpop.f32.mrb[6].mxu1 }
 0x100   :  { %356 = vst [vmem:[%s589_s3 + $0x30] sm:$0xff] %v340_v35  ;;  %364 = vst [vmem:[%s589_s3 + $0x70] sm:$0xff] %v348_v36  ;;  %v341_v43 = vadd.f32 %v426_v41, %v386_v16  ;;  %v349_v44 = vadd.f32 %v434_v42, %v386_v16  ;;  %v232_v45 = vpop.f32.mrb[7].mxu0  ;;  %v264_v46 = vpop.f32.mrb[7].mxu1 }
 0x101   :  { %354 = vst [vmem:[%s589_s3 + $0x20] sm:$0xff] %v338_v39  ;;  %362 = vst [vmem:[%s589_s3 + $0x60] sm:$0xff] %v346_v40  ;;  %v339_v47 = vadd.f32 %v386_v16, %v232_v45  ;;  %v347_v48 = vadd.f32 %v386_v16, %v264_v46 }
 0x102   :  { %357 = vst [vmem:[%s589_s3 + $0x38] sm:$0xff] %v341_v43  ;;  %365 = vst [vmem:[%s589_s3 + $0x78] sm:$0xff] %v349_v44 }
 0x103   :  { %355 = vst [vmem:[%s589_s3 + $0x28] sm:$0xff] %v339_v47  ;;  %363 = vst [vmem:[%s589_s3 + $0x68] sm:$0xff] %v347_v48 }

// kernel: _lambda_.40
= control target key start
LH: loop header
LB: loop body
LE: loop exit
PB: predicated region body
PF: predicated region fallthrough
CT: control target
= control target key end

     0   :  { %s906_s18 = smov 0   ;;  %s1044_s0 = inlined_call_operand.vmem [shape: f32[2,64,64], index: 0, kind: input, shape index: {}]   ;;  %s1045_s1 = inlined_call_operand.vmem [shape: f32[64,32], index: 1, kind: input, shape index: {}]   ;;  %s1046_s2 = inlined_call_operand.vmem [shape: f32[32,64], index: 2, kind: input, shape index: {}]   ;;  %s1047_s3 = inlined_call_operand.vmem [shape: f32[1,64], index: 3, kind: input, shape index: {}]   ;;  %s1048_s4 = inlined_call_operand.vmem [shape: f32[1,64], index: 4, kind: input, shape index: {}]   ;;  %s1049_s5 = inlined_call_operand.vmem [shape: f32[2,64,64], index: 5, kind: output, shape index: {}]  }
   0x1 LB: > { %s709_s19 = sadd.s32 4294967295, %s871_s18   ;;  %p713_p0 = scmp.ge.s32.totalorder %s871_s18, 1  ;;  %s871_s18 = sphi %s906_s18, %s15_s18  }
   0x2   : > { %p187_p1 = scmp.lt.s32.totalorder %s871_s18, 3 }
   0x4   : > { %p188_p2 = pnand %p713_p0, %p187_p1 }
   0x5   : > { %v233_v0 = vld [vmem:[%s1045_s1] sm:$0xff] (!%p188_p2)  ;;  %v234_v1 = vld [vmem:[%s1045_s1 + $0x8] sm:$0xff] (!%p188_p2)  ;;  %v235_v2 = vld [vmem:[%s1045_s1 + $0x10] sm:$0xff] (!%p188_p2)  ;;  %v873_v3 = vmov (!%p188_p2), 0.0|0.0   ;;  %vm874_vm0 = vmmov (!%p188_p2), 0   ;;  %v875_v6 = vmov (!%p188_p2), 0.0   ;;  %v415_v52 = vlaneseq (!%p188_p2) }
   0x6   : > { %191 = sbr.rel (%p188_p2) target bundleno = 954 (0x3ba), region = 40  ;;  %816 = vmatprep.subr.bf16.mxu0 (!%p188_p2), %v873_v3  ;;  %v924_v4 = vpack.c.bf16 (!%p188_p2), %v234_v1, %v233_v0  ;;  %v236_v5 = vld [vmem:[%s1045_s1 + $0x18] sm:$0xff] (!%p188_p2)  ;;  %772 = vmatprep.mubr.msk.f32.mxu0 (!%p188_p2), %vm874_vm0, %v875_v6  ;;  %p215_p3 = scmp.lt.s32.totalorder (!%p188_p2), %s709_s19, 1  ;;  %v241_v7 = vld [vmem:[%s1046_s2] sm:$0xff] (!%p188_p2)  ;;  %v242_v9 = vld [vmem:[%s1046_s2 + $0x8] sm:$0xff] (!%p188_p2)  ;;  %vm245_vm1 = vcmask (!%p188_p2), 523264  }
   0x7   : > { %828 = vmatprep.subr.bf16.mxu1 (!%p188_p2), %v873_v3  ;;  %783 = vmatprep.mubr.msk.f32.mxu1 (!%p188_p2), %vm874_vm0, %v875_v6  ;;  %v938_v8 = vpack.c.bf16 (!%p188_p2), %v236_v5, %v235_v2  ;;  %v237_v10 = vld [vmem:[%s1045_s1 + $0x20] sm:$0xff] (!%p188_p2)  ;;  %v238_v11 = vld [vmem:[%s1045_s1 + $0x28] sm:$0xff] (!%p188_p2)  ;;  %v829_v12 = vpack.c.bf16 (!%p188_p2), %v242_v9, %v241_v7  ;;  %v239_v17 = vld [vmem:[%s1045_s1 + $0x30] sm:$0xff] (!%p188_p2)  ;;  %vm341_vm2 = vcmask (!%p188_p2), 261120   ;;  %v416_v53 = vshrl.u32 (!%p188_p2), %v415_v52, 7 }
   0x8   : > { %818 = vmatpush3.bf16.msra.mxu0 (!%p188_p2), %v924_v4  ;;  %v823_v13 = vpack.c.bf16 (!%p188_p2), %v238_v11, %v237_v10  ;;  %v240_v18 = vld [vmem:[%s1045_s1 + $0x38] sm:$0xff] (!%p188_p2)  ;;  %v243_v46 = vld [vmem:[%s1046_s2 + $0x10] sm:$0xff] (!%p188_p2) }
   0x9   : > { %819 = vmatprep.subr.bf16.mxu0 (!%p188_p2), %v873_v3  ;;  %830 = vmatpush3.bf16.msra.mxu1 (!%p188_p2), %v829_v12  ;;  %v826_v26 = vpack.c.bf16 (!%p188_p2), %v240_v18, %v239_v17  ;;  %v244_v47 = vld [vmem:[%s1046_s2 + $0x18] sm:$0xff] (!%p188_p2)  ;;  %v417_v54 = vsub.s32 (!%p188_p2), 0, %v416_v53 }
   0xa   : > { %831 = vmatprep.subr.bf16.mxu1 (!%p188_p2), %v873_v3  ;;  %v832_v48 = vpack.c.bf16 (!%p188_p2), %v244_v47, %v243_v46 }
   0xc   : > { %821 = vmatpush3.bf16.msra.mxu0 (!%p188_p2), %v938_v8 }
   0xd   : > { %s1051_s19 = smov (!%p215_p3, %s709_s19), 1  ;;  %822 = vmatprep.subr.bf16.mxu0 %v873_v3  ;;  %833 = vmatpush3.bf16.msra.mxu1 %v832_v48 }
   0xe   : > { %s726_s11 = sshll.u32 %s1051_s19, 6  ;;  %834 = vmatprep.subr.bf16.mxu1 %v873_v3 }
   0xf   : > { %s219_s14 = scalar_lea.vmem %s1044_s0, %s726_s11  ;;  %s224_s6 = scalar_lea.vmem %s1049_s5, %s726_s11 }
  0x10   : > { %v959_v14 = vld [vmem:[%s219_s14] sm:$0xff]  ;;  %v961_v15 = vld [vmem:[%s219_s14 + $0x8] sm:$0xff]  ;;  %v963_v16 = vld [vmem:[%s219_s14 + $0x10] sm:$0xff]  ;;  %824 = vmatpush3.bf16.msra.mxu0 %v823_v13 }
  0x11   : > { %v973_v19 = vld [vmem:[%s219_s14 + $0x18] sm:$0xff]  ;;  %v246_v20 = vsel %vm245_vm1, %v959_v14, 0.0  ;;  %v247_v21 = vsel %vm245_vm1, %v961_v15, 0.0  ;;  %v249_v22 = vsel %vm245_vm1, %v963_v16, 0.0  ;;  %v229_v23 = vld [vmem:[%s219_s14 + $0x20] sm:$0xff]  ;;  %v230_v27 = vld [vmem:[%s219_s14 + $0x28] sm:$0xff]  ;;  %825 = vmatprep.subr.bf16.mxu0 %v873_v3 }
  0x12   : > { %v248_v24 = vadd.f32 %v247_v21, %v246_v20  ;;  %v251_v25 = vsel %vm245_vm1, %v973_v19, 0.0  ;;  %v253_v29 = vsel %vm245_vm1, %v229_v23, 0.0  ;;  %v231_v30 = vld [vmem:[%s219_s14 + $0x30] sm:$0xff]  ;;  %v255_v32 = vsel %vm245_vm1, %v230_v27, 0.0  ;;  %v232_v33 = vld [vmem:[%s219_s14 + $0x38] sm:$0xff] }
  0x13   : > { %v257_v35 = vsel %vm245_vm1, %v231_v30, 0.0  ;;  %v259_v37 = vsel %vm245_vm1, %v232_v33, 0.0 }
  0x14   : > { %v250_v28 = vadd.f32 %v249_v22, %v248_v24  ;;  %827 = vmatpush3.bf16.msra.mxu0 %v826_v26 }
  0x15   : > { %846 = vmatprep.subr.bf16.mxu0 %v873_v3 }
  0x16   : > { %v252_v31 = vadd.f32 %v251_v25, %v250_v28 }
  0x18   : > { %v254_v34 = vadd.f32 %v253_v29, %v252_v31 }
  0x1a   : > { %v256_v36 = vadd.f32 %v255_v32, %v254_v34 }
  0x1c   : > { %v258_v38 = vadd.f32 %v257_v35, %v256_v36 }
  0x1e   : > { %v260_v39 = vadd.f32 %v259_v37, %v258_v38 }
  0x20   : > { %v261_v40 = vrot.slane %v260_v39, 4 }
  0x22   : > { %v262_v41 = vadd.f32 %v261_v40, %v260_v39  ;;  %v722_v39 = vld [vmem:[%s1047_s3] ss:$0 sm:$0xff] }
  0x24   : > { %v263_v42 = vrot.slane %v262_v41, 2 }
  0x26   : > { %v264_v43 = vadd.f32 %v263_v42, %v262_v41 }
  0x28   : > { %v265_v44 = vrot.slane %v264_v43, 1 }
  0x2a   : > { %v266_v45 = vadd.f32 %v265_v44, %v264_v43 }
  0x2c   : > { %773 = vmatmul.mubr.msk.f32.vlgmr.msra.gmra.mrb[0].mxu0 %vm245_vm1, %v266_v45 }
  0x2d   : > { %848 = vmatpush3.bf16.msra.mxu0 %v829_v12  ;;  %813 = vmatprep.mubr.msk.f32.mxu0 %vm874_vm0, %v875_v6 }
  0x2e   : > { %849 = vmatprep.subr.bf16.mxu0 %v873_v3 }
  0x31   : > { %851 = vmatpush3.bf16.msra.mxu0 %v832_v48  ;;  %v723_v48 = vld [vmem:[%s1048_s4] ss:$0 sm:$0xff] }
  0xff   : > { %v336_v49 = vpop.f32.mrb[0].mxu0 }
 0x100   : > { %v340_v50 = vmul.f32 0.0078125, %v336_v49  ;;  %v774_v51 = vpop.f32.mrb[1].mxu0 }
 0x102   : > { %784 = vmatmul.mubr.msk.f32.vlgmr.msra.gmra.mrb[0].mxu1 %vm341_vm2, %v340_v50 }
 0x103   : > { %836 = vmatpush3.bf16.msra.mxu1 %v924_v4  ;;  %802 = vmatprep.mubr.msk.f32.mxu1 %vm874_vm0, %v875_v6 }
 0x104   : > { %837 = vmatprep.subr.bf16.mxu1 %v873_v3 }
 0x107   : > { %839 = vmatpush3.bf16.msra.mxu1 %v938_v8 }
 0x108   : > { %840 = vmatprep.subr.bf16.mxu1 %v873_v3 }
 0x10b   : > { %842 = vmatpush3.bf16.msra.mxu1 %v823_v13 }
 0x10c   : > { %843 = vmatprep.subr.bf16.mxu1 %v873_v3 }
 0x10f   : > { %845 = vmatpush3.bf16.msra.mxu1 %v826_v26 }
 0x1d5   : > { %v411_v55 = vpop.f32.mrb[0].mxu1 }
 0x1d6   : > { %v418_v56 = vrot.slane %v411_v55, %v417_v54  ;;  %v785_v57 = vpop.f32.mrb[1].mxu1 }
 0x1d8   : > { %v419_v58 = vsub.f32 %v959_v14, %v418_v56  ;;  %v420_v59 = vsub.f32 %v961_v15, %v418_v56  ;;  %v421_v60 = vsub.f32 %v963_v16, %v418_v56  ;;  %v422_v61 = vsub.f32 %v973_v19, %v418_v56 }
 0x1d9   : > { %v423_v62 = vsub.f32 %v229_v23, %v418_v56  ;;  %v424_v2 = vsub.f32 %v230_v27, %v418_v56  ;;  %v425_v7 = vsub.f32 %v231_v30, %v418_v56  ;;  %v426_v11 = vsub.f32 %v232_v33, %v418_v56 }
 0x1da   : > { %v427_v63 = vmul.f32 %v419_v58, %v419_v58  ;;  %v428_v0 = vmul.f32 %v420_v59, %v420_v59  ;;  %v429_v1 = vmul.f32 %v421_v60, %v421_v60  ;;  %v430_v3 = vmul.f32 %v422_v61, %v422_v61 }
 0x1db   : > { %v431_v8 = vmul.f32 %v423_v62, %v423_v62  ;;  %v432_v12 = vmul.f32 %v424_v2, %v424_v2  ;;  %v433_v15 = vmul.f32 %v425_v7, %v425_v7  ;;  %v434_v18 = vmul.f32 %v426_v11, %v426_v11 }
 0x1dc   : > { %v435_v4 = vsel %vm245_vm1, %v427_v63, 0.0  ;;  %v436_v5 = vsel %vm245_vm1, %v428_v0, 0.0  ;;  %v438_v9 = vsel %vm245_vm1, %v429_v1, 0.0  ;;  %v440_v13 = vsel %vm245_vm1, %v430_v3, 0.0 }
 0x1dd   : > { %v437_v6 = vadd.f32 %v436_v5, %v435_v4  ;;  %v442_v16 = vsel %vm245_vm1, %v431_v8, 0.0  ;;  %v444_v19 = vsel %vm245_vm1, %v432_v12, 0.0  ;;  %v446_v21 = vsel %vm245_vm1, %v433_v15, 0.0 }
 0x1de   : > { %v448_v23 = vsel %vm245_vm1, %v434_v18, 0.0 }
 0x1df   : > { %v439_v10 = vadd.f32 %v438_v9, %v437_v6 }
 0x1e1   : > { %v441_v14 = vadd.f32 %v440_v13, %v439_v10 }
 0x1e3   : > { %v443_v17 = vadd.f32 %v442_v16, %v441_v14 }
 0x1e5   : > { %v445_v20 = vadd.f32 %v444_v19, %v443_v17 }
 0x1e7   : > { %v447_v22 = vadd.f32 %v446_v21, %v445_v20 }
 0x1e9   : > { %v449_v24 = vadd.f32 %v448_v23, %v447_v22 }
 0x1eb   : > { %v450_v25 = vrot.slane %v449_v24, 4 }
 0x1ed   : > { %v451_v26 = vadd.f32 %v450_v25, %v449_v24 }
 0x1ef   : > { %v452_v27 = vrot.slane %v451_v26, 2 }
 0x1f1   : > { %v453_v28 = vadd.f32 %v452_v27, %v451_v26 }
 0x1f3   : > { %v454_v29 = vrot.slane %v453_v28, 1 }
 0x1f5   : > { %v455_v30 = vadd.f32 %v454_v29, %v453_v28 }
 0x1f7   : > { %803 = vmatmul.mubr.msk.f32.vlgmr.msra.gmra.mrb[2].mxu1 %vm245_vm1, %v455_v30 }
 0x2ca   : > { %v525_v31 = vpop.f32.mrb[2].mxu1 }
 0x2cb   : > { %v529_v32 = vmul.f32 0.0078125, %v525_v31  ;;  %v804_v33 = vpop.f32.mrb[3].mxu1 }
 0x2cd   : > { %814 = vmatmul.mubr.msk.f32.vlgmr.msra.gmra.mrb[2].mxu0 %vm341_vm2, %v529_v32 }
 0x3a0   : > { %v599_v34 = vpop.f32.mrb[2].mxu0 }
 0x3a1   : > { %v600_v35 = vadd.f32 1e-06, %v599_v34  ;;  %v815_v36 = vpop.f32.mrb[3].mxu0 }
 0x3a3   : > { %863 = vrsqrt.f32 %v600_v35 }
 0x3ad   : > { %v864_v37 = vpop.eup %863 }
 0x3ae   : > { %v607_v38 = vrot.slane %v864_v37, %v417_v54 }
 0x3b0   : > { %v608_v40 = vmul.f32 %v607_v38, %v419_v58  ;;  %v609_v41 = vmul.f32 %v607_v38, %v420_v59  ;;  %v610_v42 = vmul.f32 %v607_v38, %v421_v60  ;;  %v611_v43 = vmul.f32 %v607_v38, %v422_v61 }
 0x3b1   : > { %v612_v44 = vmul.f32 %v607_v38, %v423_v62  ;;  %v613_v45 = vmul.f32 %v607_v38, %v424_v2  ;;  %v614_v46 = vmul.f32 %v607_v38, %v425_v7  ;;  %v615_v47 = vmul.f32 %v607_v38, %v426_v11 }
 0x3b2   : > { %v623_v49 = vmul.f32 %v722_v39, %v608_v40  ;;  %v624_v50 = vmul.f32 %v722_v39, %v609_v41  ;;  %v625_v51 = vmul.f32 %v722_v39, %v610_v42  ;;  %v626_v52 = vmul.f32 %v722_v39, %v611_v43 }
 0x3b3   : > { %v627_v53 = vmul.f32 %v722_v39, %v612_v44  ;;  %v628_v54 = vmul.f32 %v722_v39, %v613_v45  ;;  %v629_v55 = vmul.f32 %v722_v39, %v614_v46  ;;  %v630_v56 = vmul.f32 %v722_v39, %v615_v47 }
 0x3b4   : > { %v638_v57 = vadd.f32 %v723_v48, %v623_v49  ;;  %v639_v58 = vadd.f32 %v723_v48, %v624_v50  ;;  %v640_v59 = vadd.f32 %v723_v48, %v625_v51  ;;  %v641_v60 = vadd.f32 %v723_v48, %v626_v52 }
 0x3b5   : > { %v642_v61 = vadd.f32 %v723_v48, %v627_v53  ;;  %v643_v62 = vadd.f32 %v723_v48, %v628_v54  ;;  %v644_v63 = vadd.f32 %v723_v48, %v629_v55  ;;  %v645_v0 = vadd.f32 %v723_v48, %v630_v56 }
 0x3b6   : > { %646 = vst.msk [vmem:[%s224_s6] sm:$0xff] %vm245_vm1, %v638_v57  ;;  %647 = vst.msk [vmem:[%s224_s6 + $0x8] sm:$0xff] %vm245_vm1, %v639_v58 }
 0x3b7   : > { %648 = vst.msk [vmem:[%s224_s6 + $0x10] sm:$0xff] %vm245_vm1, %v640_v59  ;;  %649 = vst.msk [vmem:[%s224_s6 + $0x18] sm:$0xff] %vm245_vm1, %v641_v60 }
 0x3b8   : > { %650 = vst.msk [vmem:[%s224_s6 + $0x20] sm:$0xff] %vm245_vm1, %v642_v61  ;;  %651 = vst.msk [vmem:[%s224_s6 + $0x28] sm:$0xff] %vm245_vm1, %v643_v62 }
 0x3b9   : > { %652 = vst.msk [vmem:[%s224_s6 + $0x30] sm:$0xff] %vm245_vm1, %v644_v63  ;;  %653 = vst.msk [vmem:[%s224_s6 + $0x38] sm:$0xff] %vm245_vm1, %v645_v0 }
 0x3ba PF: > { %s15_s18 = sadd.s32 1, %s871_s18  }
 0x3bb   : > { %p12_p4 = scmp.ge.s32.totalorder %s15_s18, 4  }
 0x3bd   :  { %14 = sbr.rel (!%p12_p4) target bundleno = 1 (0x1), region = 70 }

// kernel: _lambda_.42
= control target key start
LH: loop header
LB: loop body
LE: loop exit
PB: predicated region body
PF: predicated region fallthrough
CT: control target
= control target key end

     0   :  { %s979_s12 = smov 0   ;;  %s981_s13 = smov 0   ;;  %s1102_s0 = inlined_call_operand.vmem [shape: f32[2,64,384], index: 0, kind: input, shape index: {}, may-alias: {0,1,2}]   ;;  %s1103_s1 = inlined_call_operand.vmem [shape: f32[2,64,384], index: 1, kind: input, shape index: {}, may-alias: {0,1,2}]   ;;  %s1104_s2 = inlined_call_operand.vmem [shape: f32[2,64,384], index: 2, kind: input, shape index: {}, may-alias: {0,1,2}]   ;;  %s1105_s3 = inlined_call_operand.vmem [shape: f32[2,64,128], index: 3, kind: output, shape index: {}]  }
   0x1   :  { %s983_s14 = smov 0  }
   0x2 LB: > { %s791_s15 = sadd.s32 4294967295, %s957_s14   ;;  %s996_s16 = sadd.s32 1, %s957_s14   ;;  %s957_s14 = sphi %s983_s14, %s1109_s14   ;;  %s953_s13 = sphi %s981_s13, %s1108_s13   ;;  %s949_s12 = sphi %s979_s12, %s1107_s12  }
   0x3   : > { %s17_s17 = ssub.s32 %s957_s14, %s996_s16  ;;  %s20_s18 = sadd.s32 1, %s953_s13 }
   0x4   : > { %p18_p0 = scmp.eq.s32.totalorder %s17_s17, 0  ;;  %p27_p1 = scmp.ne.s32.totalorder %s953_s13, %s949_s12 }
   0x5   : > { %p28_p2 = scmp.eq.s32.totalorder %s957_s14, 0  ;;  %p794_p4 = scmp.ge.s32.totalorder %s957_s14, 2 }
   0x6   : > { %s1005_s19 = scalar_select %p18_p0, %s953_s13, %s20_s18  }
   0x7   : > { %p1007_p3 = por %p28_p2, %p27_p1  ;;  %131 = sbr.rel (%p794_p4) target bundleno = 41 (0x29), region = 16 }
   0xe   : > { %134 = sbr.rel (!%p1007_p3) target bundleno = 23 (0x17), region = 20  ;;  %s136_s21 = sand.u32 (%p1007_p3), 1, %s953_s13  }
   0xf   : > { %s878_s22 = smul.u32 (%p1007_p3), 192, %s957_s14  ;;  %s795_s23 = sshll.u32 (%p1007_p3), %s136_s21, 6 }
  0x10   : > { %s138_s27 = scalar_lea.vmem (%p1007_p3), [#allocation2], %s795_s23 }
  0x11   : > { %s141_s26 = scalar_lea.vmem (%p1007_p3), %s1102_s0, %s878_s22 }
  0x12   : > { %v183_v0 = vld [vmem:[%s141_s26] sm:$0xff] (%p1007_p3)  ;;  %v185_v1 = vld [vmem:[%s141_s26 + $0x18] sm:$0xff] (%p1007_p3)  ;;  %v187_v2 = vld [vmem:[%s141_s26 + $0x30] sm:$0xff] (%p1007_p3) }
  0x13   : > { %184 = vst [vmem:[%s138_s27] sm:$0xff] (%p1007_p3), %v183_v0  ;;  %186 = vst [vmem:[%s138_s27 + $0x8] sm:$0xff] (%p1007_p3), %v185_v1  ;;  %v189_v3 = vld [vmem:[%s141_s26 + $0x48] sm:$0xff] (%p1007_p3)  ;;  %v191_v4 = vld [vmem:[%s141_s26 + $0x60] sm:$0xff] (%p1007_p3) }
  0x14   : > { %188 = vst [vmem:[%s138_s27 + $0x10] sm:$0xff] (%p1007_p3), %v187_v2  ;;  %v193_v5 = vld [vmem:[%s141_s26 + $0x78] sm:$0xff] (%p1007_p3)  ;;  %190 = vst [vmem:[%s138_s27 + $0x18] sm:$0xff] (%p1007_p3), %v189_v3  ;;  %v195_v6 = vld [vmem:[%s141_s26 + $0x90] sm:$0xff] (%p1007_p3) }
  0x15   : > { %192 = vst [vmem:[%s138_s27 + $0x20] sm:$0xff] %v191_v4  ;;  %194 = vst [vmem:[%s138_s27 + $0x28] sm:$0xff] %v193_v5  ;;  %v197_v7 = vld [vmem:[%s141_s26 + $0xa8] sm:$0xff] }
  0x16   : > { %196 = vst [vmem:[%s138_s27 + $0x30] sm:$0xff] %v195_v6  ;;  %198 = vst [vmem:[%s138_s27 + $0x38] sm:$0xff] %v197_v7 }
  0x17 PF: > { %204 = sbr.rel (!%p1007_p3) target bundleno = 32 (0x20), region = 58  ;;  %s206_s28 = sand.u32 (%p1007_p3), 1, %s953_s13  }
  0x18   : > { %s798_s29 = smul.u32 (%p1007_p3), 192, %s957_s14  ;;  %s797_s30 = sshll.u32 (%p1007_p3), %s206_s28, 6 }
  0x19   : > { %s208_s7 = scalar_lea.vmem (%p1007_p3), [#allocation3], %s797_s30 }
  0x1a   : > { %s719_s6 = scalar_lea.vmem (%p1007_p3), %s1103_s1, %s798_s29 }
  0x1b   : > { %v799_v8 = vld [vmem:[%s719_s6 + $0x8] sm:$0xff] (%p1007_p3)  ;;  %v800_v9 = vld [vmem:[%s719_s6 + $0x20] sm:$0xff] (%p1007_p3)  ;;  %v801_v10 = vld [vmem:[%s719_s6 + $0x38] sm:$0xff] (%p1007_p3) }
  0x1c   : > { %255 = vst [vmem:[%s208_s7] sm:$0xff] (%p1007_p3), %v799_v8  ;;  %257 = vst [vmem:[%s208_s7 + $0x8] sm:$0xff] (%p1007_p3), %v800_v9  ;;  %v802_v11 = vld [vmem:[%s719_s6 + $0x50] sm:$0xff] (%p1007_p3)  ;;  %v803_v12 = vld [vmem:[%s719_s6 + $0x68] sm:$0xff] (%p1007_p3) }
  0x1d   : > { %259 = vst [vmem:[%s208_s7 + $0x10] sm:$0xff] (%p1007_p3), %v801_v10  ;;  %v804_v13 = vld [vmem:[%s719_s6 + $0x80] sm:$0xff] (%p1007_p3)  ;;  %261 = vst [vmem:[%s208_s7 + $0x18] sm:$0xff] (%p1007_p3), %v802_v11  ;;  %v805_v14 = vld [vmem:[%s719_s6 + $0x98] sm:$0xff] (%p1007_p3) }
  0x1e   : > { %263 = vst [vmem:[%s208_s7 + $0x20] sm:$0xff] %v803_v12  ;;  %265 = vst [vmem:[%s208_s7 + $0x28] sm:$0xff] %v804_v13  ;;  %v806_v15 = vld [vmem:[%s719_s6 + $0xb0] sm:$0xff] }
  0x1f   : > { %267 = vst [vmem:[%s208_s7 + $0x30] sm:$0xff] %v805_v14  ;;  %269 = vst [vmem:[%s208_s7 + $0x38] sm:$0xff] %v806_v15 }
  0x20 PF: > { %275 = sbr.rel (!%p1007_p3) target bundleno = 41 (0x29), region = 96  ;;  %s277_s8 = sand.u32 (%p1007_p3), 1, %s953_s13  }
  0x21   : > { %s808_s9 = smul.u32 (%p1007_p3), 192, %s957_s14  ;;  %s807_s10 = sshll.u32 (%p1007_p3), %s277_s8, 6 }
  0x22   : > { %s279_s21 = scalar_lea.vmem (%p1007_p3), [#allocation4], %s807_s10 }
  0x23   : > { %s725_s18 = scalar_lea.vmem (%p1007_p3), %s1104_s2, %s808_s9 }
  0x24   : > { %v809_v16 = vld [vmem:[%s725_s18 + $0x10] sm:$0xff] (%p1007_p3)  ;;  %v810_v17 = vld [vmem:[%s725_s18 + $0x28] sm:$0xff] (%p1007_p3)  ;;  %v811_v18 = vld [vmem:[%s725_s18 + $0x40] sm:$0xff] (%p1007_p3) }
  0x25   : > { %326 = vst [vmem:[%s279_s21] sm:$0xff] (%p1007_p3), %v809_v16  ;;  %328 = vst [vmem:[%s279_s21 + $0x8] sm:$0xff] (%p1007_p3), %v810_v17  ;;  %v812_v19 = vld [vmem:[%s725_s18 + $0x58] sm:$0xff] (%p1007_p3)  ;;  %v813_v20 = vld [vmem:[%s725_s18 + $0x70] sm:$0xff] (%p1007_p3) }
  0x26   : > { %330 = vst [vmem:[%s279_s21 + $0x10] sm:$0xff] (%p1007_p3), %v811_v18  ;;  %v814_v21 = vld [vmem:[%s725_s18 + $0x88] sm:$0xff] (%p1007_p3)  ;;  %332 = vst [vmem:[%s279_s21 + $0x18] sm:$0xff] (%p1007_p3), %v812_v19  ;;  %v815_v22 = vld [vmem:[%s725_s18 + $0xa0] sm:$0xff] (%p1007_p3) }
  0x27   : > { %334 = vst [vmem:[%s279_s21 + $0x20] sm:$0xff] %v813_v20  ;;  %336 = vst [vmem:[%s279_s21 + $0x28] sm:$0xff] %v814_v21  ;;  %v816_v23 = vld [vmem:[%s725_s18 + $0xb8] sm:$0xff] }
  0x28   : > { %338 = vst [vmem:[%s279_s21 + $0x30] sm:$0xff] %v815_v22  ;;  %340 = vst [vmem:[%s279_s21 + $0x38] sm:$0xff] %v816_v23 }
  0x29 PF: > { %p817_p5 = scmp.ge.s32.totalorder %s957_s14, 1  ;;  %p345_p6 = scmp.lt.s32.totalorder %s957_s14, 3 }
  0x2b   : > { %p346_p7 = pnand %p817_p5, %p345_p6 }
  0x2c   : > { %s352_s20 = sand.u32 (!%p346_p7), 1, %s949_s12   ;;  %vm512_vm0 = vcmask (!%p346_p7), 523264   ;;  %p397_p8 = scmp.lt.s32.totalorder (!%p346_p7), %s791_s15, 1 }
  0x2d   : > { %349 = sbr.rel (%p346_p7) target bundleno = 845 (0x34d), region = 134  ;;  %s1036_s22 = sshll.u32 (!%p346_p7), %s352_s20, 6 }
  0x2e   : > { %s361_s23 = scalar_lea.vmem (!%p346_p7), [#allocation3], %s1036_s22  ;;  %s354_s24 = scalar_lea.vmem (!%p346_p7), [#allocation2], %s1036_s22 }
  0x2f   : > { %v415_v24 = vld [vmem:[%s361_s23] sm:$0xff] (!%p346_p7)  ;;  %v416_v25 = vld [vmem:[%s361_s23 + $0x8] sm:$0xff] (!%p346_p7)  ;;  %v417_v26 = vld [vmem:[%s361_s23 + $0x10] sm:$0xff] (!%p346_p7)  ;;  %s368_s12 = scalar_lea.vmem (!%p346_p7), [#allocation4], %s1036_s22 }
  0x30   : > { %v423_v27 = vpack.c.bf16 (!%p346_p7), %v416_v25, %v415_v24  ;;  %v418_v28 = vld [vmem:[%s361_s23 + $0x18] sm:$0xff] (!%p346_p7)  ;;  %v403_v30 = vld [vmem:[%s354_s24] sm:$0xff] (!%p346_p7)  ;;  %v404_v31 = vld [vmem:[%s354_s24 + $0x8] sm:$0xff] (!%p346_p7) }
  0x31   : > { %v424_v29 = vpack.c.bf16 (!%p346_p7), %v418_v28, %v417_v26  ;;  %v411_v32 = vpack.c.bf16 (!%p346_p7), %v404_v31, %v403_v30  ;;  %v419_v33 = vld [vmem:[%s361_s23 + $0x20] sm:$0xff] (!%p346_p7)  ;;  %v420_v34 = vld [vmem:[%s361_s23 + $0x28] sm:$0xff] (!%p346_p7)  ;;  %v421_v36 = vld [vmem:[%s361_s23 + $0x30] sm:$0xff] (!%p346_p7) }
  0x32   : > { %846 = vmatprep.subr.bf16.mxu0 (!%p346_p7), %v423_v27  ;;  %v425_v35 = vpack.c.bf16 (!%p346_p7), %v420_v34, %v419_v33  ;;  %v422_v37 = vld [vmem:[%s361_s23 + $0x38] sm:$0xff] (!%p346_p7)  ;;  %v405_v39 = vld [vmem:[%s354_s24 + $0x10] sm:$0xff] (!%p346_p7)  ;;  %v407_v41 = vld [vmem:[%s354_s24 + $0x20] sm:$0xff] (!%p346_p7) }
  0x33   : > { %847 = vmatpush3.bf16.xpose.msra.mxu0 (!%p346_p7), %v423_v27  ;;  %854 = vmatprep.mubr.bf16.mxu0 (!%p346_p7), %v411_v32  ;;  %v426_v38 = vpack.c.bf16 (!%p346_p7), %v422_v37, %v421_v36  ;;  %v406_v40 = vld [vmem:[%s354_s24 + $0x18] sm:$0xff] (!%p346_p7)  ;;  %v408_v42 = vld [vmem:[%s354_s24 + $0x28] sm:$0xff] (!%p346_p7)  ;;  %v409_v45 = vld [vmem:[%s354_s24 + $0x30] sm:$0xff] (!%p346_p7) }
  0x34   : > { %848 = vmatprep.subr.bf16.mxu0 %v424_v29  ;;  %v412_v43 = vpack.c.bf16 %v406_v40, %v405_v39  ;;  %v413_v44 = vpack.c.bf16 %v408_v42, %v407_v41  ;;  %v410_v46 = vld [vmem:[%s354_s24 + $0x38] sm:$0xff]  ;;  %s1111_s15 = smov (!%p397_p8, %s791_s15), 1 }
  0x35   : > { %v414_v47 = vpack.c.bf16 %v410_v46, %v409_v45  ;;  %s829_s25 = sshll.u32 %s1111_s15, 6 }
  0x36   : > { %s401_s28 = scalar_lea.vmem %s1105_s3, %s829_s25 }
  0x3b   : > { %849 = vmatpush3.bf16.xpose.msra.mxu0 %v424_v29 }
  0x3c   : > { %850 = vmatprep.subr.bf16.mxu0 %v425_v35 }
  0x43   : > { %851 = vmatpush3.bf16.xpose.msra.mxu0 %v425_v35 }
  0x44   : > { %852 = vmatprep.subr.bf16.mxu0 %v426_v38 }
  0x4b   : > { %853 = vmatpush3.bf16.xpose.msra.mxu0 %v426_v38 }
  0x52   : > { %855 = vmatmul.mubr.bf16.vlgmr.msra.gmra.mrb[0].mxu0 %v412_v43 }
  0x53   : > { %858 = vmatprep.mubr.bf16.mxu0 %v413_v44 }
  0x5a   : > { %859 = vmatmul.mubr.bf16.gmra.mrb[4].mxu0 %v414_v47 }
 0x125   : > { %v856_v48 = vpop.f32.mrb[0].mxu0 }
 0x126   : > { %v506_v49 = vmul.f32 0.125, %v856_v48  ;;  %v473_v50 = vpop.f32.mrb[1].mxu0  ;;  %v427_v48 = vld [vmem:[%s368_s12] sm:$0xff] }
 0x127   : > { %v504_v51 = vmul.f32 0.125, %v473_v50  ;;  %v857_v52 = vpop.f32.mrb[2].mxu0 }
 0x128   : > { %v507_v53 = vmul.f32 0.125, %v857_v52  ;;  %v476_v54 = vpop.f32.mrb[3].mxu0  ;;  %v519_v55 = vsel %vm512_vm0, %v506_v49, -inf  ;;  %v430_v52 = vld [vmem:[%s368_s12 + $0x18] sm:$0xff] }
 0x129   : > { %v505_v56 = vmul.f32 0.125, %v476_v54  ;;  %520 = vmax.xlane.f32.xlu1 %v519_v55  ;;  %v513_v57 = vsel %vm512_vm0, %v504_v51, -inf  ;;  %v431_v54 = vld [vmem:[%s368_s12 + $0x20] sm:$0xff]  ;;  %v432_v55 = vld [vmem:[%s368_s12 + $0x28] sm:$0xff] }
 0x12a   : > { %514 = vmax.xlane.f32.xlu0 %v513_v57  ;;  %v522_v58 = vsel %vm512_vm0, %v507_v53, -inf  ;;  %v433_v57 = vld [vmem:[%s368_s12 + $0x30] sm:$0xff] }
 0x12b   : > { %v516_v60 = vsel %vm512_vm0, %v505_v56, -inf }
 0x12d   : > { %523 = vmax.xlane.f32.xlu1 %v522_v58  ;;  %v860_v59 = vpop.f32.mrb[4].mxu0  ;;  %v434_v58 = vld [vmem:[%s368_s12 + $0x38] sm:$0xff] }
 0x12e   : > { %517 = vmax.xlane.f32.xlu0 %v516_v60  ;;  %v489_v61 = vpop.f32.mrb[5].mxu0  ;;  %v510_v1 = vmul.f32 0.125, %v860_v59  ;;  %v438_v59 = vpack.c.bf16 %v434_v58, %v433_v57 }
 0x12f   : > { %v508_v62 = vmul.f32 0.125, %v489_v61  ;;  %v861_v63 = vpop.f32.mrb[6].mxu0 }
 0x130   : > { %v492_v0 = vpop.f32.mrb[7].mxu0  ;;  %v511_v4 = vmul.f32 0.125, %v861_v63  ;;  %v531_v6 = vsel %vm512_vm0, %v510_v1, -inf }
 0x131   : > { %v509_v2 = vmul.f32 0.125, %v492_v0  ;;  %v525_v3 = vsel %vm512_vm0, %v508_v62, -inf }
 0x132   : > { %526 = vmax.xlane.f32.xlu0 %v525_v3  ;;  %v534_v7 = vsel %vm512_vm0, %v511_v4, -inf }
 0x133   : > { %v528_v5 = vsel %vm512_vm0, %v509_v2, -inf }
 0x134   : > { %529 = vmax.xlane.f32.xlu1 %v528_v5 }
 0x136   : > { %532 = vmax.xlane.f32.xlu0 %v531_v6 }
 0x138   : > { %535 = vmax.xlane.f32.xlu1 %v534_v7 }
 0x1b6   : > { %v521_v8 = vpop.xlane.xlu1 %520 }
 0x1b7   : > { %v539_v9 = vsub.f32 %v506_v49, %v521_v8  ;;  %v515_v10 = vpop.xlane.xlu0 %514  ;;  %v428_v49 = vld [vmem:[%s368_s12 + $0x8] sm:$0xff] }
 0x1b8   : > { %v537_v11 = vsub.f32 %v504_v51, %v515_v10  ;;  %v435_v50 = vpack.c.bf16 %v428_v49, %v427_v48  ;;  %v429_v51 = vld [vmem:[%s368_s12 + $0x10] sm:$0xff] }
 0x1b9   : > { %v549_v12 = vmul.f32 1.442695, %v539_v9 }
 0x1ba   : > { %v545_v13 = vmul.f32 1.442695, %v537_v11  ;;  %v524_v14 = vpop.xlane.xlu1 %523  ;;  %862 = vmatprep.subr.bf16.mxu1 %v435_v50 }
 0x1bb   : > { %v540_v15 = vsub.f32 %v507_v53, %v524_v14  ;;  %v518_v16 = vpop.xlane.xlu0 %517  ;;  %863 = vmatpush3.bf16.msra.mxu1 %v435_v50  ;;  %v436_v53 = vpack.c.bf16 %v430_v52, %v429_v51 }
 0x1bc   : > { %903 = vpow2.f32 %v545_v13  ;;  %v538_v17 = vsub.f32 %v505_v56, %v518_v16  ;;  %v437_v56 = vpack.c.bf16 %v432_v55, %v431_v54 }
 0x1bd   : > { %905 = vpow2.f32 %v549_v12  ;;  %v551_v18 = vmul.f32 1.442695, %v540_v15  ;;  %864 = vmatprep.subr.bf16.mxu1 %v436_v53 }
 0x1be   : > { %v547_v19 = vmul.f32 1.442695, %v538_v17 }
 0x1bf   : > { %v527_v20 = vpop.xlane.xlu0 %526  ;;  %865 = vmatpush3.bf16.msra.mxu1 %v436_v53 }
 0x1c0   : > { %907 = vpow2.f32 %v547_v19  ;;  %v541_v21 = vsub.f32 %v508_v62, %v527_v20  ;;  %866 = vmatprep.subr.bf16.mxu1 %v437_v56 }
 0x1c1   : > { %v530_v22 = vpop.xlane.xlu1 %529  ;;  %909 = vpow2.f32 %v551_v18 }
 0x1c2   : > { %v553_v23 = vmul.f32 1.442695, %v541_v21  ;;  %v542_v24 = vsub.f32 %v509_v2, %v530_v22 }
 0x1c3   : > { %v533_v25 = vpop.xlane.xlu0 %532  ;;  %867 = vmatpush3.bf16.msra.mxu1 %v437_v56 }
 0x1c4   : > { %911 = vpow2.f32 %v553_v23  ;;  %v555_v26 = vmul.f32 1.442695, %v542_v24  ;;  %v543_v27 = vsub.f32 %v510_v1, %v533_v25  ;;  %868 = vmatprep.subr.bf16.mxu1 %v438_v59 }
 0x1c5   : > { %v536_v28 = vpop.xlane.xlu1 %535 }
 0x1c6   : > { %v1048_v29 = vpop.eup %903  ;;  %913 = vpow2.f32 %v555_v26  ;;  %v557_v30 = vmul.f32 1.442695, %v543_v27  ;;  %v544_v31 = vsub.f32 %v511_v4, %v536_v28 }
 0x1c7   : > { %v561_v32 = vsel %vm512_vm0, %v1048_v29, 0.0  ;;  %v1052_v33 = vpop.eup %905  ;;  %869 = vmatpush3.bf16.msra.mxu1 %v438_v59 }
 0x1c8   : > { %915 = vpow2.f32 %v557_v30  ;;  %v559_v34 = vmul.f32 1.442695, %v544_v31  ;;  %562 = vadd.xlane.f32.xlu0 %v561_v32  ;;  %v567_v36 = vsel %vm512_vm0, %v1052_v33, 0.0 }
 0x1ca   : > { %v908_v35 = vpop.eup %907  ;;  %917 = vpow2.f32 %v559_v34 }
 0x1cb   : > { %v564_v37 = vsel %vm512_vm0, %v908_v35, 0.0  ;;  %v1057_v38 = vpop.eup %909 }
 0x1cc   : > { %568 = vadd.xlane.f32.xlu0 %v567_v36  ;;  %565 = vadd.xlane.f32.xlu1 %v564_v37  ;;  %v570_v41 = vsel %vm512_vm0, %v1057_v38, 0.0 }
 0x1ce   : > { %v1059_v39 = vpop.eup %911 }
 0x1cf   : > { %v573_v40 = vsel %vm512_vm0, %v1059_v39, 0.0 }
 0x1d0   : > { %v1065_v42 = vpop.eup %913  ;;  %574 = vadd.xlane.f32.xlu0 %v573_v40  ;;  %571 = vadd.xlane.f32.xlu1 %v570_v41 }
 0x1d1   : > { %v576_v45 = vsel %vm512_vm0, %v1065_v42, 0.0 }
 0x1d2   : > { %v1067_v43 = vpop.eup %915 }
 0x1d3   : > { %v579_v44 = vsel %vm512_vm0, %v1067_v43, 0.0 }
 0x1d4   : > { %v918_v46 = vpop.eup %917  ;;  %580 = vadd.xlane.f32.xlu0 %v579_v44  ;;  %577 = vadd.xlane.f32.xlu1 %v576_v45 }
 0x1d5   : > { %v582_v47 = vsel %vm512_vm0, %v918_v46, 0.0 }
 0x1d8   : > { %583 = vadd.xlane.f32.xlu1 %v582_v47 }
 0x255   : > { %v563_v60 = vpop.xlane.xlu0 %562 }
 0x256   : > { %919 = vrcp.f32 %v563_v60 }
 0x259   : > { %v569_v61 = vpop.xlane.xlu0 %568  ;;  %v566_v62 = vpop.xlane.xlu1 %565 }
 0x25a   : > { %921 = vrcp.f32 %v566_v62 }
 0x25b   : > { %923 = vrcp.f32 %v569_v61 }
 0x25d   : > { %v575_v63 = vpop.xlane.xlu0 %574  ;;  %v572_v0 = vpop.xlane.xlu1 %571 }
 0x25e   : > { %925 = vrcp.f32 %v572_v0 }
 0x25f   : > { %927 = vrcp.f32 %v575_v63 }
 0x260   : > { %v920_v3 = vpop.eup %919 }
 0x261   : > { %v581_v1 = vpop.xlane.xlu0 %580  ;;  %v578_v2 = vpop.xlane.xlu1 %577  ;;  %v593_v6 = vmul.f32 %v920_v3, %v1048_v29 }
 0x262   : > { %929 = vrcp.f32 %v578_v2 }
 0x263   : > { %931 = vrcp.f32 %v581_v1 }
 0x264   : > { %v922_v4 = vpop.eup %921 }
 0x265   : > { %v584_v5 = vpop.xlane.xlu1 %583  ;;  %v594_v7 = vmul.f32 %v922_v4, %v908_v35  ;;  %v924_v8 = vpop.eup %923 }
 0x266   : > { %933 = vrcp.f32 %v584_v5  ;;  %v595_v11 = vmul.f32 %v924_v8, %v1052_v33 }
 0x267   : > { %v601_v9 = vpack.c.bf16 %v594_v7, %v593_v6 }
 0x268   : > { %v926_v10 = vpop.eup %925 }
 0x269   : > { %870 = vmatprep.mubr.msk.bf16.mxu1 %vm512_vm0, %v601_v9  ;;  %v596_v12 = vmul.f32 %v926_v10, %v1057_v38  ;;  %v928_v13 = vpop.eup %927 }
 0x26a   : > { %v597_v17 = vmul.f32 %v928_v13, %v1059_v39 }
 0x26b   : > { %v602_v14 = vpack.c.bf16 %v596_v12, %v595_v11 }
 0x26c   : > { %v930_v15 = vpop.eup %929 }
 0x26d   : > { %v932_v16 = vpop.eup %931  ;;  %871 = vmatmul.mubr.msk.bf16.vlgmr.msra.gmra.mrb[0].mxu1 %vm512_vm0, %v602_v14  ;;  %v598_v18 = vmul.f32 %v930_v15, %v1065_v42 }
 0x26e   : > { %v599_v21 = vmul.f32 %v932_v16, %v1067_v43 }
 0x26f   : > { %v603_v20 = vpack.c.bf16 %v598_v18, %v597_v17 }
 0x270   : > { %v934_v19 = vpop.eup %933 }
 0x271   : > { %v600_v22 = vmul.f32 %v934_v19, %v918_v46  ;;  %874 = vmatprep.mubr.msk.bf16.mxu1 %vm512_vm0, %v603_v20 }
 0x273   : > { %v604_v23 = vpack.c.bf16 %v600_v22, %v599_v21 }
 0x275   : > { %875 = vmatmul.mubr.msk.bf16.gmra.mrb[4].mxu1 %vm512_vm0, %v604_v23 }
 0x340   : > { %v872_v24 = vpop.f32.mrb[0].mxu1 }
 0x341   : > { %684 = vst [vmem:[%s401_s28 + $0x10] sm:$0xff] %v872_v24  ;;  %v651_v25 = vpop.f32.mrb[1].mxu1 }
 0x342   : > { %682 = vst [vmem:[%s401_s28] sm:$0xff] %v651_v25  ;;  %v873_v26 = vpop.f32.mrb[2].mxu1 }
 0x343   : > { %685 = vst [vmem:[%s401_s28 + $0x18] sm:$0xff] %v873_v26  ;;  %v654_v27 = vpop.f32.mrb[3].mxu1 }
 0x344   : > { %683 = vst [vmem:[%s401_s28 + $0x8] sm:$0xff] %v654_v27 }
 0x348   : > { %v876_v28 = vpop.f32.mrb[4].mxu1 }
 0x349   : > { %688 = vst [vmem:[%s401_s28 + $0x30] sm:$0xff] %v876_v28  ;;  %v667_v29 = vpop.f32.mrb[5].mxu1 }
 0x34a   : > { %686 = vst [vmem:[%s401_s28 + $0x20] sm:$0xff] %v667_v29  ;;  %v877_v30 = vpop.f32.mrb[6].mxu1 }
 0x34b   : > { %689 = vst [vmem:[%s401_s28 + $0x38] sm:$0xff] %v877_v30  ;;  %v670_v31 = vpop.f32.mrb[7].mxu1 }
 0x34c   : > { %687 = vst [vmem:[%s401_s28 + $0x28] sm:$0xff] %v670_v31 }
 0x34d PF: > { %p10_p9 = scmp.ge.s32.totalorder %s996_s16, 4   ;;  %s1107_s12 = smov %s953_s13 }
 0x34e   : > { %s1108_s13 = smov %s1005_s19  ;;  %s1109_s14 = smov %s996_s16 }
 0x34f   :  { %12 = sbr.rel (!%p10_p9) target bundleno = 2 (0x2), region = 197 }

// kernel: _lambda_.39
= control target key start
LH: loop header
LB: loop body
LE: loop exit
PB: predicated region body
PF: predicated region fallthrough
CT: control target
= control target key end

     0   :  { %s2126_s15 = smov 0   ;;  %s2128_s16 = smov 0   ;;  %s2429_s0 = inlined_call_operand.vmem [shape: f32[2,10,10,64], index: 0, kind: input, shape index: {}]   ;;  %s2430_s1 = inlined_call_operand.vmem [shape: bf16[576,128], index: 1, kind: input, shape index: {}]   ;;  %s2431_s2 = inlined_call_operand.vmem [shape: f32[1,128], index: 2, kind: input, shape index: {}]   ;;  %s2432_s3 = inlined_call_operand.vmem [shape: f32[2,64,128], index: 3, kind: input, shape index: {}]   ;;  %s2433_s4 = inlined_call_operand.vmem [shape: f32[2,64,128], index: 4, kind: output, shape index: {}]  }
   0x1   :  { %s2130_s17 = smov 0  }
   0x2 LB: > { %s26_s18 = sadd.s32 1, %s2095_s16  ;;  %p1597_p0 = scmp.ge.s32.totalorder %s2099_s17, 1  ;;  %s2099_s17 = sphi %s2130_s17, %s14_s17   ;;  %s2095_s16 = sphi %s2128_s16, %s2435_s16   ;;  %s2091_s15 = sphi %s2126_s15, %s2434_s15  }
   0x3   : > { %p28_p1 = scmp.ge.s32.totalorder %s26_s18, 2  ;;  %p208_p2 = scmp.lt.s32.totalorder %s2099_s17, 3 }
   0x5   : > { %s2437_s18 = smov (%p28_p1, %s26_s18), 0  ;;  %p209_p3 = pnand %p1597_p0, %p208_p2 }
   0x6   : > { %v2041_v0 = vld [vmem:[%s2430_s1 + $0x20] sm:$0xff] (!%p209_p3)   ;;  %p252_p4 = scmp.lt.s32.totalorder (!%p209_p3), %s2091_s15, 1  ;;  %v2043_v2 = vld [vmem:[%s2430_s1 + $0x28] sm:$0xff] (!%p209_p3)   ;;  %v2045_v4 = vld [vmem:[%s2430_s1 + $0x30] sm:$0xff] (!%p209_p3)   ;;  %vm345_vm0 = vcmask (!%p209_p3), 523264  }
   0x7   : > { %212 = sbr.rel (%p209_p3) target bundleno = 310 (0x136), region = 36  ;;  %v2042_v1 = vld [vmem:[%s2430_s1 + $0x80] sm:$0xff] (!%p209_p3)   ;;  %1800 = vmatprep.subr.bf16.mxu1 (!%p209_p3), %v2041_v0  ;;  %v2044_v3 = vld [vmem:[%s2430_s1 + $0x88] sm:$0xff] (!%p209_p3)   ;;  %v2046_v5 = vld [vmem:[%s2430_s1 + $0x90] sm:$0xff] (!%p209_p3)  }
   0x8   : > { %1864 = vmatprep.subr.bf16.mxu0 (!%p209_p3), %v2042_v1  ;;  %1801 = vmatpush3.bf16.msra.mxu1 (!%p209_p3), %v2041_v0  ;;  %v2047_v6 = vld [vmem:[%s2430_s1 + $0x38] sm:$0xff] (!%p209_p3)   ;;  %v2049_v14 = vld [vmem:[%s2430_s1] sm:$0xff] (!%p209_p3)   ;;  %v2051_v21 = vld [vmem:[%s2430_s1 + $0x8] sm:$0xff] (!%p209_p3)  }
   0x9   : > { %1865 = vmatpush3.bf16.msra.mxu0 (!%p209_p3), %v2042_v1  ;;  %1802 = vmatprep.subr.bf16.mxu1 (!%p209_p3), %v2043_v2  ;;  %v2048_v10 = vld [vmem:[%s2430_s1 + $0x98] sm:$0xff] (!%p209_p3)   ;;  %v2050_v16 = vld [vmem:[%s2430_s1 + $0xa0] sm:$0xff] (!%p209_p3)   ;;  %v2052_v22 = vld [vmem:[%s2430_s1 + $0xa8] sm:$0xff] (!%p209_p3)  }
   0xa   : > { %1866 = vmatprep.subr.bf16.mxu0 (!%p209_p3), %v2044_v3  ;;  %v2053_v26 = vld [vmem:[%s2430_s1 + $0x10] sm:$0xff] (!%p209_p3)   ;;  %v2055_v35 = vld [vmem:[%s2430_s1 + $0x18] sm:$0xff] (!%p209_p3)   ;;  %v2057_v41 = vld [vmem:[%s2430_s1 + $0x40] sm:$0xff] (!%p209_p3)  }
   0xb   : > { %v2054_v28 = vld [vmem:[%s2430_s1 + $0xb0] sm:$0xff] (!%p209_p3)   ;;  %v2056_v36 = vld [vmem:[%s2430_s1 + $0xb8] sm:$0xff] (!%p209_p3)   ;;  %v2058_v44 = vld [vmem:[%s2430_s1 + $0xc0] sm:$0xff] (!%p209_p3)  }
   0xc   : > { %1803 = vmatpush3.bf16.msra.mxu1 (!%p209_p3), %v2043_v2  ;;  %v2059_v51 = vld [vmem:[%s2430_s1 + $0x48] sm:$0xff] (!%p209_p3)   ;;  %v2061_v57 = vld [vmem:[%s2430_s1 + $0x50] sm:$0xff] (!%p209_p3)   ;;  %v2063_v0 = vld [vmem:[%s2430_s1 + $0x58] sm:$0xff] (!%p209_p3)  }
   0xd   : > { %1867 = vmatpush3.bf16.msra.mxu0 (!%p209_p3), %v2044_v3  ;;  %1804 = vmatprep.subr.bf16.mxu1 (!%p209_p3), %v2045_v4  ;;  %v2060_v52 = vld [vmem:[%s2430_s1 + $0xc8] sm:$0xff] (!%p209_p3)   ;;  %v2062_v60 = vld [vmem:[%s2430_s1 + $0xd0] sm:$0xff] (!%p209_p3)   ;;  %v2064_v1 = vld [vmem:[%s2430_s1 + $0xd8] sm:$0xff] (!%p209_p3)  }
   0xe   : > { %s2439_s15 = smov (!%p252_p4, %s2091_s15), 1  ;;  %1868 = vmatprep.subr.bf16.mxu0 %v2046_v5  ;;  %v2065_v3 = vld [vmem:[%s2430_s1 + $0x60] sm:$0xff]  }
   0xf   : > { %s2016_s29 = smul.u32 160, %s2439_s15 }
  0x10   : > { %1805 = vmatpush3.bf16.msra.mxu1 %v2045_v4  ;;  %v2066_v4 = vld [vmem:[%s2430_s1 + $0xe0] sm:$0xff]  }
  0x11   : > { %s2168_s8 = scalar_lea.vmem %s2429_s0, %s2016_s29  ;;  %1869 = vmatpush3.bf16.msra.mxu0 %v2046_v5  ;;  %1806 = vmatprep.subr.bf16.mxu1 %v2047_v6 }
  0x12   : > { %v301_v7 = vld [vmem:[%s2168_s8 + $0x1] sm:$0xff]  ;;  %v302_v8 = vld [vmem:[%s2168_s8 + $0x11] sm:$0xff]  ;;  %1870 = vmatprep.subr.bf16.mxu0 %v2048_v10 }
  0x13   : > { %v1644_v9 = vld [vmem:[%s2168_s8 + $0x21] sm:$0xff]  ;;  %v309_v11 = vpack.c.bf16 %v302_v8, %v301_v7  ;;  %v304_v13 = vld [vmem:[%s2168_s8 + $0x31] sm:$0xff] }
  0x14   : > { %v791_v12 = vpack.c.bf16 %v1644_v9, %v302_v8  ;;  %v1646_v15 = vld [vmem:[%s2168_s8 + $0x41] sm:$0xff]  ;;  %v2189_v17 = vpack.c.bf16 %v304_v13, %v1644_v9  ;;  %v306_v18 = vld [vmem:[%s2168_s8 + $0x51] sm:$0xff]  ;;  %1807 = vmatpush3.bf16.msra.mxu1 %v2047_v6 }
  0x15   : > { %1808 = vmatprep.mubr.msk.bf16.mxu1 %vm345_vm0, %v309_v11  ;;  %v792_v19 = vpack.c.bf16 %v1646_v15, %v304_v13  ;;  %v1648_v20 = vld [vmem:[%s2168_s8 + $0x61] sm:$0xff]  ;;  %1871 = vmatpush3.bf16.msra.mxu0 %v2048_v10  ;;  %v2199_v23 = vpack.c.bf16 %v306_v18, %v1646_v15  ;;  %v308_v25 = vld [vmem:[%s2168_s8 + $0x71] sm:$0xff] }
  0x16   : > { %1872 = vmatprep.mubr.msk.bf16.mxu0 %vm345_vm0, %v791_v12  ;;  %1816 = vmatprep.subr.bf16.mxu1 %v2049_v14  ;;  %v793_v24 = vpack.c.bf16 %v1648_v20, %v306_v18  ;;  %v2209_v27 = vld [vmem:[%s2168_s8 + $0x81] sm:$0xff]  ;;  %v2218_v30 = vpack.c.bf16 %v308_v25, %v1648_v20  ;;  %v2221_v31 = vld [vmem:[%s2168_s8 + $0x10] sm:$0xff]  ;;  %v2071_v15 = vld [vmem:[%s2430_s1 + $0x78] sm:$0xff]  }
  0x17   : > { %1880 = vmatprep.subr.bf16.mxu0 %v2050_v16  ;;  %1809 = vmatmul.mubr.msk.bf16.vlgmr.msra.gmra.mrb[0].mxu1 %vm345_vm0, %v2189_v17  ;;  %v281_v29 = vld [vmem:[%s2168_s8] sm:$0xff]  ;;  %v2224_v32 = vld [vmem:[%s2168_s8 + $0x12] sm:$0xff]  ;;  %v794_v33 = vpack.c.bf16 %v2209_v27, %v308_v25  ;;  %v2067_v6 = vld [vmem:[%s2430_s1 + $0x68] sm:$0xff]  }
  0x18   : > { %1873 = vmatmul.mubr.msk.bf16.vlgmr.msra.gmra.mrb[0].mxu0 %vm345_vm0, %v792_v19  ;;  %1817 = vmatpush3.bf16.msra.mxu1 %v2049_v14  ;;  %v2228_v34 = vld [vmem:[%s2168_s8 + $0x22] sm:$0xff]  ;;  %v289_v37 = vpack.c.bf16 %v2221_v31, %v281_v29  ;;  %v2245_v40 = vld [vmem:[%s2168_s8 + $0x30] sm:$0xff] }
  0x19   : > { %1881 = vmatpush3.bf16.msra.mxu0 %v2050_v16  ;;  %1818 = vmatprep.subr.bf16.mxu1 %v2051_v21  ;;  %v920_v38 = vpack.c.bf16 %v2228_v34, %v2224_v32  ;;  %v2242_v39 = vld [vmem:[%s2168_s8 + $0x20] sm:$0xff]  ;;  %v1661_v42 = vld [vmem:[%s2168_s8 + $0x32] sm:$0xff]  ;;  %v2068_v7 = vld [vmem:[%s2430_s1 + $0xe8] sm:$0xff]  }
  0x1a   : > { %1882 = vmatprep.subr.bf16.mxu0 %v2052_v22  ;;  %1812 = vmatprep.mubr.msk.bf16.mxu1 %vm345_vm0, %v2199_v23  ;;  %v1662_v43 = vld [vmem:[%s2168_s8 + $0x42] sm:$0xff]  ;;  %v2261_v46 = vld [vmem:[%s2168_s8 + $0x50] sm:$0xff]  ;;  %v290_v47 = vpack.c.bf16 %v2245_v40, %v2242_v39  ;;  %v2318_v5 = vpack.c.bf16 %v1661_v42, %v2228_v34  ;;  %v2072_v16 = vld [vmem:[%s2430_s1 + $0xf8] sm:$0xff]   ;;  %v662_v18 = vpack.c.bf16 %v2242_v39, %v2221_v31 }
  0x1b   : > { %1876 = vmatprep.mubr.msk.bf16.mxu0 %vm345_vm0, %v793_v24  ;;  %v2257_v45 = vld [vmem:[%s2168_s8 + $0x40] sm:$0xff]  ;;  %v1663_v48 = vld [vmem:[%s2168_s8 + $0x52] sm:$0xff]  ;;  %v921_v49 = vpack.c.bf16 %v1662_v43, %v1661_v42 }
  0x1c   : > { %1819 = vmatpush3.bf16.msra.mxu1 %v2051_v21  ;;  %v1664_v50 = vld [vmem:[%s2168_s8 + $0x62] sm:$0xff]  ;;  %v291_v53 = vpack.c.bf16 %v2261_v46, %v2257_v45  ;;  %v2280_v55 = vld [vmem:[%s2168_s8 + $0x70] sm:$0xff]  ;;  %v2326_v8 = vpack.c.bf16 %v1663_v48, %v1662_v43  ;;  %v663_v20 = vpack.c.bf16 %v2257_v45, %v2245_v40  ;;  %v1723_v45 = vld [vmem:[%s2431_s2] ss:$0 sm:$0xff] }
  0x1d   : > { %1883 = vmatpush3.bf16.msra.mxu0 %v2052_v22  ;;  %1820 = vmatprep.subr.bf16.mxu1 %v2053_v26  ;;  %v2277_v54 = vld [vmem:[%s2168_s8 + $0x60] sm:$0xff]  ;;  %v922_v56 = vpack.c.bf16 %v1664_v50, %v1663_v48  ;;  %v1665_v58 = vld [vmem:[%s2168_s8 + $0x72] sm:$0xff]  ;;  %v2074_v21 = vld [vmem:[%s2430_s1 + $0x108] sm:$0xff]  }
  0x1e   : > { %1884 = vmatprep.subr.bf16.mxu0 %v2054_v28  ;;  %v2289_v59 = vld [vmem:[%s2168_s8 + $0x82] sm:$0xff]  ;;  %v292_v61 = vpack.c.bf16 %v2280_v55, %v2277_v54  ;;  %v2069_v9 = vld [vmem:[%s2430_s1 + $0x70] sm:$0xff]   ;;  %v535_v13 = vpack.c.bf16 %v1665_v58, %v1664_v50  ;;  %v664_v22 = vpack.c.bf16 %v2277_v54, %v2261_v46 }
  0x1f   : > { %1813 = vmatmul.mubr.msk.bf16.gmra.mrb[4].mxu1 %vm345_vm0, %v2218_v30  ;;  %v524_v62 = vld [vmem:[%s2168_s8 + $0x2] sm:$0xff]  ;;  %v923_v63 = vpack.c.bf16 %v2289_v59, %v1665_v58  ;;  %v1682_v11 = vld [vmem:[%s2168_s8 + $0x90] sm:$0xff] }
  0x20   : > { %1877 = vmatmul.mubr.msk.bf16.gmra.mrb[4].mxu0 %vm345_vm0, %v794_v33  ;;  %1821 = vmatpush3.bf16.msra.mxu1 %v2053_v26  ;;  %v532_v2 = vpack.c.bf16 %v2224_v32, %v524_v62  ;;  %v1681_v10 = vld [vmem:[%s2168_s8 + $0x80] sm:$0xff]  ;;  %v2070_v12 = vld [vmem:[%s2430_s1 + $0xf0] sm:$0xff]   ;;  %v2076_v26 = vld [vmem:[%s2430_s1 + $0x118] sm:$0xff]  }
  0x21   : > { %1885 = vmatpush3.bf16.msra.mxu0 %v2054_v28  ;;  %1822 = vmatprep.subr.bf16.mxu1 %v2055_v35  ;;  %v1053_v14 = vpack.c.bf16 %v1682_v11, %v1681_v10  ;;  %v2073_v19 = vld [vmem:[%s2430_s1 + $0x100] sm:$0xff]   ;;  %v2075_v24 = vld [vmem:[%s2430_s1 + $0x110] sm:$0xff]   ;;  %v665_v25 = vpack.c.bf16 %v1681_v10, %v2280_v55 }
  0x22   : > { %1886 = vmatprep.subr.bf16.mxu0 %v2056_v36  ;;  %1824 = vmatprep.mubr.msk.bf16.mxu1 %vm345_vm0, %v289_v37  ;;  %v1714_v28 = vld [vmem:[%s2168_s8 + $0x92] sm:$0xff] }
  0x23   : > { %1888 = vmatprep.mubr.msk.bf16.mxu0 %vm345_vm0, %v920_v38 }
  0x24   : > { %1823 = vmatpush3.bf16.msra.mxu1 %v2055_v35 }
  0x25   : > { %1887 = vmatpush3.bf16.msra.mxu0 %v2056_v36  ;;  %1832 = vmatprep.subr.bf16.mxu1 %v2057_v41 }
  0x26   : > { %1896 = vmatprep.subr.bf16.mxu0 %v2058_v44 }
  0x27   : > { %1825 = vmatmul.mubr.msk.bf16.vlgmr.msra.gmra.mrb[0].mxu1 %vm345_vm0, %v290_v47 }
  0x28   : > { %1889 = vmatmul.mubr.msk.bf16.vlgmr.msra.gmra.mrb[0].mxu0 %vm345_vm0, %v921_v49  ;;  %1833 = vmatpush3.bf16.msra.mxu1 %v2057_v41 }
  0x29   : > { %1897 = vmatpush3.bf16.msra.mxu0 %v2058_v44  ;;  %1834 = vmatprep.subr.bf16.mxu1 %v2059_v51 }
  0x2a   : > { %1898 = vmatprep.subr.bf16.mxu0 %v2060_v52  ;;  %1828 = vmatprep.mubr.msk.bf16.mxu1 %vm345_vm0, %v291_v53 }
  0x2b   : > { %1892 = vmatprep.mubr.msk.bf16.mxu0 %vm345_vm0, %v922_v56 }
  0x2c   : > { %1835 = vmatpush3.bf16.msra.mxu1 %v2059_v51 }
  0x2d   : > { %1899 = vmatpush3.bf16.msra.mxu0 %v2060_v52  ;;  %1836 = vmatprep.subr.bf16.mxu1 %v2061_v57 }
  0x2e   : > { %1900 = vmatprep.subr.bf16.mxu0 %v2062_v60 }
  0x2f   : > { %1829 = vmatmul.mubr.msk.bf16.gmra.mrb[4].mxu1 %vm345_vm0, %v292_v61 }
  0x30   : > { %1893 = vmatmul.mubr.msk.bf16.gmra.mrb[4].mxu0 %vm345_vm0, %v923_v63  ;;  %1837 = vmatpush3.bf16.msra.mxu1 %v2061_v57 }
  0x31   : > { %1901 = vmatpush3.bf16.msra.mxu0 %v2062_v60  ;;  %1838 = vmatprep.subr.bf16.mxu1 %v2063_v0 }
  0x32   : > { %1902 = vmatprep.subr.bf16.mxu0 %v2064_v1  ;;  %1840 = vmatprep.mubr.msk.bf16.mxu1 %vm345_vm0, %v532_v2 }
  0x33   : > { %1904 = vmatprep.mubr.msk.bf16.mxu0 %vm345_vm0, %v290_v47 }
  0x34   : > { %1839 = vmatpush3.bf16.msra.mxu1 %v2063_v0 }
  0x35   : > { %1903 = vmatpush3.bf16.msra.mxu0 %v2064_v1  ;;  %1848 = vmatprep.subr.bf16.mxu1 %v2065_v3 }
  0x36   : > { %1912 = vmatprep.subr.bf16.mxu0 %v2066_v4 }
  0x37   : > { %1841 = vmatmul.mubr.msk.bf16.vlgmr.msra.gmra.mrb[0].mxu1 %vm345_vm0, %v2318_v5 }
  0x38   : > { %1905 = vmatmul.mubr.msk.bf16.vlgmr.msra.gmra.mrb[0].mxu0 %vm345_vm0, %v291_v53  ;;  %1849 = vmatpush3.bf16.msra.mxu1 %v2065_v3 }
  0x39   : > { %1913 = vmatpush3.bf16.msra.mxu0 %v2066_v4  ;;  %1850 = vmatprep.subr.bf16.mxu1 %v2067_v6 }
  0x3a   : > { %1914 = vmatprep.subr.bf16.mxu0 %v2068_v7  ;;  %1844 = vmatprep.mubr.msk.bf16.mxu1 %vm345_vm0, %v2326_v8 }
  0x3b   : > { %1908 = vmatprep.mubr.msk.bf16.mxu0 %vm345_vm0, %v292_v61 }
  0x3c   : > { %1851 = vmatpush3.bf16.msra.mxu1 %v2067_v6 }
  0x3d   : > { %1915 = vmatpush3.bf16.msra.mxu0 %v2068_v7  ;;  %1852 = vmatprep.subr.bf16.mxu1 %v2069_v9 }
  0x3e   : > { %1916 = vmatprep.subr.bf16.mxu0 %v2070_v12 }
  0x3f   : > { %1845 = vmatmul.mubr.msk.bf16.gmra.mrb[4].mxu1 %vm345_vm0, %v535_v13 }
  0x40   : > { %1909 = vmatmul.mubr.msk.bf16.gmra.mrb[4].mxu0 %vm345_vm0, %v1053_v14  ;;  %1853 = vmatpush3.bf16.msra.mxu1 %v2069_v9 }
  0x41   : > { %1917 = vmatpush3.bf16.msra.mxu0 %v2070_v12  ;;  %1854 = vmatprep.subr.bf16.mxu1 %v2071_v15 }
  0x42   : > { %1918 = vmatprep.subr.bf16.mxu0 %v2072_v16  ;;  %1856 = vmatprep.mubr.msk.bf16.mxu1 %vm345_vm0, %v662_v18 }
  0x43   : > { %1920 = vmatprep.mubr.msk.bf16.mxu0 %vm345_vm0, %v2189_v17  ;;  %v1698_v17 = vld [vmem:[%s2168_s8 + $0x91] sm:$0xff]  ;;  %s1726_s8 = sshll.u32 %s2439_s15, 6 }
  0x44   : > { %1855 = vmatpush3.bf16.msra.mxu1 %v2071_v15  ;;  %s2394_s7 = scalar_lea.vmem %s2432_s3, %s1726_s8  ;;  %s2405_s12 = scalar_lea.vmem %s2433_s4, %s1726_s8 }
  0x45   : > { %1919 = vmatpush3.bf16.msra.mxu0 %v2072_v16  ;;  %1944 = vmatprep.subr.bf16.mxu1 %v2073_v19  ;;  %v1450_v51 = vld [vmem:[%s2394_s7 + $0x30] sm:$0xff]  ;;  %v1448_v58 = vld [vmem:[%s2394_s7 + $0x20] sm:$0xff]  ;;  %v1451_v2 = vld [vmem:[%s2394_s7 + $0x38] sm:$0xff] }
  0x46   : > { %1928 = vmatprep.subr.bf16.mxu0 %v2073_v19  ;;  %v1446_v55 = vld [vmem:[%s2394_s7 + $0x10] sm:$0xff]  ;;  %v1444_v63 = vld [vmem:[%s2394_s7] sm:$0xff]  ;;  %v1447_v7 = vld [vmem:[%s2394_s7 + $0x18] sm:$0xff] }
  0x47   : > { %1857 = vmatmul.mubr.msk.bf16.vlgmr.msra.gmra.mrb[0].mxu1 %vm345_vm0, %v663_v20  ;;  %v1449_v10 = vld [vmem:[%s2394_s7 + $0x28] sm:$0xff] }
  0x48   : > { %1921 = vmatmul.mubr.msk.bf16.vlgmr.msra.gmra.mrb[0].mxu0 %vm345_vm0, %v2199_v23  ;;  %1948 = vmatpush3.bf16.msra.mxu1 %v2073_v19  ;;  %v1182_v23 = vpack.c.bf16 %v1698_v17, %v2209_v27  ;;  %v1311_v27 = vpack.c.bf16 %v1714_v28, %v2289_v59  ;;  %v1445_v14 = vld [vmem:[%s2394_s7 + $0x8] sm:$0xff] }
  0x49   : > { %1929 = vmatpush3.bf16.msra.mxu0 %v2073_v19  ;;  %1945 = vmatprep.subr.bf16.mxu1 %v2074_v21 }
  0x4a   : > { %1930 = vmatprep.subr.bf16.mxu0 %v2074_v21  ;;  %1860 = vmatprep.mubr.msk.bf16.mxu1 %vm345_vm0, %v664_v22 }
  0x4b   : > { %1924 = vmatprep.mubr.msk.bf16.mxu0 %vm345_vm0, %v2218_v30 }
  0x4c   : > { %1949 = vmatpush3.bf16.msra.mxu1 %v2074_v21 }
  0x4d   : > { %1931 = vmatpush3.bf16.msra.mxu0 %v2074_v21  ;;  %1946 = vmatprep.subr.bf16.mxu1 %v2075_v24 }
  0x4e   : > { %1932 = vmatprep.subr.bf16.mxu0 %v2075_v24 }
  0x4f   : > { %1861 = vmatmul.mubr.msk.bf16.gmra.mrb[4].mxu1 %vm345_vm0, %v665_v25 }
  0x50   : > { %1925 = vmatmul.mubr.msk.bf16.gmra.mrb[4].mxu0 %vm345_vm0, %v1182_v23  ;;  %1950 = vmatpush3.bf16.msra.mxu1 %v2075_v24 }
  0x51   : > { %1933 = vmatpush3.bf16.msra.mxu0 %v2075_v24  ;;  %1947 = vmatprep.subr.bf16.mxu1 %v2076_v26 }
  0x52   : > { %1934 = vmatprep.subr.bf16.mxu0 %v2076_v26  ;;  %1936 = vmatprep.mubr.msk.bf16.mxu0 %vm345_vm0, %v2318_v5 }
  0x53   : > { %1940 = vmatprep.mubr.msk.bf16.mxu1 %vm345_vm0, %v535_v13 }
  0x54   : > { %1951 = vmatpush3.bf16.msra.mxu1 %v2076_v26 }
  0x55   : > { %1935 = vmatpush3.bf16.msra.mxu0 %v2076_v26 }
  0x57   : > { %1941 = vmatmul.mubr.msk.bf16.vlgmr.msra.gmra.mrb[8].mxu1 %vm345_vm0, %v1311_v27 }
  0x58   : > { %1937 = vmatmul.mubr.msk.bf16.vlgmr.msra.gmra.mrb[0].mxu0 %vm345_vm0, %v2326_v8 }
 0x11a   : > { %v1858_v29 = vpop.f32.mrb[0].mxu1 }
 0x11b   : > { %v744_v30 = vpop.f32.mrb[1].mxu1 }
 0x11c   : > { %v1859_v31 = vpop.f32.mrb[2].mxu1 }
 0x11d   : > { %v747_v32 = vpop.f32.mrb[3].mxu1 }
 0x122   : > { %v1862_v33 = vpop.f32.mrb[4].mxu1 }
 0x123   : > { %v1926_v34 = vpop.f32.mrb[4].mxu0  ;;  %v760_v35 = vpop.f32.mrb[5].mxu1 }
 0x124   : > { %v1956_v36 = vadd.f32 %v1926_v34, %v1862_v33  ;;  %v1277_v37 = vpop.f32.mrb[5].mxu0  ;;  %v1863_v38 = vpop.f32.mrb[6].mxu1 }
 0x125   : > { %v1958_v39 = vadd.f32 %v1277_v37, %v760_v35  ;;  %v1927_v40 = vpop.f32.mrb[6].mxu0  ;;  %v763_v41 = vpop.f32.mrb[7].mxu1 }
 0x126   : > { %v1960_v42 = vadd.f32 %v1927_v40, %v1863_v38  ;;  %v1280_v43 = vpop.f32.mrb[7].mxu0 }
 0x127   : > { %v1962_v44 = vadd.f32 %v1280_v43, %v763_v41 }
 0x12a   : > { %v1942_v46 = vpop.f32.mrb[8].mxu1 }
 0x12b   : > { %v1938_v47 = vpop.f32.mrb[0].mxu0  ;;  %v1957_v48 = vadd.f32 %v1956_v36, %v1942_v46  ;;  %v1406_v49 = vpop.f32.mrb[9].mxu1 }
 0x12c   : > { %v1952_v50 = vadd.f32 %v1938_v47, %v1858_v29  ;;  %v1390_v52 = vpop.f32.mrb[1].mxu0  ;;  %v1959_v53 = vadd.f32 %v1958_v39, %v1406_v49  ;;  %v1943_v54 = vpop.f32.mrb[10].mxu1 }
 0x12d   : > { %v1442_v56 = vadd.f32 %v1957_v48, %v1723_v45  ;;  %v1953_v57 = vadd.f32 %v1390_v52, %v744_v30  ;;  %v1939_v59 = vpop.f32.mrb[2].mxu0  ;;  %v1961_v60 = vadd.f32 %v1960_v42, %v1943_v54  ;;  %v1409_v61 = vpop.f32.mrb[11].mxu1 }
 0x12e   : > { %v1438_v62 = vadd.f32 %v1952_v50, %v1723_v45  ;;  %v1440_v0 = vadd.f32 %v1959_v53, %v1723_v45  ;;  %v1954_v1 = vadd.f32 %v1939_v59, %v1859_v31  ;;  %v1393_v3 = vpop.f32.mrb[3].mxu0  ;;  %v1963_v4 = vadd.f32 %v1962_v44, %v1409_v61 }
 0x12f   : > { %v1458_v5 = vadd.f32 %v1450_v51, %v1442_v56  ;;  %v1436_v6 = vadd.f32 %v1953_v57, %v1723_v45  ;;  %v1443_v8 = vadd.f32 %v1961_v60, %v1723_v45  ;;  %v1955_v9 = vadd.f32 %v1393_v3, %v747_v32 }
 0x130   : > { %v1454_v11 = vadd.f32 %v1446_v55, %v1438_v62  ;;  %v1456_v12 = vadd.f32 %v1448_v58, %v1440_v0  ;;  %v1439_v13 = vadd.f32 %v1954_v1, %v1723_v45  ;;  %v1441_v15 = vadd.f32 %v1963_v4, %v1723_v45 }
 0x131   : > { %1466 = vst [vmem:[%s2405_s12 + $0x30] sm:$0xff] %v1458_v5  ;;  %v1452_v16 = vadd.f32 %v1444_v63, %v1436_v6  ;;  %v1459_v18 = vadd.f32 %v1451_v2, %v1443_v8  ;;  %v1437_v19 = vadd.f32 %v1955_v9, %v1723_v45 }
 0x132   : > { %1462 = vst [vmem:[%s2405_s12 + $0x10] sm:$0xff] %v1454_v11  ;;  %1464 = vst [vmem:[%s2405_s12 + $0x20] sm:$0xff] %v1456_v12  ;;  %v1455_v20 = vadd.f32 %v1447_v7, %v1439_v13  ;;  %v1457_v21 = vadd.f32 %v1449_v10, %v1441_v15 }
 0x133   : > { %1460 = vst [vmem:[%s2405_s12] sm:$0xff] %v1452_v16  ;;  %1467 = vst [vmem:[%s2405_s12 + $0x38] sm:$0xff] %v1459_v18  ;;  %v1453_v22 = vadd.f32 %v1445_v14, %v1437_v19 }
 0x134   : > { %1463 = vst [vmem:[%s2405_s12 + $0x18] sm:$0xff] %v1455_v20  ;;  %1465 = vst [vmem:[%s2405_s12 + $0x28] sm:$0xff] %v1457_v21 }
 0x135   : > { %1461 = vst [vmem:[%s2405_s12 + $0x8] sm:$0xff] %v1453_v22 }
 0x136 PF: > { %s14_s17 = sadd.s32 1, %s2099_s17   ;;  %s2434_s15 = smov %s2095_s16 }
 0x137   : > { %p11_p5 = scmp.ge.s32.totalorder %s14_s17, 4   ;;  %s2435_s16 = smov %s2437_s18 }
 0x139   :  { %13 = sbr.rel (!%p11_p5) target bundleno = 2 (0x2), region = 77 }

// kernel: _lambda_.41
= control target key start
LH: loop header
LB: loop body
LE: loop exit
PB: predicated region body
PF: predicated region fallthrough
CT: control target
= control target key end

     0   :  { %s1107_s12 = smov 0   ;;  %s1109_s13 = smov 0   ;;  %s1274_s0 = inlined_call_operand.vmem [shape: bf16[128,128], index: 0, kind: input, shape index: {}]   ;;  %s1275_s1 = inlined_call_operand.vmem [shape: bf16[128,384], index: 1, kind: input, shape index: {}]   ;;  %s1276_s2 = inlined_call_operand.vmem [shape: f32[1,384], index: 2, kind: input, shape index: {}]   ;;  %s1277_s3 = inlined_call_operand.vmem [shape: f32[128,384], index: 3, kind: output, shape index: {}]  }
   0x1   :  { %s1111_s14 = smov 0   ;;  %s1113_s15 = smov 0  }
   0x2   :  { %s1115_s16 = smov 0  }
   0x3 LB: > { %s28_s17 = sadd.s32 1, %s1081_s15  ;;  %s896_s18 = sadd.s32 4294967295, %s1085_s16   ;;  %s1085_s16 = sphi %s1115_s16, %s13_s16   ;;  %s1081_s15 = sphi %s1113_s15, %s1282_s15   ;;  %s1077_s14 = sphi %s1111_s14, %s1281_s14   ;;  %s1073_s13 = sphi %s1109_s13, %s1280_s13   ;;  %s1069_s12 = sphi %s1107_s12, %s1279_s12  }
   0x4   : > { %p30_p0 = scmp.ge.s32.totalorder %s28_s17, 3  ;;  %p76_p1 = scmp.ne.s32.totalorder %s1073_s13, %s1069_s12 }
   0x5   : > { %p77_p2 = scmp.eq.s32.totalorder %s1085_s16, 0  ;;  %p134_p4 = scmp.eq.s32.totalorder %s896_s18, 2 }
   0x6   : > { %s1284_s17 = smov (%p30_p0, %s28_s17), 0  ;;  %s69_s20 = sadd.s32 1, %s1073_s13 }
   0x7   : > { %p78_p3 = por %p77_p2, %p76_p1  ;;  %s65_s19 = ssub.s32 %s1081_s15, %s1284_s17 }
   0x8   : > { %p67_p5 = scmp.eq.s32.totalorder %s65_s19, 0  ;;  %p1142_p6 = por %p134_p4, %p76_p1 }
   0x9   : > { %p900_p7 = scmp.ge.s32.totalorder %s1085_s16, 3 }
   0xa   : > { %s1147_s22 = scalar_select %p67_p5, %s1073_s13, %s69_s20  }
   0xb   : > { %168 = sbr.rel (%p900_p7) target bundleno = 32 (0x20), region = 20 }
  0x12   : > { %171 = sbr.rel (!%p78_p3) target bundleno = 32 (0x20), region = 24  ;;  %s173_s23 = sand.u32 (%p78_p3), 1, %s1073_s13  }
  0x13   : > { %s902_s24 = sshll.u32 (%p78_p3), %s1081_s15, 2  ;;  %s901_s25 = sshll.u32 (%p78_p3), %s173_s23, 6 }
  0x14   : > { %s1155_s28 = scalar_lea.vmem (%p78_p3), %s1275_s1, %s902_s24  ;;  %s175_s29 = scalar_lea.vmem (%p78_p3), [#allocation3], %s901_s25 }
  0x15   : > { %v196_v0 = vld [vmem:[%s1155_s28] sm:$0xf] (%p78_p3)  ;;  %v198_v1 = vld [vmem:[%s1155_s28 + $0xc] sm:$0xf] (%p78_p3)  ;;  %v200_v2 = vld [vmem:[%s1155_s28 + $0x18] sm:$0xf] (%p78_p3) }
  0x16   : > { %197 = vst [vmem:[%s175_s29] sm:$0xf] (%p78_p3), %v196_v0  ;;  %199 = vst [vmem:[%s175_s29 + $0x4] sm:$0xf] (%p78_p3), %v198_v1  ;;  %v202_v3 = vld [vmem:[%s1155_s28 + $0x24] sm:$0xf] (%p78_p3) }
  0x17   : > { %v204_v4 = vld [vmem:[%s1155_s28 + $0x30] sm:$0xf] (%p78_p3)  ;;  %201 = vst [vmem:[%s175_s29 + $0x8] sm:$0xf] (%p78_p3), %v200_v2  ;;  %203 = vst [vmem:[%s175_s29 + $0xc] sm:$0xf] (%p78_p3), %v202_v3 }
  0x18   : > { %205 = vst [vmem:[%s175_s29 + $0x10] sm:$0xf] (%p78_p3), %v204_v4  ;;  %v206_v5 = vld [vmem:[%s1155_s28 + $0x3c] sm:$0xf] (%p78_p3)  ;;  %v208_v6 = vld [vmem:[%s1155_s28 + $0x48] sm:$0xf] (%p78_p3) }
  0x19   : > { %v210_v7 = vld [vmem:[%s1155_s28 + $0x54] sm:$0xf]  ;;  %207 = vst [vmem:[%s175_s29 + $0x14] sm:$0xf] %v206_v5  ;;  %209 = vst [vmem:[%s175_s29 + $0x18] sm:$0xf] %v208_v6 }
  0x1a   : > { %211 = vst [vmem:[%s175_s29 + $0x1c] sm:$0xf] %v210_v7  ;;  %v212_v8 = vld [vmem:[%s1155_s28 + $0x60] sm:$0xf]  ;;  %v214_v9 = vld [vmem:[%s1155_s28 + $0x6c] sm:$0xf] }
  0x1b   : > { %v216_v10 = vld [vmem:[%s1155_s28 + $0x78] sm:$0xf]  ;;  %213 = vst [vmem:[%s175_s29 + $0x20] sm:$0xf] %v212_v8  ;;  %215 = vst [vmem:[%s175_s29 + $0x24] sm:$0xf] %v214_v9 }
  0x1c   : > { %217 = vst [vmem:[%s175_s29 + $0x28] sm:$0xf] %v216_v10  ;;  %v218_v11 = vld [vmem:[%s1155_s28 + $0x84] sm:$0xf]  ;;  %v220_v12 = vld [vmem:[%s1155_s28 + $0x90] sm:$0xf] }
  0x1d   : > { %v222_v13 = vld [vmem:[%s1155_s28 + $0x9c] sm:$0xf]  ;;  %219 = vst [vmem:[%s175_s29 + $0x2c] sm:$0xf] %v218_v11  ;;  %221 = vst [vmem:[%s175_s29 + $0x30] sm:$0xf] %v220_v12 }
  0x1e   : > { %223 = vst [vmem:[%s175_s29 + $0x34] sm:$0xf] %v222_v13  ;;  %v224_v14 = vld [vmem:[%s1155_s28 + $0xa8] sm:$0xf]  ;;  %v226_v15 = vld [vmem:[%s1155_s28 + $0xb4] sm:$0xf] }
  0x1f   : > { %225 = vst [vmem:[%s175_s29 + $0x38] sm:$0xf] %v224_v14  ;;  %227 = vst [vmem:[%s175_s29 + $0x3c] sm:$0xf] %v226_v15 }
  0x20 PF: > { %p903_p8 = scmp.ge.s32.totalorder %s1085_s16, 1  ;;  %p287_p9 = scmp.lt.s32.totalorder %s1085_s16, 4 }
  0x22   : > { %p288_p10 = pnand %p903_p8, %p287_p9 }
  0x23   : > { %s294_s30 = sand.u32 (!%p288_p10), 1, %s1069_s12   ;;  %v1039_v16 = vld [vmem:[%s1274_s0] sm:$0xff] (!%p288_p10)   ;;  %v1041_v26 = vld [vmem:[%s1274_s0 + $0x8] sm:$0xff] (!%p288_p10)   ;;  %v1043_v28 = vld [vmem:[%s1274_s0 + $0x10] sm:$0xff] (!%p288_p10)   ;;  %p337_p11 = scmp.lt.s32.totalorder (!%p288_p10), %s1077_s14, 2 }
  0x24   : > { %291 = sbr.rel (%p288_p10) target bundleno = 306 (0x132), region = 69  ;;  %s904_s6 = sshll.u32 (!%p288_p10), %s294_s30, 6  ;;  %v1040_v17 = vld [vmem:[%s1274_s0 + $0x20] sm:$0xff] (!%p288_p10)   ;;  %959 = vmatprep.mubr.bf16.mxu0 (!%p288_p10), %v1039_v16  ;;  %v1042_v27 = vld [vmem:[%s1274_s0 + $0x28] sm:$0xff] (!%p288_p10)   ;;  %v1044_v29 = vld [vmem:[%s1274_s0 + $0x30] sm:$0xff] (!%p288_p10)  }
  0x25   : > { %s1184_s9 = scalar_lea.vmem (!%p288_p10), [#allocation3], %s904_s6  ;;  %967 = vmatprep.mubr.bf16.mxu1 (!%p288_p10), %v1040_v17  ;;  %v1045_v30 = vld [vmem:[%s1274_s0 + $0x18] sm:$0xff] (!%p288_p10)   ;;  %s905_s8 = sshll.u32 (!%p288_p10), %s294_s30, 7 }
  0x26   : > { %v1031_v18 = vld [vmem:[%s1184_s9] sm:$0xff] (!%p288_p10)   ;;  %v1032_v19 = vld [vmem:[%s1184_s9 + $0x8] sm:$0xff] (!%p288_p10)   ;;  %v1033_v20 = vld [vmem:[%s1184_s9 + $0x10] sm:$0xff] (!%p288_p10)  }
  0x27   : > { %943 = vmatprep.subr.bf16.mxu0 (!%p288_p10), %v1031_v18  ;;  %975 = vmatprep.subr.bf16.mxu1 (!%p288_p10), %v1031_v18  ;;  %v1034_v21 = vld [vmem:[%s1184_s9 + $0x18] sm:$0xff] (!%p288_p10)   ;;  %v1035_v22 = vld [vmem:[%s1184_s9 + $0x20] sm:$0xff] (!%p288_p10)   ;;  %v1036_v23 = vld [vmem:[%s1184_s9 + $0x28] sm:$0xff] (!%p288_p10)  }
  0x28   : > { %944 = vmatpush3.bf16.msra.mxu0 (!%p288_p10), %v1031_v18  ;;  %983 = vmatpush3.bf16.msra.mxu1 (!%p288_p10), %v1031_v18  ;;  %v1037_v24 = vld [vmem:[%s1184_s9 + $0x30] sm:$0xff] (!%p288_p10)   ;;  %v1038_v25 = vld [vmem:[%s1184_s9 + $0x38] sm:$0xff] (!%p288_p10)   ;;  %s1219_s9 = scalar_lea.vmem (!%p288_p10), [#allocation4], %s905_s8 }
  0x29   : > { %945 = vmatprep.subr.bf16.mxu0 (!%p288_p10), %v1032_v19  ;;  %976 = vmatprep.subr.bf16.mxu1 (!%p288_p10), %v1032_v19  ;;  %v1046_v31 = vld [vmem:[%s1274_s0 + $0x38] sm:$0xff] (!%p288_p10)  }
  0x2b   : > { %s338_s4 = scalar_select %p337_p11, %s1077_s14, 2 }
  0x2c   : > { %946 = vmatpush3.bf16.msra.mxu0 %v1032_v19  ;;  %984 = vmatpush3.bf16.msra.mxu1 %v1032_v19  ;;  %s924_s12 = sshll.u32 (%p1142_p6), %s1077_s14, 3 }
  0x2d   : > { %947 = vmatprep.subr.bf16.mxu0 %v1033_v20  ;;  %977 = vmatprep.subr.bf16.mxu1 %v1033_v20  ;;  %s339_s7 = scalar_lea.vmem %s1276_s2, %s338_s4  ;;  %s704_s11 = scalar_lea.vmem (%p1142_p6), %s1277_s3, %s924_s12 }
  0x2e   : > { %v922_v32 = vld [vmem:[%s339_s7] ss:$0 sm:$0xff] }
  0x30   : > { %948 = vmatpush3.bf16.msra.mxu0 %v1033_v20  ;;  %985 = vmatpush3.bf16.msra.mxu1 %v1033_v20 }
  0x31   : > { %949 = vmatprep.subr.bf16.mxu0 %v1034_v21  ;;  %978 = vmatprep.subr.bf16.mxu1 %v1034_v21 }
  0x34   : > { %950 = vmatpush3.bf16.msra.mxu0 %v1034_v21  ;;  %986 = vmatpush3.bf16.msra.mxu1 %v1034_v21 }
  0x35   : > { %951 = vmatprep.subr.bf16.mxu0 %v1035_v22  ;;  %979 = vmatprep.subr.bf16.mxu1 %v1035_v22 }
  0x38   : > { %952 = vmatpush3.bf16.msra.mxu0 %v1035_v22  ;;  %987 = vmatpush3.bf16.msra.mxu1 %v1035_v22 }
  0x39   : > { %953 = vmatprep.subr.bf16.mxu0 %v1036_v23  ;;  %980 = vmatprep.subr.bf16.mxu1 %v1036_v23 }
  0x3c   : > { %954 = vmatpush3.bf16.msra.mxu0 %v1036_v23  ;;  %988 = vmatpush3.bf16.msra.mxu1 %v1036_v23 }
  0x3d   : > { %955 = vmatprep.subr.bf16.mxu0 %v1037_v24  ;;  %981 = vmatprep.subr.bf16.mxu1 %v1037_v24 }
  0x40   : > { %956 = vmatpush3.bf16.msra.mxu0 %v1037_v24  ;;  %989 = vmatpush3.bf16.msra.mxu1 %v1037_v24 }
  0x41   : > { %957 = vmatprep.subr.bf16.mxu0 %v1038_v25  ;;  %982 = vmatprep.subr.bf16.mxu1 %v1038_v25 }
  0x44   : > { %958 = vmatpush3.bf16.msra.mxu0 %v1038_v25  ;;  %990 = vmatpush3.bf16.msra.mxu1 %v1038_v25 }
  0x47   : > { %960 = vmatmul.mubr.bf16.vlgmr.msra.gmra.mrb[0].mxu0 %v1041_v26  ;;  %968 = vmatmul.mubr.bf16.vlgmr.msra.gmra.mrb[0].mxu1 %v1042_v27 }
  0x48   : > { %963 = vmatprep.mubr.bf16.mxu0 %v1043_v28  ;;  %971 = vmatprep.mubr.bf16.mxu1 %v1044_v29 }
  0x4f   : > { %964 = vmatmul.mubr.bf16.gmra.mrb[4].mxu0 %v1045_v30  ;;  %972 = vmatmul.mubr.bf16.gmra.mrb[4].mxu1 %v1046_v31 }
 0x11a   : > { %v961_v33 = vpop.f32.mrb[0].mxu0  ;;  %v969_v34 = vpop.f32.mrb[0].mxu1 }
 0x11b   : > { %v663_v35 = vadd.f32 %v961_v33, %v922_v32  ;;  %v671_v36 = vadd.f32 %v969_v34, %v922_v32  ;;  %v540_v37 = vpop.f32.mrb[1].mxu0  ;;  %v572_v38 = vpop.f32.mrb[1].mxu1 }
 0x11c   : > { %v661_v39 = vadd.f32 %v922_v32, %v540_v37  ;;  %v669_v40 = vadd.f32 %v922_v32, %v572_v38  ;;  %v962_v41 = vpop.f32.mrb[2].mxu0  ;;  %v970_v42 = vpop.f32.mrb[2].mxu1 }
 0x11d   : > { %679 = vst [vmem:[%s1219_s9 + $0x10] sm:$0xff] %v663_v35  ;;  %687 = vst [vmem:[%s1219_s9 + $0x50] sm:$0xff] %v671_v36  ;;  %v664_v43 = vadd.f32 %v962_v41, %v922_v32  ;;  %v672_v44 = vadd.f32 %v970_v42, %v922_v32  ;;  %v543_v45 = vpop.f32.mrb[3].mxu0  ;;  %v575_v46 = vpop.f32.mrb[3].mxu1 }
 0x11e   : > { %677 = vst [vmem:[%s1219_s9] sm:$0xff] %v661_v39  ;;  %685 = vst [vmem:[%s1219_s9 + $0x40] sm:$0xff] %v669_v40  ;;  %v662_v47 = vadd.f32 %v922_v32, %v543_v45  ;;  %v670_v48 = vadd.f32 %v922_v32, %v575_v46 }
 0x11f   : > { %680 = vst [vmem:[%s1219_s9 + $0x18] sm:$0xff] %v664_v43  ;;  %688 = vst [vmem:[%s1219_s9 + $0x58] sm:$0xff] %v672_v44 }
 0x120   : > { %678 = vst [vmem:[%s1219_s9 + $0x8] sm:$0xff] %v662_v47  ;;  %686 = vst [vmem:[%s1219_s9 + $0x48] sm:$0xff] %v670_v48 }
 0x122   : > { %v965_v49 = vpop.f32.mrb[4].mxu0  ;;  %v973_v50 = vpop.f32.mrb[4].mxu1  ;;  %699 = sbr.rel (!%p1142_p6) target bundleno = 306 (0x132), region = 85 }
 0x123   : > { %v667_v51 = vadd.f32 %v965_v49, %v922_v32  ;;  %v675_v52 = vadd.f32 %v973_v50, %v922_v32  ;;  %v556_v53 = vpop.f32.mrb[5].mxu0  ;;  %v588_v54 = vpop.f32.mrb[5].mxu1 }
 0x124   : > { %v665_v55 = vadd.f32 %v922_v32, %v556_v53  ;;  %v673_v56 = vadd.f32 %v922_v32, %v588_v54  ;;  %v966_v57 = vpop.f32.mrb[6].mxu0  ;;  %v974_v58 = vpop.f32.mrb[6].mxu1  ;;  %v766_v3 = vld [vmem:[%s1219_s9 + $0x10] sm:$0xff] (%p1142_p6) }
 0x125   : > { %683 = vst [vmem:[%s1219_s9 + $0x30] sm:$0xff] %v667_v51  ;;  %691 = vst [vmem:[%s1219_s9 + $0x70] sm:$0xff] %v675_v52  ;;  %v668_v59 = vadd.f32 %v966_v57, %v922_v32  ;;  %v676_v60 = vadd.f32 %v974_v58, %v922_v32  ;;  %v559_v61 = vpop.f32.mrb[7].mxu0  ;;  %v591_v62 = vpop.f32.mrb[7].mxu1  ;;  %v762_v1 = vld [vmem:[%s1219_s9] sm:$0xff] (%p1142_p6)  ;;  %v782_v11 = vld [vmem:[%s1219_s9 + $0x50] sm:$0xff] (%p1142_p6) }
 0x126   : > { %681 = vst [vmem:[%s1219_s9 + $0x20] sm:$0xff] %v665_v55  ;;  %689 = vst [vmem:[%s1219_s9 + $0x60] sm:$0xff] %v673_v56  ;;  %v666_v63 = vadd.f32 %v922_v32, %v559_v61  ;;  %v674_v0 = vadd.f32 %v922_v32, %v591_v62  ;;  %v768_v4 = vld [vmem:[%s1219_s9 + $0x18] sm:$0xff] (%p1142_p6)  ;;  %v778_v9 = vld [vmem:[%s1219_s9 + $0x40] sm:$0xff] (%p1142_p6) }
 0x127   : > { %684 = vst [vmem:[%s1219_s9 + $0x38] sm:$0xff] %v668_v59  ;;  %692 = vst [vmem:[%s1219_s9 + $0x78] sm:$0xff] %v676_v60  ;;  %v764_v2 = vld [vmem:[%s1219_s9 + $0x8] sm:$0xff] (%p1142_p6)  ;;  %v784_v12 = vld [vmem:[%s1219_s9 + $0x58] sm:$0xff] (%p1142_p6) }
 0x128   : > { %682 = vst [vmem:[%s1219_s9 + $0x28] sm:$0xff] %v666_v63  ;;  %690 = vst [vmem:[%s1219_s9 + $0x68] sm:$0xff] %v674_v0  ;;  %v780_v10 = vld [vmem:[%s1219_s9 + $0x48] sm:$0xff] (%p1142_p6) }
 0x129   : > { %763 = vst [vmem:[%s704_s11] sm:$0xff] %v762_v1  ;;  %765 = vst [vmem:[%s704_s11 + $0x18] sm:$0xff] %v764_v2 }
 0x12a   : > { %767 = vst [vmem:[%s704_s11 + $0x30] sm:$0xff] %v766_v3  ;;  %769 = vst [vmem:[%s704_s11 + $0x48] sm:$0xff] %v768_v4 }
 0x12b   : > { %779 = vst [vmem:[%s704_s11 + $0xc0] sm:$0xff] %v778_v9  ;;  %781 = vst [vmem:[%s704_s11 + $0xd8] sm:$0xff] %v780_v10 }
 0x12c   : > { %v774_v7 = vld [vmem:[%s1219_s9 + $0x30] sm:$0xff]  ;;  %783 = vst [vmem:[%s704_s11 + $0xf0] sm:$0xff] %v782_v11  ;;  %785 = vst [vmem:[%s704_s11 + $0x108] sm:$0xff] %v784_v12 }
 0x12d   : > { %v770_v5 = vld [vmem:[%s1219_s9 + $0x20] sm:$0xff]  ;;  %775 = vst [vmem:[%s704_s11 + $0x90] sm:$0xff] %v774_v7  ;;  %v790_v15 = vld [vmem:[%s1219_s9 + $0x70] sm:$0xff] }
 0x12e   : > { %771 = vst [vmem:[%s704_s11 + $0x60] sm:$0xff] %v770_v5  ;;  %v776_v8 = vld [vmem:[%s1219_s9 + $0x38] sm:$0xff]  ;;  %v786_v13 = vld [vmem:[%s1219_s9 + $0x60] sm:$0xff]  ;;  %791 = vst [vmem:[%s704_s11 + $0x150] sm:$0xff] %v790_v15 }
 0x12f   : > { %v772_v6 = vld [vmem:[%s1219_s9 + $0x28] sm:$0xff]  ;;  %777 = vst [vmem:[%s704_s11 + $0xa8] sm:$0xff] %v776_v8  ;;  %787 = vst [vmem:[%s704_s11 + $0x120] sm:$0xff] %v786_v13  ;;  %v792_v16 = vld [vmem:[%s1219_s9 + $0x78] sm:$0xff] }
 0x130   : > { %773 = vst [vmem:[%s704_s11 + $0x78] sm:$0xff] %v772_v6  ;;  %v788_v14 = vld [vmem:[%s1219_s9 + $0x68] sm:$0xff]  ;;  %793 = vst [vmem:[%s704_s11 + $0x168] sm:$0xff] %v792_v16 }
 0x131   : > { %789 = vst [vmem:[%s704_s11 + $0x138] sm:$0xff] %v788_v14 }
 0x132 PF: > { %s13_s16 = sadd.s32 1, %s1085_s16   ;;  %s1279_s12 = smov %s1073_s13 }
 0x133   : > { %p10_p12 = scmp.ge.s32.totalorder %s13_s16, 5   ;;  %s1280_s13 = smov %s1147_s22 }
 0x134   : > { %s1281_s14 = smov %s1081_s15  ;;  %s1282_s15 = smov %s1284_s17 }
 0x135   :  { %12 = sbr.rel (!%p10_p12) target bundleno = 3 (0x3), region = 160 }

// kernel: _lambda_.43
= control target key start
LH: loop header
LB: loop body
LE: loop exit
PB: predicated region body
PF: predicated region fallthrough
CT: control target
= control target key end

     0   :  { %s692_s1 = inlined_call_operand.vmem [shape: bf16[128,128], index: 1, kind: input, shape index: {}]   ;;  %s693_s0 = inlined_call_operand.vmem [shape: bf16[128,128], index: 0, kind: input, shape index: {}]   ;;  %s694_s2 = inlined_call_operand.vmem [shape: f32[1,128], index: 2, kind: input, shape index: {}]   ;;  %s695_s3 = inlined_call_operand.vmem [shape: f32[128,128], index: 3, kind: input, shape index: {}]   ;;  %s696_s4 = inlined_call_operand.vmem [shape: f32[128,128], index: 4, kind: output, shape index: {}]  }
   0x1   :  { %v486_v0 = vld [vmem:[%s692_s1] sm:$0xff]   ;;  %v487_v1 = vld [vmem:[%s692_s1 + $0x8] sm:$0xff]   ;;  %v488_v2 = vld [vmem:[%s692_s1 + $0x10] sm:$0xff]  }
   0x2   :  { %438 = vmatprep.subr.bf16.mxu0 %v486_v0  ;;  %470 = vmatprep.subr.bf16.mxu1 %v486_v0  ;;  %v489_v3 = vld [vmem:[%s692_s1 + $0x18] sm:$0xff]   ;;  %v494_v4 = vld [vmem:[%s693_s0] sm:$0xff]   ;;  %v491_v7 = vld [vmem:[%s692_s1 + $0x28] sm:$0xff]  }
   0x3   :  { %439 = vmatpush3.bf16.msra.mxu0 %v486_v0  ;;  %478 = vmatpush3.bf16.msra.mxu1 %v486_v0  ;;  %v495_v5 = vld [vmem:[%s693_s0 + $0x20] sm:$0xff]   ;;  %v492_v8 = vld [vmem:[%s692_s1 + $0x30] sm:$0xff]   ;;  %v493_v9 = vld [vmem:[%s692_s1 + $0x38] sm:$0xff]  }
   0x4   :  { %440 = vmatprep.subr.bf16.mxu0 %v487_v1  ;;  %471 = vmatprep.subr.bf16.mxu1 %v487_v1  ;;  %v490_v6 = vld [vmem:[%s692_s1 + $0x20] sm:$0xff]   ;;  %v496_v10 = vld [vmem:[%s693_s0 + $0x8] sm:$0xff]   ;;  %v498_v12 = vld [vmem:[%s693_s0 + $0x10] sm:$0xff]  }
   0x5   :  { %454 = vmatprep.mubr.bf16.mxu0 %v494_v4  ;;  %462 = vmatprep.mubr.bf16.mxu1 %v495_v5  ;;  %v497_v11 = vld [vmem:[%s693_s0 + $0x28] sm:$0xff]   ;;  %v499_v13 = vld [vmem:[%s693_s0 + $0x30] sm:$0xff]   ;;  %v500_v14 = vld [vmem:[%s693_s0 + $0x18] sm:$0xff]  }
   0x6   :  { %v501_v15 = vld [vmem:[%s693_s0 + $0x38] sm:$0xff]   ;;  %v578_v16 = vld [vmem:[%s694_s2] ss:$0 sm:$0xff]  ;;  %v355_v18 = vld [vmem:[%s695_s3 + $0x10] sm:$0xff] }
   0x7   :  { %441 = vmatpush3.bf16.msra.mxu0 %v487_v1  ;;  %479 = vmatpush3.bf16.msra.mxu1 %v487_v1  ;;  %v363_v20 = vld [vmem:[%s695_s3 + $0x50] sm:$0xff]  ;;  %v353_v24 = vld [vmem:[%s695_s3] sm:$0xff]  ;;  %v356_v30 = vld [vmem:[%s695_s3 + $0x18] sm:$0xff] }
   0x8   :  { %442 = vmatprep.subr.bf16.mxu0 %v488_v2  ;;  %472 = vmatprep.subr.bf16.mxu1 %v488_v2  ;;  %v361_v26 = vld [vmem:[%s695_s3 + $0x40] sm:$0xff]  ;;  %v364_v32 = vld [vmem:[%s695_s3 + $0x58] sm:$0xff]  ;;  %v354_v38 = vld [vmem:[%s695_s3 + $0x8] sm:$0xff] }
   0x9   :  { %v362_v40 = vld [vmem:[%s695_s3 + $0x48] sm:$0xff]  ;;  %v359_v50 = vld [vmem:[%s695_s3 + $0x30] sm:$0xff]  ;;  %v357_v56 = vld [vmem:[%s695_s3 + $0x20] sm:$0xff] }
   0xa   :  { %v367_v52 = vld [vmem:[%s695_s3 + $0x70] sm:$0xff]  ;;  %v365_v58 = vld [vmem:[%s695_s3 + $0x60] sm:$0xff]  ;;  %v360_v62 = vld [vmem:[%s695_s3 + $0x38] sm:$0xff] }
   0xb   :  { %443 = vmatpush3.bf16.msra.mxu0 %v488_v2  ;;  %480 = vmatpush3.bf16.msra.mxu1 %v488_v2  ;;  %v368_v0 = vld [vmem:[%s695_s3 + $0x78] sm:$0xff] }
   0xc   :  { %444 = vmatprep.subr.bf16.mxu0 %v489_v3  ;;  %473 = vmatprep.subr.bf16.mxu1 %v489_v3 }
   0xf   :  { %445 = vmatpush3.bf16.msra.mxu0 %v489_v3  ;;  %481 = vmatpush3.bf16.msra.mxu1 %v489_v3 }
  0x10   :  { %446 = vmatprep.subr.bf16.mxu0 %v490_v6  ;;  %474 = vmatprep.subr.bf16.mxu1 %v490_v6 }
  0x13   :  { %447 = vmatpush3.bf16.msra.mxu0 %v490_v6  ;;  %482 = vmatpush3.bf16.msra.mxu1 %v490_v6  ;;  %v358_v6 = vld [vmem:[%s695_s3 + $0x28] sm:$0xff] }
  0x14   :  { %448 = vmatprep.subr.bf16.mxu0 %v491_v7  ;;  %475 = vmatprep.subr.bf16.mxu1 %v491_v7 }
  0x17   :  { %449 = vmatpush3.bf16.msra.mxu0 %v491_v7  ;;  %483 = vmatpush3.bf16.msra.mxu1 %v491_v7 }
  0x18   :  { %450 = vmatprep.subr.bf16.mxu0 %v492_v8  ;;  %476 = vmatprep.subr.bf16.mxu1 %v492_v8 }
  0x1b   :  { %451 = vmatpush3.bf16.msra.mxu0 %v492_v8  ;;  %484 = vmatpush3.bf16.msra.mxu1 %v492_v8  ;;  %v366_v8 = vld [vmem:[%s695_s3 + $0x68] sm:$0xff] }
  0x1c   :  { %452 = vmatprep.subr.bf16.mxu0 %v493_v9  ;;  %477 = vmatprep.subr.bf16.mxu1 %v493_v9 }
  0x1f   :  { %453 = vmatpush3.bf16.msra.mxu0 %v493_v9  ;;  %485 = vmatpush3.bf16.msra.mxu1 %v493_v9 }
  0x22   :  { %455 = vmatmul.mubr.bf16.vlgmr.msra.gmra.mrb[0].mxu0 %v496_v10  ;;  %463 = vmatmul.mubr.bf16.vlgmr.msra.gmra.mrb[0].mxu1 %v497_v11 }
  0x23   :  { %458 = vmatprep.mubr.bf16.mxu0 %v498_v12  ;;  %466 = vmatprep.mubr.bf16.mxu1 %v499_v13 }
  0x2a   :  { %459 = vmatmul.mubr.bf16.gmra.mrb[4].mxu0 %v500_v14  ;;  %467 = vmatmul.mubr.bf16.gmra.mrb[4].mxu1 %v501_v15 }
  0xf5   :  { %v456_v17 = vpop.f32.mrb[0].mxu0  ;;  %v464_v19 = vpop.f32.mrb[0].mxu1 }
  0xf6   :  { %v339_v21 = vadd.f32 %v456_v17, %v578_v16  ;;  %v347_v22 = vadd.f32 %v464_v19, %v578_v16  ;;  %v216_v23 = vpop.f32.mrb[1].mxu0  ;;  %v248_v25 = vpop.f32.mrb[1].mxu1 }
  0xf7   :  { %v337_v27 = vadd.f32 %v578_v16, %v216_v23  ;;  %v345_v28 = vadd.f32 %v578_v16, %v248_v25  ;;  %v457_v29 = vpop.f32.mrb[2].mxu0  ;;  %v465_v31 = vpop.f32.mrb[2].mxu1 }
  0xf8   :  { %v371_v33 = vadd.f32 %v355_v18, %v339_v21  ;;  %v379_v34 = vadd.f32 %v363_v20, %v347_v22  ;;  %v340_v35 = vadd.f32 %v457_v29, %v578_v16  ;;  %v348_v36 = vadd.f32 %v465_v31, %v578_v16  ;;  %v219_v37 = vpop.f32.mrb[3].mxu0  ;;  %v251_v39 = vpop.f32.mrb[3].mxu1 }
  0xf9   :  { %v369_v41 = vadd.f32 %v353_v24, %v337_v27  ;;  %v377_v42 = vadd.f32 %v361_v26, %v345_v28  ;;  %v338_v43 = vadd.f32 %v578_v16, %v219_v37  ;;  %v346_v44 = vadd.f32 %v578_v16, %v251_v39 }
  0xfa   :  { %387 = vst [vmem:[%s696_s4 + $0x10] sm:$0xff] %v371_v33  ;;  %395 = vst [vmem:[%s696_s4 + $0x50] sm:$0xff] %v379_v34  ;;  %v372_v45 = vadd.f32 %v356_v30, %v340_v35  ;;  %v380_v46 = vadd.f32 %v364_v32, %v348_v36 }
  0xfb   :  { %385 = vst [vmem:[%s696_s4] sm:$0xff] %v369_v41  ;;  %393 = vst [vmem:[%s696_s4 + $0x40] sm:$0xff] %v377_v42  ;;  %v370_v47 = vadd.f32 %v354_v38, %v338_v43  ;;  %v378_v48 = vadd.f32 %v362_v40, %v346_v44 }
  0xfc   :  { %388 = vst [vmem:[%s696_s4 + $0x18] sm:$0xff] %v372_v45  ;;  %396 = vst [vmem:[%s696_s4 + $0x58] sm:$0xff] %v380_v46 }
  0xfd   :  { %386 = vst [vmem:[%s696_s4 + $0x8] sm:$0xff] %v370_v47  ;;  %394 = vst [vmem:[%s696_s4 + $0x48] sm:$0xff] %v378_v48  ;;  %v460_v49 = vpop.f32.mrb[4].mxu0  ;;  %v468_v51 = vpop.f32.mrb[4].mxu1 }
  0xfe   :  { %v343_v53 = vadd.f32 %v460_v49, %v578_v16  ;;  %v351_v54 = vadd.f32 %v468_v51, %v578_v16  ;;  %v232_v55 = vpop.f32.mrb[5].mxu0  ;;  %v264_v57 = vpop.f32.mrb[5].mxu1 }
  0xff   :  { %v341_v59 = vadd.f32 %v578_v16, %v232_v55  ;;  %v349_v60 = vadd.f32 %v578_v16, %v264_v57  ;;  %v461_v61 = vpop.f32.mrb[6].mxu0  ;;  %v469_v63 = vpop.f32.mrb[6].mxu1 }
 0x100   :  { %v375_v1 = vadd.f32 %v359_v50, %v343_v53  ;;  %v383_v2 = vadd.f32 %v367_v52, %v351_v54  ;;  %v344_v3 = vadd.f32 %v461_v61, %v578_v16  ;;  %v352_v4 = vadd.f32 %v469_v63, %v578_v16  ;;  %v235_v5 = vpop.f32.mrb[7].mxu0  ;;  %v267_v7 = vpop.f32.mrb[7].mxu1 }
 0x101   :  { %v373_v9 = vadd.f32 %v357_v56, %v341_v59  ;;  %v381_v10 = vadd.f32 %v365_v58, %v349_v60  ;;  %v342_v11 = vadd.f32 %v578_v16, %v235_v5  ;;  %v350_v12 = vadd.f32 %v578_v16, %v267_v7 }
 0x102   :  { %391 = vst [vmem:[%s696_s4 + $0x30] sm:$0xff] %v375_v1  ;;  %399 = vst [vmem:[%s696_s4 + $0x70] sm:$0xff] %v383_v2  ;;  %v376_v13 = vadd.f32 %v360_v62, %v344_v3  ;;  %v384_v14 = vadd.f32 %v368_v0, %v352_v4 }
 0x103   :  { %389 = vst [vmem:[%s696_s4 + $0x20] sm:$0xff] %v373_v9  ;;  %397 = vst [vmem:[%s696_s4 + $0x60] sm:$0xff] %v381_v10  ;;  %v374_v15 = vadd.f32 %v358_v6, %v342_v11  ;;  %v382_v16 = vadd.f32 %v366_v8, %v350_v12 }
 0x104   :  { %392 = vst [vmem:[%s696_s4 + $0x38] sm:$0xff] %v376_v13  ;;  %400 = vst [vmem:[%s696_s4 + $0x78] sm:$0xff] %v384_v14 }
 0x105   :  { %390 = vst [vmem:[%s696_s4 + $0x28] sm:$0xff] %v374_v15  ;;  %398 = vst [vmem:[%s696_s4 + $0x68] sm:$0xff] %v382_v16 }

// kernel: _lambda_.45
= control target key start
LH: loop header
LB: loop body
LE: loop exit
PB: predicated region body
PF: predicated region fallthrough
CT: control target
= control target key end

     0   :  { %s2026_s12 = smov 0   ;;  %s2028_s13 = smov 0   ;;  %s2306_s0 = inlined_call_operand.vmem [shape: f32[2,10,10,64], index: 0, kind: input, shape index: {}]   ;;  %s2307_s1 = inlined_call_operand.vmem [shape: bf16[576,128], index: 1, kind: input, shape index: {}]   ;;  %s2308_s2 = inlined_call_operand.vmem [shape: f32[1,128], index: 2, kind: input, shape index: {}]   ;;  %s2309_s3 = inlined_call_operand.vmem [shape: f32[2,64,128], index: 3, kind: output, shape index: {}]  }
   0x1   :  { %s2030_s14 = smov 0  }
   0x2 LB: > { %s25_s15 = sadd.s32 1, %s2000_s13  ;;  %p1505_p0 = scmp.ge.s32.totalorder %s2004_s14, 1  ;;  %s2004_s14 = sphi %s2030_s14, %s13_s14   ;;  %s2000_s13 = sphi %s2028_s13, %s2311_s13   ;;  %s1996_s12 = sphi %s2026_s12, %s2310_s12  }
   0x3   : > { %p27_p1 = scmp.ge.s32.totalorder %s25_s15, 2  ;;  %p168_p2 = scmp.lt.s32.totalorder %s2004_s14, 3 }
   0x5   : > { %s2313_s15 = smov (%p27_p1, %s25_s15), 0  ;;  %p169_p3 = pnand %p1505_p0, %p168_p2 }
   0x6   : > { %v1946_v0 = vld [vmem:[%s2307_s1 + $0x20] sm:$0xff] (!%p169_p3)   ;;  %p202_p4 = scmp.lt.s32.totalorder (!%p169_p3), %s1996_s12, 1  ;;  %v1948_v2 = vld [vmem:[%s2307_s1 + $0x28] sm:$0xff] (!%p169_p3)   ;;  %v1950_v4 = vld [vmem:[%s2307_s1 + $0x30] sm:$0xff] (!%p169_p3)   ;;  %vm287_vm0 = vcmask (!%p169_p3), 523264  }
   0x7   : > { %172 = sbr.rel (%p169_p3) target bundleno = 308 (0x134), region = 32  ;;  %v1947_v1 = vld [vmem:[%s2307_s1 + $0x80] sm:$0xff] (!%p169_p3)   ;;  %1705 = vmatprep.subr.bf16.mxu1 (!%p169_p3), %v1946_v0  ;;  %v1949_v3 = vld [vmem:[%s2307_s1 + $0x88] sm:$0xff] (!%p169_p3)   ;;  %v1951_v5 = vld [vmem:[%s2307_s1 + $0x90] sm:$0xff] (!%p169_p3)  }
   0x8   : > { %1769 = vmatprep.subr.bf16.mxu0 (!%p169_p3), %v1947_v1  ;;  %1706 = vmatpush3.bf16.msra.mxu1 (!%p169_p3), %v1946_v0  ;;  %v1952_v6 = vld [vmem:[%s2307_s1 + $0x38] sm:$0xff] (!%p169_p3)   ;;  %v1954_v14 = vld [vmem:[%s2307_s1] sm:$0xff] (!%p169_p3)   ;;  %v1956_v21 = vld [vmem:[%s2307_s1 + $0x8] sm:$0xff] (!%p169_p3)  }
   0x9   : > { %1770 = vmatpush3.bf16.msra.mxu0 (!%p169_p3), %v1947_v1  ;;  %1707 = vmatprep.subr.bf16.mxu1 (!%p169_p3), %v1948_v2  ;;  %v1953_v10 = vld [vmem:[%s2307_s1 + $0x98] sm:$0xff] (!%p169_p3)   ;;  %v1955_v16 = vld [vmem:[%s2307_s1 + $0xa0] sm:$0xff] (!%p169_p3)   ;;  %v1957_v22 = vld [vmem:[%s2307_s1 + $0xa8] sm:$0xff] (!%p169_p3)  }
   0xa   : > { %1771 = vmatprep.subr.bf16.mxu0 (!%p169_p3), %v1949_v3  ;;  %v1958_v26 = vld [vmem:[%s2307_s1 + $0x10] sm:$0xff] (!%p169_p3)   ;;  %v1960_v35 = vld [vmem:[%s2307_s1 + $0x18] sm:$0xff] (!%p169_p3)   ;;  %v1962_v41 = vld [vmem:[%s2307_s1 + $0x40] sm:$0xff] (!%p169_p3)  }
   0xb   : > { %v1959_v28 = vld [vmem:[%s2307_s1 + $0xb0] sm:$0xff] (!%p169_p3)   ;;  %v1961_v36 = vld [vmem:[%s2307_s1 + $0xb8] sm:$0xff] (!%p169_p3)   ;;  %v1963_v44 = vld [vmem:[%s2307_s1 + $0xc0] sm:$0xff] (!%p169_p3)  }
   0xc   : > { %1708 = vmatpush3.bf16.msra.mxu1 (!%p169_p3), %v1948_v2  ;;  %v1964_v51 = vld [vmem:[%s2307_s1 + $0x48] sm:$0xff] (!%p169_p3)   ;;  %v1966_v57 = vld [vmem:[%s2307_s1 + $0x50] sm:$0xff] (!%p169_p3)   ;;  %v1968_v0 = vld [vmem:[%s2307_s1 + $0x58] sm:$0xff] (!%p169_p3)  }
   0xd   : > { %1772 = vmatpush3.bf16.msra.mxu0 (!%p169_p3), %v1949_v3  ;;  %1709 = vmatprep.subr.bf16.mxu1 (!%p169_p3), %v1950_v4  ;;  %v1965_v52 = vld [vmem:[%s2307_s1 + $0xc8] sm:$0xff] (!%p169_p3)   ;;  %v1967_v60 = vld [vmem:[%s2307_s1 + $0xd0] sm:$0xff] (!%p169_p3)   ;;  %v1969_v1 = vld [vmem:[%s2307_s1 + $0xd8] sm:$0xff] (!%p169_p3)  }
   0xe   : > { %s2315_s12 = smov (!%p202_p4, %s1996_s12), 1  ;;  %1773 = vmatprep.subr.bf16.mxu0 %v1951_v5  ;;  %v1970_v3 = vld [vmem:[%s2307_s1 + $0x60] sm:$0xff]  }
   0xf   : > { %s1921_s26 = smul.u32 160, %s2315_s12 }
  0x10   : > { %1710 = vmatpush3.bf16.msra.mxu1 %v1950_v4  ;;  %v1971_v4 = vld [vmem:[%s2307_s1 + $0xe0] sm:$0xff]  }
  0x11   : > { %s2068_s4 = scalar_lea.vmem %s2306_s0, %s1921_s26  ;;  %1774 = vmatpush3.bf16.msra.mxu0 %v1951_v5  ;;  %1711 = vmatprep.subr.bf16.mxu1 %v1952_v6 }
  0x12   : > { %v243_v7 = vld [vmem:[%s2068_s4 + $0x1] sm:$0xff]  ;;  %v244_v8 = vld [vmem:[%s2068_s4 + $0x11] sm:$0xff]  ;;  %1775 = vmatprep.subr.bf16.mxu0 %v1953_v10 }
  0x13   : > { %v1550_v9 = vld [vmem:[%s2068_s4 + $0x21] sm:$0xff]  ;;  %v251_v11 = vpack.c.bf16 %v244_v8, %v243_v7  ;;  %v246_v13 = vld [vmem:[%s2068_s4 + $0x31] sm:$0xff] }
  0x14   : > { %v733_v12 = vpack.c.bf16 %v1550_v9, %v244_v8  ;;  %v1552_v15 = vld [vmem:[%s2068_s4 + $0x41] sm:$0xff]  ;;  %v2089_v17 = vpack.c.bf16 %v246_v13, %v1550_v9  ;;  %v248_v18 = vld [vmem:[%s2068_s4 + $0x51] sm:$0xff]  ;;  %1712 = vmatpush3.bf16.msra.mxu1 %v1952_v6 }
  0x15   : > { %1713 = vmatprep.mubr.msk.bf16.mxu1 %vm287_vm0, %v251_v11  ;;  %v734_v19 = vpack.c.bf16 %v1552_v15, %v246_v13  ;;  %v1554_v20 = vld [vmem:[%s2068_s4 + $0x61] sm:$0xff]  ;;  %1776 = vmatpush3.bf16.msra.mxu0 %v1953_v10  ;;  %v2099_v23 = vpack.c.bf16 %v248_v18, %v1552_v15  ;;  %v250_v25 = vld [vmem:[%s2068_s4 + $0x71] sm:$0xff] }
  0x16   : > { %1777 = vmatprep.mubr.msk.bf16.mxu0 %vm287_vm0, %v733_v12  ;;  %1721 = vmatprep.subr.bf16.mxu1 %v1954_v14  ;;  %v735_v24 = vpack.c.bf16 %v1554_v20, %v248_v18  ;;  %v2109_v27 = vld [vmem:[%s2068_s4 + $0x81] sm:$0xff]  ;;  %v2118_v30 = vpack.c.bf16 %v250_v25, %v1554_v20  ;;  %v2121_v31 = vld [vmem:[%s2068_s4 + $0x10] sm:$0xff]  ;;  %v1976_v15 = vld [vmem:[%s2307_s1 + $0x78] sm:$0xff]  }
  0x17   : > { %1785 = vmatprep.subr.bf16.mxu0 %v1955_v16  ;;  %1714 = vmatmul.mubr.msk.bf16.vlgmr.msra.gmra.mrb[0].mxu1 %vm287_vm0, %v2089_v17  ;;  %v223_v29 = vld [vmem:[%s2068_s4] sm:$0xff]  ;;  %v2124_v32 = vld [vmem:[%s2068_s4 + $0x12] sm:$0xff]  ;;  %v736_v33 = vpack.c.bf16 %v2109_v27, %v250_v25  ;;  %v1972_v6 = vld [vmem:[%s2307_s1 + $0x68] sm:$0xff]  }
  0x18   : > { %1778 = vmatmul.mubr.msk.bf16.vlgmr.msra.gmra.mrb[0].mxu0 %vm287_vm0, %v734_v19  ;;  %1722 = vmatpush3.bf16.msra.mxu1 %v1954_v14  ;;  %v2128_v34 = vld [vmem:[%s2068_s4 + $0x22] sm:$0xff]  ;;  %v231_v37 = vpack.c.bf16 %v2121_v31, %v223_v29  ;;  %v2145_v40 = vld [vmem:[%s2068_s4 + $0x30] sm:$0xff] }
  0x19   : > { %1786 = vmatpush3.bf16.msra.mxu0 %v1955_v16  ;;  %1723 = vmatprep.subr.bf16.mxu1 %v1956_v21  ;;  %v862_v38 = vpack.c.bf16 %v2128_v34, %v2124_v32  ;;  %v2142_v39 = vld [vmem:[%s2068_s4 + $0x20] sm:$0xff]  ;;  %v1567_v42 = vld [vmem:[%s2068_s4 + $0x32] sm:$0xff]  ;;  %v1973_v7 = vld [vmem:[%s2307_s1 + $0xe8] sm:$0xff]  }
  0x1a   : > { %1787 = vmatprep.subr.bf16.mxu0 %v1957_v22  ;;  %1717 = vmatprep.mubr.msk.bf16.mxu1 %vm287_vm0, %v2099_v23  ;;  %v1568_v43 = vld [vmem:[%s2068_s4 + $0x42] sm:$0xff]  ;;  %v2161_v46 = vld [vmem:[%s2068_s4 + $0x50] sm:$0xff]  ;;  %v232_v47 = vpack.c.bf16 %v2145_v40, %v2142_v39  ;;  %v2218_v5 = vpack.c.bf16 %v1567_v42, %v2128_v34  ;;  %v1977_v16 = vld [vmem:[%s2307_s1 + $0xf8] sm:$0xff]   ;;  %v604_v18 = vpack.c.bf16 %v2142_v39, %v2121_v31 }
  0x1b   : > { %1781 = vmatprep.mubr.msk.bf16.mxu0 %vm287_vm0, %v735_v24  ;;  %v2157_v45 = vld [vmem:[%s2068_s4 + $0x40] sm:$0xff]  ;;  %v1569_v48 = vld [vmem:[%s2068_s4 + $0x52] sm:$0xff]  ;;  %v863_v49 = vpack.c.bf16 %v1568_v43, %v1567_v42 }
  0x1c   : > { %1724 = vmatpush3.bf16.msra.mxu1 %v1956_v21  ;;  %v1570_v50 = vld [vmem:[%s2068_s4 + $0x62] sm:$0xff]  ;;  %v233_v53 = vpack.c.bf16 %v2161_v46, %v2157_v45  ;;  %v2180_v55 = vld [vmem:[%s2068_s4 + $0x70] sm:$0xff]  ;;  %v2226_v8 = vpack.c.bf16 %v1569_v48, %v1568_v43  ;;  %v605_v20 = vpack.c.bf16 %v2157_v45, %v2145_v40  ;;  %v1629_v45 = vld [vmem:[%s2308_s2] ss:$0 sm:$0xff] }
  0x1d   : > { %1788 = vmatpush3.bf16.msra.mxu0 %v1957_v22  ;;  %1725 = vmatprep.subr.bf16.mxu1 %v1958_v26  ;;  %v2177_v54 = vld [vmem:[%s2068_s4 + $0x60] sm:$0xff]  ;;  %v864_v56 = vpack.c.bf16 %v1570_v50, %v1569_v48  ;;  %v1571_v58 = vld [vmem:[%s2068_s4 + $0x72] sm:$0xff]  ;;  %v1979_v21 = vld [vmem:[%s2307_s1 + $0x108] sm:$0xff]  }
  0x1e   : > { %1789 = vmatprep.subr.bf16.mxu0 %v1959_v28  ;;  %v2189_v59 = vld [vmem:[%s2068_s4 + $0x82] sm:$0xff]  ;;  %v234_v61 = vpack.c.bf16 %v2180_v55, %v2177_v54  ;;  %v1974_v9 = vld [vmem:[%s2307_s1 + $0x70] sm:$0xff]   ;;  %v477_v13 = vpack.c.bf16 %v1571_v58, %v1570_v50  ;;  %v606_v22 = vpack.c.bf16 %v2177_v54, %v2161_v46 }
  0x1f   : > { %1718 = vmatmul.mubr.msk.bf16.gmra.mrb[4].mxu1 %vm287_vm0, %v2118_v30  ;;  %v466_v62 = vld [vmem:[%s2068_s4 + $0x2] sm:$0xff]  ;;  %v865_v63 = vpack.c.bf16 %v2189_v59, %v1571_v58  ;;  %v1588_v11 = vld [vmem:[%s2068_s4 + $0x90] sm:$0xff] }
  0x20   : > { %1782 = vmatmul.mubr.msk.bf16.gmra.mrb[4].mxu0 %vm287_vm0, %v736_v33  ;;  %1726 = vmatpush3.bf16.msra.mxu1 %v1958_v26  ;;  %v474_v2 = vpack.c.bf16 %v2124_v32, %v466_v62  ;;  %v1587_v10 = vld [vmem:[%s2068_s4 + $0x80] sm:$0xff]  ;;  %v1975_v12 = vld [vmem:[%s2307_s1 + $0xf0] sm:$0xff]   ;;  %v1981_v26 = vld [vmem:[%s2307_s1 + $0x118] sm:$0xff]  }
  0x21   : > { %1790 = vmatpush3.bf16.msra.mxu0 %v1959_v28  ;;  %1727 = vmatprep.subr.bf16.mxu1 %v1960_v35  ;;  %v995_v14 = vpack.c.bf16 %v1588_v11, %v1587_v10  ;;  %v1978_v19 = vld [vmem:[%s2307_s1 + $0x100] sm:$0xff]   ;;  %v1980_v24 = vld [vmem:[%s2307_s1 + $0x110] sm:$0xff]   ;;  %v607_v25 = vpack.c.bf16 %v1587_v10, %v2180_v55 }
  0x22   : > { %1791 = vmatprep.subr.bf16.mxu0 %v1961_v36  ;;  %1729 = vmatprep.mubr.msk.bf16.mxu1 %vm287_vm0, %v231_v37  ;;  %v1620_v28 = vld [vmem:[%s2068_s4 + $0x92] sm:$0xff] }
  0x23   : > { %1793 = vmatprep.mubr.msk.bf16.mxu0 %vm287_vm0, %v862_v38 }
  0x24   : > { %1728 = vmatpush3.bf16.msra.mxu1 %v1960_v35 }
  0x25   : > { %1792 = vmatpush3.bf16.msra.mxu0 %v1961_v36  ;;  %1737 = vmatprep.subr.bf16.mxu1 %v1962_v41 }
  0x26   : > { %1801 = vmatprep.subr.bf16.mxu0 %v1963_v44 }
  0x27   : > { %1730 = vmatmul.mubr.msk.bf16.vlgmr.msra.gmra.mrb[0].mxu1 %vm287_vm0, %v232_v47 }
  0x28   : > { %1794 = vmatmul.mubr.msk.bf16.vlgmr.msra.gmra.mrb[0].mxu0 %vm287_vm0, %v863_v49  ;;  %1738 = vmatpush3.bf16.msra.mxu1 %v1962_v41 }
  0x29   : > { %1802 = vmatpush3.bf16.msra.mxu0 %v1963_v44  ;;  %1739 = vmatprep.subr.bf16.mxu1 %v1964_v51 }
  0x2a   : > { %1803 = vmatprep.subr.bf16.mxu0 %v1965_v52  ;;  %1733 = vmatprep.mubr.msk.bf16.mxu1 %vm287_vm0, %v233_v53 }
  0x2b   : > { %1797 = vmatprep.mubr.msk.bf16.mxu0 %vm287_vm0, %v864_v56 }
  0x2c   : > { %1740 = vmatpush3.bf16.msra.mxu1 %v1964_v51 }
  0x2d   : > { %1804 = vmatpush3.bf16.msra.mxu0 %v1965_v52  ;;  %1741 = vmatprep.subr.bf16.mxu1 %v1966_v57 }
  0x2e   : > { %1805 = vmatprep.subr.bf16.mxu0 %v1967_v60 }
  0x2f   : > { %1734 = vmatmul.mubr.msk.bf16.gmra.mrb[4].mxu1 %vm287_vm0, %v234_v61 }
  0x30   : > { %1798 = vmatmul.mubr.msk.bf16.gmra.mrb[4].mxu0 %vm287_vm0, %v865_v63  ;;  %1742 = vmatpush3.bf16.msra.mxu1 %v1966_v57 }
  0x31   : > { %1806 = vmatpush3.bf16.msra.mxu0 %v1967_v60  ;;  %1743 = vmatprep.subr.bf16.mxu1 %v1968_v0 }
  0x32   : > { %1807 = vmatprep.subr.bf16.mxu0 %v1969_v1  ;;  %1745 = vmatprep.mubr.msk.bf16.mxu1 %vm287_vm0, %v474_v2 }
  0x33   : > { %1809 = vmatprep.mubr.msk.bf16.mxu0 %vm287_vm0, %v232_v47 }
  0x34   : > { %1744 = vmatpush3.bf16.msra.mxu1 %v1968_v0 }
  0x35   : > { %1808 = vmatpush3.bf16.msra.mxu0 %v1969_v1  ;;  %1753 = vmatprep.subr.bf16.mxu1 %v1970_v3 }
  0x36   : > { %1817 = vmatprep.subr.bf16.mxu0 %v1971_v4 }
  0x37   : > { %1746 = vmatmul.mubr.msk.bf16.vlgmr.msra.gmra.mrb[0].mxu1 %vm287_vm0, %v2218_v5 }
  0x38   : > { %1810 = vmatmul.mubr.msk.bf16.vlgmr.msra.gmra.mrb[0].mxu0 %vm287_vm0, %v233_v53  ;;  %1754 = vmatpush3.bf16.msra.mxu1 %v1970_v3 }
  0x39   : > { %1818 = vmatpush3.bf16.msra.mxu0 %v1971_v4  ;;  %1755 = vmatprep.subr.bf16.mxu1 %v1972_v6 }
  0x3a   : > { %1819 = vmatprep.subr.bf16.mxu0 %v1973_v7  ;;  %1749 = vmatprep.mubr.msk.bf16.mxu1 %vm287_vm0, %v2226_v8 }
  0x3b   : > { %1813 = vmatprep.mubr.msk.bf16.mxu0 %vm287_vm0, %v234_v61 }
  0x3c   : > { %1756 = vmatpush3.bf16.msra.mxu1 %v1972_v6 }
  0x3d   : > { %1820 = vmatpush3.bf16.msra.mxu0 %v1973_v7  ;;  %1757 = vmatprep.subr.bf16.mxu1 %v1974_v9 }
  0x3e   : > { %1821 = vmatprep.subr.bf16.mxu0 %v1975_v12 }
  0x3f   : > { %1750 = vmatmul.mubr.msk.bf16.gmra.mrb[4].mxu1 %vm287_vm0, %v477_v13 }
  0x40   : > { %1814 = vmatmul.mubr.msk.bf16.gmra.mrb[4].mxu0 %vm287_vm0, %v995_v14  ;;  %1758 = vmatpush3.bf16.msra.mxu1 %v1974_v9 }
  0x41   : > { %1822 = vmatpush3.bf16.msra.mxu0 %v1975_v12  ;;  %1759 = vmatprep.subr.bf16.mxu1 %v1976_v15 }
  0x42   : > { %1823 = vmatprep.subr.bf16.mxu0 %v1977_v16  ;;  %1761 = vmatprep.mubr.msk.bf16.mxu1 %vm287_vm0, %v604_v18 }
  0x43   : > { %1825 = vmatprep.mubr.msk.bf16.mxu0 %vm287_vm0, %v2089_v17  ;;  %v1604_v17 = vld [vmem:[%s2068_s4 + $0x91] sm:$0xff]  ;;  %s1632_s4 = sshll.u32 %s2315_s12, 6 }
  0x44   : > { %1760 = vmatpush3.bf16.msra.mxu1 %v1976_v15  ;;  %s221_s29 = scalar_lea.vmem %s2309_s3, %s1632_s4 }
  0x45   : > { %1824 = vmatpush3.bf16.msra.mxu0 %v1977_v16  ;;  %1849 = vmatprep.subr.bf16.mxu1 %v1978_v19 }
  0x46   : > { %1833 = vmatprep.subr.bf16.mxu0 %v1978_v19 }
  0x47   : > { %1762 = vmatmul.mubr.msk.bf16.vlgmr.msra.gmra.mrb[0].mxu1 %vm287_vm0, %v605_v20 }
  0x48   : > { %1826 = vmatmul.mubr.msk.bf16.vlgmr.msra.gmra.mrb[0].mxu0 %vm287_vm0, %v2099_v23  ;;  %1853 = vmatpush3.bf16.msra.mxu1 %v1978_v19  ;;  %v1124_v23 = vpack.c.bf16 %v1604_v17, %v2109_v27  ;;  %v1253_v27 = vpack.c.bf16 %v1620_v28, %v2189_v59 }
  0x49   : > { %1834 = vmatpush3.bf16.msra.mxu0 %v1978_v19  ;;  %1850 = vmatprep.subr.bf16.mxu1 %v1979_v21 }
  0x4a   : > { %1835 = vmatprep.subr.bf16.mxu0 %v1979_v21  ;;  %1765 = vmatprep.mubr.msk.bf16.mxu1 %vm287_vm0, %v606_v22 }
  0x4b   : > { %1829 = vmatprep.mubr.msk.bf16.mxu0 %vm287_vm0, %v2118_v30 }
  0x4c   : > { %1854 = vmatpush3.bf16.msra.mxu1 %v1979_v21 }
  0x4d   : > { %1836 = vmatpush3.bf16.msra.mxu0 %v1979_v21  ;;  %1851 = vmatprep.subr.bf16.mxu1 %v1980_v24 }
  0x4e   : > { %1837 = vmatprep.subr.bf16.mxu0 %v1980_v24 }
  0x4f   : > { %1766 = vmatmul.mubr.msk.bf16.gmra.mrb[4].mxu1 %vm287_vm0, %v607_v25 }
  0x50   : > { %1830 = vmatmul.mubr.msk.bf16.gmra.mrb[4].mxu0 %vm287_vm0, %v1124_v23  ;;  %1855 = vmatpush3.bf16.msra.mxu1 %v1980_v24 }
  0x51   : > { %1838 = vmatpush3.bf16.msra.mxu0 %v1980_v24  ;;  %1852 = vmatprep.subr.bf16.mxu1 %v1981_v26 }
  0x52   : > { %1839 = vmatprep.subr.bf16.mxu0 %v1981_v26  ;;  %1841 = vmatprep.mubr.msk.bf16.mxu0 %vm287_vm0, %v2218_v5 }
  0x53   : > { %1845 = vmatprep.mubr.msk.bf16.mxu1 %vm287_vm0, %v477_v13 }
  0x54   : > { %1856 = vmatpush3.bf16.msra.mxu1 %v1981_v26 }
  0x55   : > { %1840 = vmatpush3.bf16.msra.mxu0 %v1981_v26 }
  0x57   : > { %1846 = vmatmul.mubr.msk.bf16.vlgmr.msra.gmra.mrb[8].mxu1 %vm287_vm0, %v1253_v27 }
  0x58   : > { %1842 = vmatmul.mubr.msk.bf16.vlgmr.msra.gmra.mrb[0].mxu0 %vm287_vm0, %v2226_v8 }
 0x11a   : > { %v1763_v29 = vpop.f32.mrb[0].mxu1 }
 0x11b   : > { %v686_v30 = vpop.f32.mrb[1].mxu1 }
 0x11c   : > { %v1764_v31 = vpop.f32.mrb[2].mxu1 }
 0x11d   : > { %v689_v32 = vpop.f32.mrb[3].mxu1 }
 0x122   : > { %v1767_v33 = vpop.f32.mrb[4].mxu1 }
 0x123   : > { %v1831_v34 = vpop.f32.mrb[4].mxu0  ;;  %v702_v35 = vpop.f32.mrb[5].mxu1 }
 0x124   : > { %v1861_v36 = vadd.f32 %v1831_v34, %v1767_v33  ;;  %v1219_v37 = vpop.f32.mrb[5].mxu0  ;;  %v1768_v38 = vpop.f32.mrb[6].mxu1 }
 0x125   : > { %v1863_v39 = vadd.f32 %v1219_v37, %v702_v35  ;;  %v1832_v40 = vpop.f32.mrb[6].mxu0  ;;  %v705_v41 = vpop.f32.mrb[7].mxu1 }
 0x126   : > { %v1865_v42 = vadd.f32 %v1832_v40, %v1768_v38  ;;  %v1222_v43 = vpop.f32.mrb[7].mxu0 }
 0x127   : > { %v1867_v44 = vadd.f32 %v1222_v43, %v705_v41 }
 0x12a   : > { %v1847_v46 = vpop.f32.mrb[8].mxu1 }
 0x12b   : > { %v1843_v47 = vpop.f32.mrb[0].mxu0  ;;  %v1862_v48 = vadd.f32 %v1861_v36, %v1847_v46  ;;  %v1348_v49 = vpop.f32.mrb[9].mxu1 }
 0x12c   : > { %v1857_v50 = vadd.f32 %v1843_v47, %v1763_v29  ;;  %v1332_v51 = vpop.f32.mrb[1].mxu0  ;;  %v1864_v52 = vadd.f32 %v1863_v39, %v1348_v49  ;;  %v1848_v53 = vpop.f32.mrb[10].mxu1 }
 0x12d   : > { %v1384_v54 = vadd.f32 %v1862_v48, %v1629_v45  ;;  %v1858_v55 = vadd.f32 %v1332_v51, %v686_v30  ;;  %v1844_v56 = vpop.f32.mrb[2].mxu0  ;;  %v1866_v57 = vadd.f32 %v1865_v42, %v1848_v53  ;;  %v1351_v58 = vpop.f32.mrb[11].mxu1 }
 0x12e   : > { %v1380_v59 = vadd.f32 %v1857_v50, %v1629_v45  ;;  %v1382_v60 = vadd.f32 %v1864_v52, %v1629_v45  ;;  %v1859_v61 = vadd.f32 %v1844_v56, %v1764_v31  ;;  %v1335_v62 = vpop.f32.mrb[3].mxu0  ;;  %v1868_v63 = vadd.f32 %v1867_v44, %v1351_v58 }
 0x12f   : > { %1392 = vst [vmem:[%s221_s29 + $0x30] sm:$0xff] %v1384_v54  ;;  %v1378_v0 = vadd.f32 %v1858_v55, %v1629_v45  ;;  %v1385_v1 = vadd.f32 %v1866_v57, %v1629_v45  ;;  %v1860_v2 = vadd.f32 %v1335_v62, %v689_v32 }
 0x130   : > { %1388 = vst [vmem:[%s221_s29 + $0x10] sm:$0xff] %v1380_v59  ;;  %1390 = vst [vmem:[%s221_s29 + $0x20] sm:$0xff] %v1382_v60  ;;  %v1381_v3 = vadd.f32 %v1859_v61, %v1629_v45  ;;  %v1383_v4 = vadd.f32 %v1868_v63, %v1629_v45 }
 0x131   : > { %1386 = vst [vmem:[%s221_s29] sm:$0xff] %v1378_v0  ;;  %1393 = vst [vmem:[%s221_s29 + $0x38] sm:$0xff] %v1385_v1  ;;  %v1379_v5 = vadd.f32 %v1860_v2, %v1629_v45 }
 0x132   : > { %1389 = vst [vmem:[%s221_s29 + $0x18] sm:$0xff] %v1381_v3  ;;  %1391 = vst [vmem:[%s221_s29 + $0x28] sm:$0xff] %v1383_v4 }
 0x133   : > { %1387 = vst [vmem:[%s221_s29 + $0x8] sm:$0xff] %v1379_v5 }
 0x134 PF: > { %s13_s14 = sadd.s32 1, %s2004_s14   ;;  %s2310_s12 = smov %s2000_s13 }
 0x135   : > { %p10_p5 = scmp.ge.s32.totalorder %s13_s14, 4   ;;  %s2311_s13 = smov %s2313_s15 }
 0x137   :  { %12 = sbr.rel (!%p10_p5) target bundleno = 2 (0x2), region = 70 }

</bundles_post_ra>
